<compile_context>
chip_gen: v5e
topology: v5e:2x2
jax: 0.10.0
libtpu: 0.0.40
codegen_flags: <defaults>
</compile_context>

<pallas_src>
import functools

import jax
import jax.numpy as jnp
from jax import lax
from jax.experimental import pallas as pl
from jax.experimental.pallas import tpu as pltpu


def _round_up(x, m):
    return -(-x // m) * m


def _loss_term(dg, pg, approx_recip):
    """ReLU(-Softsign(Softshrink_1(dg)) * (pg/(|pg|+1e-8)) * log(1+pg^2))."""
    ss = dg - jnp.clip(dg, -1.0, 1.0)                 # Softshrink(lambda=1)
    if approx_recip:
        # Denominator >= 1 -> EUP approximate reciprocal is well conditioned.
        dw = ss * pl.reciprocal(1.0 + jnp.abs(ss), approx=True)   # Softsign
    else:
        dw = ss / (1.0 + jnp.abs(ss))
    disp_direct = pg / (jnp.abs(pg) + 1e-8)           # exact (tiny |pg| safe)
    dv = jnp.log(1.0 + pg * pg)
    return jnp.maximum(-dw * disp_direct * dv, 0.0)


def _lrl_kernel(disp_ref, depth_ref, vote_ref, out_ref,
                disp_cs, depth_cs, vote_cs, *,
                rad, dilation, topK, H, W, pad, row_chunk, col_chunk,
                approx_recip):
    """One grid step: a single (b, c) slice, processed in (row, col) chunks."""
    K = 2 * rad + 1
    d = dilation
    h_ext = row_chunk + 2 * pad
    nr = H // row_chunk
    nc = W // col_chunk

    def process_chunk(r0, c0):
        # --- K column-shifted slabs per input (K lane-offset slices per input
        #     instead of K*K); neighbour loop below uses only sublane offsets.
        for j in range(K):
            off = c0 + j * d
            disp_cs[j] = disp_ref[0, pl.ds(r0, h_ext), pl.ds(off, col_chunk)]
            depth_cs[j] = depth_ref[0, pl.ds(r0, h_ext), pl.ds(off, col_chunk)]
            vote_cs[j] = vote_ref[0, pl.ds(r0, h_ext), pl.ds(off, col_chunk)]

        # Centre pixels of this chunk (column shift j=rad, rows [pad, pad+rc)).
        disp_c = disp_cs[rad, pl.ds(pad, row_chunk), :]
        depth_c = depth_cs[rad, pl.ds(pad, row_chunk), :]

        inf_tile = jnp.full((row_chunk, col_chunk), jnp.inf, jnp.float32)
        zero_tile = jnp.zeros((row_chunk, col_chunk), jnp.float32)
        carry0 = ((inf_tile,) * topK, (zero_tile,) * topK)

        def row_body(i, carry):
            slot_v = list(carry[0])
            slot_t = list(carry[1])
            ro = i * d                       # sublane offset only
            for j in range(K):
                v_n = vote_cs[j, pl.ds(ro, row_chunk), :]
                dg = depth_c - depth_cs[j, pl.ds(ro, row_chunk), :]
                pg = disp_c - disp_cs[j, pl.ds(ro, row_chunk), :]
                term = _loss_term(dg, pg, approx_recip)

                # Branch-free stable sorted insert (slots stay ascending;
                # strict < keeps earliest neighbour on ties == lax.top_k).
                b = [v_n < slot_v[k] for k in range(topK)]
                new_v = [jnp.where(b[0], v_n, slot_v[0])]
                new_t = [jnp.where(b[0], term, slot_t[0])]
                for k in range(1, topK):
                    ins_v = jnp.where(b[k], v_n, slot_v[k])
                    ins_t = jnp.where(b[k], term, slot_t[k])
                    new_v.append(jnp.where(b[k - 1], slot_v[k - 1], ins_v))
                    new_t.append(jnp.where(b[k - 1], slot_t[k - 1], ins_t))
                slot_v, slot_t = new_v, new_t
            return (tuple(slot_v), tuple(slot_t))

        _, slot_t = lax.fori_loop(0, K, row_body, carry0)

        loss_tile = slot_t[0]
        for k in range(1, topK):
            loss_tile = loss_tile + slot_t[k]
        part = jnp.sum(loss_tile, axis=1, keepdims=True)
        return jnp.sum(part, axis=0, keepdims=True)        # (1, 1)

    if nr * nc == 1:
        total = process_chunk(0, 0)
    else:
        def chunk_body(idx, acc):
            ri = idx // nc
            ci = idx - ri * nc
            r0 = ri * row_chunk
            c0 = ci * col_chunk
            if row_chunk % 8 == 0:
                r0 = pl.multiple_of(r0, 8)
            if col_chunk % 128 == 0:
                c0 = pl.multiple_of(c0, 128)
            return acc + process_chunk(r0, c0)
        total = lax.fori_loop(0, nr * nc, chunk_body,
                              jnp.zeros((1, 1), jnp.float32))

    out_ref[0] = total                      # per-BC partial, no accumulation


def _pick_tiles(H, W, topK):
    """Tile sizes chosen for the 64-entry vreg file, not for VMEM: keep the
    2*topK carried slot tiles at ~<=2 vregs each so they stay register
    resident (no spill traffic onto the 1-wide store slot)."""
    # Lane-axis (column) tile.
    if W <= 256:
        col_chunk = W
    else:
        col_chunk = 1
        for cand in range(256, 0, -1):
            if W % cand == 0:
                col_chunk = cand
                break
    lane_words = _round_up(col_chunk, 128)
    # ~40 vregs budget for the carried (vote, term) slot tiles.
    max_tile_elems = max(1024, (40 // (2 * topK)) * 1024)
    cap = max(8, max_tile_elems // lane_words)
    row_chunk = 1
    for cand in range(min(cap, H), 0, -1):
        if H % cand == 0:
            row_chunk = cand
            break
    return row_chunk, col_chunk


def local_ranking_loss(disp, depth, vote, *, rad=5, dilation=6, topK=8,
                       approx_recip=True):
    """Pallas implementation of Local_Ranking_Loss.forward (returns a scalar)."""
    B, C, H, W = disp.shape
    pad = rad * dilation
    K = 2 * rad + 1
    BC = B * C
    Hp, Wp = H + 2 * pad, W + 2 * pad

    # TODO(synk): move this padding inside the kernel (edge-row/col broadcasts
    # in VMEM) to avoid the (Hp*Wp)/(H*W) HBM traffic blowup and masked DMAs.
    disp_p = jnp.pad(disp.reshape(BC, H, W).astype(jnp.float32),
                     ((0, 0), (pad, pad), (pad, pad)), mode="edge")
    depth_p = jnp.pad(depth.reshape(BC, H, W).astype(jnp.float32),
                      ((0, 0), (pad, pad), (pad, pad)), mode="edge")
    vote_p = jnp.pad(vote.reshape(BC, H, W).astype(jnp.float32),
                     ((0, 0), (pad, pad), (pad, pad)),
                     mode="constant", constant_values=1.0)

    row_chunk, col_chunk = _pick_tiles(H, W, topK)
    h_ext = row_chunk + 2 * pad

    kernel = functools.partial(
        _lrl_kernel, rad=rad, dilation=dilation, topK=topK, H=H, W=W, pad=pad,
        row_chunk=row_chunk, col_chunk=col_chunk, approx_recip=approx_recip)

    # Per-step VMEM estimate: double-buffered input blocks + shift scratch.
    block_bytes = 3 * 2 * _round_up(Hp, 8) * _round_up(Wp, 128) * 4
    scratch_bytes = 3 * K * _round_up(h_ext, 8) * _round_up(col_chunk, 128) * 4
    est = block_bytes + scratch_bytes
    # Only raise the scoped-VMEM limit when needed; cap at 40 MiB so v7x
    # (64 MiB physical / TC) keeps headroom for compiler temps & pipelining.
    vmem_limit = int(min(2 * est, 40 << 20)) if est > (12 << 20) else None

    in_spec = pl.BlockSpec((1, Hp, Wp), lambda g: (g, 0, 0))
    out = pl.pallas_call(
        kernel,
        out_shape=jax.ShapeDtypeStruct((BC, 1, 1), jnp.float32),
        grid=(BC,),
        in_specs=[in_spec, in_spec, in_spec],
        out_specs=pl.BlockSpec((1, 1, 1), lambda g: (g, 0, 0)),
        scratch_shapes=[pltpu.VMEM((K, h_ext, col_chunk), jnp.float32)
                        for _ in range(3)],
        compiler_params=pltpu.CompilerParams(
            dimension_semantics=("parallel",),
            vmem_limit_bytes=vmem_limit),
    )(disp_p, depth_p, vote_p)

    return jnp.sum(out) / jnp.float32(B * C * H * W * topK)


def local_ranking_loss_ref(disp, depth, vote, *, rad=5, dilation=6, topK=8):
    """Pure-JAX reference (mirrors the PyTorch forward)."""
    B, C, H, W = disp.shape
    pad = rad * dilation
    K = 2 * rad + 1

    def unfold(xp):  # (B, C, Hp, Wp) -> (B, C, H, W, N)
        cols = []
        for i in range(K):
            for j in range(K):
                cols.append(xp[:, :, i * dilation:i * dilation + H,
                               j * dilation:j * dilation + W])
        return jnp.stack(cols, axis=-1)

    depth_p = jnp.pad(depth, ((0, 0), (0, 0), (pad, pad), (pad, pad)), mode="edge")
    disp_p = jnp.pad(disp, ((0, 0), (0, 0), (pad, pad), (pad, pad)), mode="edge")
    vote_p = jnp.pad(vote, ((0, 0), (0, 0), (pad, pad), (pad, pad)),
                     mode="constant", constant_values=1.0)

    vote_u = unfold(vote_p)
    _, idx = jax.lax.top_k(-vote_u, topK)          # k smallest of vote
    depth_g = depth[..., None] - unfold(depth_p)
    disp_g = disp[..., None] - unfold(disp_p)
    depth_g = jnp.take_along_axis(depth_g, idx, axis=-1)
    disp_g = jnp.take_along_axis(disp_g, idx, axis=-1)

    disp_direct = disp_g / (jnp.abs(disp_g) + 1e-8)
    dw = jnp.where(depth_g > 1.0, depth_g - 1.0,
                   jnp.where(depth_g < -1.0, depth_g + 1.0, 0.0))
    dw = dw / (1.0 + jnp.abs(dw))
    dv = jnp.log(1.0 + jnp.square(disp_g))
    return jnp.mean(jnp.maximum(-dw * disp_direct * dv, 0.0))


if __name__ == "__main__":
    # Module params: rad=5, dilation=6, topK=8 (no learned weights).
    B, C, H, W = 2, 2, 16, 16
    key = jax.random.PRNGKey(0)
    k1, k2, k3 = jax.random.split(key, 3)
    disp = 2.0 * jax.random.normal(k1, (B, C, H, W), dtype=jnp.float32)
    depth = 3.0 * jax.random.normal(k2, (B, C, H, W), dtype=jnp.float32)
    vote = jax.random.uniform(k3, (B, C, H, W), dtype=jnp.float32)

    loss = jax.block_until_ready(local_ranking_loss(disp, depth, vote))
    loss_ref = jax.block_until_ready(local_ranking_loss_ref(disp, depth, vote))

    assert jnp.isfinite(loss), loss
    # Selection is exact; only the Softsign denominator uses the approximate
    # EUP reciprocal, so a modest tolerance vs. the pure-JAX reference holds.
    assert jnp.allclose(loss, loss_ref, rtol=5e-3, atol=1e-6), (loss, loss_ref)

    print("KERNEL_OK")
</pallas_src>

<mosaic_0001>
module attributes {stable_mosaic.version = 11 : i64} {
  func.func @_lrl_kernel(%arg0: i32, %arg1: memref<1x76x76xf32, #tpu.memory_space<vmem>>, %arg2: memref<1x76x76xf32, #tpu.memory_space<vmem>>, %arg3: memref<1x76x76xf32, #tpu.memory_space<vmem>>, %arg4: memref<1x1x1xf32, #tpu.memory_space<vmem>>, %arg5: memref<11x76x16xf32, #tpu.memory_space<vmem>>, %arg6: memref<11x76x16xf32, #tpu.memory_space<vmem>>, %arg7: memref<11x76x16xf32, #tpu.memory_space<vmem>>) attributes {dimension_semantics = [#tpu.dimension_semantics<parallel>], iteration_bounds = array<i64: 4>, scalar_prefetch = 0 : i64, scratch_operands = 3 : i64, tpu.core_type = #tpu.core_type<tc>, window_params = [{transform_indices = @transform_0, window_bounds = array<i64: 1, 76, 76>}, {transform_indices = @transform_1, window_bounds = array<i64: 1, 76, 76>}, {transform_indices = @transform_2, window_bounds = array<i64: 1, 76, 76>}, {transform_indices = @transform_3, window_bounds = array<i64: 1, 1, 1>}]} {
    %c0 = arith.constant 0 : index
    %c0_0 = arith.constant 0 : index
    %c0_1 = arith.constant 0 : index
    %0 = vector.load %arg1[%c0, %c0_0, %c0_1] : memref<1x76x76xf32, #tpu.memory_space<vmem>>, vector<1x76x16xf32>
    %1 = vector.shape_cast %0 : vector<1x76x16xf32> to vector<76x16xf32>
    %c0_2 = arith.constant 0 : index
    %c0_3 = arith.constant 0 : index
    %c0_4 = arith.constant 0 : index
    %2 = vector.load %arg5[%c0_2, %c0_3, %c0_4] : memref<11x76x16xf32, #tpu.memory_space<vmem>>, vector<1x76x16xf32>
    %3 = vector.shape_cast %2 : vector<1x76x16xf32> to vector<76x16xf32>
    %4 = vector.shape_cast %1 : vector<76x16xf32> to vector<1x76x16xf32>
    tpu.vector_store %arg5[%c0_2, %c0_3, %c0_4], %4 {strides = array<i32>} : memref<11x76x16xf32, #tpu.memory_space<vmem>>, vector<1x76x16xf32>,
    %c0_5 = arith.constant 0 : index
    %c0_6 = arith.constant 0 : index
    %c0_7 = arith.constant 0 : index
    %5 = vector.load %arg2[%c0_5, %c0_6, %c0_7] : memref<1x76x76xf32, #tpu.memory_space<vmem>>, vector<1x76x16xf32>
    %6 = vector.shape_cast %5 : vector<1x76x16xf32> to vector<76x16xf32>
    %c0_8 = arith.constant 0 : index
    %c0_9 = arith.constant 0 : index
    %c0_10 = arith.constant 0 : index
    %7 = vector.load %arg6[%c0_8, %c0_9, %c0_10] : memref<11x76x16xf32, #tpu.memory_space<vmem>>, vector<1x76x16xf32>
    %8 = vector.shape_cast %7 : vector<1x76x16xf32> to vector<76x16xf32>
    %9 = vector.shape_cast %6 : vector<76x16xf32> to vector<1x76x16xf32>
    tpu.vector_store %arg6[%c0_8, %c0_9, %c0_10], %9 {strides = array<i32>} : memref<11x76x16xf32, #tpu.memory_space<vmem>>, vector<1x76x16xf32>,
    %c0_11 = arith.constant 0 : index
    %c0_12 = arith.constant 0 : index
    %c0_13 = arith.constant 0 : index
    %10 = vector.load %arg3[%c0_11, %c0_12, %c0_13] : memref<1x76x76xf32, #tpu.memory_space<vmem>>, vector<1x76x16xf32>
    %11 = vector.shape_cast %10 : vector<1x76x16xf32> to vector<76x16xf32>
    %c0_14 = arith.constant 0 : index
    %c0_15 = arith.constant 0 : index
    %c0_16 = arith.constant 0 : index
    %12 = vector.load %arg7[%c0_14, %c0_15, %c0_16] : memref<11x76x16xf32, #tpu.memory_space<vmem>>, vector<1x76x16xf32>
    %13 = vector.shape_cast %12 : vector<1x76x16xf32> to vector<76x16xf32>
    %14 = vector.shape_cast %11 : vector<76x16xf32> to vector<1x76x16xf32>
    tpu.vector_store %arg7[%c0_14, %c0_15, %c0_16], %14 {strides = array<i32>} : memref<11x76x16xf32, #tpu.memory_space<vmem>>, vector<1x76x16xf32>,
    %c0_17 = arith.constant 0 : index
    %c0_18 = arith.constant 0 : index
    %c6 = arith.constant 6 : index
    %15 = vector.load %arg1[%c0_17, %c0_18, %c6] : memref<1x76x76xf32, #tpu.memory_space<vmem>>, vector<1x76x16xf32>
    %16 = vector.shape_cast %15 : vector<1x76x16xf32> to vector<76x16xf32>
    %c1 = arith.constant 1 : index
    %c0_19 = arith.constant 0 : index
    %c0_20 = arith.constant 0 : index
    %17 = vector.load %arg5[%c1, %c0_19, %c0_20] : memref<11x76x16xf32, #tpu.memory_space<vmem>>, vector<1x76x16xf32>
    %18 = vector.shape_cast %17 : vector<1x76x16xf32> to vector<76x16xf32>
    %19 = vector.shape_cast %16 : vector<76x16xf32> to vector<1x76x16xf32>
    tpu.vector_store %arg5[%c1, %c0_19, %c0_20], %19 {strides = array<i32>} : memref<11x76x16xf32, #tpu.memory_space<vmem>>, vector<1x76x16xf32>,
    %c0_21 = arith.constant 0 : index
    %c0_22 = arith.constant 0 : index
    %c6_23 = arith.constant 6 : index
    %20 = vector.load %arg2[%c0_21, %c0_22, %c6_23] : memref<1x76x76xf32, #tpu.memory_space<vmem>>, vector<1x76x16xf32>
    %21 = vector.shape_cast %20 : vector<1x76x16xf32> to vector<76x16xf32>
    %c1_24 = arith.constant 1 : index
    %c0_25 = arith.constant 0 : index
    %c0_26 = arith.constant 0 : index
    %22 = vector.load %arg6[%c1_24, %c0_25, %c0_26] : memref<11x76x16xf32, #tpu.memory_space<vmem>>, vector<1x76x16xf32>
    %23 = vector.shape_cast %22 : vector<1x76x16xf32> to vector<76x16xf32>
    %24 = vector.shape_cast %21 : vector<76x16xf32> to vector<1x76x16xf32>
    tpu.vector_store %arg6[%c1_24, %c0_25, %c0_26], %24 {strides = array<i32>} : memref<11x76x16xf32, #tpu.memory_space<vmem>>, vector<1x76x16xf32>,
    %c0_27 = arith.constant 0 : index
    %c0_28 = arith.constant 0 : index
    %c6_29 = arith.constant 6 : index
    %25 = vector.load %arg3[%c0_27, %c0_28, %c6_29] : memref<1x76x76xf32, #tpu.memory_space<vmem>>, vector<1x76x16xf32>
    %26 = vector.shape_cast %25 : vector<1x76x16xf32> to vector<76x16xf32>
    %c1_30 = arith.constant 1 : index
    %c0_31 = arith.constant 0 : index
    %c0_32 = arith.constant 0 : index
    %27 = vector.load %arg7[%c1_30, %c0_31, %c0_32] : memref<11x76x16xf32, #tpu.memory_space<vmem>>, vector<1x76x16xf32>
    %28 = vector.shape_cast %27 : vector<1x76x16xf32> to vector<76x16xf32>
    %29 = vector.shape_cast %26 : vector<76x16xf32> to vector<1x76x16xf32>
    tpu.vector_store %arg7[%c1_30, %c0_31, %c0_32], %29 {strides = array<i32>} : memref<11x76x16xf32, #tpu.memory_space<vmem>>, vector<1x76x16xf32>,
    %c0_33 = arith.constant 0 : index
    %c0_34 = arith.constant 0 : index
    %c12 = arith.constant 12 : index
    %30 = vector.load %arg1[%c0_33, %c0_34, %c12] : memref<1x76x76xf32, #tpu.memory_space<vmem>>, vector<1x76x16xf32>
    %31 = vector.shape_cast %30 : vector<1x76x16xf32> to vector<76x16xf32>
    %c2 = arith.constant 2 : index
    %c0_35 = arith.constant 0 : index
    %c0_36 = arith.constant 0 : index
    %32 = vector.load %arg5[%c2, %c0_35, %c0_36] : memref<11x76x16xf32, #tpu.memory_space<vmem>>, vector<1x76x16xf32>
    %33 = vector.shape_cast %32 : vector<1x76x16xf32> to vector<76x16xf32>
    %34 = vector.shape_cast %31 : vector<76x16xf32> to vector<1x76x16xf32>
    tpu.vector_store %arg5[%c2, %c0_35, %c0_36], %34 {strides = array<i32>} : memref<11x76x16xf32, #tpu.memory_space<vmem>>, vector<1x76x16xf32>,
    %c0_37 = arith.constant 0 : index
    %c0_38 = arith.constant 0 : index
    %c12_39 = arith.constant 12 : index
    %35 = vector.load %arg2[%c0_37, %c0_38, %c12_39] : memref<1x76x76xf32, #tpu.memory_space<vmem>>, vector<1x76x16xf32>
    %36 = vector.shape_cast %35 : vector<1x76x16xf32> to vector<76x16xf32>
    %c2_40 = arith.constant 2 : index
    %c0_41 = arith.constant 0 : index
    %c0_42 = arith.constant 0 : index
    %37 = vector.load %arg6[%c2_40, %c0_41, %c0_42] : memref<11x76x16xf32, #tpu.memory_space<vmem>>, vector<1x76x16xf32>
    %38 = vector.shape_cast %37 : vector<1x76x16xf32> to vector<76x16xf32>
    %39 = vector.shape_cast %36 : vector<76x16xf32> to vector<1x76x16xf32>
    tpu.vector_store %arg6[%c2_40, %c0_41, %c0_42], %39 {strides = array<i32>} : memref<11x76x16xf32, #tpu.memory_space<vmem>>, vector<1x76x16xf32>,
    %c0_43 = arith.constant 0 : index
    %c0_44 = arith.constant 0 : index
    %c12_45 = arith.constant 12 : index
    %40 = vector.load %arg3[%c0_43, %c0_44, %c12_45] : memref<1x76x76xf32, #tpu.memory_space<vmem>>, vector<1x76x16xf32>
    %41 = vector.shape_cast %40 : vector<1x76x16xf32> to vector<76x16xf32>
    %c2_46 = arith.constant 2 : index
    %c0_47 = arith.constant 0 : index
    %c0_48 = arith.constant 0 : index
    %42 = vector.load %arg7[%c2_46, %c0_47, %c0_48] : memref<11x76x16xf32, #tpu.memory_space<vmem>>, vector<1x76x16xf32>
    %43 = vector.shape_cast %42 : vector<1x76x16xf32> to vector<76x16xf32>
    %44 = vector.shape_cast %41 : vector<76x16xf32> to vector<1x76x16xf32>
    tpu.vector_store %arg7[%c2_46, %c0_47, %c0_48], %44 {strides = array<i32>} : memref<11x76x16xf32, #tpu.memory_space<vmem>>, vector<1x76x16xf32>,
    %c0_49 = arith.constant 0 : index
    %c0_50 = arith.constant 0 : index
    %c18 = arith.constant 18 : index
    %45 = vector.load %arg1[%c0_49, %c0_50, %c18] : memref<1x76x76xf32, #tpu.memory_space<vmem>>, vector<1x76x16xf32>
    %46 = vector.shape_cast %45 : vector<1x76x16xf32> to vector<76x16xf32>
    %c3 = arith.constant 3 : index
    %c0_51 = arith.constant 0 : index
    %c0_52 = arith.constant 0 : index
    %47 = vector.load %arg5[%c3, %c0_51, %c0_52] : memref<11x76x16xf32, #tpu.memory_space<vmem>>, vector<1x76x16xf32>
    %48 = vector.shape_cast %47 : vector<1x76x16xf32> to vector<76x16xf32>
    %49 = vector.shape_cast %46 : vector<76x16xf32> to vector<1x76x16xf32>
    tpu.vector_store %arg5[%c3, %c0_51, %c0_52], %49 {strides = array<i32>} : memref<11x76x16xf32, #tpu.memory_space<vmem>>, vector<1x76x16xf32>,
    %c0_53 = arith.constant 0 : index
    %c0_54 = arith.constant 0 : index
    %c18_55 = arith.constant 18 : index
    %50 = vector.load %arg2[%c0_53, %c0_54, %c18_55] : memref<1x76x76xf32, #tpu.memory_space<vmem>>, vector<1x76x16xf32>
    %51 = vector.shape_cast %50 : vector<1x76x16xf32> to vector<76x16xf32>
    %c3_56 = arith.constant 3 : index
    %c0_57 = arith.constant 0 : index
    %c0_58 = arith.constant 0 : index
    %52 = vector.load %arg6[%c3_56, %c0_57, %c0_58] : memref<11x76x16xf32, #tpu.memory_space<vmem>>, vector<1x76x16xf32>
    %53 = vector.shape_cast %52 : vector<1x76x16xf32> to vector<76x16xf32>
    %54 = vector.shape_cast %51 : vector<76x16xf32> to vector<1x76x16xf32>
    tpu.vector_store %arg6[%c3_56, %c0_57, %c0_58], %54 {strides = array<i32>} : memref<11x76x16xf32, #tpu.memory_space<vmem>>, vector<1x76x16xf32>,
    %c0_59 = arith.constant 0 : index
    %c0_60 = arith.constant 0 : index
    %c18_61 = arith.constant 18 : index
    %55 = vector.load %arg3[%c0_59, %c0_60, %c18_61] : memref<1x76x76xf32, #tpu.memory_space<vmem>>, vector<1x76x16xf32>
    %56 = vector.shape_cast %55 : vector<1x76x16xf32> to vector<76x16xf32>
    %c3_62 = arith.constant 3 : index
    %c0_63 = arith.constant 0 : index
    %c0_64 = arith.constant 0 : index
    %57 = vector.load %arg7[%c3_62, %c0_63, %c0_64] : memref<11x76x16xf32, #tpu.memory_space<vmem>>, vector<1x76x16xf32>
    %58 = vector.shape_cast %57 : vector<1x76x16xf32> to vector<76x16xf32>
    %59 = vector.shape_cast %56 : vector<76x16xf32> to vector<1x76x16xf32>
    tpu.vector_store %arg7[%c3_62, %c0_63, %c0_64], %59 {strides = array<i32>} : memref<11x76x16xf32, #tpu.memory_space<vmem>>, vector<1x76x16xf32>,
    %c0_65 = arith.constant 0 : index
    %c0_66 = arith.constant 0 : index
    %c24 = arith.constant 24 : index
    %60 = vector.load %arg1[%c0_65, %c0_66, %c24] : memref<1x76x76xf32, #tpu.memory_space<vmem>>, vector<1x76x16xf32>
    %61 = vector.shape_cast %60 : vector<1x76x16xf32> to vector<76x16xf32>
    %c4 = arith.constant 4 : index
    %c0_67 = arith.constant 0 : index
    %c0_68 = arith.constant 0 : index
    %62 = vector.load %arg5[%c4, %c0_67, %c0_68] : memref<11x76x16xf32, #tpu.memory_space<vmem>>, vector<1x76x16xf32>
    %63 = vector.shape_cast %62 : vector<1x76x16xf32> to vector<76x16xf32>
    %64 = vector.shape_cast %61 : vector<76x16xf32> to vector<1x76x16xf32>
    tpu.vector_store %arg5[%c4, %c0_67, %c0_68], %64 {strides = array<i32>} : memref<11x76x16xf32, #tpu.memory_space<vmem>>, vector<1x76x16xf32>,
    %c0_69 = arith.constant 0 : index
    %c0_70 = arith.constant 0 : index
    %c24_71 = arith.constant 24 : index
    %65 = vector.load %arg2[%c0_69, %c0_70, %c24_71] : memref<1x76x76xf32, #tpu.memory_space<vmem>>, vector<1x76x16xf32>
    %66 = vector.shape_cast %65 : vector<1x76x16xf32> to vector<76x16xf32>
    %c4_72 = arith.constant 4 : index
    %c0_73 = arith.constant 0 : index
    %c0_74 = arith.constant 0 : index
    %67 = vector.load %arg6[%c4_72, %c0_73, %c0_74] : memref<11x76x16xf32, #tpu.memory_space<vmem>>, vector<1x76x16xf32>
    %68 = vector.shape_cast %67 : vector<1x76x16xf32> to vector<76x16xf32>
    %69 = vector.shape_cast %66 : vector<76x16xf32> to vector<1x76x16xf32>
    tpu.vector_store %arg6[%c4_72, %c0_73, %c0_74], %69 {strides = array<i32>} : memref<11x76x16xf32, #tpu.memory_space<vmem>>, vector<1x76x16xf32>,
    %c0_75 = arith.constant 0 : index
    %c0_76 = arith.constant 0 : index
    %c24_77 = arith.constant 24 : index
    %70 = vector.load %arg3[%c0_75, %c0_76, %c24_77] : memref<1x76x76xf32, #tpu.memory_space<vmem>>, vector<1x76x16xf32>
    %71 = vector.shape_cast %70 : vector<1x76x16xf32> to vector<76x16xf32>
    %c4_78 = arith.constant 4 : index
    %c0_79 = arith.constant 0 : index
    %c0_80 = arith.constant 0 : index
    %72 = vector.load %arg7[%c4_78, %c0_79, %c0_80] : memref<11x76x16xf32, #tpu.memory_space<vmem>>, vector<1x76x16xf32>
    %73 = vector.shape_cast %72 : vector<1x76x16xf32> to vector<76x16xf32>
    %74 = vector.shape_cast %71 : vector<76x16xf32> to vector<1x76x16xf32>
    tpu.vector_store %arg7[%c4_78, %c0_79, %c0_80], %74 {strides = array<i32>} : memref<11x76x16xf32, #tpu.memory_space<vmem>>, vector<1x76x16xf32>,
    %c0_81 = arith.constant 0 : index
    %c0_82 = arith.constant 0 : index
    %c30 = arith.constant 30 : index
    %75 = vector.load %arg1[%c0_81, %c0_82, %c30] : memref<1x76x76xf32, #tpu.memory_space<vmem>>, vector<1x76x16xf32>
    %76 = vector.shape_cast %75 : vector<1x76x16xf32> to vector<76x16xf32>
    %c5 = arith.constant 5 : index
    %c0_83 = arith.constant 0 : index
    %c0_84 = arith.constant 0 : index
    %77 = vector.load %arg5[%c5, %c0_83, %c0_84] : memref<11x76x16xf32, #tpu.memory_space<vmem>>, vector<1x76x16xf32>
    %78 = vector.shape_cast %77 : vector<1x76x16xf32> to vector<76x16xf32>
    %79 = vector.shape_cast %76 : vector<76x16xf32> to vector<1x76x16xf32>
    tpu.vector_store %arg5[%c5, %c0_83, %c0_84], %79 {strides = array<i32>} : memref<11x76x16xf32, #tpu.memory_space<vmem>>, vector<1x76x16xf32>,
    %c0_85 = arith.constant 0 : index
    %c0_86 = arith.constant 0 : index
    %c30_87 = arith.constant 30 : index
    %80 = vector.load %arg2[%c0_85, %c0_86, %c30_87] : memref<1x76x76xf32, #tpu.memory_space<vmem>>, vector<1x76x16xf32>
    %81 = vector.shape_cast %80 : vector<1x76x16xf32> to vector<76x16xf32>
    %c5_88 = arith.constant 5 : index
    %c0_89 = arith.constant 0 : index
    %c0_90 = arith.constant 0 : index
    %82 = vector.load %arg6[%c5_88, %c0_89, %c0_90] : memref<11x76x16xf32, #tpu.memory_space<vmem>>, vector<1x76x16xf32>
    %83 = vector.shape_cast %82 : vector<1x76x16xf32> to vector<76x16xf32>
    %84 = vector.shape_cast %81 : vector<76x16xf32> to vector<1x76x16xf32>
    tpu.vector_store %arg6[%c5_88, %c0_89, %c0_90], %84 {strides = array<i32>} : memref<11x76x16xf32, #tpu.memory_space<vmem>>, vector<1x76x16xf32>,
    %c0_91 = arith.constant 0 : index
    %c0_92 = arith.constant 0 : index
    %c30_93 = arith.constant 30 : index
    %85 = vector.load %arg3[%c0_91, %c0_92, %c30_93] : memref<1x76x76xf32, #tpu.memory_space<vmem>>, vector<1x76x16xf32>
    %86 = vector.shape_cast %85 : vector<1x76x16xf32> to vector<76x16xf32>
    %c5_94 = arith.constant 5 : index
    %c0_95 = arith.constant 0 : index
    %c0_96 = arith.constant 0 : index
    %87 = vector.load %arg7[%c5_94, %c0_95, %c0_96] : memref<11x76x16xf32, #tpu.memory_space<vmem>>, vector<1x76x16xf32>
    %88 = vector.shape_cast %87 : vector<1x76x16xf32> to vector<76x16xf32>
    %89 = vector.shape_cast %86 : vector<76x16xf32> to vector<1x76x16xf32>
    tpu.vector_store %arg7[%c5_94, %c0_95, %c0_96], %89 {strides = array<i32>} : memref<11x76x16xf32, #tpu.memory_space<vmem>>, vector<1x76x16xf32>,
    %c0_97 = arith.constant 0 : index
    %c0_98 = arith.constant 0 : index
    %c36 = arith.constant 36 : index
    %90 = vector.load %arg1[%c0_97, %c0_98, %c36] : memref<1x76x76xf32, #tpu.memory_space<vmem>>, vector<1x76x16xf32>
    %91 = vector.shape_cast %90 : vector<1x76x16xf32> to vector<76x16xf32>
    %c6_99 = arith.constant 6 : index
    %c0_100 = arith.constant 0 : index
    %c0_101 = arith.constant 0 : index
    %92 = vector.load %arg5[%c6_99, %c0_100, %c0_101] : memref<11x76x16xf32, #tpu.memory_space<vmem>>, vector<1x76x16xf32>
    %93 = vector.shape_cast %92 : vector<1x76x16xf32> to vector<76x16xf32>
    %94 = vector.shape_cast %91 : vector<76x16xf32> to vector<1x76x16xf32>
    tpu.vector_store %arg5[%c6_99, %c0_100, %c0_101], %94 {strides = array<i32>} : memref<11x76x16xf32, #tpu.memory_space<vmem>>, vector<1x76x16xf32>,
    %c0_102 = arith.constant 0 : index
    %c0_103 = arith.constant 0 : index
    %c36_104 = arith.constant 36 : index
    %95 = vector.load %arg2[%c0_102, %c0_103, %c36_104] : memref<1x76x76xf32, #tpu.memory_space<vmem>>, vector<1x76x16xf32>
    %96 = vector.shape_cast %95 : vector<1x76x16xf32> to vector<76x16xf32>
    %c6_105 = arith.constant 6 : index
    %c0_106 = arith.constant 0 : index
    %c0_107 = arith.constant 0 : index
    %97 = vector.load %arg6[%c6_105, %c0_106, %c0_107] : memref<11x76x16xf32, #tpu.memory_space<vmem>>, vector<1x76x16xf32>
    %98 = vector.shape_cast %97 : vector<1x76x16xf32> to vector<76x16xf32>
    %99 = vector.shape_cast %96 : vector<76x16xf32> to vector<1x76x16xf32>
    tpu.vector_store %arg6[%c6_105, %c0_106, %c0_107], %99 {strides = array<i32>} : memref<11x76x16xf32, #tpu.memory_space<vmem>>, vector<1x76x16xf32>,
    %c0_108 = arith.constant 0 : index
    %c0_109 = arith.constant 0 : index
    %c36_110 = arith.constant 36 : index
    %100 = vector.load %arg3[%c0_108, %c0_109, %c36_110] : memref<1x76x76xf32, #tpu.memory_space<vmem>>, vector<1x76x16xf32>
    %101 = vector.shape_cast %100 : vector<1x76x16xf32> to vector<76x16xf32>
    %c6_111 = arith.constant 6 : index
    %c0_112 = arith.constant 0 : index
    %c0_113 = arith.constant 0 : index
    %102 = vector.load %arg7[%c6_111, %c0_112, %c0_113] : memref<11x76x16xf32, #tpu.memory_space<vmem>>, vector<1x76x16xf32>
    %103 = vector.shape_cast %102 : vector<1x76x16xf32> to vector<76x16xf32>
    %104 = vector.shape_cast %101 : vector<76x16xf32> to vector<1x76x16xf32>
    tpu.vector_store %arg7[%c6_111, %c0_112, %c0_113], %104 {strides = array<i32>} : memref<11x76x16xf32, #tpu.memory_space<vmem>>, vector<1x76x16xf32>,
    %c0_114 = arith.constant 0 : index
    %c0_115 = arith.constant 0 : index
    %c42 = arith.constant 42 : index
    %105 = vector.load %arg1[%c0_114, %c0_115, %c42] : memref<1x76x76xf32, #tpu.memory_space<vmem>>, vector<1x76x16xf32>
    %106 = vector.shape_cast %105 : vector<1x76x16xf32> to vector<76x16xf32>
    %c7 = arith.constant 7 : index
    %c0_116 = arith.constant 0 : index
    %c0_117 = arith.constant 0 : index
    %107 = vector.load %arg5[%c7, %c0_116, %c0_117] : memref<11x76x16xf32, #tpu.memory_space<vmem>>, vector<1x76x16xf32>
    %108 = vector.shape_cast %107 : vector<1x76x16xf32> to vector<76x16xf32>
    %109 = vector.shape_cast %106 : vector<76x16xf32> to vector<1x76x16xf32>
    tpu.vector_store %arg5[%c7, %c0_116, %c0_117], %109 {strides = array<i32>} : memref<11x76x16xf32, #tpu.memory_space<vmem>>, vector<1x76x16xf32>,
    %c0_118 = arith.constant 0 : index
    %c0_119 = arith.constant 0 : index
    %c42_120 = arith.constant 42 : index
    %110 = vector.load %arg2[%c0_118, %c0_119, %c42_120] : memref<1x76x76xf32, #tpu.memory_space<vmem>>, vector<1x76x16xf32>
    %111 = vector.shape_cast %110 : vector<1x76x16xf32> to vector<76x16xf32>
    %c7_121 = arith.constant 7 : index
    %c0_122 = arith.constant 0 : index
    %c0_123 = arith.constant 0 : index
    %112 = vector.load %arg6[%c7_121, %c0_122, %c0_123] : memref<11x76x16xf32, #tpu.memory_space<vmem>>, vector<1x76x16xf32>
    %113 = vector.shape_cast %112 : vector<1x76x16xf32> to vector<76x16xf32>
    %114 = vector.shape_cast %111 : vector<76x16xf32> to vector<1x76x16xf32>
    tpu.vector_store %arg6[%c7_121, %c0_122, %c0_123], %114 {strides = array<i32>} : memref<11x76x16xf32, #tpu.memory_space<vmem>>, vector<1x76x16xf32>,
    %c0_124 = arith.constant 0 : index
    %c0_125 = arith.constant 0 : index
    %c42_126 = arith.constant 42 : index
    %115 = vector.load %arg3[%c0_124, %c0_125, %c42_126] : memref<1x76x76xf32, #tpu.memory_space<vmem>>, vector<1x76x16xf32>
    %116 = vector.shape_cast %115 : vector<1x76x16xf32> to vector<76x16xf32>
    %c7_127 = arith.constant 7 : index
    %c0_128 = arith.constant 0 : index
    %c0_129 = arith.constant 0 : index
    %117 = vector.load %arg7[%c7_127, %c0_128, %c0_129] : memref<11x76x16xf32, #tpu.memory_space<vmem>>, vector<1x76x16xf32>
    %118 = vector.shape_cast %117 : vector<1x76x16xf32> to vector<76x16xf32>
    %119 = vector.shape_cast %116 : vector<76x16xf32> to vector<1x76x16xf32>
    tpu.vector_store %arg7[%c7_127, %c0_128, %c0_129], %119 {strides = array<i32>} : memref<11x76x16xf32, #tpu.memory_space<vmem>>, vector<1x76x16xf32>,
    %c0_130 = arith.constant 0 : index
    %c0_131 = arith.constant 0 : index
    %c48 = arith.constant 48 : index
    %120 = vector.load %arg1[%c0_130, %c0_131, %c48] : memref<1x76x76xf32, #tpu.memory_space<vmem>>, vector<1x76x16xf32>
    %121 = vector.shape_cast %120 : vector<1x76x16xf32> to vector<76x16xf32>
    %c8 = arith.constant 8 : index
    %c0_132 = arith.constant 0 : index
    %c0_133 = arith.constant 0 : index
    %122 = vector.load %arg5[%c8, %c0_132, %c0_133] : memref<11x76x16xf32, #tpu.memory_space<vmem>>, vector<1x76x16xf32>
    %123 = vector.shape_cast %122 : vector<1x76x16xf32> to vector<76x16xf32>
    %124 = vector.shape_cast %121 : vector<76x16xf32> to vector<1x76x16xf32>
    tpu.vector_store %arg5[%c8, %c0_132, %c0_133], %124 {strides = array<i32>} : memref<11x76x16xf32, #tpu.memory_space<vmem>>, vector<1x76x16xf32>,
    %c0_134 = arith.constant 0 : index
    %c0_135 = arith.constant 0 : index
    %c48_136 = arith.constant 48 : index
    %125 = vector.load %arg2[%c0_134, %c0_135, %c48_136] : memref<1x76x76xf32, #tpu.memory_space<vmem>>, vector<1x76x16xf32>
    %126 = vector.shape_cast %125 : vector<1x76x16xf32> to vector<76x16xf32>
    %c8_137 = arith.constant 8 : index
    %c0_138 = arith.constant 0 : index
    %c0_139 = arith.constant 0 : index
    %127 = vector.load %arg6[%c8_137, %c0_138, %c0_139] : memref<11x76x16xf32, #tpu.memory_space<vmem>>, vector<1x76x16xf32>
    %128 = vector.shape_cast %127 : vector<1x76x16xf32> to vector<76x16xf32>
    %129 = vector.shape_cast %126 : vector<76x16xf32> to vector<1x76x16xf32>
    tpu.vector_store %arg6[%c8_137, %c0_138, %c0_139], %129 {strides = array<i32>} : memref<11x76x16xf32, #tpu.memory_space<vmem>>, vector<1x76x16xf32>,
    %c0_140 = arith.constant 0 : index
    %c0_141 = arith.constant 0 : index
    %c48_142 = arith.constant 48 : index
    %130 = vector.load %arg3[%c0_140, %c0_141, %c48_142] : memref<1x76x76xf32, #tpu.memory_space<vmem>>, vector<1x76x16xf32>
    %131 = vector.shape_cast %130 : vector<1x76x16xf32> to vector<76x16xf32>
    %c8_143 = arith.constant 8 : index
    %c0_144 = arith.constant 0 : index
    %c0_145 = arith.constant 0 : index
    %132 = vector.load %arg7[%c8_143, %c0_144, %c0_145] : memref<11x76x16xf32, #tpu.memory_space<vmem>>, vector<1x76x16xf32>
    %133 = vector.shape_cast %132 : vector<1x76x16xf32> to vector<76x16xf32>
    %134 = vector.shape_cast %131 : vector<76x16xf32> to vector<1x76x16xf32>
    tpu.vector_store %arg7[%c8_143, %c0_144, %c0_145], %134 {strides = array<i32>} : memref<11x76x16xf32, #tpu.memory_space<vmem>>, vector<1x76x16xf32>,
    %c0_146 = arith.constant 0 : index
    %c0_147 = arith.constant 0 : index
    %c54 = arith.constant 54 : index
    %135 = vector.load %arg1[%c0_146, %c0_147, %c54] : memref<1x76x76xf32, #tpu.memory_space<vmem>>, vector<1x76x16xf32>
    %136 = vector.shape_cast %135 : vector<1x76x16xf32> to vector<76x16xf32>
    %c9 = arith.constant 9 : index
    %c0_148 = arith.constant 0 : index
    %c0_149 = arith.constant 0 : index
    %137 = vector.load %arg5[%c9, %c0_148, %c0_149] : memref<11x76x16xf32, #tpu.memory_space<vmem>>, vector<1x76x16xf32>
    %138 = vector.shape_cast %137 : vector<1x76x16xf32> to vector<76x16xf32>
    %139 = vector.shape_cast %136 : vector<76x16xf32> to vector<1x76x16xf32>
    tpu.vector_store %arg5[%c9, %c0_148, %c0_149], %139 {strides = array<i32>} : memref<11x76x16xf32, #tpu.memory_space<vmem>>, vector<1x76x16xf32>,
    %c0_150 = arith.constant 0 : index
    %c0_151 = arith.constant 0 : index
    %c54_152 = arith.constant 54 : index
    %140 = vector.load %arg2[%c0_150, %c0_151, %c54_152] : memref<1x76x76xf32, #tpu.memory_space<vmem>>, vector<1x76x16xf32>
    %141 = vector.shape_cast %140 : vector<1x76x16xf32> to vector<76x16xf32>
    %c9_153 = arith.constant 9 : index
    %c0_154 = arith.constant 0 : index
    %c0_155 = arith.constant 0 : index
    %142 = vector.load %arg6[%c9_153, %c0_154, %c0_155] : memref<11x76x16xf32, #tpu.memory_space<vmem>>, vector<1x76x16xf32>
    %143 = vector.shape_cast %142 : vector<1x76x16xf32> to vector<76x16xf32>
    %144 = vector.shape_cast %141 : vector<76x16xf32> to vector<1x76x16xf32>
    tpu.vector_store %arg6[%c9_153, %c0_154, %c0_155], %144 {strides = array<i32>} : memref<11x76x16xf32, #tpu.memory_space<vmem>>, vector<1x76x16xf32>,
    %c0_156 = arith.constant 0 : index
    %c0_157 = arith.constant 0 : index
    %c54_158 = arith.constant 54 : index
    %145 = vector.load %arg3[%c0_156, %c0_157, %c54_158] : memref<1x76x76xf32, #tpu.memory_space<vmem>>, vector<1x76x16xf32>
    %146 = vector.shape_cast %145 : vector<1x76x16xf32> to vector<76x16xf32>
    %c9_159 = arith.constant 9 : index
    %c0_160 = arith.constant 0 : index
    %c0_161 = arith.constant 0 : index
    %147 = vector.load %arg7[%c9_159, %c0_160, %c0_161] : memref<11x76x16xf32, #tpu.memory_space<vmem>>, vector<1x76x16xf32>
    %148 = vector.shape_cast %147 : vector<1x76x16xf32> to vector<76x16xf32>
    %149 = vector.shape_cast %146 : vector<76x16xf32> to vector<1x76x16xf32>
    tpu.vector_store %arg7[%c9_159, %c0_160, %c0_161], %149 {strides = array<i32>} : memref<11x76x16xf32, #tpu.memory_space<vmem>>, vector<1x76x16xf32>,
    %c0_162 = arith.constant 0 : index
    %c0_163 = arith.constant 0 : index
    %c60 = arith.constant 60 : index
    %150 = vector.load %arg1[%c0_162, %c0_163, %c60] : memref<1x76x76xf32, #tpu.memory_space<vmem>>, vector<1x76x16xf32>
    %151 = vector.shape_cast %150 : vector<1x76x16xf32> to vector<76x16xf32>
    %c10 = arith.constant 10 : index
    %c0_164 = arith.constant 0 : index
    %c0_165 = arith.constant 0 : index
    %152 = vector.load %arg5[%c10, %c0_164, %c0_165] : memref<11x76x16xf32, #tpu.memory_space<vmem>>, vector<1x76x16xf32>
    %153 = vector.shape_cast %152 : vector<1x76x16xf32> to vector<76x16xf32>
    %154 = vector.shape_cast %151 : vector<76x16xf32> to vector<1x76x16xf32>
    tpu.vector_store %arg5[%c10, %c0_164, %c0_165], %154 {strides = array<i32>} : memref<11x76x16xf32, #tpu.memory_space<vmem>>, vector<1x76x16xf32>,
    %c0_166 = arith.constant 0 : index
    %c0_167 = arith.constant 0 : index
    %c60_168 = arith.constant 60 : index
    %155 = vector.load %arg2[%c0_166, %c0_167, %c60_168] : memref<1x76x76xf32, #tpu.memory_space<vmem>>, vector<1x76x16xf32>
    %156 = vector.shape_cast %155 : vector<1x76x16xf32> to vector<76x16xf32>
    %c10_169 = arith.constant 10 : index
    %c0_170 = arith.constant 0 : index
    %c0_171 = arith.constant 0 : index
    %157 = vector.load %arg6[%c10_169, %c0_170, %c0_171] : memref<11x76x16xf32, #tpu.memory_space<vmem>>, vector<1x76x16xf32>
    %158 = vector.shape_cast %157 : vector<1x76x16xf32> to vector<76x16xf32>
    %159 = vector.shape_cast %156 : vector<76x16xf32> to vector<1x76x16xf32>
    tpu.vector_store %arg6[%c10_169, %c0_170, %c0_171], %159 {strides = array<i32>} : memref<11x76x16xf32, #tpu.memory_space<vmem>>, vector<1x76x16xf32>,
    %c0_172 = arith.constant 0 : index
    %c0_173 = arith.constant 0 : index
    %c60_174 = arith.constant 60 : index
    %160 = vector.load %arg3[%c0_172, %c0_173, %c60_174] : memref<1x76x76xf32, #tpu.memory_space<vmem>>, vector<1x76x16xf32>
    %161 = vector.shape_cast %160 : vector<1x76x16xf32> to vector<76x16xf32>
    %c10_175 = arith.constant 10 : index
    %c0_176 = arith.constant 0 : index
    %c0_177 = arith.constant 0 : index
    %162 = vector.load %arg7[%c10_175, %c0_176, %c0_177] : memref<11x76x16xf32, #tpu.memory_space<vmem>>, vector<1x76x16xf32>
    %163 = vector.shape_cast %162 : vector<1x76x16xf32> to vector<76x16xf32>
    %164 = vector.shape_cast %161 : vector<76x16xf32> to vector<1x76x16xf32>
    tpu.vector_store %arg7[%c10_175, %c0_176, %c0_177], %164 {strides = array<i32>} : memref<11x76x16xf32, #tpu.memory_space<vmem>>, vector<1x76x16xf32>,
    %c5_178 = arith.constant 5 : index
    %c30_179 = arith.constant 30 : index
    %c0_180 = arith.constant 0 : index
    %165 = vector.load %arg5[%c5_178, %c30_179, %c0_180] : memref<11x76x16xf32, #tpu.memory_space<vmem>>, vector<1x16x16xf32>
    %166 = vector.shape_cast %165 : vector<1x16x16xf32> to vector<16x16xf32>
    %c5_181 = arith.constant 5 : index
    %c30_182 = arith.constant 30 : index
    %c0_183 = arith.constant 0 : index
    %167 = vector.load %arg6[%c5_181, %c30_182, %c0_183] : memref<11x76x16xf32, #tpu.memory_space<vmem>>, vector<1x16x16xf32>
    %168 = vector.shape_cast %167 : vector<1x16x16xf32> to vector<16x16xf32>
    %cst = arith.constant 0x7F800000 : f32
    %169 = vector.broadcast %cst : f32 to vector<16x16xf32>
    %cst_184 = arith.constant 0.000000e+00 : f32
    %170 = vector.broadcast %cst_184 : f32 to vector<16x16xf32>
    %c0_i32 = arith.constant 0 : i32
    %c11_i32 = arith.constant 11 : i32
    %171 = arith.addi %c0_i32, %c11_i32 : i32
    %c1_i32 = arith.constant 1 : i32
    %172:16 = scf.for %arg8 = %c0_i32 to %171 step %c1_i32 iter_args(%arg9 = %169, %arg10 = %169, %arg11 = %169, %arg12 = %169, %arg13 = %169, %arg14 = %169, %arg15 = %169, %arg16 = %169, %arg17 = %170, %arg18 = %170, %arg19 = %170, %arg20 = %170, %arg21 = %170, %arg22 = %170, %arg23 = %170, %arg24 = %170) -> (vector<16x16xf32>, vector<16x16xf32>, vector<16x16xf32>, vector<16x16xf32>, vector<16x16xf32>, vector<16x16xf32>, vector<16x16xf32>, vector<16x16xf32>, vector<16x16xf32>, vector<16x16xf32>, vector<16x16xf32>, vector<16x16xf32>, vector<16x16xf32>, vector<16x16xf32>, vector<16x16xf32>, vector<16x16xf32>)  : i32 {
      %c6_i32 = arith.constant 6 : i32
      %187 = arith.muli %arg8, %c6_i32 : i32
      %c0_191 = arith.constant 0 : index
      %188 = arith.index_cast %187 : i32 to index
      %c0_192 = arith.constant 0 : index
      %189 = vector.load %arg7[%c0_191, %188, %c0_192] : memref<11x76x16xf32, #tpu.memory_space<vmem>>, vector<1x16x16xf32>
      %190 = vector.shape_cast %189 : vector<1x16x16xf32> to vector<16x16xf32>
      %c0_193 = arith.constant 0 : index
      %191 = arith.index_cast %187 : i32 to index
      %c0_194 = arith.constant 0 : index
      %192 = vector.load %arg6[%c0_193, %191, %c0_194] : memref<11x76x16xf32, #tpu.memory_space<vmem>>, vector<1x16x16xf32>
      %193 = vector.shape_cast %192 : vector<1x16x16xf32> to vector<16x16xf32>
      %194 = arith.subf %168, %193 : vector<16x16xf32>
      %c0_195 = arith.constant 0 : index
      %195 = arith.index_cast %187 : i32 to index
      %c0_196 = arith.constant 0 : index
      %196 = vector.load %arg5[%c0_195, %195, %c0_196] : memref<11x76x16xf32, #tpu.memory_space<vmem>>, vector<1x16x16xf32>
      %197 = vector.shape_cast %196 : vector<1x16x16xf32> to vector<16x16xf32>
      %198 = arith.subf %166, %197 : vector<16x16xf32>
      %cst_197 = arith.constant -1.000000e+00 : f32
      %cst_198 = arith.constant 1.000000e+00 : f32
      %199 = vector.broadcast %cst_197 : f32 to vector<16x16xf32>
      %200 = arith.maximumf %199, %194 : vector<16x16xf32>
      %201 = vector.broadcast %cst_198 : f32 to vector<16x16xf32>
      %202 = arith.minimumf %201, %200 : vector<16x16xf32>
      %203 = arith.subf %194, %202 : vector<16x16xf32>
      %204 = math.absf %203 : vector<16x16xf32>
      %cst_199 = arith.constant 1.000000e+00 : f32
      %205 = vector.broadcast %cst_199 : f32 to vector<16x16xf32>
      %206 = arith.addf %205, %204 : vector<16x16xf32>
      %207 = tpu.reciprocal %206 {approx = true} : vector<16x16xf32> -> vector<16x16xf32>
      %208 = arith.mulf %203, %207 : vector<16x16xf32>
      %209 = math.absf %198 : vector<16x16xf32>
      %cst_200 = arith.constant 9.99999993E-9 : f32
      %210 = vector.broadcast %cst_200 : f32 to vector<16x16xf32>
      %211 = arith.addf %209, %210 : vector<16x16xf32>
      %212 = arith.divf %198, %211 : vector<16x16xf32>
      %213 = arith.mulf %198, %198 : vector<16x16xf32>
      %cst_201 = arith.constant 1.000000e+00 : f32
      %214 = vector.broadcast %cst_201 : f32 to vector<16x16xf32>
      %215 = arith.addf %214, %213 : vector<16x16xf32>
      %216 = math.log %215 : vector<16x16xf32>
      %cst_202 = arith.constant 0.000000e+00 : f32
      %217 = vector.broadcast %cst_202 : f32 to vector<16x16xf32>
      %218 = arith.subf %217, %208 : vector<16x16xf32>
      %219 = arith.mulf %218, %212 : vector<16x16xf32>
      %220 = arith.mulf %219, %216 : vector<16x16xf32>
      %cst_203 = arith.constant 0.000000e+00 : f32
      %221 = vector.broadcast %cst_203 : f32 to vector<16x16xf32>
      %222 = arith.maximumf %220, %221 : vector<16x16xf32>
      %223 = arith.cmpf olt, %190, %arg9 : vector<16x16xf32>
      %224 = arith.cmpf olt, %190, %arg10 : vector<16x16xf32>
      %225 = arith.cmpf olt, %190, %arg11 : vector<16x16xf32>
      %226 = arith.cmpf olt, %190, %arg12 : vector<16x16xf32>
      %227 = arith.cmpf olt, %190, %arg13 : vector<16x16xf32>
      %228 = arith.cmpf olt, %190, %arg14 : vector<16x16xf32>
      %229 = arith.cmpf olt, %190, %arg15 : vector<16x16xf32>
      %230 = arith.cmpf olt, %190, %arg16 : vector<16x16xf32>
      %231 = arith.select %223, %190, %arg9 : vector<16x16xi1>, vector<16x16xf32>
      %232 = arith.select %223, %222, %arg17 : vector<16x16xi1>, vector<16x16xf32>
      %233 = arith.select %224, %190, %arg10 : vector<16x16xi1>, vector<16x16xf32>
      %234 = arith.select %224, %222, %arg18 : vector<16x16xi1>, vector<16x16xf32>
      %235 = arith.select %223, %arg9, %233 : vector<16x16xi1>, vector<16x16xf32>
      %236 = arith.select %223, %arg17, %234 : vector<16x16xi1>, vector<16x16xf32>
      %237 = arith.select %225, %190, %arg11 : vector<16x16xi1>, vector<16x16xf32>
      %238 = arith.select %225, %222, %arg19 : vector<16x16xi1>, vector<16x16xf32>
      %239 = arith.select %224, %arg10, %237 : vector<16x16xi1>, vector<16x16xf32>
      %240 = arith.select %224, %arg18, %238 : vector<16x16xi1>, vector<16x16xf32>
      %241 = arith.select %226, %190, %arg12 : vector<16x16xi1>, vector<16x16xf32>
      %242 = arith.select %226, %222, %arg20 : vector<16x16xi1>, vector<16x16xf32>
      %243 = arith.select %225, %arg11, %241 : vector<16x16xi1>, vector<16x16xf32>
      %244 = arith.select %225, %arg19, %242 : vector<16x16xi1>, vector<16x16xf32>
      %245 = arith.select %227, %190, %arg13 : vector<16x16xi1>, vector<16x16xf32>
      %246 = arith.select %227, %222, %arg21 : vector<16x16xi1>, vector<16x16xf32>
      %247 = arith.select %226, %arg12, %245 : vector<16x16xi1>, vector<16x16xf32>
      %248 = arith.select %226, %arg20, %246 : vector<16x16xi1>, vector<16x16xf32>
      %249 = arith.select %228, %190, %arg14 : vector<16x16xi1>, vector<16x16xf32>
      %250 = arith.select %228, %222, %arg22 : vector<16x16xi1>, vector<16x16xf32>
      %251 = arith.select %227, %arg13, %249 : vector<16x16xi1>, vector<16x16xf32>
      %252 = arith.select %227, %arg21, %250 : vector<16x16xi1>, vector<16x16xf32>
      %253 = arith.select %229, %190, %arg15 : vector<16x16xi1>, vector<16x16xf32>
      %254 = arith.select %229, %222, %arg23 : vector<16x16xi1>, vector<16x16xf32>
      %255 = arith.select %228, %arg14, %253 : vector<16x16xi1>, vector<16x16xf32>
      %256 = arith.select %228, %arg22, %254 : vector<16x16xi1>, vector<16x16xf32>
      %257 = arith.select %230, %190, %arg16 : vector<16x16xi1>, vector<16x16xf32>
      %258 = arith.select %230, %222, %arg24 : vector<16x16xi1>, vector<16x16xf32>
      %259 = arith.select %229, %arg15, %257 : vector<16x16xi1>, vector<16x16xf32>
      %260 = arith.select %229, %arg23, %258 : vector<16x16xi1>, vector<16x16xf32>
      %c1_204 = arith.constant 1 : index
      %261 = arith.index_cast %187 : i32 to index
      %c0_205 = arith.constant 0 : index
      %262 = vector.load %arg7[%c1_204, %261, %c0_205] : memref<11x76x16xf32, #tpu.memory_space<vmem>>, vector<1x16x16xf32>
      %263 = vector.shape_cast %262 : vector<1x16x16xf32> to vector<16x16xf32>
      %c1_206 = arith.constant 1 : index
      %264 = arith.index_cast %187 : i32 to index
      %c0_207 = arith.constant 0 : index
      %265 = vector.load %arg6[%c1_206, %264, %c0_207] : memref<11x76x16xf32, #tpu.memory_space<vmem>>, vector<1x16x16xf32>
      %266 = vector.shape_cast %265 : vector<1x16x16xf32> to vector<16x16xf32>
      %267 = arith.subf %168, %266 : vector<16x16xf32>
      %c1_208 = arith.constant 1 : index
      %268 = arith.index_cast %187 : i32 to index
      %c0_209 = arith.constant 0 : index
      %269 = vector.load %arg5[%c1_208, %268, %c0_209] : memref<11x76x16xf32, #tpu.memory_space<vmem>>, vector<1x16x16xf32>
      %270 = vector.shape_cast %269 : vector<1x16x16xf32> to vector<16x16xf32>
      %271 = arith.subf %166, %270 : vector<16x16xf32>
      %cst_210 = arith.constant -1.000000e+00 : f32
      %cst_211 = arith.constant 1.000000e+00 : f32
      %272 = vector.broadcast %cst_210 : f32 to vector<16x16xf32>
      %273 = arith.maximumf %272, %267 : vector<16x16xf32>
      %274 = vector.broadcast %cst_211 : f32 to vector<16x16xf32>
      %275 = arith.minimumf %274, %273 : vector<16x16xf32>
      %276 = arith.subf %267, %275 : vector<16x16xf32>
      %277 = math.absf %276 : vector<16x16xf32>
      %cst_212 = arith.constant 1.000000e+00 : f32
      %278 = vector.broadcast %cst_212 : f32 to vector<16x16xf32>
      %279 = arith.addf %278, %277 : vector<16x16xf32>
      %280 = tpu.reciprocal %279 {approx = true} : vector<16x16xf32> -> vector<16x16xf32>
      %281 = arith.mulf %276, %280 : vector<16x16xf32>
      %282 = math.absf %271 : vector<16x16xf32>
      %cst_213 = arith.constant 9.99999993E-9 : f32
      %283 = vector.broadcast %cst_213 : f32 to vector<16x16xf32>
      %284 = arith.addf %282, %283 : vector<16x16xf32>
      %285 = arith.divf %271, %284 : vector<16x16xf32>
      %286 = arith.mulf %271, %271 : vector<16x16xf32>
      %cst_214 = arith.constant 1.000000e+00 : f32
      %287 = vector.broadcast %cst_214 : f32 to vector<16x16xf32>
      %288 = arith.addf %287, %286 : vector<16x16xf32>
      %289 = math.log %288 : vector<16x16xf32>
      %cst_215 = arith.constant 0.000000e+00 : f32
      %290 = vector.broadcast %cst_215 : f32 to vector<16x16xf32>
      %291 = arith.subf %290, %281 : vector<16x16xf32>
      %292 = arith.mulf %291, %285 : vector<16x16xf32>
      %293 = arith.mulf %292, %289 : vector<16x16xf32>
      %cst_216 = arith.constant 0.000000e+00 : f32
      %294 = vector.broadcast %cst_216 : f32 to vector<16x16xf32>
      %295 = arith.maximumf %293, %294 : vector<16x16xf32>
      %296 = arith.cmpf olt, %263, %231 : vector<16x16xf32>
      %297 = arith.cmpf olt, %263, %235 : vector<16x16xf32>
      %298 = arith.cmpf olt, %263, %239 : vector<16x16xf32>
      %299 = arith.cmpf olt, %263, %243 : vector<16x16xf32>
      %300 = arith.cmpf olt, %263, %247 : vector<16x16xf32>
      %301 = arith.cmpf olt, %263, %251 : vector<16x16xf32>
      %302 = arith.cmpf olt, %263, %255 : vector<16x16xf32>
      %303 = arith.cmpf olt, %263, %259 : vector<16x16xf32>
      %304 = arith.select %296, %263, %231 : vector<16x16xi1>, vector<16x16xf32>
      %305 = arith.select %296, %295, %232 : vector<16x16xi1>, vector<16x16xf32>
      %306 = arith.select %297, %263, %235 : vector<16x16xi1>, vector<16x16xf32>
      %307 = arith.select %297, %295, %236 : vector<16x16xi1>, vector<16x16xf32>
      %308 = arith.select %296, %231, %306 : vector<16x16xi1>, vector<16x16xf32>
      %309 = arith.select %296, %232, %307 : vector<16x16xi1>, vector<16x16xf32>
      %310 = arith.select %298, %263, %239 : vector<16x16xi1>, vector<16x16xf32>
      %311 = arith.select %298, %295, %240 : vector<16x16xi1>, vector<16x16xf32>
      %312 = arith.select %297, %235, %310 : vector<16x16xi1>, vector<16x16xf32>
      %313 = arith.select %297, %236, %311 : vector<16x16xi1>, vector<16x16xf32>
      %314 = arith.select %299, %263, %243 : vector<16x16xi1>, vector<16x16xf32>
      %315 = arith.select %299, %295, %244 : vector<16x16xi1>, vector<16x16xf32>
      %316 = arith.select %298, %239, %314 : vector<16x16xi1>, vector<16x16xf32>
      %317 = arith.select %298, %240, %315 : vector<16x16xi1>, vector<16x16xf32>
      %318 = arith.select %300, %263, %247 : vector<16x16xi1>, vector<16x16xf32>
      %319 = arith.select %300, %295, %248 : vector<16x16xi1>, vector<16x16xf32>
      %320 = arith.select %299, %243, %318 : vector<16x16xi1>, vector<16x16xf32>
      %321 = arith.select %299, %244, %319 : vector<16x16xi1>, vector<16x16xf32>
      %322 = arith.select %301, %263, %251 : vector<16x16xi1>, vector<16x16xf32>
      %323 = arith.select %301, %295, %252 : vector<16x16xi1>, vector<16x16xf32>
      %324 = arith.select %300, %247, %322 : vector<16x16xi1>, vector<16x16xf32>
      %325 = arith.select %300, %248, %323 : vector<16x16xi1>, vector<16x16xf32>
      %326 = arith.select %302, %263, %255 : vector<16x16xi1>, vector<16x16xf32>
      %327 = arith.select %302, %295, %256 : vector<16x16xi1>, vector<16x16xf32>
      %328 = arith.select %301, %251, %326 : vector<16x16xi1>, vector<16x16xf32>
      %329 = arith.select %301, %252, %327 : vector<16x16xi1>, vector<16x16xf32>
      %330 = arith.select %303, %263, %259 : vector<16x16xi1>, vector<16x16xf32>
      %331 = arith.select %303, %295, %260 : vector<16x16xi1>, vector<16x16xf32>
      %332 = arith.select %302, %255, %330 : vector<16x16xi1>, vector<16x16xf32>
      %333 = arith.select %302, %256, %331 : vector<16x16xi1>, vector<16x16xf32>
      %c2_217 = arith.constant 2 : index
      %334 = arith.index_cast %187 : i32 to index
      %c0_218 = arith.constant 0 : index
      %335 = vector.load %arg7[%c2_217, %334, %c0_218] : memref<11x76x16xf32, #tpu.memory_space<vmem>>, vector<1x16x16xf32>
      %336 = vector.shape_cast %335 : vector<1x16x16xf32> to vector<16x16xf32>
      %c2_219 = arith.constant 2 : index
      %337 = arith.index_cast %187 : i32 to index
      %c0_220 = arith.constant 0 : index
      %338 = vector.load %arg6[%c2_219, %337, %c0_220] : memref<11x76x16xf32, #tpu.memory_space<vmem>>, vector<1x16x16xf32>
      %339 = vector.shape_cast %338 : vector<1x16x16xf32> to vector<16x16xf32>
      %340 = arith.subf %168, %339 : vector<16x16xf32>
      %c2_221 = arith.constant 2 : index
      %341 = arith.index_cast %187 : i32 to index
      %c0_222 = arith.constant 0 : index
      %342 = vector.load %arg5[%c2_221, %341, %c0_222] : memref<11x76x16xf32, #tpu.memory_space<vmem>>, vector<1x16x16xf32>
      %343 = vector.shape_cast %342 : vector<1x16x16xf32> to vector<16x16xf32>
      %344 = arith.subf %166, %343 : vector<16x16xf32>
      %cst_223 = arith.constant -1.000000e+00 : f32
      %cst_224 = arith.constant 1.000000e+00 : f32
      %345 = vector.broadcast %cst_223 : f32 to vector<16x16xf32>
      %346 = arith.maximumf %345, %340 : vector<16x16xf32>
      %347 = vector.broadcast %cst_224 : f32 to vector<16x16xf32>
      %348 = arith.minimumf %347, %346 : vector<16x16xf32>
      %349 = arith.subf %340, %348 : vector<16x16xf32>
      %350 = math.absf %349 : vector<16x16xf32>
      %cst_225 = arith.constant 1.000000e+00 : f32
      %351 = vector.broadcast %cst_225 : f32 to vector<16x16xf32>
      %352 = arith.addf %351, %350 : vector<16x16xf32>
      %353 = tpu.reciprocal %352 {approx = true} : vector<16x16xf32> -> vector<16x16xf32>
      %354 = arith.mulf %349, %353 : vector<16x16xf32>
      %355 = math.absf %344 : vector<16x16xf32>
      %cst_226 = arith.constant 9.99999993E-9 : f32
      %356 = vector.broadcast %cst_226 : f32 to vector<16x16xf32>
      %357 = arith.addf %355, %356 : vector<16x16xf32>
      %358 = arith.divf %344, %357 : vector<16x16xf32>
      %359 = arith.mulf %344, %344 : vector<16x16xf32>
      %cst_227 = arith.constant 1.000000e+00 : f32
      %360 = vector.broadcast %cst_227 : f32 to vector<16x16xf32>
      %361 = arith.addf %360, %359 : vector<16x16xf32>
      %362 = math.log %361 : vector<16x16xf32>
      %cst_228 = arith.constant 0.000000e+00 : f32
      %363 = vector.broadcast %cst_228 : f32 to vector<16x16xf32>
      %364 = arith.subf %363, %354 : vector<16x16xf32>
      %365 = arith.mulf %364, %358 : vector<16x16xf32>
      %366 = arith.mulf %365, %362 : vector<16x16xf32>
      %cst_229 = arith.constant 0.000000e+00 : f32
      %367 = vector.broadcast %cst_229 : f32 to vector<16x16xf32>
      %368 = arith.maximumf %366, %367 : vector<16x16xf32>
      %369 = arith.cmpf olt, %336, %304 : vector<16x16xf32>
      %370 = arith.cmpf olt, %336, %308 : vector<16x16xf32>
      %371 = arith.cmpf olt, %336, %312 : vector<16x16xf32>
      %372 = arith.cmpf olt, %336, %316 : vector<16x16xf32>
      %373 = arith.cmpf olt, %336, %320 : vector<16x16xf32>
      %374 = arith.cmpf olt, %336, %324 : vector<16x16xf32>
      %375 = arith.cmpf olt, %336, %328 : vector<16x16xf32>
      %376 = arith.cmpf olt, %336, %332 : vector<16x16xf32>
      %377 = arith.select %369, %336, %304 : vector<16x16xi1>, vector<16x16xf32>
      %378 = arith.select %369, %368, %305 : vector<16x16xi1>, vector<16x16xf32>
      %379 = arith.select %370, %336, %308 : vector<16x16xi1>, vector<16x16xf32>
      %380 = arith.select %370, %368, %309 : vector<16x16xi1>, vector<16x16xf32>
      %381 = arith.select %369, %304, %379 : vector<16x16xi1>, vector<16x16xf32>
      %382 = arith.select %369, %305, %380 : vector<16x16xi1>, vector<16x16xf32>
      %383 = arith.select %371, %336, %312 : vector<16x16xi1>, vector<16x16xf32>
      %384 = arith.select %371, %368, %313 : vector<16x16xi1>, vector<16x16xf32>
      %385 = arith.select %370, %308, %383 : vector<16x16xi1>, vector<16x16xf32>
      %386 = arith.select %370, %309, %384 : vector<16x16xi1>, vector<16x16xf32>
      %387 = arith.select %372, %336, %316 : vector<16x16xi1>, vector<16x16xf32>
      %388 = arith.select %372, %368, %317 : vector<16x16xi1>, vector<16x16xf32>
      %389 = arith.select %371, %312, %387 : vector<16x16xi1>, vector<16x16xf32>
      %390 = arith.select %371, %313, %388 : vector<16x16xi1>, vector<16x16xf32>
      %391 = arith.select %373, %336, %320 : vector<16x16xi1>, vector<16x16xf32>
      %392 = arith.select %373, %368, %321 : vector<16x16xi1>, vector<16x16xf32>
      %393 = arith.select %372, %316, %391 : vector<16x16xi1>, vector<16x16xf32>
      %394 = arith.select %372, %317, %392 : vector<16x16xi1>, vector<16x16xf32>
      %395 = arith.select %374, %336, %324 : vector<16x16xi1>, vector<16x16xf32>
      %396 = arith.select %374, %368, %325 : vector<16x16xi1>, vector<16x16xf32>
      %397 = arith.select %373, %320, %395 : vector<16x16xi1>, vector<16x16xf32>
      %398 = arith.select %373, %321, %396 : vector<16x16xi1>, vector<16x16xf32>
      %399 = arith.select %375, %336, %328 : vector<16x16xi1>, vector<16x16xf32>
      %400 = arith.select %375, %368, %329 : vector<16x16xi1>, vector<16x16xf32>
      %401 = arith.select %374, %324, %399 : vector<16x16xi1>, vector<16x16xf32>
      %402 = arith.select %374, %325, %400 : vector<16x16xi1>, vector<16x16xf32>
      %403 = arith.select %376, %336, %332 : vector<16x16xi1>, vector<16x16xf32>
      %404 = arith.select %376, %368, %333 : vector<16x16xi1>, vector<16x16xf32>
      %405 = arith.select %375, %328, %403 : vector<16x16xi1>, vector<16x16xf32>
      %406 = arith.select %375, %329, %404 : vector<16x16xi1>, vector<16x16xf32>
      %c3_230 = arith.constant 3 : index
      %407 = arith.index_cast %187 : i32 to index
      %c0_231 = arith.constant 0 : index
      %408 = vector.load %arg7[%c3_230, %407, %c0_231] : memref<11x76x16xf32, #tpu.memory_space<vmem>>, vector<1x16x16xf32>
      %409 = vector.shape_cast %408 : vector<1x16x16xf32> to vector<16x16xf32>
      %c3_232 = arith.constant 3 : index
      %410 = arith.index_cast %187 : i32 to index
      %c0_233 = arith.constant 0 : index
      %411 = vector.load %arg6[%c3_232, %410, %c0_233] : memref<11x76x16xf32, #tpu.memory_space<vmem>>, vector<1x16x16xf32>
      %412 = vector.shape_cast %411 : vector<1x16x16xf32> to vector<16x16xf32>
      %413 = arith.subf %168, %412 : vector<16x16xf32>
      %c3_234 = arith.constant 3 : index
      %414 = arith.index_cast %187 : i32 to index
      %c0_235 = arith.constant 0 : index
      %415 = vector.load %arg5[%c3_234, %414, %c0_235] : memref<11x76x16xf32, #tpu.memory_space<vmem>>, vector<1x16x16xf32>
      %416 = vector.shape_cast %415 : vector<1x16x16xf32> to vector<16x16xf32>
      %417 = arith.subf %166, %416 : vector<16x16xf32>
      %cst_236 = arith.constant -1.000000e+00 : f32
      %cst_237 = arith.constant 1.000000e+00 : f32
      %418 = vector.broadcast %cst_236 : f32 to vector<16x16xf32>
      %419 = arith.maximumf %418, %413 : vector<16x16xf32>
      %420 = vector.broadcast %cst_237 : f32 to vector<16x16xf32>
      %421 = arith.minimumf %420, %419 : vector<16x16xf32>
      %422 = arith.subf %413, %421 : vector<16x16xf32>
      %423 = math.absf %422 : vector<16x16xf32>
      %cst_238 = arith.constant 1.000000e+00 : f32
      %424 = vector.broadcast %cst_238 : f32 to vector<16x16xf32>
      %425 = arith.addf %424, %423 : vector<16x16xf32>
      %426 = tpu.reciprocal %425 {approx = true} : vector<16x16xf32> -> vector<16x16xf32>
      %427 = arith.mulf %422, %426 : vector<16x16xf32>
      %428 = math.absf %417 : vector<16x16xf32>
      %cst_239 = arith.constant 9.99999993E-9 : f32
      %429 = vector.broadcast %cst_239 : f32 to vector<16x16xf32>
      %430 = arith.addf %428, %429 : vector<16x16xf32>
      %431 = arith.divf %417, %430 : vector<16x16xf32>
      %432 = arith.mulf %417, %417 : vector<16x16xf32>
      %cst_240 = arith.constant 1.000000e+00 : f32
      %433 = vector.broadcast %cst_240 : f32 to vector<16x16xf32>
      %434 = arith.addf %433, %432 : vector<16x16xf32>
      %435 = math.log %434 : vector<16x16xf32>
      %cst_241 = arith.constant 0.000000e+00 : f32
      %436 = vector.broadcast %cst_241 : f32 to vector<16x16xf32>
      %437 = arith.subf %436, %427 : vector<16x16xf32>
      %438 = arith.mulf %437, %431 : vector<16x16xf32>
      %439 = arith.mulf %438, %435 : vector<16x16xf32>
      %cst_242 = arith.constant 0.000000e+00 : f32
      %440 = vector.broadcast %cst_242 : f32 to vector<16x16xf32>
      %441 = arith.maximumf %439, %440 : vector<16x16xf32>
      %442 = arith.cmpf olt, %409, %377 : vector<16x16xf32>
      %443 = arith.cmpf olt, %409, %381 : vector<16x16xf32>
      %444 = arith.cmpf olt, %409, %385 : vector<16x16xf32>
      %445 = arith.cmpf olt, %409, %389 : vector<16x16xf32>
      %446 = arith.cmpf olt, %409, %393 : vector<16x16xf32>
      %447 = arith.cmpf olt, %409, %397 : vector<16x16xf32>
      %448 = arith.cmpf olt, %409, %401 : vector<16x16xf32>
      %449 = arith.cmpf olt, %409, %405 : vector<16x16xf32>
      %450 = arith.select %442, %409, %377 : vector<16x16xi1>, vector<16x16xf32>
      %451 = arith.select %442, %441, %378 : vector<16x16xi1>, vector<16x16xf32>
      %452 = arith.select %443, %409, %381 : vector<16x16xi1>, vector<16x16xf32>
      %453 = arith.select %443, %441, %382 : vector<16x16xi1>, vector<16x16xf32>
      %454 = arith.select %442, %377, %452 : vector<16x16xi1>, vector<16x16xf32>
      %455 = arith.select %442, %378, %453 : vector<16x16xi1>, vector<16x16xf32>
      %456 = arith.select %444, %409, %385 : vector<16x16xi1>, vector<16x16xf32>
      %457 = arith.select %444, %441, %386 : vector<16x16xi1>, vector<16x16xf32>
      %458 = arith.select %443, %381, %456 : vector<16x16xi1>, vector<16x16xf32>
      %459 = arith.select %443, %382, %457 : vector<16x16xi1>, vector<16x16xf32>
      %460 = arith.select %445, %409, %389 : vector<16x16xi1>, vector<16x16xf32>
      %461 = arith.select %445, %441, %390 : vector<16x16xi1>, vector<16x16xf32>
      %462 = arith.select %444, %385, %460 : vector<16x16xi1>, vector<16x16xf32>
      %463 = arith.select %444, %386, %461 : vector<16x16xi1>, vector<16x16xf32>
      %464 = arith.select %446, %409, %393 : vector<16x16xi1>, vector<16x16xf32>
      %465 = arith.select %446, %441, %394 : vector<16x16xi1>, vector<16x16xf32>
      %466 = arith.select %445, %389, %464 : vector<16x16xi1>, vector<16x16xf32>
      %467 = arith.select %445, %390, %465 : vector<16x16xi1>, vector<16x16xf32>
      %468 = arith.select %447, %409, %397 : vector<16x16xi1>, vector<16x16xf32>
      %469 = arith.select %447, %441, %398 : vector<16x16xi1>, vector<16x16xf32>
      %470 = arith.select %446, %393, %468 : vector<16x16xi1>, vector<16x16xf32>
      %471 = arith.select %446, %394, %469 : vector<16x16xi1>, vector<16x16xf32>
      %472 = arith.select %448, %409, %401 : vector<16x16xi1>, vector<16x16xf32>
      %473 = arith.select %448, %441, %402 : vector<16x16xi1>, vector<16x16xf32>
      %474 = arith.select %447, %397, %472 : vector<16x16xi1>, vector<16x16xf32>
      %475 = arith.select %447, %398, %473 : vector<16x16xi1>, vector<16x16xf32>
      %476 = arith.select %449, %409, %405 : vector<16x16xi1>, vector<16x16xf32>
      %477 = arith.select %449, %441, %406 : vector<16x16xi1>, vector<16x16xf32>
      %478 = arith.select %448, %401, %476 : vector<16x16xi1>, vector<16x16xf32>
      %479 = arith.select %448, %402, %477 : vector<16x16xi1>, vector<16x16xf32>
      %c4_243 = arith.constant 4 : index
      %480 = arith.index_cast %187 : i32 to index
      %c0_244 = arith.constant 0 : index
      %481 = vector.load %arg7[%c4_243, %480, %c0_244] : memref<11x76x16xf32, #tpu.memory_space<vmem>>, vector<1x16x16xf32>
      %482 = vector.shape_cast %481 : vector<1x16x16xf32> to vector<16x16xf32>
      %c4_245 = arith.constant 4 : index
      %483 = arith.index_cast %187 : i32 to index
      %c0_246 = arith.constant 0 : index
      %484 = vector.load %arg6[%c4_245, %483, %c0_246] : memref<11x76x16xf32, #tpu.memory_space<vmem>>, vector<1x16x16xf32>
      %485 = vector.shape_cast %484 : vector<1x16x16xf32> to vector<16x16xf32>
      %486 = arith.subf %168, %485 : vector<16x16xf32>
      %c4_247 = arith.constant 4 : index
      %487 = arith.index_cast %187 : i32 to index
      %c0_248 = arith.constant 0 : index
      %488 = vector.load %arg5[%c4_247, %487, %c0_248] : memref<11x76x16xf32, #tpu.memory_space<vmem>>, vector<1x16x16xf32>
      %489 = vector.shape_cast %488 : vector<1x16x16xf32> to vector<16x16xf32>
      %490 = arith.subf %166, %489 : vector<16x16xf32>
      %cst_249 = arith.constant -1.000000e+00 : f32
      %cst_250 = arith.constant 1.000000e+00 : f32
      %491 = vector.broadcast %cst_249 : f32 to vector<16x16xf32>
      %492 = arith.maximumf %491, %486 : vector<16x16xf32>
      %493 = vector.broadcast %cst_250 : f32 to vector<16x16xf32>
      %494 = arith.minimumf %493, %492 : vector<16x16xf32>
      %495 = arith.subf %486, %494 : vector<16x16xf32>
      %496 = math.absf %495 : vector<16x16xf32>
      %cst_251 = arith.constant 1.000000e+00 : f32
      %497 = vector.broadcast %cst_251 : f32 to vector<16x16xf32>
      %498 = arith.addf %497, %496 : vector<16x16xf32>
      %499 = tpu.reciprocal %498 {approx = true} : vector<16x16xf32> -> vector<16x16xf32>
      %500 = arith.mulf %495, %499 : vector<16x16xf32>
      %501 = math.absf %490 : vector<16x16xf32>
      %cst_252 = arith.constant 9.99999993E-9 : f32
      %502 = vector.broadcast %cst_252 : f32 to vector<16x16xf32>
      %503 = arith.addf %501, %502 : vector<16x16xf32>
      %504 = arith.divf %490, %503 : vector<16x16xf32>
      %505 = arith.mulf %490, %490 : vector<16x16xf32>
      %cst_253 = arith.constant 1.000000e+00 : f32
      %506 = vector.broadcast %cst_253 : f32 to vector<16x16xf32>
      %507 = arith.addf %506, %505 : vector<16x16xf32>
      %508 = math.log %507 : vector<16x16xf32>
      %cst_254 = arith.constant 0.000000e+00 : f32
      %509 = vector.broadcast %cst_254 : f32 to vector<16x16xf32>
      %510 = arith.subf %509, %500 : vector<16x16xf32>
      %511 = arith.mulf %510, %504 : vector<16x16xf32>
      %512 = arith.mulf %511, %508 : vector<16x16xf32>
      %cst_255 = arith.constant 0.000000e+00 : f32
      %513 = vector.broadcast %cst_255 : f32 to vector<16x16xf32>
      %514 = arith.maximumf %512, %513 : vector<16x16xf32>
      %515 = arith.cmpf olt, %482, %450 : vector<16x16xf32>
      %516 = arith.cmpf olt, %482, %454 : vector<16x16xf32>
      %517 = arith.cmpf olt, %482, %458 : vector<16x16xf32>
      %518 = arith.cmpf olt, %482, %462 : vector<16x16xf32>
      %519 = arith.cmpf olt, %482, %466 : vector<16x16xf32>
      %520 = arith.cmpf olt, %482, %470 : vector<16x16xf32>
      %521 = arith.cmpf olt, %482, %474 : vector<16x16xf32>
      %522 = arith.cmpf olt, %482, %478 : vector<16x16xf32>
      %523 = arith.select %515, %482, %450 : vector<16x16xi1>, vector<16x16xf32>
      %524 = arith.select %515, %514, %451 : vector<16x16xi1>, vector<16x16xf32>
      %525 = arith.select %516, %482, %454 : vector<16x16xi1>, vector<16x16xf32>
      %526 = arith.select %516, %514, %455 : vector<16x16xi1>, vector<16x16xf32>
      %527 = arith.select %515, %450, %525 : vector<16x16xi1>, vector<16x16xf32>
      %528 = arith.select %515, %451, %526 : vector<16x16xi1>, vector<16x16xf32>
      %529 = arith.select %517, %482, %458 : vector<16x16xi1>, vector<16x16xf32>
      %530 = arith.select %517, %514, %459 : vector<16x16xi1>, vector<16x16xf32>
      %531 = arith.select %516, %454, %529 : vector<16x16xi1>, vector<16x16xf32>
      %532 = arith.select %516, %455, %530 : vector<16x16xi1>, vector<16x16xf32>
      %533 = arith.select %518, %482, %462 : vector<16x16xi1>, vector<16x16xf32>
      %534 = arith.select %518, %514, %463 : vector<16x16xi1>, vector<16x16xf32>
      %535 = arith.select %517, %458, %533 : vector<16x16xi1>, vector<16x16xf32>
      %536 = arith.select %517, %459, %534 : vector<16x16xi1>, vector<16x16xf32>
      %537 = arith.select %519, %482, %466 : vector<16x16xi1>, vector<16x16xf32>
      %538 = arith.select %519, %514, %467 : vector<16x16xi1>, vector<16x16xf32>
      %539 = arith.select %518, %462, %537 : vector<16x16xi1>, vector<16x16xf32>
      %540 = arith.select %518, %463, %538 : vector<16x16xi1>, vector<16x16xf32>
      %541 = arith.select %520, %482, %470 : vector<16x16xi1>, vector<16x16xf32>
      %542 = arith.select %520, %514, %471 : vector<16x16xi1>, vector<16x16xf32>
      %543 = arith.select %519, %466, %541 : vector<16x16xi1>, vector<16x16xf32>
      %544 = arith.select %519, %467, %542 : vector<16x16xi1>, vector<16x16xf32>
      %545 = arith.select %521, %482, %474 : vector<16x16xi1>, vector<16x16xf32>
      %546 = arith.select %521, %514, %475 : vector<16x16xi1>, vector<16x16xf32>
      %547 = arith.select %520, %470, %545 : vector<16x16xi1>, vector<16x16xf32>
      %548 = arith.select %520, %471, %546 : vector<16x16xi1>, vector<16x16xf32>
      %549 = arith.select %522, %482, %478 : vector<16x16xi1>, vector<16x16xf32>
      %550 = arith.select %522, %514, %479 : vector<16x16xi1>, vector<16x16xf32>
      %551 = arith.select %521, %474, %549 : vector<16x16xi1>, vector<16x16xf32>
      %552 = arith.select %521, %475, %550 : vector<16x16xi1>, vector<16x16xf32>
      %c5_256 = arith.constant 5 : index
      %553 = arith.index_cast %187 : i32 to index
      %c0_257 = arith.constant 0 : index
      %554 = vector.load %arg7[%c5_256, %553, %c0_257] : memref<11x76x16xf32, #tpu.memory_space<vmem>>, vector<1x16x16xf32>
      %555 = vector.shape_cast %554 : vector<1x16x16xf32> to vector<16x16xf32>
      %c5_258 = arith.constant 5 : index
      %556 = arith.index_cast %187 : i32 to index
      %c0_259 = arith.constant 0 : index
      %557 = vector.load %arg6[%c5_258, %556, %c0_259] : memref<11x76x16xf32, #tpu.memory_space<vmem>>, vector<1x16x16xf32>
      %558 = vector.shape_cast %557 : vector<1x16x16xf32> to vector<16x16xf32>
      %559 = arith.subf %168, %558 : vector<16x16xf32>
      %c5_260 = arith.constant 5 : index
      %560 = arith.index_cast %187 : i32 to index
      %c0_261 = arith.constant 0 : index
      %561 = vector.load %arg5[%c5_260, %560, %c0_261] : memref<11x76x16xf32, #tpu.memory_space<vmem>>, vector<1x16x16xf32>
      %562 = vector.shape_cast %561 : vector<1x16x16xf32> to vector<16x16xf32>
      %563 = arith.subf %166, %562 : vector<16x16xf32>
      %cst_262 = arith.constant -1.000000e+00 : f32
      %cst_263 = arith.constant 1.000000e+00 : f32
      %564 = vector.broadcast %cst_262 : f32 to vector<16x16xf32>
      %565 = arith.maximumf %564, %559 : vector<16x16xf32>
      %566 = vector.broadcast %cst_263 : f32 to vector<16x16xf32>
      %567 = arith.minimumf %566, %565 : vector<16x16xf32>
      %568 = arith.subf %559, %567 : vector<16x16xf32>
      %569 = math.absf %568 : vector<16x16xf32>
      %cst_264 = arith.constant 1.000000e+00 : f32
      %570 = vector.broadcast %cst_264 : f32 to vector<16x16xf32>
      %571 = arith.addf %570, %569 : vector<16x16xf32>
      %572 = tpu.reciprocal %571 {approx = true} : vector<16x16xf32> -> vector<16x16xf32>
      %573 = arith.mulf %568, %572 : vector<16x16xf32>
      %574 = math.absf %563 : vector<16x16xf32>
      %cst_265 = arith.constant 9.99999993E-9 : f32
      %575 = vector.broadcast %cst_265 : f32 to vector<16x16xf32>
      %576 = arith.addf %574, %575 : vector<16x16xf32>
      %577 = arith.divf %563, %576 : vector<16x16xf32>
      %578 = arith.mulf %563, %563 : vector<16x16xf32>
      %cst_266 = arith.constant 1.000000e+00 : f32
      %579 = vector.broadcast %cst_266 : f32 to vector<16x16xf32>
      %580 = arith.addf %579, %578 : vector<16x16xf32>
      %581 = math.log %580 : vector<16x16xf32>
      %cst_267 = arith.constant 0.000000e+00 : f32
      %582 = vector.broadcast %cst_267 : f32 to vector<16x16xf32>
      %583 = arith.subf %582, %573 : vector<16x16xf32>
      %584 = arith.mulf %583, %577 : vector<16x16xf32>
      %585 = arith.mulf %584, %581 : vector<16x16xf32>
      %cst_268 = arith.constant 0.000000e+00 : f32
      %586 = vector.broadcast %cst_268 : f32 to vector<16x16xf32>
      %587 = arith.maximumf %585, %586 : vector<16x16xf32>
      %588 = arith.cmpf olt, %555, %523 : vector<16x16xf32>
      %589 = arith.cmpf olt, %555, %527 : vector<16x16xf32>
      %590 = arith.cmpf olt, %555, %531 : vector<16x16xf32>
      %591 = arith.cmpf olt, %555, %535 : vector<16x16xf32>
      %592 = arith.cmpf olt, %555, %539 : vector<16x16xf32>
      %593 = arith.cmpf olt, %555, %543 : vector<16x16xf32>
      %594 = arith.cmpf olt, %555, %547 : vector<16x16xf32>
      %595 = arith.cmpf olt, %555, %551 : vector<16x16xf32>
      %596 = arith.select %588, %555, %523 : vector<16x16xi1>, vector<16x16xf32>
      %597 = arith.select %588, %587, %524 : vector<16x16xi1>, vector<16x16xf32>
      %598 = arith.select %589, %555, %527 : vector<16x16xi1>, vector<16x16xf32>
      %599 = arith.select %589, %587, %528 : vector<16x16xi1>, vector<16x16xf32>
      %600 = arith.select %588, %523, %598 : vector<16x16xi1>, vector<16x16xf32>
      %601 = arith.select %588, %524, %599 : vector<16x16xi1>, vector<16x16xf32>
      %602 = arith.select %590, %555, %531 : vector<16x16xi1>, vector<16x16xf32>
      %603 = arith.select %590, %587, %532 : vector<16x16xi1>, vector<16x16xf32>
      %604 = arith.select %589, %527, %602 : vector<16x16xi1>, vector<16x16xf32>
      %605 = arith.select %589, %528, %603 : vector<16x16xi1>, vector<16x16xf32>
      %606 = arith.select %591, %555, %535 : vector<16x16xi1>, vector<16x16xf32>
      %607 = arith.select %591, %587, %536 : vector<16x16xi1>, vector<16x16xf32>
      %608 = arith.select %590, %531, %606 : vector<16x16xi1>, vector<16x16xf32>
      %609 = arith.select %590, %532, %607 : vector<16x16xi1>, vector<16x16xf32>
      %610 = arith.select %592, %555, %539 : vector<16x16xi1>, vector<16x16xf32>
      %611 = arith.select %592, %587, %540 : vector<16x16xi1>, vector<16x16xf32>
      %612 = arith.select %591, %535, %610 : vector<16x16xi1>, vector<16x16xf32>
      %613 = arith.select %591, %536, %611 : vector<16x16xi1>, vector<16x16xf32>
      %614 = arith.select %593, %555, %543 : vector<16x16xi1>, vector<16x16xf32>
      %615 = arith.select %593, %587, %544 : vector<16x16xi1>, vector<16x16xf32>
      %616 = arith.select %592, %539, %614 : vector<16x16xi1>, vector<16x16xf32>
      %617 = arith.select %592, %540, %615 : vector<16x16xi1>, vector<16x16xf32>
      %618 = arith.select %594, %555, %547 : vector<16x16xi1>, vector<16x16xf32>
      %619 = arith.select %594, %587, %548 : vector<16x16xi1>, vector<16x16xf32>
      %620 = arith.select %593, %543, %618 : vector<16x16xi1>, vector<16x16xf32>
      %621 = arith.select %593, %544, %619 : vector<16x16xi1>, vector<16x16xf32>
      %622 = arith.select %595, %555, %551 : vector<16x16xi1>, vector<16x16xf32>
      %623 = arith.select %595, %587, %552 : vector<16x16xi1>, vector<16x16xf32>
      %624 = arith.select %594, %547, %622 : vector<16x16xi1>, vector<16x16xf32>
      %625 = arith.select %594, %548, %623 : vector<16x16xi1>, vector<16x16xf32>
      %c6_269 = arith.constant 6 : index
      %626 = arith.index_cast %187 : i32 to index
      %c0_270 = arith.constant 0 : index
      %627 = vector.load %arg7[%c6_269, %626, %c0_270] : memref<11x76x16xf32, #tpu.memory_space<vmem>>, vector<1x16x16xf32>
      %628 = vector.shape_cast %627 : vector<1x16x16xf32> to vector<16x16xf32>
      %c6_271 = arith.constant 6 : index
      %629 = arith.index_cast %187 : i32 to index
      %c0_272 = arith.constant 0 : index
      %630 = vector.load %arg6[%c6_271, %629, %c0_272] : memref<11x76x16xf32, #tpu.memory_space<vmem>>, vector<1x16x16xf32>
      %631 = vector.shape_cast %630 : vector<1x16x16xf32> to vector<16x16xf32>
      %632 = arith.subf %168, %631 : vector<16x16xf32>
      %c6_273 = arith.constant 6 : index
      %633 = arith.index_cast %187 : i32 to index
      %c0_274 = arith.constant 0 : index
      %634 = vector.load %arg5[%c6_273, %633, %c0_274] : memref<11x76x16xf32, #tpu.memory_space<vmem>>, vector<1x16x16xf32>
      %635 = vector.shape_cast %634 : vector<1x16x16xf32> to vector<16x16xf32>
      %636 = arith.subf %166, %635 : vector<16x16xf32>
      %cst_275 = arith.constant -1.000000e+00 : f32
      %cst_276 = arith.constant 1.000000e+00 : f32
      %637 = vector.broadcast %cst_275 : f32 to vector<16x16xf32>
      %638 = arith.maximumf %637, %632 : vector<16x16xf32>
      %639 = vector.broadcast %cst_276 : f32 to vector<16x16xf32>
      %640 = arith.minimumf %639, %638 : vector<16x16xf32>
      %641 = arith.subf %632, %640 : vector<16x16xf32>
      %642 = math.absf %641 : vector<16x16xf32>
      %cst_277 = arith.constant 1.000000e+00 : f32
      %643 = vector.broadcast %cst_277 : f32 to vector<16x16xf32>
      %644 = arith.addf %643, %642 : vector<16x16xf32>
      %645 = tpu.reciprocal %644 {approx = true} : vector<16x16xf32> -> vector<16x16xf32>
      %646 = arith.mulf %641, %645 : vector<16x16xf32>
      %647 = math.absf %636 : vector<16x16xf32>
      %cst_278 = arith.constant 9.99999993E-9 : f32
      %648 = vector.broadcast %cst_278 : f32 to vector<16x16xf32>
      %649 = arith.addf %647, %648 : vector<16x16xf32>
      %650 = arith.divf %636, %649 : vector<16x16xf32>
      %651 = arith.mulf %636, %636 : vector<16x16xf32>
      %cst_279 = arith.constant 1.000000e+00 : f32
      %652 = vector.broadcast %cst_279 : f32 to vector<16x16xf32>
      %653 = arith.addf %652, %651 : vector<16x16xf32>
      %654 = math.log %653 : vector<16x16xf32>
      %cst_280 = arith.constant 0.000000e+00 : f32
      %655 = vector.broadcast %cst_280 : f32 to vector<16x16xf32>
      %656 = arith.subf %655, %646 : vector<16x16xf32>
      %657 = arith.mulf %656, %650 : vector<16x16xf32>
      %658 = arith.mulf %657, %654 : vector<16x16xf32>
      %cst_281 = arith.constant 0.000000e+00 : f32
      %659 = vector.broadcast %cst_281 : f32 to vector<16x16xf32>
      %660 = arith.maximumf %658, %659 : vector<16x16xf32>
      %661 = arith.cmpf olt, %628, %596 : vector<16x16xf32>
      %662 = arith.cmpf olt, %628, %600 : vector<16x16xf32>
      %663 = arith.cmpf olt, %628, %604 : vector<16x16xf32>
      %664 = arith.cmpf olt, %628, %608 : vector<16x16xf32>
      %665 = arith.cmpf olt, %628, %612 : vector<16x16xf32>
      %666 = arith.cmpf olt, %628, %616 : vector<16x16xf32>
      %667 = arith.cmpf olt, %628, %620 : vector<16x16xf32>
      %668 = arith.cmpf olt, %628, %624 : vector<16x16xf32>
      %669 = arith.select %661, %628, %596 : vector<16x16xi1>, vector<16x16xf32>
      %670 = arith.select %661, %660, %597 : vector<16x16xi1>, vector<16x16xf32>
      %671 = arith.select %662, %628, %600 : vector<16x16xi1>, vector<16x16xf32>
      %672 = arith.select %662, %660, %601 : vector<16x16xi1>, vector<16x16xf32>
      %673 = arith.select %661, %596, %671 : vector<16x16xi1>, vector<16x16xf32>
      %674 = arith.select %661, %597, %672 : vector<16x16xi1>, vector<16x16xf32>
      %675 = arith.select %663, %628, %604 : vector<16x16xi1>, vector<16x16xf32>
      %676 = arith.select %663, %660, %605 : vector<16x16xi1>, vector<16x16xf32>
      %677 = arith.select %662, %600, %675 : vector<16x16xi1>, vector<16x16xf32>
      %678 = arith.select %662, %601, %676 : vector<16x16xi1>, vector<16x16xf32>
      %679 = arith.select %664, %628, %608 : vector<16x16xi1>, vector<16x16xf32>
      %680 = arith.select %664, %660, %609 : vector<16x16xi1>, vector<16x16xf32>
      %681 = arith.select %663, %604, %679 : vector<16x16xi1>, vector<16x16xf32>
      %682 = arith.select %663, %605, %680 : vector<16x16xi1>, vector<16x16xf32>
      %683 = arith.select %665, %628, %612 : vector<16x16xi1>, vector<16x16xf32>
      %684 = arith.select %665, %660, %613 : vector<16x16xi1>, vector<16x16xf32>
      %685 = arith.select %664, %608, %683 : vector<16x16xi1>, vector<16x16xf32>
      %686 = arith.select %664, %609, %684 : vector<16x16xi1>, vector<16x16xf32>
      %687 = arith.select %666, %628, %616 : vector<16x16xi1>, vector<16x16xf32>
      %688 = arith.select %666, %660, %617 : vector<16x16xi1>, vector<16x16xf32>
      %689 = arith.select %665, %612, %687 : vector<16x16xi1>, vector<16x16xf32>
      %690 = arith.select %665, %613, %688 : vector<16x16xi1>, vector<16x16xf32>
      %691 = arith.select %667, %628, %620 : vector<16x16xi1>, vector<16x16xf32>
      %692 = arith.select %667, %660, %621 : vector<16x16xi1>, vector<16x16xf32>
      %693 = arith.select %666, %616, %691 : vector<16x16xi1>, vector<16x16xf32>
      %694 = arith.select %666, %617, %692 : vector<16x16xi1>, vector<16x16xf32>
      %695 = arith.select %668, %628, %624 : vector<16x16xi1>, vector<16x16xf32>
      %696 = arith.select %668, %660, %625 : vector<16x16xi1>, vector<16x16xf32>
      %697 = arith.select %667, %620, %695 : vector<16x16xi1>, vector<16x16xf32>
      %698 = arith.select %667, %621, %696 : vector<16x16xi1>, vector<16x16xf32>
      %c7_282 = arith.constant 7 : index
      %699 = arith.index_cast %187 : i32 to index
      %c0_283 = arith.constant 0 : index
      %700 = vector.load %arg7[%c7_282, %699, %c0_283] : memref<11x76x16xf32, #tpu.memory_space<vmem>>, vector<1x16x16xf32>
      %701 = vector.shape_cast %700 : vector<1x16x16xf32> to vector<16x16xf32>
      %c7_284 = arith.constant 7 : index
      %702 = arith.index_cast %187 : i32 to index
      %c0_285 = arith.constant 0 : index
      %703 = vector.load %arg6[%c7_284, %702, %c0_285] : memref<11x76x16xf32, #tpu.memory_space<vmem>>, vector<1x16x16xf32>
      %704 = vector.shape_cast %703 : vector<1x16x16xf32> to vector<16x16xf32>
      %705 = arith.subf %168, %704 : vector<16x16xf32>
      %c7_286 = arith.constant 7 : index
      %706 = arith.index_cast %187 : i32 to index
      %c0_287 = arith.constant 0 : index
      %707 = vector.load %arg5[%c7_286, %706, %c0_287] : memref<11x76x16xf32, #tpu.memory_space<vmem>>, vector<1x16x16xf32>
      %708 = vector.shape_cast %707 : vector<1x16x16xf32> to vector<16x16xf32>
      %709 = arith.subf %166, %708 : vector<16x16xf32>
      %cst_288 = arith.constant -1.000000e+00 : f32
      %cst_289 = arith.constant 1.000000e+00 : f32
      %710 = vector.broadcast %cst_288 : f32 to vector<16x16xf32>
      %711 = arith.maximumf %710, %705 : vector<16x16xf32>
      %712 = vector.broadcast %cst_289 : f32 to vector<16x16xf32>
      %713 = arith.minimumf %712, %711 : vector<16x16xf32>
      %714 = arith.subf %705, %713 : vector<16x16xf32>
      %715 = math.absf %714 : vector<16x16xf32>
      %cst_290 = arith.constant 1.000000e+00 : f32
      %716 = vector.broadcast %cst_290 : f32 to vector<16x16xf32>
      %717 = arith.addf %716, %715 : vector<16x16xf32>
      %718 = tpu.reciprocal %717 {approx = true} : vector<16x16xf32> -> vector<16x16xf32>
      %719 = arith.mulf %714, %718 : vector<16x16xf32>
      %720 = math.absf %709 : vector<16x16xf32>
      %cst_291 = arith.constant 9.99999993E-9 : f32
      %721 = vector.broadcast %cst_291 : f32 to vector<16x16xf32>
      %722 = arith.addf %720, %721 : vector<16x16xf32>
      %723 = arith.divf %709, %722 : vector<16x16xf32>
      %724 = arith.mulf %709, %709 : vector<16x16xf32>
      %cst_292 = arith.constant 1.000000e+00 : f32
      %725 = vector.broadcast %cst_292 : f32 to vector<16x16xf32>
      %726 = arith.addf %725, %724 : vector<16x16xf32>
      %727 = math.log %726 : vector<16x16xf32>
      %cst_293 = arith.constant 0.000000e+00 : f32
      %728 = vector.broadcast %cst_293 : f32 to vector<16x16xf32>
      %729 = arith.subf %728, %719 : vector<16x16xf32>
      %730 = arith.mulf %729, %723 : vector<16x16xf32>
      %731 = arith.mulf %730, %727 : vector<16x16xf32>
      %cst_294 = arith.constant 0.000000e+00 : f32
      %732 = vector.broadcast %cst_294 : f32 to vector<16x16xf32>
      %733 = arith.maximumf %731, %732 : vector<16x16xf32>
      %734 = arith.cmpf olt, %701, %669 : vector<16x16xf32>
      %735 = arith.cmpf olt, %701, %673 : vector<16x16xf32>
      %736 = arith.cmpf olt, %701, %677 : vector<16x16xf32>
      %737 = arith.cmpf olt, %701, %681 : vector<16x16xf32>
      %738 = arith.cmpf olt, %701, %685 : vector<16x16xf32>
      %739 = arith.cmpf olt, %701, %689 : vector<16x16xf32>
      %740 = arith.cmpf olt, %701, %693 : vector<16x16xf32>
      %741 = arith.cmpf olt, %701, %697 : vector<16x16xf32>
      %742 = arith.select %734, %701, %669 : vector<16x16xi1>, vector<16x16xf32>
      %743 = arith.select %734, %733, %670 : vector<16x16xi1>, vector<16x16xf32>
      %744 = arith.select %735, %701, %673 : vector<16x16xi1>, vector<16x16xf32>
      %745 = arith.select %735, %733, %674 : vector<16x16xi1>, vector<16x16xf32>
      %746 = arith.select %734, %669, %744 : vector<16x16xi1>, vector<16x16xf32>
      %747 = arith.select %734, %670, %745 : vector<16x16xi1>, vector<16x16xf32>
      %748 = arith.select %736, %701, %677 : vector<16x16xi1>, vector<16x16xf32>
      %749 = arith.select %736, %733, %678 : vector<16x16xi1>, vector<16x16xf32>
      %750 = arith.select %735, %673, %748 : vector<16x16xi1>, vector<16x16xf32>
      %751 = arith.select %735, %674, %749 : vector<16x16xi1>, vector<16x16xf32>
      %752 = arith.select %737, %701, %681 : vector<16x16xi1>, vector<16x16xf32>
      %753 = arith.select %737, %733, %682 : vector<16x16xi1>, vector<16x16xf32>
      %754 = arith.select %736, %677, %752 : vector<16x16xi1>, vector<16x16xf32>
      %755 = arith.select %736, %678, %753 : vector<16x16xi1>, vector<16x16xf32>
      %756 = arith.select %738, %701, %685 : vector<16x16xi1>, vector<16x16xf32>
      %757 = arith.select %738, %733, %686 : vector<16x16xi1>, vector<16x16xf32>
      %758 = arith.select %737, %681, %756 : vector<16x16xi1>, vector<16x16xf32>
      %759 = arith.select %737, %682, %757 : vector<16x16xi1>, vector<16x16xf32>
      %760 = arith.select %739, %701, %689 : vector<16x16xi1>, vector<16x16xf32>
      %761 = arith.select %739, %733, %690 : vector<16x16xi1>, vector<16x16xf32>
      %762 = arith.select %738, %685, %760 : vector<16x16xi1>, vector<16x16xf32>
      %763 = arith.select %738, %686, %761 : vector<16x16xi1>, vector<16x16xf32>
      %764 = arith.select %740, %701, %693 : vector<16x16xi1>, vector<16x16xf32>
      %765 = arith.select %740, %733, %694 : vector<16x16xi1>, vector<16x16xf32>
      %766 = arith.select %739, %689, %764 : vector<16x16xi1>, vector<16x16xf32>
      %767 = arith.select %739, %690, %765 : vector<16x16xi1>, vector<16x16xf32>
      %768 = arith.select %741, %701, %697 : vector<16x16xi1>, vector<16x16xf32>
      %769 = arith.select %741, %733, %698 : vector<16x16xi1>, vector<16x16xf32>
      %770 = arith.select %740, %693, %768 : vector<16x16xi1>, vector<16x16xf32>
      %771 = arith.select %740, %694, %769 : vector<16x16xi1>, vector<16x16xf32>
      %c8_295 = arith.constant 8 : index
      %772 = arith.index_cast %187 : i32 to index
      %c0_296 = arith.constant 0 : index
      %773 = vector.load %arg7[%c8_295, %772, %c0_296] : memref<11x76x16xf32, #tpu.memory_space<vmem>>, vector<1x16x16xf32>
      %774 = vector.shape_cast %773 : vector<1x16x16xf32> to vector<16x16xf32>
      %c8_297 = arith.constant 8 : index
      %775 = arith.index_cast %187 : i32 to index
      %c0_298 = arith.constant 0 : index
      %776 = vector.load %arg6[%c8_297, %775, %c0_298] : memref<11x76x16xf32, #tpu.memory_space<vmem>>, vector<1x16x16xf32>
      %777 = vector.shape_cast %776 : vector<1x16x16xf32> to vector<16x16xf32>
      %778 = arith.subf %168, %777 : vector<16x16xf32>
      %c8_299 = arith.constant 8 : index
      %779 = arith.index_cast %187 : i32 to index
      %c0_300 = arith.constant 0 : index
      %780 = vector.load %arg5[%c8_299, %779, %c0_300] : memref<11x76x16xf32, #tpu.memory_space<vmem>>, vector<1x16x16xf32>
      %781 = vector.shape_cast %780 : vector<1x16x16xf32> to vector<16x16xf32>
      %782 = arith.subf %166, %781 : vector<16x16xf32>
      %cst_301 = arith.constant -1.000000e+00 : f32
      %cst_302 = arith.constant 1.000000e+00 : f32
      %783 = vector.broadcast %cst_301 : f32 to vector<16x16xf32>
      %784 = arith.maximumf %783, %778 : vector<16x16xf32>
      %785 = vector.broadcast %cst_302 : f32 to vector<16x16xf32>
      %786 = arith.minimumf %785, %784 : vector<16x16xf32>
      %787 = arith.subf %778, %786 : vector<16x16xf32>
      %788 = math.absf %787 : vector<16x16xf32>
      %cst_303 = arith.constant 1.000000e+00 : f32
      %789 = vector.broadcast %cst_303 : f32 to vector<16x16xf32>
      %790 = arith.addf %789, %788 : vector<16x16xf32>
      %791 = tpu.reciprocal %790 {approx = true} : vector<16x16xf32> -> vector<16x16xf32>
      %792 = arith.mulf %787, %791 : vector<16x16xf32>
      %793 = math.absf %782 : vector<16x16xf32>
      %cst_304 = arith.constant 9.99999993E-9 : f32
      %794 = vector.broadcast %cst_304 : f32 to vector<16x16xf32>
      %795 = arith.addf %793, %794 : vector<16x16xf32>
      %796 = arith.divf %782, %795 : vector<16x16xf32>
      %797 = arith.mulf %782, %782 : vector<16x16xf32>
      %cst_305 = arith.constant 1.000000e+00 : f32
      %798 = vector.broadcast %cst_305 : f32 to vector<16x16xf32>
      %799 = arith.addf %798, %797 : vector<16x16xf32>
      %800 = math.log %799 : vector<16x16xf32>
      %cst_306 = arith.constant 0.000000e+00 : f32
      %801 = vector.broadcast %cst_306 : f32 to vector<16x16xf32>
      %802 = arith.subf %801, %792 : vector<16x16xf32>
      %803 = arith.mulf %802, %796 : vector<16x16xf32>
      %804 = arith.mulf %803, %800 : vector<16x16xf32>
      %cst_307 = arith.constant 0.000000e+00 : f32
      %805 = vector.broadcast %cst_307 : f32 to vector<16x16xf32>
      %806 = arith.maximumf %804, %805 : vector<16x16xf32>
      %807 = arith.cmpf olt, %774, %742 : vector<16x16xf32>
      %808 = arith.cmpf olt, %774, %746 : vector<16x16xf32>
      %809 = arith.cmpf olt, %774, %750 : vector<16x16xf32>
      %810 = arith.cmpf olt, %774, %754 : vector<16x16xf32>
      %811 = arith.cmpf olt, %774, %758 : vector<16x16xf32>
      %812 = arith.cmpf olt, %774, %762 : vector<16x16xf32>
      %813 = arith.cmpf olt, %774, %766 : vector<16x16xf32>
      %814 = arith.cmpf olt, %774, %770 : vector<16x16xf32>
      %815 = arith.select %807, %774, %742 : vector<16x16xi1>, vector<16x16xf32>
      %816 = arith.select %807, %806, %743 : vector<16x16xi1>, vector<16x16xf32>
      %817 = arith.select %808, %774, %746 : vector<16x16xi1>, vector<16x16xf32>
      %818 = arith.select %808, %806, %747 : vector<16x16xi1>, vector<16x16xf32>
      %819 = arith.select %807, %742, %817 : vector<16x16xi1>, vector<16x16xf32>
      %820 = arith.select %807, %743, %818 : vector<16x16xi1>, vector<16x16xf32>
      %821 = arith.select %809, %774, %750 : vector<16x16xi1>, vector<16x16xf32>
      %822 = arith.select %809, %806, %751 : vector<16x16xi1>, vector<16x16xf32>
      %823 = arith.select %808, %746, %821 : vector<16x16xi1>, vector<16x16xf32>
      %824 = arith.select %808, %747, %822 : vector<16x16xi1>, vector<16x16xf32>
      %825 = arith.select %810, %774, %754 : vector<16x16xi1>, vector<16x16xf32>
      %826 = arith.select %810, %806, %755 : vector<16x16xi1>, vector<16x16xf32>
      %827 = arith.select %809, %750, %825 : vector<16x16xi1>, vector<16x16xf32>
      %828 = arith.select %809, %751, %826 : vector<16x16xi1>, vector<16x16xf32>
      %829 = arith.select %811, %774, %758 : vector<16x16xi1>, vector<16x16xf32>
      %830 = arith.select %811, %806, %759 : vector<16x16xi1>, vector<16x16xf32>
      %831 = arith.select %810, %754, %829 : vector<16x16xi1>, vector<16x16xf32>
      %832 = arith.select %810, %755, %830 : vector<16x16xi1>, vector<16x16xf32>
      %833 = arith.select %812, %774, %762 : vector<16x16xi1>, vector<16x16xf32>
      %834 = arith.select %812, %806, %763 : vector<16x16xi1>, vector<16x16xf32>
      %835 = arith.select %811, %758, %833 : vector<16x16xi1>, vector<16x16xf32>
      %836 = arith.select %811, %759, %834 : vector<16x16xi1>, vector<16x16xf32>
      %837 = arith.select %813, %774, %766 : vector<16x16xi1>, vector<16x16xf32>
      %838 = arith.select %813, %806, %767 : vector<16x16xi1>, vector<16x16xf32>
      %839 = arith.select %812, %762, %837 : vector<16x16xi1>, vector<16x16xf32>
      %840 = arith.select %812, %763, %838 : vector<16x16xi1>, vector<16x16xf32>
      %841 = arith.select %814, %774, %770 : vector<16x16xi1>, vector<16x16xf32>
      %842 = arith.select %814, %806, %771 : vector<16x16xi1>, vector<16x16xf32>
      %843 = arith.select %813, %766, %841 : vector<16x16xi1>, vector<16x16xf32>
      %844 = arith.select %813, %767, %842 : vector<16x16xi1>, vector<16x16xf32>
      %c9_308 = arith.constant 9 : index
      %845 = arith.index_cast %187 : i32 to index
      %c0_309 = arith.constant 0 : index
      %846 = vector.load %arg7[%c9_308, %845, %c0_309] : memref<11x76x16xf32, #tpu.memory_space<vmem>>, vector<1x16x16xf32>
      %847 = vector.shape_cast %846 : vector<1x16x16xf32> to vector<16x16xf32>
      %c9_310 = arith.constant 9 : index
      %848 = arith.index_cast %187 : i32 to index
      %c0_311 = arith.constant 0 : index
      %849 = vector.load %arg6[%c9_310, %848, %c0_311] : memref<11x76x16xf32, #tpu.memory_space<vmem>>, vector<1x16x16xf32>
      %850 = vector.shape_cast %849 : vector<1x16x16xf32> to vector<16x16xf32>
      %851 = arith.subf %168, %850 : vector<16x16xf32>
      %c9_312 = arith.constant 9 : index
      %852 = arith.index_cast %187 : i32 to index
      %c0_313 = arith.constant 0 : index
      %853 = vector.load %arg5[%c9_312, %852, %c0_313] : memref<11x76x16xf32, #tpu.memory_space<vmem>>, vector<1x16x16xf32>
      %854 = vector.shape_cast %853 : vector<1x16x16xf32> to vector<16x16xf32>
      %855 = arith.subf %166, %854 : vector<16x16xf32>
      %cst_314 = arith.constant -1.000000e+00 : f32
      %cst_315 = arith.constant 1.000000e+00 : f32
      %856 = vector.broadcast %cst_314 : f32 to vector<16x16xf32>
      %857 = arith.maximumf %856, %851 : vector<16x16xf32>
      %858 = vector.broadcast %cst_315 : f32 to vector<16x16xf32>
      %859 = arith.minimumf %858, %857 : vector<16x16xf32>
      %860 = arith.subf %851, %859 : vector<16x16xf32>
      %861 = math.absf %860 : vector<16x16xf32>
      %cst_316 = arith.constant 1.000000e+00 : f32
      %862 = vector.broadcast %cst_316 : f32 to vector<16x16xf32>
      %863 = arith.addf %862, %861 : vector<16x16xf32>
      %864 = tpu.reciprocal %863 {approx = true} : vector<16x16xf32> -> vector<16x16xf32>
      %865 = arith.mulf %860, %864 : vector<16x16xf32>
      %866 = math.absf %855 : vector<16x16xf32>
      %cst_317 = arith.constant 9.99999993E-9 : f32
      %867 = vector.broadcast %cst_317 : f32 to vector<16x16xf32>
      %868 = arith.addf %866, %867 : vector<16x16xf32>
      %869 = arith.divf %855, %868 : vector<16x16xf32>
      %870 = arith.mulf %855, %855 : vector<16x16xf32>
      %cst_318 = arith.constant 1.000000e+00 : f32
      %871 = vector.broadcast %cst_318 : f32 to vector<16x16xf32>
      %872 = arith.addf %871, %870 : vector<16x16xf32>
      %873 = math.log %872 : vector<16x16xf32>
      %cst_319 = arith.constant 0.000000e+00 : f32
      %874 = vector.broadcast %cst_319 : f32 to vector<16x16xf32>
      %875 = arith.subf %874, %865 : vector<16x16xf32>
      %876 = arith.mulf %875, %869 : vector<16x16xf32>
      %877 = arith.mulf %876, %873 : vector<16x16xf32>
      %cst_320 = arith.constant 0.000000e+00 : f32
      %878 = vector.broadcast %cst_320 : f32 to vector<16x16xf32>
      %879 = arith.maximumf %877, %878 : vector<16x16xf32>
      %880 = arith.cmpf olt, %847, %815 : vector<16x16xf32>
      %881 = arith.cmpf olt, %847, %819 : vector<16x16xf32>
      %882 = arith.cmpf olt, %847, %823 : vector<16x16xf32>
      %883 = arith.cmpf olt, %847, %827 : vector<16x16xf32>
      %884 = arith.cmpf olt, %847, %831 : vector<16x16xf32>
      %885 = arith.cmpf olt, %847, %835 : vector<16x16xf32>
      %886 = arith.cmpf olt, %847, %839 : vector<16x16xf32>
      %887 = arith.cmpf olt, %847, %843 : vector<16x16xf32>
      %888 = arith.select %880, %847, %815 : vector<16x16xi1>, vector<16x16xf32>
      %889 = arith.select %880, %879, %816 : vector<16x16xi1>, vector<16x16xf32>
      %890 = arith.select %881, %847, %819 : vector<16x16xi1>, vector<16x16xf32>
      %891 = arith.select %881, %879, %820 : vector<16x16xi1>, vector<16x16xf32>
      %892 = arith.select %880, %815, %890 : vector<16x16xi1>, vector<16x16xf32>
      %893 = arith.select %880, %816, %891 : vector<16x16xi1>, vector<16x16xf32>
      %894 = arith.select %882, %847, %823 : vector<16x16xi1>, vector<16x16xf32>
      %895 = arith.select %882, %879, %824 : vector<16x16xi1>, vector<16x16xf32>
      %896 = arith.select %881, %819, %894 : vector<16x16xi1>, vector<16x16xf32>
      %897 = arith.select %881, %820, %895 : vector<16x16xi1>, vector<16x16xf32>
      %898 = arith.select %883, %847, %827 : vector<16x16xi1>, vector<16x16xf32>
      %899 = arith.select %883, %879, %828 : vector<16x16xi1>, vector<16x16xf32>
      %900 = arith.select %882, %823, %898 : vector<16x16xi1>, vector<16x16xf32>
      %901 = arith.select %882, %824, %899 : vector<16x16xi1>, vector<16x16xf32>
      %902 = arith.select %884, %847, %831 : vector<16x16xi1>, vector<16x16xf32>
      %903 = arith.select %884, %879, %832 : vector<16x16xi1>, vector<16x16xf32>
      %904 = arith.select %883, %827, %902 : vector<16x16xi1>, vector<16x16xf32>
      %905 = arith.select %883, %828, %903 : vector<16x16xi1>, vector<16x16xf32>
      %906 = arith.select %885, %847, %835 : vector<16x16xi1>, vector<16x16xf32>
      %907 = arith.select %885, %879, %836 : vector<16x16xi1>, vector<16x16xf32>
      %908 = arith.select %884, %831, %906 : vector<16x16xi1>, vector<16x16xf32>
      %909 = arith.select %884, %832, %907 : vector<16x16xi1>, vector<16x16xf32>
      %910 = arith.select %886, %847, %839 : vector<16x16xi1>, vector<16x16xf32>
      %911 = arith.select %886, %879, %840 : vector<16x16xi1>, vector<16x16xf32>
      %912 = arith.select %885, %835, %910 : vector<16x16xi1>, vector<16x16xf32>
      %913 = arith.select %885, %836, %911 : vector<16x16xi1>, vector<16x16xf32>
      %914 = arith.select %887, %847, %843 : vector<16x16xi1>, vector<16x16xf32>
      %915 = arith.select %887, %879, %844 : vector<16x16xi1>, vector<16x16xf32>
      %916 = arith.select %886, %839, %914 : vector<16x16xi1>, vector<16x16xf32>
      %917 = arith.select %886, %840, %915 : vector<16x16xi1>, vector<16x16xf32>
      %c10_321 = arith.constant 10 : index
      %918 = arith.index_cast %187 : i32 to index
      %c0_322 = arith.constant 0 : index
      %919 = vector.load %arg7[%c10_321, %918, %c0_322] : memref<11x76x16xf32, #tpu.memory_space<vmem>>, vector<1x16x16xf32>
      %920 = vector.shape_cast %919 : vector<1x16x16xf32> to vector<16x16xf32>
      %c10_323 = arith.constant 10 : index
      %921 = arith.index_cast %187 : i32 to index
      %c0_324 = arith.constant 0 : index
      %922 = vector.load %arg6[%c10_323, %921, %c0_324] : memref<11x76x16xf32, #tpu.memory_space<vmem>>, vector<1x16x16xf32>
      %923 = vector.shape_cast %922 : vector<1x16x16xf32> to vector<16x16xf32>
      %924 = arith.subf %168, %923 : vector<16x16xf32>
      %c10_325 = arith.constant 10 : index
      %925 = arith.index_cast %187 : i32 to index
      %c0_326 = arith.constant 0 : index
      %926 = vector.load %arg5[%c10_325, %925, %c0_326] : memref<11x76x16xf32, #tpu.memory_space<vmem>>, vector<1x16x16xf32>
      %927 = vector.shape_cast %926 : vector<1x16x16xf32> to vector<16x16xf32>
      %928 = arith.subf %166, %927 : vector<16x16xf32>
      %cst_327 = arith.constant -1.000000e+00 : f32
      %cst_328 = arith.constant 1.000000e+00 : f32
      %929 = vector.broadcast %cst_327 : f32 to vector<16x16xf32>
      %930 = arith.maximumf %929, %924 : vector<16x16xf32>
      %931 = vector.broadcast %cst_328 : f32 to vector<16x16xf32>
      %932 = arith.minimumf %931, %930 : vector<16x16xf32>
      %933 = arith.subf %924, %932 : vector<16x16xf32>
      %934 = math.absf %933 : vector<16x16xf32>
      %cst_329 = arith.constant 1.000000e+00 : f32
      %935 = vector.broadcast %cst_329 : f32 to vector<16x16xf32>
      %936 = arith.addf %935, %934 : vector<16x16xf32>
      %937 = tpu.reciprocal %936 {approx = true} : vector<16x16xf32> -> vector<16x16xf32>
      %938 = arith.mulf %933, %937 : vector<16x16xf32>
      %939 = math.absf %928 : vector<16x16xf32>
      %cst_330 = arith.constant 9.99999993E-9 : f32
      %940 = vector.broadcast %cst_330 : f32 to vector<16x16xf32>
      %941 = arith.addf %939, %940 : vector<16x16xf32>
      %942 = arith.divf %928, %941 : vector<16x16xf32>
      %943 = arith.mulf %928, %928 : vector<16x16xf32>
      %cst_331 = arith.constant 1.000000e+00 : f32
      %944 = vector.broadcast %cst_331 : f32 to vector<16x16xf32>
      %945 = arith.addf %944, %943 : vector<16x16xf32>
      %946 = math.log %945 : vector<16x16xf32>
      %cst_332 = arith.constant 0.000000e+00 : f32
      %947 = vector.broadcast %cst_332 : f32 to vector<16x16xf32>
      %948 = arith.subf %947, %938 : vector<16x16xf32>
      %949 = arith.mulf %948, %942 : vector<16x16xf32>
      %950 = arith.mulf %949, %946 : vector<16x16xf32>
      %cst_333 = arith.constant 0.000000e+00 : f32
      %951 = vector.broadcast %cst_333 : f32 to vector<16x16xf32>
      %952 = arith.maximumf %950, %951 : vector<16x16xf32>
      %953 = arith.cmpf olt, %920, %888 : vector<16x16xf32>
      %954 = arith.cmpf olt, %920, %892 : vector<16x16xf32>
      %955 = arith.cmpf olt, %920, %896 : vector<16x16xf32>
      %956 = arith.cmpf olt, %920, %900 : vector<16x16xf32>
      %957 = arith.cmpf olt, %920, %904 : vector<16x16xf32>
      %958 = arith.cmpf olt, %920, %908 : vector<16x16xf32>
      %959 = arith.cmpf olt, %920, %912 : vector<16x16xf32>
      %960 = arith.cmpf olt, %920, %916 : vector<16x16xf32>
      %961 = arith.select %953, %920, %888 : vector<16x16xi1>, vector<16x16xf32>
      %962 = arith.select %953, %952, %889 : vector<16x16xi1>, vector<16x16xf32>
      %963 = arith.select %954, %920, %892 : vector<16x16xi1>, vector<16x16xf32>
      %964 = arith.select %954, %952, %893 : vector<16x16xi1>, vector<16x16xf32>
      %965 = arith.select %953, %888, %963 : vector<16x16xi1>, vector<16x16xf32>
      %966 = arith.select %953, %889, %964 : vector<16x16xi1>, vector<16x16xf32>
      %967 = arith.select %955, %920, %896 : vector<16x16xi1>, vector<16x16xf32>
      %968 = arith.select %955, %952, %897 : vector<16x16xi1>, vector<16x16xf32>
      %969 = arith.select %954, %892, %967 : vector<16x16xi1>, vector<16x16xf32>
      %970 = arith.select %954, %893, %968 : vector<16x16xi1>, vector<16x16xf32>
      %971 = arith.select %956, %920, %900 : vector<16x16xi1>, vector<16x16xf32>
      %972 = arith.select %956, %952, %901 : vector<16x16xi1>, vector<16x16xf32>
      %973 = arith.select %955, %896, %971 : vector<16x16xi1>, vector<16x16xf32>
      %974 = arith.select %955, %897, %972 : vector<16x16xi1>, vector<16x16xf32>
      %975 = arith.select %957, %920, %904 : vector<16x16xi1>, vector<16x16xf32>
      %976 = arith.select %957, %952, %905 : vector<16x16xi1>, vector<16x16xf32>
      %977 = arith.select %956, %900, %975 : vector<16x16xi1>, vector<16x16xf32>
      %978 = arith.select %956, %901, %976 : vector<16x16xi1>, vector<16x16xf32>
      %979 = arith.select %958, %920, %908 : vector<16x16xi1>, vector<16x16xf32>
      %980 = arith.select %958, %952, %909 : vector<16x16xi1>, vector<16x16xf32>
      %981 = arith.select %957, %904, %979 : vector<16x16xi1>, vector<16x16xf32>
      %982 = arith.select %957, %905, %980 : vector<16x16xi1>, vector<16x16xf32>
      %983 = arith.select %959, %920, %912 : vector<16x16xi1>, vector<16x16xf32>
      %984 = arith.select %959, %952, %913 : vector<16x16xi1>, vector<16x16xf32>
      %985 = arith.select %958, %908, %983 : vector<16x16xi1>, vector<16x16xf32>
      %986 = arith.select %958, %909, %984 : vector<16x16xi1>, vector<16x16xf32>
      %987 = arith.select %960, %920, %916 : vector<16x16xi1>, vector<16x16xf32>
      %988 = arith.select %960, %952, %917 : vector<16x16xi1>, vector<16x16xf32>
      %989 = arith.select %959, %912, %987 : vector<16x16xi1>, vector<16x16xf32>
      %990 = arith.select %959, %913, %988 : vector<16x16xi1>, vector<16x16xf32>
      scf.yield %961, %965, %969, %973, %977, %981, %985, %989, %962, %966, %970, %974, %978, %982, %986, %990 : vector<16x16xf32>, vector<16x16xf32>, vector<16x16xf32>, vector<16x16xf32>, vector<16x16xf32>, vector<16x16xf32>, vector<16x16xf32>, vector<16x16xf32>, vector<16x16xf32>, vector<16x16xf32>, vector<16x16xf32>, vector<16x16xf32>, vector<16x16xf32>, vector<16x16xf32>, vector<16x16xf32>, vector<16x16xf32>
    }
    %c11_i32_185 = arith.constant 11 : i32
    %173 = arith.addf %172#8, %172#9 : vector<16x16xf32>
    %174 = arith.addf %173, %172#10 : vector<16x16xf32>
    %175 = arith.addf %174, %172#11 : vector<16x16xf32>
    %176 = arith.addf %175, %172#12 : vector<16x16xf32>
    %177 = arith.addf %176, %172#13 : vector<16x16xf32>
    %178 = arith.addf %177, %172#14 : vector<16x16xf32>
    %179 = arith.addf %178, %172#15 : vector<16x16xf32>
    %cst_186 = arith.constant dense<0.000000e+00> : vector<16xf32>
    %180 = vector.multi_reduction <add>, %179, %cst_186 [1] : vector<16x16xf32> to vector<16xf32>
    %181 = vector.shape_cast %180 : vector<16xf32> to vector<16x1xf32>
    %cst_187 = arith.constant dense<0.000000e+00> : vector<1xf32>
    %182 = vector.multi_reduction <add>, %181, %cst_187 [0] : vector<16x1xf32> to vector<1xf32>
    %183 = vector.shape_cast %182 : vector<1xf32> to vector<1x1xf32>
    %c0_188 = arith.constant 0 : index
    %c0_189 = arith.constant 0 : index
    %c0_190 = arith.constant 0 : index
    %184 = vector.load %arg4[%c0_188, %c0_189, %c0_190] : memref<1x1x1xf32, #tpu.memory_space<vmem>>, vector<1x1x1xf32>
    %185 = vector.shape_cast %184 : vector<1x1x1xf32> to vector<1x1xf32>
    %186 = vector.shape_cast %183 : vector<1x1xf32> to vector<1x1x1xf32>
    tpu.vector_store %arg4[%c0_188, %c0_189, %c0_190], %186 {strides = array<i32>} : memref<1x1x1xf32, #tpu.memory_space<vmem>>, vector<1x1x1xf32>,
    return
  }
  func.func @transform_0(%arg0: i32) -> (i32, i32, i32) {
    %c0_i32 = arith.constant 0 : i32
    %c0_i32_0 = arith.constant 0 : i32
    %c0_i32_1 = arith.constant 0 : i32
    return %arg0, %c0_i32, %c0_i32_0 : i32, i32, i32
  }
  func.func @transform_1(%arg0: i32) -> (i32, i32, i32) {
    %c0_i32 = arith.constant 0 : i32
    %c0_i32_0 = arith.constant 0 : i32
    %c0_i32_1 = arith.constant 0 : i32
    return %arg0, %c0_i32, %c0_i32_0 : i32, i32, i32
  }
  func.func @transform_2(%arg0: i32) -> (i32, i32, i32) {
    %c0_i32 = arith.constant 0 : i32
    %c0_i32_0 = arith.constant 0 : i32
    %c0_i32_1 = arith.constant 0 : i32
    return %arg0, %c0_i32, %c0_i32_0 : i32, i32, i32
  }
  func.func @transform_3(%arg0: i32) -> (i32, i32, i32) {
    %c0_i32 = arith.constant 0 : i32
    %c0_i32_0 = arith.constant 0 : i32
    %c0_i32_1 = arith.constant 0 : i32
    return %arg0, %c0_i32, %c0_i32_0 : i32, i32, i32
  }
}

</mosaic_0001>

<bundles_post_ra>
// kernel: tpu_custom_call.1
= control target key start
LH: loop header
LB: loop body
LE: loop exit
PB: predicated region body
PF: predicated region fallthrough
CT: control target
= control target key end

     0   :  { %s4941_s12 = smov 0   ;;  %s11000_s0 = inlined_call_operand.vmem [shape: f32[4,76,76], index: 0, kind: input, shape index: {}]   ;;  %s11001_s1 = inlined_call_operand.vmem [shape: f32[4,76,76], index: 1, kind: input, shape index: {}]   ;;  %s11002_s2 = inlined_call_operand.vmem [shape: f32[4,76,76], index: 2, kind: input, shape index: {}]   ;;  %s11003_s3 = inlined_call_operand.vmem [shape: f32[4,1,1], index: 3, kind: output, shape index: {}]  }
   0x1 LB: > { %s4132_s13 = sadd.s32 4294967295, %s4777_s12   ;;  %p4136_p0 = scmp.ge.s32.totalorder %s4777_s12, 1  ;;  %s4777_s12 = sphi %s4941_s12, %s13_s12  }
   0x2   : > { %p157_p1 = scmp.lt.s32.totalorder %s4777_s12, 5 }
   0x4   : > { %p158_p2 = pnand %p4136_p0, %p157_p1 }
   0x6   : > { %161 = sbr.rel (%p158_p2) target bundleno = 1491 (0x5d3), region = 32 }
   0xb   : > { %p189_p3 = scmp.lt.s32.totalorder %s4132_s13, 3  ;;  %s4911_s21 = smov 122   ;;  %vm11004_vm0 = vcmask 130048   ;;  %vm227_vm1 = vcmask 125952  }
   0xc   : > { %s4912_s28 = smov 116   ;;  %s4913_s29 = smov 110  }
   0xd   : > { %s11632_s13 = smov (!%p189_p3, %s4132_s13), 3  ;;  %s4914_s30 = smov 104  }
   0xe   : > { %s4952_s14 = smul.u32 80, %s11632_s13  ;;  %s206_s17 = scalar_lea.vmem %s11003_s3, %s11632_s13 }
   0xf   : > { %s4915_s4 = smov 98   ;;  %s4916_s5 = smov 92  }
  0x10   : > { %s4962_s20 = scalar_lea.vmem %s11000_s0, %s4952_s14  ;;  %s5011_s24 = scalar_lea.vmem %s11001_s1, %s4952_s14 }
  0x11   : > { %v4965_v0 = vld [vmem:[%s4962_s20 + $0x10] sm:$0xff]  ;;  %v4968_v1 = vld [vmem:[%s4962_s20] sm:$0xff]  ;;  %v4980_v3 = vld [vmem:[%s4962_s20 + $0x18] sm:$0xff]  ;;  %s5065_s27 = scalar_lea.vmem %s11002_s2, %s4952_s14  ;;  %s4917_s6 = smov 86  }
  0x12   : > { %293 = vrot.lane.b32.xlu1 %v4965_v0, %s4911_s21  ;;  %289 = vrot.lane.b32.xlu0 %v4968_v1, %s4911_s21  ;;  %v4975_v2 = vld [vmem:[%s4962_s20 + $0x20] sm:$0xff]  ;;  %v4983_v4 = vld [vmem:[%s4962_s20 + $0x8] sm:$0xff]  ;;  %s4918_s7 = smov 80   ;;  %s4919_s8 = smov 74  }
  0x13   : > { %297 = vrot.lane.b32.xlu2 %v4975_v2, %s4911_s21  ;;  %v4986_v5 = vld [vmem:[%s4962_s20 + $0x28] sm:$0xff]  ;;  %v4995_v6 = vld [vmem:[%s4962_s20 + $0x38] sm:$0xff]  ;;  %v4998_v7 = vld [vmem:[%s4962_s20 + $0x30] sm:$0xff]  ;;  %s4920_s9 = smov 68   ;;  %s6170_s10 = smov 0  }
  0x14   : > { %v5001_v8 = vld [vmem:[%s4962_s20 + $0x40] sm:$0xff]  ;;  %v278_v10 = vld [vmem:[%s4962_s20 + $0x48] sm:$0xf]  ;;  %v5028_v12 = vld [vmem:[%s5011_s24 + $0x18] sm:$0xff] }
  0x15   : > { %v5016_v9 = vld [vmem:[%s5011_s24] sm:$0xff]  ;;  %v5020_v11 = vld [vmem:[%s5011_s24 + $0x8] sm:$0xff]  ;;  %v5031_v13 = vld [vmem:[%s5011_s24 + $0x10] sm:$0xff] }
  0x16   : > { %v5034_v14 = vld [vmem:[%s5011_s24 + $0x20] sm:$0xff]  ;;  %v5043_v15 = vld [vmem:[%s5011_s24 + $0x30] sm:$0xff]  ;;  %v5046_v16 = vld [vmem:[%s5011_s24 + $0x28] sm:$0xff] }
  0x17   : > { %v5049_v17 = vld [vmem:[%s5011_s24 + $0x38] sm:$0xff]  ;;  %v339_v18 = vld [vmem:[%s5011_s24 + $0x48] sm:$0xf]  ;;  %v5059_v19 = vld [vmem:[%s5011_s24 + $0x40] sm:$0xff] }
  0x18   : > { %v5068_v20 = vld [vmem:[%s5065_s27] sm:$0xff]  ;;  %v5076_v21 = vld [vmem:[%s5065_s27 + $0x10] sm:$0xff]  ;;  %v5079_v22 = vld [vmem:[%s5065_s27 + $0x8] sm:$0xff] }
  0x19   : > { %v5082_v23 = vld [vmem:[%s5065_s27 + $0x18] sm:$0xff]  ;;  %v5091_v24 = vld [vmem:[%s5065_s27 + $0x28] sm:$0xff]  ;;  %v5094_v25 = vld [vmem:[%s5065_s27 + $0x20] sm:$0xff] }
  0x1a   : > { %295 = vrot.lane.b32.xlu1 %v4980_v3, %s4911_s21  ;;  %291 = vrot.lane.b32.xlu0 %v4983_v4, %s4911_s21  ;;  %v5097_v26 = vld [vmem:[%s5065_s27 + $0x30] sm:$0xff]  ;;  %v5106_v27 = vld [vmem:[%s5065_s27 + $0x40] sm:$0xff] }
  0x1b   : > { %299 = vrot.lane.b32.xlu2 %v4986_v5, %s4911_s21  ;;  %v5109_v28 = vld [vmem:[%s5065_s27 + $0x38] sm:$0xff]  ;;  %v400_v29 = vld [vmem:[%s5065_s27 + $0x48] sm:$0xf] }
  0x1c   : > { %v461_v32 = vld [vmem:[%s4962_s20 + $0x48] sm:$0xf] }
  0x1d   : > { %v238_v33 = vld [vmem:[%s5011_s24 + $0x48] sm:$0xf] }
  0x1e   : > { %v258_v34 = vld [vmem:[%s5065_s27 + $0x48] sm:$0xf]  ;;  %248 = vst.msk [vmem:[#allocation3 + $0x48] sm:$0xf] %vm227_vm1, %v238_v33 }
  0x1f   : > { %v216_v36 = vld [vmem:[%s4962_s20 + $0x48] sm:$0xf]  ;;  %268 = vst.msk [vmem:[#allocation4 + $0x48] sm:$0xf] %vm227_vm1, %v258_v34 }
  0x20   : > { %228 = vst.msk [vmem:[#allocation2 + $0x48] sm:$0xf] %vm227_vm1, %v216_v36  ;;  %v522_v43 = vld [vmem:[%s5011_s24 + $0x48] sm:$0xf] }
  0x21   : > { %v583_v53 = vld [vmem:[%s5065_s27 + $0x48] sm:$0xf] }
  0x22   : > { %303 = vrot.lane.b32.xlu1 %v4995_v6, %s4911_s21  ;;  %301 = vrot.lane.b32.xlu0 %v4998_v7, %s4911_s21 }
  0x23   : > { %305 = vrot.lane.b32.xlu2 %v5001_v8, %s4911_s21 }
  0x2a   : > { %350 = vrot.lane.b32.xlu1 %v5016_v9, %s4911_s21  ;;  %307 = vrot.lane.b32.xlu0 %v278_v10, %s4911_s21 }
  0x2b   : > { %352 = vrot.lane.b32.xlu2 %v5020_v11, %s4911_s21 }
  0x32   : > { %356 = vrot.lane.b32.xlu1 %v5028_v12, %s4911_s21  ;;  %354 = vrot.lane.b32.xlu0 %v5031_v13, %s4911_s21 }
  0x33   : > { %358 = vrot.lane.b32.xlu2 %v5034_v14, %s4911_s21 }
  0x3a   : > { %362 = vrot.lane.b32.xlu1 %v5043_v15, %s4911_s21  ;;  %360 = vrot.lane.b32.xlu0 %v5046_v16, %s4911_s21 }
  0x3b   : > { %364 = vrot.lane.b32.xlu2 %v5049_v17, %s4911_s21 }
  0x42   : > { %368 = vrot.lane.b32.xlu1 %v339_v18, %s4911_s21  ;;  %366 = vrot.lane.b32.xlu0 %v5059_v19, %s4911_s21 }
  0x43   : > { %411 = vrot.lane.b32.xlu2 %v5068_v20, %s4911_s21 }
  0x4a   : > { %415 = vrot.lane.b32.xlu1 %v5076_v21, %s4911_s21  ;;  %413 = vrot.lane.b32.xlu0 %v5079_v22, %s4911_s21 }
  0x4b   : > { %417 = vrot.lane.b32.xlu2 %v5082_v23, %s4911_s21 }
  0x52   : > { %421 = vrot.lane.b32.xlu1 %v5091_v24, %s4911_s21  ;;  %419 = vrot.lane.b32.xlu0 %v5094_v25, %s4911_s21 }
  0x53   : > { %423 = vrot.lane.b32.xlu2 %v5097_v26, %s4911_s21 }
  0x5a   : > { %427 = vrot.lane.b32.xlu1 %v5106_v27, %s4911_s21  ;;  %425 = vrot.lane.b32.xlu0 %v5109_v28, %s4911_s21 }
  0x5b   : > { %429 = vrot.lane.b32.xlu2 %v400_v29, %s4911_s21  ;;  %v644_v29 = vld [vmem:[%s4962_s20 + $0x48] sm:$0xf] }
  0x62   : > { %474 = vrot.lane.b32.xlu1 %v4983_v4, %s4912_s28  ;;  %472 = vrot.lane.b32.xlu0 %v4968_v1, %s4912_s28 }
  0x63   : > { %476 = vrot.lane.b32.xlu2 %v4965_v0, %s4912_s28 }
  0x6a   : > { %480 = vrot.lane.b32.xlu1 %v4975_v2, %s4912_s28  ;;  %478 = vrot.lane.b32.xlu0 %v4980_v3, %s4912_s28 }
  0x6b   : > { %482 = vrot.lane.b32.xlu2 %v4986_v5, %s4912_s28 }
  0x6d   : > { %v298_v30 = vpop.permute.xlu2 %297 }
  0x6e   : > { %324 = vst.msk [vmem:[#allocation2 + $0x70] sm:$0xff] %vm11004_vm0, %v298_v30 }
  0x72   : > { %486 = vrot.lane.b32.xlu1 %v4995_v6, %s4912_s28  ;;  %484 = vrot.lane.b32.xlu0 %v4998_v7, %s4912_s28 }
  0x73   : > { %488 = vrot.lane.b32.xlu2 %v5001_v8, %s4912_s28 }
  0x75   : > { %v300_v31 = vpop.permute.xlu2 %299 }
  0x76   : > { %325 = vst.msk [vmem:[#allocation2 + $0x78] sm:$0xff] %vm11004_vm0, %v300_v31 }
  0x7a   : > { %533 = vrot.lane.b32.xlu1 %v5016_v9, %s4912_s28  ;;  %490 = vrot.lane.b32.xlu0 %v461_v32, %s4912_s28 }
  0x7b   : > { %535 = vrot.lane.b32.xlu2 %v5020_v11, %s4912_s28 }
  0x7d   : > { %v306_v35 = vpop.permute.xlu2 %305 }
  0x7e   : > { %328 = vst.msk [vmem:[#allocation2 + $0x90] sm:$0xff] %vm11004_vm0, %v306_v35 }
  0x82   : > { %539 = vrot.lane.b32.xlu1 %v5028_v12, %s4912_s28  ;;  %537 = vrot.lane.b32.xlu0 %v5031_v13, %s4912_s28 }
  0x83   : > { %541 = vrot.lane.b32.xlu2 %v5034_v14, %s4912_s28 }
  0x84   : > { %v294_v37 = vpop.permute.xlu1 %293  ;;  %v290_v38 = vpop.permute.xlu0 %289 }
  0x85   : > { %322 = vst.msk [vmem:[#allocation2 + $0x60] sm:$0xff] %vm11004_vm0, %v294_v37  ;;  %v353_v39 = vpop.permute.xlu2 %352 }
  0x86   : > { %320 = vst.msk [vmem:[#allocation2 + $0x50] sm:$0xff] %vm11004_vm0, %v290_v38 }
  0x87   : > { %382 = vst.msk [vmem:[#allocation3 + $0x58] sm:$0xff] %vm11004_vm0, %v353_v39  ;;  %v705_v39 = vld [vmem:[%s5011_s24 + $0x48] sm:$0xf] }
  0x8a   : > { %545 = vrot.lane.b32.xlu1 %v5043_v15, %s4912_s28  ;;  %543 = vrot.lane.b32.xlu0 %v5046_v16, %s4912_s28 }
  0x8b   : > { %547 = vrot.lane.b32.xlu2 %v5049_v17, %s4912_s28 }
  0x8c   : > { %v296_v40 = vpop.permute.xlu1 %295  ;;  %v292_v41 = vpop.permute.xlu0 %291 }
  0x8d   : > { %323 = vst.msk [vmem:[#allocation2 + $0x68] sm:$0xff] %vm11004_vm0, %v296_v40  ;;  %v359_v42 = vpop.permute.xlu2 %358 }
  0x8e   : > { %321 = vst.msk [vmem:[#allocation2 + $0x58] sm:$0xff] %vm11004_vm0, %v292_v41 }
  0x8f   : > { %385 = vst.msk [vmem:[#allocation3 + $0x70] sm:$0xff] %vm11004_vm0, %v359_v42 }
  0x92   : > { %551 = vrot.lane.b32.xlu1 %v522_v43, %s4912_s28  ;;  %549 = vrot.lane.b32.xlu0 %v5059_v19, %s4912_s28 }
  0x93   : > { %594 = vrot.lane.b32.xlu2 %v5068_v20, %s4912_s28 }
  0x94   : > { %v304_v44 = vpop.permute.xlu1 %303  ;;  %v302_v45 = vpop.permute.xlu0 %301 }
  0x95   : > { %327 = vst.msk [vmem:[#allocation2 + $0x88] sm:$0xff] %vm11004_vm0, %v304_v44  ;;  %v365_v46 = vpop.permute.xlu2 %364 }
  0x96   : > { %326 = vst.msk [vmem:[#allocation2 + $0x80] sm:$0xff] %vm11004_vm0, %v302_v45 }
  0x97   : > { %388 = vst.msk [vmem:[#allocation3 + $0x88] sm:$0xff] %vm11004_vm0, %v365_v46 }
  0x9a   : > { %598 = vrot.lane.b32.xlu1 %v5076_v21, %s4912_s28  ;;  %596 = vrot.lane.b32.xlu0 %v5079_v22, %s4912_s28 }
  0x9b   : > { %600 = vrot.lane.b32.xlu2 %v5082_v23, %s4912_s28 }
  0x9c   : > { %v351_v47 = vpop.permute.xlu1 %350  ;;  %v308_v48 = vpop.permute.xlu0 %307 }
  0x9d   : > { %381 = vst.msk [vmem:[#allocation3 + $0x50] sm:$0xff] %vm11004_vm0, %v351_v47  ;;  %v412_v49 = vpop.permute.xlu2 %411 }
  0x9e   : > { %329 = vst.msk [vmem:[#allocation2 + $0x98] sm:$0xf] %vm227_vm1, %v308_v48 }
  0x9f   : > { %442 = vst.msk [vmem:[#allocation4 + $0x50] sm:$0xff] %vm11004_vm0, %v412_v49  ;;  %v766_v49 = vld [vmem:[%s5065_s27 + $0x48] sm:$0xf] }
  0xa2   : > { %604 = vrot.lane.b32.xlu1 %v5091_v24, %s4912_s28  ;;  %602 = vrot.lane.b32.xlu0 %v5094_v25, %s4912_s28 }
  0xa3   : > { %606 = vrot.lane.b32.xlu2 %v5097_v26, %s4912_s28 }
  0xa4   : > { %v357_v50 = vpop.permute.xlu1 %356  ;;  %v355_v51 = vpop.permute.xlu0 %354 }
  0xa5   : > { %384 = vst.msk [vmem:[#allocation3 + $0x68] sm:$0xff] %vm11004_vm0, %v357_v50  ;;  %v418_v52 = vpop.permute.xlu2 %417 }
  0xa6   : > { %383 = vst.msk [vmem:[#allocation3 + $0x60] sm:$0xff] %vm11004_vm0, %v355_v51 }
  0xa7   : > { %445 = vst.msk [vmem:[#allocation4 + $0x68] sm:$0xff] %vm11004_vm0, %v418_v52 }
  0xaa   : > { %610 = vrot.lane.b32.xlu1 %v5106_v27, %s4912_s28  ;;  %608 = vrot.lane.b32.xlu0 %v5109_v28, %s4912_s28 }
  0xab   : > { %612 = vrot.lane.b32.xlu2 %v583_v53, %s4912_s28 }
  0xac   : > { %v363_v54 = vpop.permute.xlu1 %362  ;;  %v361_v55 = vpop.permute.xlu0 %360 }
  0xad   : > { %387 = vst.msk [vmem:[#allocation3 + $0x80] sm:$0xff] %vm11004_vm0, %v363_v54  ;;  %v424_v56 = vpop.permute.xlu2 %423 }
  0xae   : > { %386 = vst.msk [vmem:[#allocation3 + $0x78] sm:$0xff] %vm11004_vm0, %v361_v55 }
  0xaf   : > { %448 = vst.msk [vmem:[#allocation4 + $0x80] sm:$0xff] %vm11004_vm0, %v424_v56 }
  0xb2   : > { %657 = vrot.lane.b32.xlu1 %v4983_v4, %s4913_s29  ;;  %655 = vrot.lane.b32.xlu0 %v4968_v1, %s4913_s29 }
  0xb3   : > { %659 = vrot.lane.b32.xlu2 %v4965_v0, %s4913_s29 }
  0xb4   : > { %v369_v57 = vpop.permute.xlu1 %368  ;;  %v367_v58 = vpop.permute.xlu0 %366 }
  0xb5   : > { %390 = vst.msk [vmem:[#allocation3 + $0x98] sm:$0xf] %vm227_vm1, %v369_v57  ;;  %v430_v59 = vpop.permute.xlu2 %429 }
  0xb6   : > { %389 = vst.msk [vmem:[#allocation3 + $0x90] sm:$0xff] %vm11004_vm0, %v367_v58 }
  0xb7   : > { %451 = vst.msk [vmem:[#allocation4 + $0x98] sm:$0xf] %vm227_vm1, %v430_v59 }
  0xba   : > { %663 = vrot.lane.b32.xlu1 %v4975_v2, %s4913_s29  ;;  %661 = vrot.lane.b32.xlu0 %v4980_v3, %s4913_s29 }
  0xbb   : > { %665 = vrot.lane.b32.xlu2 %v4986_v5, %s4913_s29 }
  0xbc   : > { %v416_v60 = vpop.permute.xlu1 %415  ;;  %v414_v61 = vpop.permute.xlu0 %413 }
  0xbd   : > { %444 = vst.msk [vmem:[#allocation4 + $0x60] sm:$0xff] %vm11004_vm0, %v416_v60  ;;  %v477_v62 = vpop.permute.xlu2 %476 }
  0xbe   : > { %443 = vst.msk [vmem:[#allocation4 + $0x58] sm:$0xff] %vm11004_vm0, %v414_v61 }
  0xbf   : > { %505 = vst.msk [vmem:[#allocation2 + $0xb0] sm:$0xff] %vm11004_vm0, %v477_v62  ;;  %v827_v62 = vld [vmem:[%s4962_s20 + $0x48] sm:$0xf] }
  0xc2   : > { %669 = vrot.lane.b32.xlu1 %v4995_v6, %s4913_s29  ;;  %667 = vrot.lane.b32.xlu0 %v4998_v7, %s4913_s29 }
  0xc3   : > { %671 = vrot.lane.b32.xlu2 %v5001_v8, %s4913_s29 }
  0xc4   : > { %v422_v63 = vpop.permute.xlu1 %421  ;;  %v420_v10 = vpop.permute.xlu0 %419 }
  0xc5   : > { %447 = vst.msk [vmem:[#allocation4 + $0x78] sm:$0xff] %vm11004_vm0, %v422_v63  ;;  %v483_v18 = vpop.permute.xlu2 %482 }
  0xc6   : > { %446 = vst.msk [vmem:[#allocation4 + $0x70] sm:$0xff] %vm11004_vm0, %v420_v10 }
  0xc7   : > { %508 = vst.msk [vmem:[#allocation2 + $0xc8] sm:$0xff] %vm11004_vm0, %v483_v18 }
  0xca   : > { %716 = vrot.lane.b32.xlu1 %v5016_v9, %s4913_s29  ;;  %673 = vrot.lane.b32.xlu0 %v644_v29, %s4913_s29 }
  0xcb   : > { %718 = vrot.lane.b32.xlu2 %v5020_v11, %s4913_s29 }
  0xcc   : > { %v428_v30 = vpop.permute.xlu1 %427  ;;  %v426_v31 = vpop.permute.xlu0 %425 }
  0xcd   : > { %450 = vst.msk [vmem:[#allocation4 + $0x90] sm:$0xff] %vm11004_vm0, %v428_v30  ;;  %v489_v32 = vpop.permute.xlu2 %488 }
  0xce   : > { %449 = vst.msk [vmem:[#allocation4 + $0x88] sm:$0xff] %vm11004_vm0, %v426_v31 }
  0xcf   : > { %511 = vst.msk [vmem:[#allocation2 + $0xe0] sm:$0xff] %vm11004_vm0, %v489_v32 }
  0xd2   : > { %722 = vrot.lane.b32.xlu1 %v5028_v12, %s4913_s29  ;;  %720 = vrot.lane.b32.xlu0 %v5031_v13, %s4913_s29 }
  0xd3   : > { %724 = vrot.lane.b32.xlu2 %v5034_v14, %s4913_s29 }
  0xd4   : > { %v475_v33 = vpop.permute.xlu1 %474  ;;  %v473_v34 = vpop.permute.xlu0 %472 }
  0xd5   : > { %504 = vst.msk [vmem:[#allocation2 + $0xa8] sm:$0xff] %vm11004_vm0, %v475_v33  ;;  %v536_v35 = vpop.permute.xlu2 %535 }
  0xd6   : > { %503 = vst.msk [vmem:[#allocation2 + $0xa0] sm:$0xff] %vm11004_vm0, %v473_v34 }
  0xd7   : > { %565 = vst.msk [vmem:[#allocation3 + $0xa8] sm:$0xff] %vm11004_vm0, %v536_v35  ;;  %v888_v35 = vld [vmem:[%s5011_s24 + $0x48] sm:$0xf] }
  0xda   : > { %728 = vrot.lane.b32.xlu1 %v5043_v15, %s4913_s29  ;;  %726 = vrot.lane.b32.xlu0 %v5046_v16, %s4913_s29 }
  0xdb   : > { %730 = vrot.lane.b32.xlu2 %v5049_v17, %s4913_s29 }
  0xdc   : > { %v481_v36 = vpop.permute.xlu1 %480  ;;  %v479_v37 = vpop.permute.xlu0 %478 }
  0xdd   : > { %507 = vst.msk [vmem:[#allocation2 + $0xc0] sm:$0xff] %vm11004_vm0, %v481_v36  ;;  %v542_v38 = vpop.permute.xlu2 %541 }
  0xde   : > { %506 = vst.msk [vmem:[#allocation2 + $0xb8] sm:$0xff] %vm11004_vm0, %v479_v37 }
  0xdf   : > { %568 = vst.msk [vmem:[#allocation3 + $0xc0] sm:$0xff] %vm11004_vm0, %v542_v38 }
  0xe2   : > { %734 = vrot.lane.b32.xlu1 %v705_v39, %s4913_s29  ;;  %732 = vrot.lane.b32.xlu0 %v5059_v19, %s4913_s29 }
  0xe3   : > { %777 = vrot.lane.b32.xlu2 %v5068_v20, %s4913_s29 }
  0xe4   : > { %v487_v40 = vpop.permute.xlu1 %486  ;;  %v485_v41 = vpop.permute.xlu0 %484 }
  0xe5   : > { %510 = vst.msk [vmem:[#allocation2 + $0xd8] sm:$0xff] %vm11004_vm0, %v487_v40  ;;  %v548_v42 = vpop.permute.xlu2 %547 }
  0xe6   : > { %509 = vst.msk [vmem:[#allocation2 + $0xd0] sm:$0xff] %vm11004_vm0, %v485_v41 }
  0xe7   : > { %571 = vst.msk [vmem:[#allocation3 + $0xd8] sm:$0xff] %vm11004_vm0, %v548_v42 }
  0xea   : > { %781 = vrot.lane.b32.xlu1 %v5076_v21, %s4913_s29  ;;  %779 = vrot.lane.b32.xlu0 %v5079_v22, %s4913_s29 }
  0xeb   : > { %783 = vrot.lane.b32.xlu2 %v5082_v23, %s4913_s29 }
  0xec   : > { %v534_v43 = vpop.permute.xlu1 %533  ;;  %v491_v44 = vpop.permute.xlu0 %490 }
  0xed   : > { %564 = vst.msk [vmem:[#allocation3 + $0xa0] sm:$0xff] %vm11004_vm0, %v534_v43  ;;  %v595_v45 = vpop.permute.xlu2 %594 }
  0xee   : > { %512 = vst.msk [vmem:[#allocation2 + $0xe8] sm:$0xf] %vm227_vm1, %v491_v44 }
  0xef   : > { %625 = vst.msk [vmem:[#allocation4 + $0xa0] sm:$0xff] %vm11004_vm0, %v595_v45  ;;  %v949_v45 = vld [vmem:[%s5065_s27 + $0x48] sm:$0xf] }
  0xf2   : > { %787 = vrot.lane.b32.xlu1 %v5091_v24, %s4913_s29  ;;  %785 = vrot.lane.b32.xlu0 %v5094_v25, %s4913_s29 }
  0xf3   : > { %789 = vrot.lane.b32.xlu2 %v5097_v26, %s4913_s29 }
  0xf4   : > { %v540_v46 = vpop.permute.xlu1 %539  ;;  %v538_v47 = vpop.permute.xlu0 %537 }
  0xf5   : > { %567 = vst.msk [vmem:[#allocation3 + $0xb8] sm:$0xff] %vm11004_vm0, %v540_v46  ;;  %v601_v48 = vpop.permute.xlu2 %600 }
  0xf6   : > { %566 = vst.msk [vmem:[#allocation3 + $0xb0] sm:$0xff] %vm11004_vm0, %v538_v47 }
  0xf7   : > { %628 = vst.msk [vmem:[#allocation4 + $0xb8] sm:$0xff] %vm11004_vm0, %v601_v48 }
  0xfa   : > { %793 = vrot.lane.b32.xlu1 %v5106_v27, %s4913_s29  ;;  %791 = vrot.lane.b32.xlu0 %v5109_v28, %s4913_s29 }
  0xfb   : > { %795 = vrot.lane.b32.xlu2 %v766_v49, %s4913_s29 }
  0xfc   : > { %v546_v50 = vpop.permute.xlu1 %545  ;;  %v544_v51 = vpop.permute.xlu0 %543 }
  0xfd   : > { %570 = vst.msk [vmem:[#allocation3 + $0xd0] sm:$0xff] %vm11004_vm0, %v546_v50  ;;  %v607_v52 = vpop.permute.xlu2 %606 }
  0xfe   : > { %569 = vst.msk [vmem:[#allocation3 + $0xc8] sm:$0xff] %vm11004_vm0, %v544_v51 }
  0xff   : > { %631 = vst.msk [vmem:[#allocation4 + $0xd0] sm:$0xff] %vm11004_vm0, %v607_v52  ;;  %v1010_v52 = vld [vmem:[%s4962_s20 + $0x48] sm:$0xf] }
 0x102   : > { %840 = vrot.lane.b32.xlu1 %v4983_v4, %s4914_s30  ;;  %838 = vrot.lane.b32.xlu0 %v4968_v1, %s4914_s30 }
 0x103   : > { %842 = vrot.lane.b32.xlu2 %v4965_v0, %s4914_s30 }
 0x104   : > { %v552_v53 = vpop.permute.xlu1 %551  ;;  %v550_v54 = vpop.permute.xlu0 %549 }
 0x105   : > { %573 = vst.msk [vmem:[#allocation3 + $0xe8] sm:$0xf] %vm227_vm1, %v552_v53  ;;  %v613_v55 = vpop.permute.xlu2 %612 }
 0x106   : > { %572 = vst.msk [vmem:[#allocation3 + $0xe0] sm:$0xff] %vm11004_vm0, %v550_v54  ;;  %v1071_v54 = vld [vmem:[%s5011_s24 + $0x48] sm:$0xf] }
 0x107   : > { %634 = vst.msk [vmem:[#allocation4 + $0xe8] sm:$0xf] %vm227_vm1, %v613_v55 }
 0x10a   : > { %846 = vrot.lane.b32.xlu1 %v4975_v2, %s4914_s30  ;;  %844 = vrot.lane.b32.xlu0 %v4980_v3, %s4914_s30 }
 0x10b   : > { %848 = vrot.lane.b32.xlu2 %v4986_v5, %s4914_s30 }
 0x10c   : > { %v599_v56 = vpop.permute.xlu1 %598  ;;  %v597_v57 = vpop.permute.xlu0 %596 }
 0x10d   : > { %627 = vst.msk [vmem:[#allocation4 + $0xb0] sm:$0xff] %vm11004_vm0, %v599_v56  ;;  %v660_v58 = vpop.permute.xlu2 %659  ;;  %v1132_v56 = vld [vmem:[%s5065_s27 + $0x48] sm:$0xf] }
 0x10e   : > { %626 = vst.msk [vmem:[#allocation4 + $0xa8] sm:$0xff] %vm11004_vm0, %v597_v57  ;;  %v5474_v57 = vld [vmem:[%s4962_s20 + $0x8] sm:$0xff] }
 0x10f   : > { %688 = vst.msk [vmem:[#allocation2 + $0x100] sm:$0xff] %vm11004_vm0, %v660_v58  ;;  %v5477_v58 = vld [vmem:[%s4962_s20] sm:$0xff] }
 0x112   : > { %852 = vrot.lane.b32.xlu1 %v4995_v6, %s4914_s30  ;;  %850 = vrot.lane.b32.xlu0 %v4998_v7, %s4914_s30 }
 0x113   : > { %854 = vrot.lane.b32.xlu2 %v5001_v8, %s4914_s30 }
 0x114   : > { %v605_v59 = vpop.permute.xlu1 %604  ;;  %v603_v60 = vpop.permute.xlu0 %602 }
 0x115   : > { %630 = vst.msk [vmem:[#allocation4 + $0xc8] sm:$0xff] %vm11004_vm0, %v605_v59  ;;  %v666_v61 = vpop.permute.xlu2 %665 }
 0x116   : > { %629 = vst.msk [vmem:[#allocation4 + $0xc0] sm:$0xff] %vm11004_vm0, %v603_v60 }
 0x117   : > { %691 = vst.msk [vmem:[#allocation2 + $0x118] sm:$0xff] %vm11004_vm0, %v666_v61  ;;  %v5492_v61 = vld [vmem:[%s4962_s20 + $0x20] sm:$0xff] }
 0x11a   : > { %899 = vrot.lane.b32.xlu1 %v5016_v9, %s4914_s30  ;;  %856 = vrot.lane.b32.xlu0 %v827_v62, %s4914_s30  ;;  %v5495_v62 = vld [vmem:[%s4962_s20 + $0x18] sm:$0xff] }
 0x11b   : > { %901 = vrot.lane.b32.xlu2 %v5020_v11, %s4914_s30 }
 0x11c   : > { %v611_v63 = vpop.permute.xlu1 %610  ;;  %v609_v10 = vpop.permute.xlu0 %608 }
 0x11d   : > { %633 = vst.msk [vmem:[#allocation4 + $0xe0] sm:$0xff] %vm11004_vm0, %v611_v63  ;;  %v672_v18 = vpop.permute.xlu2 %671  ;;  %v5499_v63 = vld [vmem:[%s4962_s20 + $0x28] sm:$0xff] }
 0x11e   : > { %632 = vst.msk [vmem:[#allocation4 + $0xd8] sm:$0xff] %vm11004_vm0, %v609_v10 }
 0x11f   : > { %694 = vst.msk [vmem:[#allocation2 + $0x130] sm:$0xff] %vm11004_vm0, %v672_v18 }
 0x122   : > { %905 = vrot.lane.b32.xlu1 %v5028_v12, %s4914_s30  ;;  %903 = vrot.lane.b32.xlu0 %v5031_v13, %s4914_s30 }
 0x123   : > { %907 = vrot.lane.b32.xlu2 %v5034_v14, %s4914_s30 }
 0x124   : > { %v658_v29 = vpop.permute.xlu1 %657  ;;  %v656_v30 = vpop.permute.xlu0 %655 }
 0x125   : > { %687 = vst.msk [vmem:[#allocation2 + $0xf8] sm:$0xff] %vm11004_vm0, %v658_v29  ;;  %v719_v31 = vpop.permute.xlu2 %718 }
 0x126   : > { %686 = vst.msk [vmem:[#allocation2 + $0xf0] sm:$0xff] %vm11004_vm0, %v656_v30  ;;  %v5510_v30 = vld [vmem:[%s4962_s20 + $0x38] sm:$0xff] }
 0x127   : > { %748 = vst.msk [vmem:[#allocation3 + $0xf8] sm:$0xff] %vm11004_vm0, %v719_v31  ;;  %v5513_v31 = vld [vmem:[%s4962_s20 + $0x30] sm:$0xff] }
 0x12a   : > { %911 = vrot.lane.b32.xlu1 %v5043_v15, %s4914_s30  ;;  %909 = vrot.lane.b32.xlu0 %v5046_v16, %s4914_s30 }
 0x12b   : > { %913 = vrot.lane.b32.xlu2 %v5049_v17, %s4914_s30 }
 0x12c   : > { %v664_v32 = vpop.permute.xlu1 %663  ;;  %v662_v33 = vpop.permute.xlu0 %661 }
 0x12d   : > { %690 = vst.msk [vmem:[#allocation2 + $0x110] sm:$0xff] %vm11004_vm0, %v664_v32  ;;  %v725_v34 = vpop.permute.xlu2 %724  ;;  %v5517_v32 = vld [vmem:[%s4962_s20 + $0x40] sm:$0xff] }
 0x12e   : > { %689 = vst.msk [vmem:[#allocation2 + $0x108] sm:$0xff] %vm11004_vm0, %v662_v33 }
 0x12f   : > { %751 = vst.msk [vmem:[#allocation3 + $0x110] sm:$0xff] %vm11004_vm0, %v725_v34 }
 0x132   : > { %917 = vrot.lane.b32.xlu1 %v888_v35, %s4914_s30  ;;  %915 = vrot.lane.b32.xlu0 %v5059_v19, %s4914_s30 }
 0x133   : > { %960 = vrot.lane.b32.xlu2 %v5068_v20, %s4914_s30 }
 0x134   : > { %v670_v36 = vpop.permute.xlu1 %669  ;;  %v668_v37 = vpop.permute.xlu0 %667 }
 0x135   : > { %693 = vst.msk [vmem:[#allocation2 + $0x128] sm:$0xff] %vm11004_vm0, %v670_v36  ;;  %v731_v38 = vpop.permute.xlu2 %730  ;;  %v5528_v36 = vld [vmem:[%s5011_s24] sm:$0xff] }
 0x136   : > { %692 = vst.msk [vmem:[#allocation2 + $0x120] sm:$0xff] %vm11004_vm0, %v668_v37  ;;  %v1193_v37 = vld [vmem:[%s4962_s20 + $0x48] sm:$0xf] }
 0x137   : > { %754 = vst.msk [vmem:[#allocation3 + $0x128] sm:$0xff] %vm11004_vm0, %v731_v38  ;;  %v5533_v38 = vld [vmem:[%s5011_s24 + $0x8] sm:$0xff] }
 0x13a   : > { %964 = vrot.lane.b32.xlu1 %v5076_v21, %s4914_s30  ;;  %962 = vrot.lane.b32.xlu0 %v5079_v22, %s4914_s30 }
 0x13b   : > { %966 = vrot.lane.b32.xlu2 %v5082_v23, %s4914_s30 }
 0x13c   : > { %v717_v39 = vpop.permute.xlu1 %716  ;;  %v674_v40 = vpop.permute.xlu0 %673 }
 0x13d   : > { %747 = vst.msk [vmem:[#allocation3 + $0xf0] sm:$0xff] %vm11004_vm0, %v717_v39  ;;  %v778_v41 = vpop.permute.xlu2 %777 }
 0x13e   : > { %695 = vst.msk [vmem:[#allocation2 + $0x138] sm:$0xf] %vm227_vm1, %v674_v40 }
 0x13f   : > { %808 = vst.msk [vmem:[#allocation4 + $0xf0] sm:$0xff] %vm11004_vm0, %v778_v41 }
 0x142   : > { %970 = vrot.lane.b32.xlu1 %v5091_v24, %s4914_s30  ;;  %968 = vrot.lane.b32.xlu0 %v5094_v25, %s4914_s30 }
 0x143   : > { %972 = vrot.lane.b32.xlu2 %v5097_v26, %s4914_s30 }
 0x144   : > { %v723_v42 = vpop.permute.xlu1 %722  ;;  %v721_v43 = vpop.permute.xlu0 %720 }
 0x145   : > { %750 = vst.msk [vmem:[#allocation3 + $0x108] sm:$0xff] %vm11004_vm0, %v723_v42  ;;  %v784_v44 = vpop.permute.xlu2 %783  ;;  %v5543_v42 = vld [vmem:[%s5011_s24 + $0x18] sm:$0xff] }
 0x146   : > { %749 = vst.msk [vmem:[#allocation3 + $0x100] sm:$0xff] %vm11004_vm0, %v721_v43  ;;  %v5546_v43 = vld [vmem:[%s5011_s24 + $0x10] sm:$0xff] }
 0x147   : > { %811 = vst.msk [vmem:[#allocation4 + $0x108] sm:$0xff] %vm11004_vm0, %v784_v44  ;;  %v5550_v44 = vld [vmem:[%s5011_s24 + $0x20] sm:$0xff] }
 0x14a   : > { %976 = vrot.lane.b32.xlu1 %v5106_v27, %s4914_s30  ;;  %974 = vrot.lane.b32.xlu0 %v5109_v28, %s4914_s30 }
 0x14b   : > { %978 = vrot.lane.b32.xlu2 %v949_v45, %s4914_s30 }
 0x14c   : > { %v729_v46 = vpop.permute.xlu1 %728  ;;  %v727_v47 = vpop.permute.xlu0 %726 }
 0x14d   : > { %753 = vst.msk [vmem:[#allocation3 + $0x120] sm:$0xff] %vm11004_vm0, %v729_v46  ;;  %v790_v48 = vpop.permute.xlu2 %789 }
 0x14e   : > { %752 = vst.msk [vmem:[#allocation3 + $0x118] sm:$0xff] %vm11004_vm0, %v727_v47 }
 0x14f   : > { %814 = vst.msk [vmem:[#allocation4 + $0x120] sm:$0xff] %vm11004_vm0, %v790_v48  ;;  %v5561_v48 = vld [vmem:[%s5011_s24 + $0x30] sm:$0xff] }
 0x152   : > { %1023 = vrot.lane.b32.xlu1 %v4983_v4, %s4915_s4  ;;  %1021 = vrot.lane.b32.xlu0 %v4968_v1, %s4915_s4 }
 0x153   : > { %1025 = vrot.lane.b32.xlu2 %v4965_v0, %s4915_s4 }
 0x154   : > { %v735_v49 = vpop.permute.xlu1 %734  ;;  %v733_v50 = vpop.permute.xlu0 %732 }
 0x155   : > { %756 = vst.msk [vmem:[#allocation3 + $0x138] sm:$0xf] %vm227_vm1, %v735_v49  ;;  %v796_v51 = vpop.permute.xlu2 %795  ;;  %v5564_v49 = vld [vmem:[%s5011_s24 + $0x28] sm:$0xff] }
 0x156   : > { %755 = vst.msk [vmem:[#allocation3 + $0x130] sm:$0xff] %vm11004_vm0, %v733_v50  ;;  %v5568_v50 = vld [vmem:[%s5011_s24 + $0x38] sm:$0xff] }
 0x157   : > { %817 = vst.msk [vmem:[#allocation4 + $0x138] sm:$0xf] %vm227_vm1, %v796_v51 }
 0x15a   : > { %1029 = vrot.lane.b32.xlu1 %v4975_v2, %s4915_s4  ;;  %1027 = vrot.lane.b32.xlu0 %v4980_v3, %s4915_s4 }
 0x15b   : > { %1031 = vrot.lane.b32.xlu2 %v4986_v5, %s4915_s4 }
 0x15c   : > { %v782_v1 = vpop.permute.xlu1 %781  ;;  %v780_v4 = vpop.permute.xlu0 %779 }
 0x15d   : > { %810 = vst.msk [vmem:[#allocation4 + $0x100] sm:$0xff] %vm11004_vm0, %v782_v1  ;;  %v843_v0 = vpop.permute.xlu2 %842 }
 0x15e   : > { %809 = vst.msk [vmem:[#allocation4 + $0xf8] sm:$0xff] %vm11004_vm0, %v780_v4 }
 0x15f   : > { %871 = vst.msk [vmem:[#allocation2 + $0x150] sm:$0xff] %vm11004_vm0, %v843_v0  ;;  %v1254_v0 = vld [vmem:[%s5011_s24 + $0x48] sm:$0xf] }
 0x162   : > { %1035 = vrot.lane.b32.xlu1 %v4995_v6, %s4915_s4  ;;  %1033 = vrot.lane.b32.xlu0 %v4998_v7, %s4915_s4 }
 0x163   : > { %1037 = vrot.lane.b32.xlu2 %v5001_v8, %s4915_s4 }
 0x164   : > { %v788_v2 = vpop.permute.xlu1 %787  ;;  %v786_v3 = vpop.permute.xlu0 %785 }
 0x165   : > { %813 = vst.msk [vmem:[#allocation4 + $0x118] sm:$0xff] %vm11004_vm0, %v788_v2  ;;  %v849_v5 = vpop.permute.xlu2 %848  ;;  %v5580_v2 = vld [vmem:[%s5011_s24 + $0x40] sm:$0xff] }
 0x166   : > { %812 = vst.msk [vmem:[#allocation4 + $0x110] sm:$0xff] %vm11004_vm0, %v786_v3  ;;  %v5584_v3 = vld [vmem:[%s5065_s27] sm:$0xff] }
 0x167   : > { %874 = vst.msk [vmem:[#allocation2 + $0x168] sm:$0xff] %vm11004_vm0, %v849_v5 }
 0x16a   : > { %1082 = vrot.lane.b32.xlu1 %v5016_v9, %s4915_s4  ;;  %1039 = vrot.lane.b32.xlu0 %v1010_v52, %s4915_s4 }
 0x16b   : > { %1084 = vrot.lane.b32.xlu2 %v5020_v11, %s4915_s4 }
 0x16c   : > { %v794_v6 = vpop.permute.xlu1 %793  ;;  %v792_v7 = vpop.permute.xlu0 %791 }
 0x16d   : > { %816 = vst.msk [vmem:[#allocation4 + $0x130] sm:$0xff] %vm11004_vm0, %v794_v6  ;;  %v855_v8 = vpop.permute.xlu2 %854 }
 0x16e   : > { %815 = vst.msk [vmem:[#allocation4 + $0x128] sm:$0xff] %vm11004_vm0, %v792_v7 }
 0x16f   : > { %877 = vst.msk [vmem:[#allocation2 + $0x180] sm:$0xff] %vm11004_vm0, %v855_v8 }
 0x172   : > { %1088 = vrot.lane.b32.xlu1 %v5028_v12, %s4915_s4  ;;  %1086 = vrot.lane.b32.xlu0 %v5031_v13, %s4915_s4 }
 0x173   : > { %1090 = vrot.lane.b32.xlu2 %v5034_v14, %s4915_s4 }
 0x174   : > { %v841_v9 = vpop.permute.xlu1 %840  ;;  %v839_v53 = vpop.permute.xlu0 %838 }
 0x175   : > { %870 = vst.msk [vmem:[#allocation2 + $0x148] sm:$0xff] %vm11004_vm0, %v841_v9  ;;  %v902_v11 = vpop.permute.xlu2 %901  ;;  %v5598_v9 = vld [vmem:[%s5065_s27 + $0x10] sm:$0xff] }
 0x176   : > { %869 = vst.msk [vmem:[#allocation2 + $0x140] sm:$0xff] %vm11004_vm0, %v839_v53  ;;  %v5601_v53 = vld [vmem:[%s5065_s27 + $0x8] sm:$0xff] }
 0x177   : > { %931 = vst.msk [vmem:[#allocation3 + $0x148] sm:$0xff] %vm11004_vm0, %v902_v11  ;;  %v5605_v11 = vld [vmem:[%s5065_s27 + $0x18] sm:$0xff] }
 0x17a   : > { %1094 = vrot.lane.b32.xlu1 %v5043_v15, %s4915_s4  ;;  %1092 = vrot.lane.b32.xlu0 %v5046_v16, %s4915_s4 }
 0x17b   : > { %1096 = vrot.lane.b32.xlu2 %v5049_v17, %s4915_s4 }
 0x17c   : > { %v847_v12 = vpop.permute.xlu1 %846  ;;  %v845_v13 = vpop.permute.xlu0 %844 }
 0x17d   : > { %873 = vst.msk [vmem:[#allocation2 + $0x160] sm:$0xff] %vm11004_vm0, %v847_v12  ;;  %v908_v14 = vpop.permute.xlu2 %907 }
 0x17e   : > { %872 = vst.msk [vmem:[#allocation2 + $0x158] sm:$0xff] %vm11004_vm0, %v845_v13 }
 0x17f   : > { %934 = vst.msk [vmem:[#allocation3 + $0x160] sm:$0xff] %vm11004_vm0, %v908_v14 }
 0x182   : > { %1100 = vrot.lane.b32.xlu1 %v1071_v54, %s4915_s4  ;;  %1098 = vrot.lane.b32.xlu0 %v5059_v19, %s4915_s4  ;;  %v5616_v54 = vld [vmem:[%s5065_s27 + $0x28] sm:$0xff] }
 0x183   : > { %1143 = vrot.lane.b32.xlu2 %v5068_v20, %s4915_s4 }
 0x184   : > { %v853_v15 = vpop.permute.xlu1 %852  ;;  %v851_v16 = vpop.permute.xlu0 %850 }
 0x185   : > { %876 = vst.msk [vmem:[#allocation2 + $0x178] sm:$0xff] %vm11004_vm0, %v853_v15  ;;  %v914_v17 = vpop.permute.xlu2 %913  ;;  %v5619_v15 = vld [vmem:[%s5065_s27 + $0x20] sm:$0xff] }
 0x186   : > { %875 = vst.msk [vmem:[#allocation2 + $0x170] sm:$0xff] %vm11004_vm0, %v851_v16  ;;  %v5623_v16 = vld [vmem:[%s5065_s27 + $0x30] sm:$0xff] }
 0x187   : > { %937 = vst.msk [vmem:[#allocation3 + $0x178] sm:$0xff] %vm11004_vm0, %v914_v17 }
 0x18a   : > { %1147 = vrot.lane.b32.xlu1 %v5076_v21, %s4915_s4  ;;  %1145 = vrot.lane.b32.xlu0 %v5079_v22, %s4915_s4 }
 0x18b   : > { %1149 = vrot.lane.b32.xlu2 %v5082_v23, %s4915_s4 }
 0x18c   : > { %v900_v55 = vpop.permute.xlu1 %899  ;;  %v857_v19 = vpop.permute.xlu0 %856 }
 0x18d   : > { %930 = vst.msk [vmem:[#allocation3 + $0x140] sm:$0xff] %vm11004_vm0, %v900_v55  ;;  %v961_v20 = vpop.permute.xlu2 %960 }
 0x18e   : > { %878 = vst.msk [vmem:[#allocation2 + $0x188] sm:$0xf] %vm227_vm1, %v857_v19 }
 0x18f   : > { %991 = vst.msk [vmem:[#allocation4 + $0x140] sm:$0xff] %vm11004_vm0, %v961_v20  ;;  %v5634_v20 = vld [vmem:[%s5065_s27 + $0x40] sm:$0xff] }
 0x192   : > { %1153 = vrot.lane.b32.xlu1 %v5091_v24, %s4915_s4  ;;  %1151 = vrot.lane.b32.xlu0 %v5094_v25, %s4915_s4 }
 0x193   : > { %1155 = vrot.lane.b32.xlu2 %v5097_v26, %s4915_s4 }
 0x194   : > { %v906_v21 = vpop.permute.xlu1 %905  ;;  %v904_v22 = vpop.permute.xlu0 %903 }
 0x195   : > { %933 = vst.msk [vmem:[#allocation3 + $0x158] sm:$0xff] %vm11004_vm0, %v906_v21  ;;  %v967_v23 = vpop.permute.xlu2 %966  ;;  %v5637_v21 = vld [vmem:[%s5065_s27 + $0x38] sm:$0xff] }
 0x196   : > { %932 = vst.msk [vmem:[#allocation3 + $0x150] sm:$0xff] %vm11004_vm0, %v904_v22  ;;  %v1315_v22 = vld [vmem:[%s5065_s27 + $0x48] sm:$0xf] }
 0x197   : > { %994 = vst.msk [vmem:[#allocation4 + $0x158] sm:$0xff] %vm11004_vm0, %v967_v23 }
 0x19a   : > { %1159 = vrot.lane.b32.xlu1 %v5106_v27, %s4915_s4  ;;  %1157 = vrot.lane.b32.xlu0 %v5109_v28, %s4915_s4  ;;  %v5481_v27 = vld [vmem:[%s4962_s20 + $0x10] sm:$0xff] }
 0x19b   : > { %1161 = vrot.lane.b32.xlu2 %v1132_v56, %s4915_s4 }
 0x19c   : > { %v912_v24 = vpop.permute.xlu1 %911  ;;  %v910_v25 = vpop.permute.xlu0 %909 }
 0x19d   : > { %936 = vst.msk [vmem:[#allocation3 + $0x170] sm:$0xff] %vm11004_vm0, %v912_v24  ;;  %v973_v26 = vpop.permute.xlu2 %972 }
 0x19e   : > { %935 = vst.msk [vmem:[#allocation3 + $0x168] sm:$0xff] %vm11004_vm0, %v910_v25 }
 0x19f   : > { %997 = vst.msk [vmem:[#allocation4 + $0x170] sm:$0xff] %vm11004_vm0, %v973_v26 }
 0x1a2   : > { %1206 = vrot.lane.b32.xlu1 %v5474_v57, %s4916_s5  ;;  %1204 = vrot.lane.b32.xlu0 %v5477_v58, %s4916_s5 }
 0x1a3   : > { %1208 = vrot.lane.b32.xlu2 %v5481_v27, %s4916_s5 }
 0x1a4   : > { %v918_v28 = vpop.permute.xlu1 %917  ;;  %v916_v59 = vpop.permute.xlu0 %915 }
 0x1a5   : > { %939 = vst.msk [vmem:[#allocation3 + $0x188] sm:$0xf] %vm227_vm1, %v918_v28  ;;  %v979_v60 = vpop.permute.xlu2 %978 }
 0x1a6   : > { %938 = vst.msk [vmem:[#allocation3 + $0x180] sm:$0xff] %vm11004_vm0, %v916_v59 }
 0x1a7   : > { %1000 = vst.msk [vmem:[#allocation4 + $0x188] sm:$0xf] %vm227_vm1, %v979_v60 }
 0x1aa   : > { %1212 = vrot.lane.b32.xlu1 %v5492_v61, %s4916_s5  ;;  %1210 = vrot.lane.b32.xlu0 %v5495_v62, %s4916_s5 }
 0x1ab   : > { %1214 = vrot.lane.b32.xlu2 %v5499_v63, %s4916_s5 }
 0x1ac   : > { %v965_v10 = vpop.permute.xlu1 %964  ;;  %v963_v18 = vpop.permute.xlu0 %962 }
 0x1ad   : > { %993 = vst.msk [vmem:[#allocation4 + $0x150] sm:$0xff] %vm11004_vm0, %v965_v10  ;;  %v1026_v29 = vpop.permute.xlu2 %1025 }
 0x1ae   : > { %992 = vst.msk [vmem:[#allocation4 + $0x148] sm:$0xff] %vm11004_vm0, %v963_v18 }
 0x1af   : > { %1054 = vst.msk [vmem:[#allocation2 + $0x1a0] sm:$0xff] %vm11004_vm0, %v1026_v29 }
 0x1b2   : > { %1218 = vrot.lane.b32.xlu1 %v5510_v30, %s4916_s5  ;;  %1216 = vrot.lane.b32.xlu0 %v5513_v31, %s4916_s5 }
 0x1b3   : > { %1220 = vrot.lane.b32.xlu2 %v5517_v32, %s4916_s5 }
 0x1b4   : > { %v971_v33 = vpop.permute.xlu1 %970  ;;  %v969_v34 = vpop.permute.xlu0 %968 }
 0x1b5   : > { %996 = vst.msk [vmem:[#allocation4 + $0x168] sm:$0xff] %vm11004_vm0, %v971_v33  ;;  %v1032_v35 = vpop.permute.xlu2 %1031 }
 0x1b6   : > { %995 = vst.msk [vmem:[#allocation4 + $0x160] sm:$0xff] %vm11004_vm0, %v969_v34 }
 0x1b7   : > { %1057 = vst.msk [vmem:[#allocation2 + $0x1b8] sm:$0xff] %vm11004_vm0, %v1032_v35 }
 0x1ba   : > { %1265 = vrot.lane.b32.xlu1 %v5528_v36, %s4916_s5  ;;  %1222 = vrot.lane.b32.xlu0 %v1193_v37, %s4916_s5  ;;  %v1376_v37 = vld [vmem:[%s4962_s20 + $0x48] sm:$0xf] }
 0x1bb   : > { %1267 = vrot.lane.b32.xlu2 %v5533_v38, %s4916_s5 }
 0x1bc   : > { %v977_v39 = vpop.permute.xlu1 %976  ;;  %v975_v40 = vpop.permute.xlu0 %974 }
 0x1bd   : > { %999 = vst.msk [vmem:[#allocation4 + $0x180] sm:$0xff] %vm11004_vm0, %v977_v39  ;;  %v1038_v41 = vpop.permute.xlu2 %1037 }
 0x1be   : > { %998 = vst.msk [vmem:[#allocation4 + $0x178] sm:$0xff] %vm11004_vm0, %v975_v40 }
 0x1bf   : > { %1060 = vst.msk [vmem:[#allocation2 + $0x1d0] sm:$0xff] %vm11004_vm0, %v1038_v41 }
 0x1c2   : > { %1271 = vrot.lane.b32.xlu1 %v5543_v42, %s4916_s5  ;;  %1269 = vrot.lane.b32.xlu0 %v5546_v43, %s4916_s5 }
 0x1c3   : > { %1273 = vrot.lane.b32.xlu2 %v5550_v44, %s4916_s5 }
 0x1c4   : > { %v1024_v45 = vpop.permute.xlu1 %1023  ;;  %v1022_v46 = vpop.permute.xlu0 %1021 }
 0x1c5   : > { %1053 = vst.msk [vmem:[#allocation2 + $0x198] sm:$0xff] %vm11004_vm0, %v1024_v45  ;;  %v1085_v47 = vpop.permute.xlu2 %1084 }
 0x1c6   : > { %1052 = vst.msk [vmem:[#allocation2 + $0x190] sm:$0xff] %vm11004_vm0, %v1022_v46 }
 0x1c7   : > { %1114 = vst.msk [vmem:[#allocation3 + $0x198] sm:$0xff] %vm11004_vm0, %v1085_v47 }
 0x1ca   : > { %1277 = vrot.lane.b32.xlu1 %v5561_v48, %s4916_s5  ;;  %1275 = vrot.lane.b32.xlu0 %v5564_v49, %s4916_s5 }
 0x1cb   : > { %1279 = vrot.lane.b32.xlu2 %v5568_v50, %s4916_s5 }
 0x1cc   : > { %v1030_v51 = vpop.permute.xlu1 %1029  ;;  %v1028_v1 = vpop.permute.xlu0 %1027 }
 0x1cd   : > { %1056 = vst.msk [vmem:[#allocation2 + $0x1b0] sm:$0xff] %vm11004_vm0, %v1030_v51  ;;  %v1091_v4 = vpop.permute.xlu2 %1090 }
 0x1ce   : > { %1055 = vst.msk [vmem:[#allocation2 + $0x1a8] sm:$0xff] %vm11004_vm0, %v1028_v1 }
 0x1cf   : > { %1117 = vst.msk [vmem:[#allocation3 + $0x1b0] sm:$0xff] %vm11004_vm0, %v1091_v4 }
 0x1d2   : > { %1283 = vrot.lane.b32.xlu1 %v1254_v0, %s4916_s5  ;;  %1281 = vrot.lane.b32.xlu0 %v5580_v2, %s4916_s5  ;;  %v1437_v0 = vld [vmem:[%s5011_s24 + $0x48] sm:$0xf] }
 0x1d3   : > { %1326 = vrot.lane.b32.xlu2 %v5584_v3, %s4916_s5 }
 0x1d4   : > { %v5589_v5 = vld [vmem:[#allocation2 + $0x1b6] sm:$0xff]  ;;  %v1036_v52 = vpop.permute.xlu1 %1035  ;;  %v1034_v6 = vpop.permute.xlu0 %1033 }
 0x1d5   : > { %11099 = vst [vmem:[#allocation5_spill] sm:$0xff] %v5589_v5  ;;  %v5593_v7 = vld [vmem:[#allocation2 + $0x1ae] sm:$0xff]  ;;  %v1097_v8 = vpop.permute.xlu2 %1096 }
 0x1d6   : > { %11100 = vst [vmem:[#allocation6_spill] sm:$0xff] %v5593_v7 }
 0x1d7   : > { %1059 = vst.msk [vmem:[#allocation2 + $0x1c8] sm:$0xff] %vm11004_vm0, %v1036_v52 }
 0x1d8   : > { %1058 = vst.msk [vmem:[#allocation2 + $0x1c0] sm:$0xff] %vm11004_vm0, %v1034_v6 }
 0x1d9   : > { %1120 = vst.msk [vmem:[#allocation3 + $0x1c8] sm:$0xff] %vm11004_vm0, %v1097_v8 }
 0x1da   : > { %1330 = vrot.lane.b32.xlu1 %v5598_v9, %s4916_s5  ;;  %1328 = vrot.lane.b32.xlu0 %v5601_v53, %s4916_s5 }
 0x1db   : > { %1332 = vrot.lane.b32.xlu2 %v5605_v11, %s4916_s5 }
 0x1dc   : > { %v1083_v12 = vpop.permute.xlu1 %1082  ;;  %v1040_v13 = vpop.permute.xlu0 %1039 }
 0x1dd   : > { %1113 = vst.msk [vmem:[#allocation3 + $0x190] sm:$0xff] %vm11004_vm0, %v1083_v12  ;;  %v1144_v14 = vpop.permute.xlu2 %1143 }
 0x1de   : > { %1061 = vst.msk [vmem:[#allocation2 + $0x1d8] sm:$0xf] %vm227_vm1, %v1040_v13 }
 0x1df   : > { %1174 = vst.msk [vmem:[#allocation4 + $0x190] sm:$0xff] %vm11004_vm0, %v1144_v14 }
 0x1e2   : > { %1336 = vrot.lane.b32.xlu1 %v5616_v54, %s4916_s5  ;;  %1334 = vrot.lane.b32.xlu0 %v5619_v15, %s4916_s5 }
 0x1e3   : > { %1338 = vrot.lane.b32.xlu2 %v5623_v16, %s4916_s5 }
 0x1e4   : > { %v1089_v17 = vpop.permute.xlu1 %1088  ;;  %v1087_v55 = vpop.permute.xlu0 %1086 }
 0x1e5   : > { %1116 = vst.msk [vmem:[#allocation3 + $0x1a8] sm:$0xff] %vm11004_vm0, %v1089_v17  ;;  %v1150_v19 = vpop.permute.xlu2 %1149 }
 0x1e6   : > { %1115 = vst.msk [vmem:[#allocation3 + $0x1a0] sm:$0xff] %vm11004_vm0, %v1087_v55 }
 0x1e7   : > { %1177 = vst.msk [vmem:[#allocation4 + $0x1a8] sm:$0xff] %vm11004_vm0, %v1150_v19 }
 0x1ea   : > { %1342 = vrot.lane.b32.xlu1 %v5634_v20, %s4916_s5  ;;  %1340 = vrot.lane.b32.xlu0 %v5637_v21, %s4916_s5 }
 0x1eb   : > { %1344 = vrot.lane.b32.xlu2 %v1315_v22, %s4916_s5  ;;  %v1498_v22 = vld [vmem:[%s5065_s27 + $0x48] sm:$0xf] }
 0x1ec   : > { %v5645_v23 = vld [vmem:[#allocation3 + $0x1ae] sm:$0xff]  ;;  %v1095_v56 = vpop.permute.xlu1 %1094  ;;  %v1093_v24 = vpop.permute.xlu0 %1092 }
 0x1ed   : > { %11101 = vst [vmem:[#allocation7_spill] sm:$0xff] %v5645_v23  ;;  %v1156_v25 = vpop.permute.xlu2 %1155 }
 0x1ee   : > { %1119 = vst.msk [vmem:[#allocation3 + $0x1c0] sm:$0xff] %vm11004_vm0, %v1095_v56 }
 0x1ef   : > { %1118 = vst.msk [vmem:[#allocation3 + $0x1b8] sm:$0xff] %vm11004_vm0, %v1093_v24 }
 0x1f0   : > { %1180 = vst.msk [vmem:[#allocation4 + $0x1c0] sm:$0xff] %vm11004_vm0, %v1156_v25 }
 0x1f2   : > { %1389 = vrot.lane.b32.xlu1 %v5474_v57, %s4917_s6  ;;  %1387 = vrot.lane.b32.xlu0 %v5477_v58, %s4917_s6 }
 0x1f3   : > { %1391 = vrot.lane.b32.xlu2 %v5481_v27, %s4917_s6 }
 0x1f4   : > { %v1101_v26 = vpop.permute.xlu1 %1100  ;;  %v1099_v28 = vpop.permute.xlu0 %1098 }
 0x1f5   : > { %1122 = vst.msk [vmem:[#allocation3 + $0x1d8] sm:$0xf] %vm227_vm1, %v1101_v26  ;;  %v1162_v60 = vpop.permute.xlu2 %1161 }
 0x1f6   : > { %v5657_v59 = vld [vmem:[#allocation3 + $0x1b6] sm:$0xff]  ;;  %1121 = vst.msk [vmem:[#allocation3 + $0x1d0] sm:$0xff] %vm11004_vm0, %v1099_v28 }
 0x1f7   : > { %11102 = vst [vmem:[#allocation8_spill] sm:$0xff] %v5657_v59 }
 0x1f8   : > { %1183 = vst.msk [vmem:[#allocation4 + $0x1d8] sm:$0xf] %vm227_vm1, %v1162_v60 }
 0x1fa   : > { %1395 = vrot.lane.b32.xlu1 %v5492_v61, %s4917_s6  ;;  %1393 = vrot.lane.b32.xlu0 %v5495_v62, %s4917_s6 }
 0x1fb   : > { %1397 = vrot.lane.b32.xlu2 %v5499_v63, %s4917_s6 }
 0x1fc   : > { %v1148_v10 = vpop.permute.xlu1 %1147  ;;  %v1146_v18 = vpop.permute.xlu0 %1145 }
 0x1fd   : > { %1176 = vst.msk [vmem:[#allocation4 + $0x1a0] sm:$0xff] %vm11004_vm0, %v1148_v10  ;;  %v1209_v29 = vpop.permute.xlu2 %1208 }
 0x1fe   : > { %1175 = vst.msk [vmem:[#allocation4 + $0x198] sm:$0xff] %vm11004_vm0, %v1146_v18 }
 0x1ff   : > { %1237 = vst.msk [vmem:[#allocation2 + $0x1f0] sm:$0xff] %vm11004_vm0, %v1209_v29 }
 0x202   : > { %1401 = vrot.lane.b32.xlu1 %v5510_v30, %s4917_s6  ;;  %1399 = vrot.lane.b32.xlu0 %v5513_v31, %s4917_s6 }
 0x203   : > { %1403 = vrot.lane.b32.xlu2 %v5517_v32, %s4917_s6 }
 0x204   : > { %v1154_v33 = vpop.permute.xlu1 %1153  ;;  %v1152_v34 = vpop.permute.xlu0 %1151 }
 0x205   : > { %1179 = vst.msk [vmem:[#allocation4 + $0x1b8] sm:$0xff] %vm11004_vm0, %v1154_v33  ;;  %v1215_v35 = vpop.permute.xlu2 %1214 }
 0x206   : > { %1178 = vst.msk [vmem:[#allocation4 + $0x1b0] sm:$0xff] %vm11004_vm0, %v1152_v34 }
 0x207   : > { %1240 = vst.msk [vmem:[#allocation2 + $0x208] sm:$0xff] %vm11004_vm0, %v1215_v35 }
 0x20a   : > { %1448 = vrot.lane.b32.xlu1 %v5528_v36, %s4917_s6  ;;  %1405 = vrot.lane.b32.xlu0 %v1376_v37, %s4917_s6  ;;  %v1559_v37 = vld [vmem:[%s4962_s20 + $0x48] sm:$0xf] }
 0x20b   : > { %1450 = vrot.lane.b32.xlu2 %v5533_v38, %s4917_s6 }
 0x20c   : > { %v1160_v39 = vpop.permute.xlu1 %1159  ;;  %v1158_v40 = vpop.permute.xlu0 %1157 }
 0x20d   : > { %1182 = vst.msk [vmem:[#allocation4 + $0x1d0] sm:$0xff] %vm11004_vm0, %v1160_v39  ;;  %v1221_v41 = vpop.permute.xlu2 %1220 }
 0x20e   : > { %1181 = vst.msk [vmem:[#allocation4 + $0x1c8] sm:$0xff] %vm11004_vm0, %v1158_v40 }
 0x20f   : > { %1243 = vst.msk [vmem:[#allocation2 + $0x220] sm:$0xff] %vm11004_vm0, %v1221_v41 }
 0x212   : > { %1454 = vrot.lane.b32.xlu1 %v5543_v42, %s4917_s6  ;;  %1452 = vrot.lane.b32.xlu0 %v5546_v43, %s4917_s6 }
 0x213   : > { %1456 = vrot.lane.b32.xlu2 %v5550_v44, %s4917_s6 }
 0x214   : > { %v1207_v45 = vpop.permute.xlu1 %1206  ;;  %v1205_v46 = vpop.permute.xlu0 %1204 }
 0x215   : > { %1236 = vst.msk [vmem:[#allocation2 + $0x1e8] sm:$0xff] %vm11004_vm0, %v1207_v45  ;;  %v1268_v47 = vpop.permute.xlu2 %1267 }
 0x216   : > { %1235 = vst.msk [vmem:[#allocation2 + $0x1e0] sm:$0xff] %vm11004_vm0, %v1205_v46 }
 0x217   : > { %1297 = vst.msk [vmem:[#allocation3 + $0x1e8] sm:$0xff] %vm11004_vm0, %v1268_v47 }
 0x21a   : > { %1460 = vrot.lane.b32.xlu1 %v5561_v48, %s4917_s6  ;;  %1458 = vrot.lane.b32.xlu0 %v5564_v49, %s4917_s6 }
 0x21b   : > { %1462 = vrot.lane.b32.xlu2 %v5568_v50, %s4917_s6 }
 0x21c   : > { %v1213_v51 = vpop.permute.xlu1 %1212  ;;  %v1211_v1 = vpop.permute.xlu0 %1210 }
 0x21d   : > { %1239 = vst.msk [vmem:[#allocation2 + $0x200] sm:$0xff] %vm11004_vm0, %v1213_v51  ;;  %v1274_v4 = vpop.permute.xlu2 %1273 }
 0x21e   : > { %1238 = vst.msk [vmem:[#allocation2 + $0x1f8] sm:$0xff] %vm11004_vm0, %v1211_v1 }
 0x21f   : > { %1300 = vst.msk [vmem:[#allocation3 + $0x200] sm:$0xff] %vm11004_vm0, %v1274_v4 }
 0x222   : > { %1466 = vrot.lane.b32.xlu1 %v1437_v0, %s4917_s6  ;;  %1464 = vrot.lane.b32.xlu0 %v5580_v2, %s4917_s6  ;;  %v1620_v0 = vld [vmem:[%s5011_s24 + $0x48] sm:$0xf] }
 0x223   : > { %1509 = vrot.lane.b32.xlu2 %v5584_v3, %s4917_s6 }
 0x224   : > { %v1219_v52 = vpop.permute.xlu1 %1218  ;;  %v1217_v6 = vpop.permute.xlu0 %1216 }
 0x225   : > { %1242 = vst.msk [vmem:[#allocation2 + $0x218] sm:$0xff] %vm11004_vm0, %v1219_v52  ;;  %v1280_v8 = vpop.permute.xlu2 %1279 }
 0x226   : > { %1241 = vst.msk [vmem:[#allocation2 + $0x210] sm:$0xff] %vm11004_vm0, %v1217_v6 }
 0x227   : > { %1303 = vst.msk [vmem:[#allocation3 + $0x218] sm:$0xff] %vm11004_vm0, %v1280_v8 }
 0x22a   : > { %1513 = vrot.lane.b32.xlu1 %v5598_v9, %s4917_s6  ;;  %1511 = vrot.lane.b32.xlu0 %v5601_v53, %s4917_s6 }
 0x22b   : > { %1515 = vrot.lane.b32.xlu2 %v5605_v11, %s4917_s6 }
 0x22c   : > { %v1266_v12 = vpop.permute.xlu1 %1265  ;;  %v1223_v13 = vpop.permute.xlu0 %1222 }
 0x22d   : > { %1296 = vst.msk [vmem:[#allocation3 + $0x1e0] sm:$0xff] %vm11004_vm0, %v1266_v12  ;;  %v1327_v14 = vpop.permute.xlu2 %1326 }
 0x22e   : > { %1244 = vst.msk [vmem:[#allocation2 + $0x228] sm:$0xf] %vm227_vm1, %v1223_v13 }
 0x22f   : > { %1357 = vst.msk [vmem:[#allocation4 + $0x1e0] sm:$0xff] %vm11004_vm0, %v1327_v14 }
 0x232   : > { %1519 = vrot.lane.b32.xlu1 %v5616_v54, %s4917_s6  ;;  %1517 = vrot.lane.b32.xlu0 %v5619_v15, %s4917_s6 }
 0x233   : > { %1521 = vrot.lane.b32.xlu2 %v5623_v16, %s4917_s6 }
 0x234   : > { %v1272_v17 = vpop.permute.xlu1 %1271  ;;  %v1270_v55 = vpop.permute.xlu0 %1269 }
 0x235   : > { %1299 = vst.msk [vmem:[#allocation3 + $0x1f8] sm:$0xff] %vm11004_vm0, %v1272_v17  ;;  %v1333_v19 = vpop.permute.xlu2 %1332 }
 0x236   : > { %1298 = vst.msk [vmem:[#allocation3 + $0x1f0] sm:$0xff] %vm11004_vm0, %v1270_v55 }
 0x237   : > { %1360 = vst.msk [vmem:[#allocation4 + $0x1f8] sm:$0xff] %vm11004_vm0, %v1333_v19 }
 0x23a   : > { %1525 = vrot.lane.b32.xlu1 %v5634_v20, %s4917_s6  ;;  %1523 = vrot.lane.b32.xlu0 %v5637_v21, %s4917_s6 }
 0x23b   : > { %1527 = vrot.lane.b32.xlu2 %v1498_v22, %s4917_s6  ;;  %v1681_v22 = vld [vmem:[%s5065_s27 + $0x48] sm:$0xf] }
 0x23c   : > { %v1278_v56 = vpop.permute.xlu1 %1277  ;;  %v1276_v24 = vpop.permute.xlu0 %1275 }
 0x23d   : > { %1302 = vst.msk [vmem:[#allocation3 + $0x210] sm:$0xff] %vm11004_vm0, %v1278_v56  ;;  %v1339_v25 = vpop.permute.xlu2 %1338 }
 0x23e   : > { %1301 = vst.msk [vmem:[#allocation3 + $0x208] sm:$0xff] %vm11004_vm0, %v1276_v24 }
 0x23f   : > { %1363 = vst.msk [vmem:[#allocation4 + $0x210] sm:$0xff] %vm11004_vm0, %v1339_v25 }
 0x242   : > { %1572 = vrot.lane.b32.xlu1 %v5474_v57, %s4918_s7  ;;  %1570 = vrot.lane.b32.xlu0 %v5477_v58, %s4918_s7 }
 0x243   : > { %1574 = vrot.lane.b32.xlu2 %v5481_v27, %s4918_s7 }
 0x244   : > { %v1284_v26 = vpop.permute.xlu1 %1283  ;;  %v1282_v28 = vpop.permute.xlu0 %1281 }
 0x245   : > { %1305 = vst.msk [vmem:[#allocation3 + $0x228] sm:$0xf] %vm227_vm1, %v1284_v26  ;;  %v1345_v60 = vpop.permute.xlu2 %1344 }
 0x246   : > { %1304 = vst.msk [vmem:[#allocation3 + $0x220] sm:$0xff] %vm11004_vm0, %v1282_v28 }
 0x247   : > { %1366 = vst.msk [vmem:[#allocation4 + $0x228] sm:$0xf] %vm227_vm1, %v1345_v60 }
 0x24a   : > { %1578 = vrot.lane.b32.xlu1 %v5492_v61, %s4918_s7  ;;  %1576 = vrot.lane.b32.xlu0 %v5495_v62, %s4918_s7 }
 0x24b   : > { %1580 = vrot.lane.b32.xlu2 %v5499_v63, %s4918_s7 }
 0x24c   : > { %v1331_v10 = vpop.permute.xlu1 %1330  ;;  %v1329_v18 = vpop.permute.xlu0 %1328 }
 0x24d   : > { %1359 = vst.msk [vmem:[#allocation4 + $0x1f0] sm:$0xff] %vm11004_vm0, %v1331_v10  ;;  %v1392_v29 = vpop.permute.xlu2 %1391 }
 0x24e   : > { %1358 = vst.msk [vmem:[#allocation4 + $0x1e8] sm:$0xff] %vm11004_vm0, %v1329_v18 }
 0x24f   : > { %1420 = vst.msk [vmem:[#allocation2 + $0x240] sm:$0xff] %vm11004_vm0, %v1392_v29 }
 0x252   : > { %1584 = vrot.lane.b32.xlu1 %v5510_v30, %s4918_s7  ;;  %1582 = vrot.lane.b32.xlu0 %v5513_v31, %s4918_s7 }
 0x253   : > { %1586 = vrot.lane.b32.xlu2 %v5517_v32, %s4918_s7 }
 0x254   : > { %v1337_v33 = vpop.permute.xlu1 %1336  ;;  %v1335_v34 = vpop.permute.xlu0 %1334 }
 0x255   : > { %1362 = vst.msk [vmem:[#allocation4 + $0x208] sm:$0xff] %vm11004_vm0, %v1337_v33  ;;  %v1398_v35 = vpop.permute.xlu2 %1397 }
 0x256   : > { %1361 = vst.msk [vmem:[#allocation4 + $0x200] sm:$0xff] %vm11004_vm0, %v1335_v34 }
 0x257   : > { %1423 = vst.msk [vmem:[#allocation2 + $0x258] sm:$0xff] %vm11004_vm0, %v1398_v35 }
 0x25a   : > { %1631 = vrot.lane.b32.xlu1 %v5528_v36, %s4918_s7  ;;  %1588 = vrot.lane.b32.xlu0 %v1559_v37, %s4918_s7  ;;  %v1742_v37 = vld [vmem:[%s4962_s20 + $0x48] sm:$0xf] }
 0x25b   : > { %1633 = vrot.lane.b32.xlu2 %v5533_v38, %s4918_s7 }
 0x25c   : > { %v1343_v39 = vpop.permute.xlu1 %1342  ;;  %v1341_v40 = vpop.permute.xlu0 %1340 }
 0x25d   : > { %1365 = vst.msk [vmem:[#allocation4 + $0x220] sm:$0xff] %vm11004_vm0, %v1343_v39  ;;  %v1404_v41 = vpop.permute.xlu2 %1403 }
 0x25e   : > { %1364 = vst.msk [vmem:[#allocation4 + $0x218] sm:$0xff] %vm11004_vm0, %v1341_v40 }
 0x25f   : > { %1426 = vst.msk [vmem:[#allocation2 + $0x270] sm:$0xff] %vm11004_vm0, %v1404_v41 }
 0x262   : > { %1637 = vrot.lane.b32.xlu1 %v5543_v42, %s4918_s7  ;;  %1635 = vrot.lane.b32.xlu0 %v5546_v43, %s4918_s7 }
 0x263   : > { %1639 = vrot.lane.b32.xlu2 %v5550_v44, %s4918_s7 }
 0x264   : > { %v1390_v45 = vpop.permute.xlu1 %1389  ;;  %v1388_v46 = vpop.permute.xlu0 %1387 }
 0x265   : > { %1419 = vst.msk [vmem:[#allocation2 + $0x238] sm:$0xff] %vm11004_vm0, %v1390_v45  ;;  %v1451_v47 = vpop.permute.xlu2 %1450 }
 0x266   : > { %1418 = vst.msk [vmem:[#allocation2 + $0x230] sm:$0xff] %vm11004_vm0, %v1388_v46 }
 0x267   : > { %1480 = vst.msk [vmem:[#allocation3 + $0x238] sm:$0xff] %vm11004_vm0, %v1451_v47 }
 0x26a   : > { %1643 = vrot.lane.b32.xlu1 %v5561_v48, %s4918_s7  ;;  %1641 = vrot.lane.b32.xlu0 %v5564_v49, %s4918_s7 }
 0x26b   : > { %1645 = vrot.lane.b32.xlu2 %v5568_v50, %s4918_s7 }
 0x26c   : > { %v1396_v51 = vpop.permute.xlu1 %1395  ;;  %v1394_v1 = vpop.permute.xlu0 %1393 }
 0x26d   : > { %1422 = vst.msk [vmem:[#allocation2 + $0x250] sm:$0xff] %vm11004_vm0, %v1396_v51  ;;  %v1457_v4 = vpop.permute.xlu2 %1456 }
 0x26e   : > { %1421 = vst.msk [vmem:[#allocation2 + $0x248] sm:$0xff] %vm11004_vm0, %v1394_v1 }
 0x26f   : > { %1483 = vst.msk [vmem:[#allocation3 + $0x250] sm:$0xff] %vm11004_vm0, %v1457_v4 }
 0x272   : > { %1649 = vrot.lane.b32.xlu1 %v1620_v0, %s4918_s7  ;;  %1647 = vrot.lane.b32.xlu0 %v5580_v2, %s4918_s7  ;;  %v1803_v0 = vld [vmem:[%s5011_s24 + $0x48] sm:$0xf] }
 0x273   : > { %1692 = vrot.lane.b32.xlu2 %v5584_v3, %s4918_s7 }
 0x274   : > { %v1402_v52 = vpop.permute.xlu1 %1401  ;;  %v1400_v6 = vpop.permute.xlu0 %1399 }
 0x275   : > { %1425 = vst.msk [vmem:[#allocation2 + $0x268] sm:$0xff] %vm11004_vm0, %v1402_v52  ;;  %v1463_v8 = vpop.permute.xlu2 %1462 }
 0x276   : > { %1424 = vst.msk [vmem:[#allocation2 + $0x260] sm:$0xff] %vm11004_vm0, %v1400_v6 }
 0x277   : > { %1486 = vst.msk [vmem:[#allocation3 + $0x268] sm:$0xff] %vm11004_vm0, %v1463_v8 }
 0x27a   : > { %1696 = vrot.lane.b32.xlu1 %v5598_v9, %s4918_s7  ;;  %1694 = vrot.lane.b32.xlu0 %v5601_v53, %s4918_s7 }
 0x27b   : > { %1698 = vrot.lane.b32.xlu2 %v5605_v11, %s4918_s7 }
 0x27c   : > { %v1449_v12 = vpop.permute.xlu1 %1448  ;;  %v1406_v13 = vpop.permute.xlu0 %1405 }
 0x27d   : > { %1479 = vst.msk [vmem:[#allocation3 + $0x230] sm:$0xff] %vm11004_vm0, %v1449_v12  ;;  %v1510_v14 = vpop.permute.xlu2 %1509 }
 0x27e   : > { %1427 = vst.msk [vmem:[#allocation2 + $0x278] sm:$0xf] %vm227_vm1, %v1406_v13 }
 0x27f   : > { %1540 = vst.msk [vmem:[#allocation4 + $0x230] sm:$0xff] %vm11004_vm0, %v1510_v14 }
 0x282   : > { %1702 = vrot.lane.b32.xlu1 %v5616_v54, %s4918_s7  ;;  %1700 = vrot.lane.b32.xlu0 %v5619_v15, %s4918_s7 }
 0x283   : > { %1704 = vrot.lane.b32.xlu2 %v5623_v16, %s4918_s7 }
 0x284   : > { %v1455_v17 = vpop.permute.xlu1 %1454  ;;  %v1453_v55 = vpop.permute.xlu0 %1452 }
 0x285   : > { %1482 = vst.msk [vmem:[#allocation3 + $0x248] sm:$0xff] %vm11004_vm0, %v1455_v17  ;;  %v1516_v19 = vpop.permute.xlu2 %1515 }
 0x286   : > { %1481 = vst.msk [vmem:[#allocation3 + $0x240] sm:$0xff] %vm11004_vm0, %v1453_v55 }
 0x287   : > { %1543 = vst.msk [vmem:[#allocation4 + $0x248] sm:$0xff] %vm11004_vm0, %v1516_v19 }
 0x28a   : > { %1708 = vrot.lane.b32.xlu1 %v5634_v20, %s4918_s7  ;;  %1706 = vrot.lane.b32.xlu0 %v5637_v21, %s4918_s7 }
 0x28b   : > { %1710 = vrot.lane.b32.xlu2 %v1681_v22, %s4918_s7  ;;  %v1864_v22 = vld [vmem:[%s5065_s27 + $0x48] sm:$0xf] }
 0x28c   : > { %v1461_v56 = vpop.permute.xlu1 %1460  ;;  %v1459_v24 = vpop.permute.xlu0 %1458 }
 0x28d   : > { %1485 = vst.msk [vmem:[#allocation3 + $0x260] sm:$0xff] %vm11004_vm0, %v1461_v56  ;;  %v1522_v25 = vpop.permute.xlu2 %1521 }
 0x28e   : > { %1484 = vst.msk [vmem:[#allocation3 + $0x258] sm:$0xff] %vm11004_vm0, %v1459_v24 }
 0x28f   : > { %1546 = vst.msk [vmem:[#allocation4 + $0x260] sm:$0xff] %vm11004_vm0, %v1522_v25 }
 0x292   : > { %1755 = vrot.lane.b32.xlu1 %v5474_v57, %s4919_s8  ;;  %1753 = vrot.lane.b32.xlu0 %v5477_v58, %s4919_s8 }
 0x293   : > { %1757 = vrot.lane.b32.xlu2 %v5481_v27, %s4919_s8 }
 0x294   : > { %v1467_v26 = vpop.permute.xlu1 %1466  ;;  %v1465_v28 = vpop.permute.xlu0 %1464 }
 0x295   : > { %1488 = vst.msk [vmem:[#allocation3 + $0x278] sm:$0xf] %vm227_vm1, %v1467_v26  ;;  %v1528_v60 = vpop.permute.xlu2 %1527 }
 0x296   : > { %1487 = vst.msk [vmem:[#allocation3 + $0x270] sm:$0xff] %vm11004_vm0, %v1465_v28 }
 0x297   : > { %1549 = vst.msk [vmem:[#allocation4 + $0x278] sm:$0xf] %vm227_vm1, %v1528_v60 }
 0x29a   : > { %1761 = vrot.lane.b32.xlu1 %v5492_v61, %s4919_s8  ;;  %1759 = vrot.lane.b32.xlu0 %v5495_v62, %s4919_s8 }
 0x29b   : > { %1763 = vrot.lane.b32.xlu2 %v5499_v63, %s4919_s8 }
 0x29c   : > { %v1514_v10 = vpop.permute.xlu1 %1513  ;;  %v1512_v18 = vpop.permute.xlu0 %1511 }
 0x29d   : > { %1542 = vst.msk [vmem:[#allocation4 + $0x240] sm:$0xff] %vm11004_vm0, %v1514_v10  ;;  %v1575_v29 = vpop.permute.xlu2 %1574  ;;  %v1925_v10 = vld [vmem:[%s4962_s20 + $0x48] sm:$0xf] }
 0x29e   : > { %1541 = vst.msk [vmem:[#allocation4 + $0x238] sm:$0xff] %vm11004_vm0, %v1512_v18 }
 0x29f   : > { %1603 = vst.msk [vmem:[#allocation2 + $0x290] sm:$0xff] %vm11004_vm0, %v1575_v29  ;;  %v1986_v29 = vld [vmem:[%s5011_s24 + $0x48] sm:$0xf] }
 0x2a2   : > { %1767 = vrot.lane.b32.xlu1 %v5510_v30, %s4919_s8  ;;  %1765 = vrot.lane.b32.xlu0 %v5513_v31, %s4919_s8 }
 0x2a3   : > { %1769 = vrot.lane.b32.xlu2 %v5517_v32, %s4919_s8 }
 0x2a4   : > { %v1520_v33 = vpop.permute.xlu1 %1519  ;;  %v1518_v34 = vpop.permute.xlu0 %1517 }
 0x2a5   : > { %1545 = vst.msk [vmem:[#allocation4 + $0x258] sm:$0xff] %vm11004_vm0, %v1520_v33  ;;  %v1581_v35 = vpop.permute.xlu2 %1580 }
 0x2a6   : > { %1544 = vst.msk [vmem:[#allocation4 + $0x250] sm:$0xff] %vm11004_vm0, %v1518_v34  ;;  %v2047_v34 = vld [vmem:[%s5065_s27 + $0x48] sm:$0xf] }
 0x2a7   : > { %1606 = vst.msk [vmem:[#allocation2 + $0x2a8] sm:$0xff] %vm11004_vm0, %v1581_v35 }
 0x2aa   : > { %1814 = vrot.lane.b32.xlu1 %v5528_v36, %s4919_s8  ;;  %1771 = vrot.lane.b32.xlu0 %v1742_v37, %s4919_s8 }
 0x2ab   : > { %1816 = vrot.lane.b32.xlu2 %v5533_v38, %s4919_s8 }
 0x2ac   : > { %v1526_v39 = vpop.permute.xlu1 %1525  ;;  %v1524_v40 = vpop.permute.xlu0 %1523 }
 0x2ad   : > { %1548 = vst.msk [vmem:[#allocation4 + $0x270] sm:$0xff] %vm11004_vm0, %v1526_v39  ;;  %v1587_v41 = vpop.permute.xlu2 %1586 }
 0x2ae   : > { %1547 = vst.msk [vmem:[#allocation4 + $0x268] sm:$0xff] %vm11004_vm0, %v1524_v40 }
 0x2af   : > { %1609 = vst.msk [vmem:[#allocation2 + $0x2c0] sm:$0xff] %vm11004_vm0, %v1587_v41 }
 0x2b2   : > { %1820 = vrot.lane.b32.xlu1 %v5543_v42, %s4919_s8  ;;  %1818 = vrot.lane.b32.xlu0 %v5546_v43, %s4919_s8 }
 0x2b3   : > { %1822 = vrot.lane.b32.xlu2 %v5550_v44, %s4919_s8 }
 0x2b4   : > { %v1573_v45 = vpop.permute.xlu1 %1572  ;;  %v1571_v46 = vpop.permute.xlu0 %1570 }
 0x2b5   : > { %1602 = vst.msk [vmem:[#allocation2 + $0x288] sm:$0xff] %vm11004_vm0, %v1573_v45  ;;  %v1634_v47 = vpop.permute.xlu2 %1633 }
 0x2b6   : > { %1601 = vst.msk [vmem:[#allocation2 + $0x280] sm:$0xff] %vm11004_vm0, %v1571_v46 }
 0x2b7   : > { %1663 = vst.msk [vmem:[#allocation3 + $0x288] sm:$0xff] %vm11004_vm0, %v1634_v47 }
 0x2ba   : > { %1826 = vrot.lane.b32.xlu1 %v5561_v48, %s4919_s8  ;;  %1824 = vrot.lane.b32.xlu0 %v5564_v49, %s4919_s8 }
 0x2bb   : > { %1828 = vrot.lane.b32.xlu2 %v5568_v50, %s4919_s8 }
 0x2bc   : > { %v1579_v51 = vpop.permute.xlu1 %1578  ;;  %v1577_v1 = vpop.permute.xlu0 %1576 }
 0x2bd   : > { %1605 = vst.msk [vmem:[#allocation2 + $0x2a0] sm:$0xff] %vm11004_vm0, %v1579_v51  ;;  %v1640_v4 = vpop.permute.xlu2 %1639 }
 0x2be   : > { %1604 = vst.msk [vmem:[#allocation2 + $0x298] sm:$0xff] %vm11004_vm0, %v1577_v1 }
 0x2bf   : > { %1666 = vst.msk [vmem:[#allocation3 + $0x2a0] sm:$0xff] %vm11004_vm0, %v1640_v4 }
 0x2c2   : > { %1832 = vrot.lane.b32.xlu1 %v1803_v0, %s4919_s8  ;;  %1830 = vrot.lane.b32.xlu0 %v5580_v2, %s4919_s8 }
 0x2c3   : > { %1875 = vrot.lane.b32.xlu2 %v5584_v3, %s4919_s8 }
 0x2c4   : > { %v1585_v52 = vpop.permute.xlu1 %1584  ;;  %v1583_v6 = vpop.permute.xlu0 %1582 }
 0x2c5   : > { %1608 = vst.msk [vmem:[#allocation2 + $0x2b8] sm:$0xff] %vm11004_vm0, %v1585_v52  ;;  %v1646_v8 = vpop.permute.xlu2 %1645 }
 0x2c6   : > { %1607 = vst.msk [vmem:[#allocation2 + $0x2b0] sm:$0xff] %vm11004_vm0, %v1583_v6 }
 0x2c7   : > { %1669 = vst.msk [vmem:[#allocation3 + $0x2b8] sm:$0xff] %vm11004_vm0, %v1646_v8 }
 0x2ca   : > { %1879 = vrot.lane.b32.xlu1 %v5598_v9, %s4919_s8  ;;  %1877 = vrot.lane.b32.xlu0 %v5601_v53, %s4919_s8 }
 0x2cb   : > { %1881 = vrot.lane.b32.xlu2 %v5605_v11, %s4919_s8 }
 0x2cc   : > { %v1632_v12 = vpop.permute.xlu1 %1631  ;;  %v1589_v13 = vpop.permute.xlu0 %1588 }
 0x2cd   : > { %1662 = vst.msk [vmem:[#allocation3 + $0x280] sm:$0xff] %vm11004_vm0, %v1632_v12  ;;  %v1693_v14 = vpop.permute.xlu2 %1692 }
 0x2ce   : > { %1610 = vst.msk [vmem:[#allocation2 + $0x2c8] sm:$0xf] %vm227_vm1, %v1589_v13 }
 0x2cf   : > { %1723 = vst.msk [vmem:[#allocation4 + $0x280] sm:$0xff] %vm11004_vm0, %v1693_v14 }
 0x2d2   : > { %1885 = vrot.lane.b32.xlu1 %v5616_v54, %s4919_s8  ;;  %1883 = vrot.lane.b32.xlu0 %v5619_v15, %s4919_s8 }
 0x2d3   : > { %1887 = vrot.lane.b32.xlu2 %v5623_v16, %s4919_s8 }
 0x2d4   : > { %v1638_v17 = vpop.permute.xlu1 %1637  ;;  %v1636_v55 = vpop.permute.xlu0 %1635 }
 0x2d5   : > { %1665 = vst.msk [vmem:[#allocation3 + $0x298] sm:$0xff] %vm11004_vm0, %v1638_v17  ;;  %v1699_v19 = vpop.permute.xlu2 %1698 }
 0x2d6   : > { %1664 = vst.msk [vmem:[#allocation3 + $0x290] sm:$0xff] %vm11004_vm0, %v1636_v55 }
 0x2d7   : > { %1726 = vst.msk [vmem:[#allocation4 + $0x298] sm:$0xff] %vm11004_vm0, %v1699_v19 }
 0x2da   : > { %1891 = vrot.lane.b32.xlu1 %v5634_v20, %s4919_s8  ;;  %1889 = vrot.lane.b32.xlu0 %v5637_v21, %s4919_s8 }
 0x2db   : > { %1893 = vrot.lane.b32.xlu2 %v1864_v22, %s4919_s8 }
 0x2dc   : > { %v1644_v56 = vpop.permute.xlu1 %1643  ;;  %v1642_v24 = vpop.permute.xlu0 %1641 }
 0x2dd   : > { %1668 = vst.msk [vmem:[#allocation3 + $0x2b0] sm:$0xff] %vm11004_vm0, %v1644_v56  ;;  %v1705_v25 = vpop.permute.xlu2 %1704 }
 0x2de   : > { %1667 = vst.msk [vmem:[#allocation3 + $0x2a8] sm:$0xff] %vm11004_vm0, %v1642_v24 }
 0x2df   : > { %1729 = vst.msk [vmem:[#allocation4 + $0x2b0] sm:$0xff] %vm11004_vm0, %v1705_v25 }
 0x2e2   : > { %1938 = vrot.lane.b32.xlu1 %v5474_v57, %s4920_s9  ;;  %1936 = vrot.lane.b32.xlu0 %v5477_v58, %s4920_s9 }
 0x2e3   : > { %1940 = vrot.lane.b32.xlu2 %v5481_v27, %s4920_s9 }
 0x2e4   : > { %v1650_v26 = vpop.permute.xlu1 %1649  ;;  %v1648_v28 = vpop.permute.xlu0 %1647 }
 0x2e5   : > { %1671 = vst.msk [vmem:[#allocation3 + $0x2c8] sm:$0xf] %vm227_vm1, %v1650_v26  ;;  %v1711_v60 = vpop.permute.xlu2 %1710 }
 0x2e6   : > { %1670 = vst.msk [vmem:[#allocation3 + $0x2c0] sm:$0xff] %vm11004_vm0, %v1648_v28 }
 0x2e7   : > { %1732 = vst.msk [vmem:[#allocation4 + $0x2c8] sm:$0xf] %vm227_vm1, %v1711_v60  ;;  %v207_v60 = vld [vmem:[%s4962_s20] sm:$0xff] }
 0x2e8   : > { %218 = vst.msk [vmem:[#allocation2] sm:$0xff] %vm11004_vm0, %v207_v60  ;;  %v6152_v60 = vmov inf  }
 0x2ea   : > { %1944 = vrot.lane.b32.xlu1 %v5492_v61, %s4920_s9  ;;  %1942 = vrot.lane.b32.xlu0 %v5495_v62, %s4920_s9 }
 0x2eb   : > { %1946 = vrot.lane.b32.xlu2 %v5499_v63, %s4920_s9 }
 0x2ec   : > { %v1697_v57 = vpop.permute.xlu1 %1696  ;;  %v1695_v58 = vpop.permute.xlu0 %1694 }
 0x2ed   : > { %1725 = vst.msk [vmem:[#allocation4 + $0x290] sm:$0xff] %vm11004_vm0, %v1697_v57  ;;  %v1758_v27 = vpop.permute.xlu2 %1757 }
 0x2ee   : > { %1724 = vst.msk [vmem:[#allocation4 + $0x288] sm:$0xff] %vm11004_vm0, %v1695_v58  ;;  %v208_v58 = vld [vmem:[%s4962_s20 + $0x8] sm:$0xff] }
 0x2ef   : > { %1786 = vst.msk [vmem:[#allocation2 + $0x2e0] sm:$0xff] %vm11004_vm0, %v1758_v27  ;;  %v209_v27 = vld [vmem:[%s4962_s20 + $0x10] sm:$0xff] }
 0x2f0   : > { %219 = vst.msk [vmem:[#allocation2 + $0x8] sm:$0xff] %vm11004_vm0, %v208_v58  ;;  %v6156_v58 = vmov inf  }
 0x2f1   : > { %220 = vst.msk [vmem:[#allocation2 + $0x10] sm:$0xff] %vm11004_vm0, %v209_v27  ;;  %v6158_v27 = vmov inf  }
 0x2f2   : > { %1950 = vrot.lane.b32.xlu1 %v5510_v30, %s4920_s9  ;;  %1948 = vrot.lane.b32.xlu0 %v5513_v31, %s4920_s9 }
 0x2f3   : > { %1952 = vrot.lane.b32.xlu2 %v5517_v32, %s4920_s9 }
 0x2f4   : > { %v1703_v61 = vpop.permute.xlu1 %1702  ;;  %v1701_v62 = vpop.permute.xlu0 %1700 }
 0x2f5   : > { %1728 = vst.msk [vmem:[#allocation4 + $0x2a8] sm:$0xff] %vm11004_vm0, %v1703_v61  ;;  %v1764_v63 = vpop.permute.xlu2 %1763  ;;  %v210_v61 = vld [vmem:[%s4962_s20 + $0x18] sm:$0xff] }
 0x2f6   : > { %1727 = vst.msk [vmem:[#allocation4 + $0x2a0] sm:$0xff] %vm11004_vm0, %v1701_v62  ;;  %v211_v62 = vld [vmem:[%s4962_s20 + $0x20] sm:$0xff] }
 0x2f7   : > { %1789 = vst.msk [vmem:[#allocation2 + $0x2f8] sm:$0xff] %vm11004_vm0, %v1764_v63 }
 0x2f8   : > { %221 = vst.msk [vmem:[#allocation2 + $0x18] sm:$0xff] %vm11004_vm0, %v210_v61  ;;  %v6160_v61 = vmov inf  }
 0x2f9   : > { %222 = vst.msk [vmem:[#allocation2 + $0x20] sm:$0xff] %vm11004_vm0, %v211_v62  ;;  %v6162_v62 = vmov inf  }
 0x2fa   : > { %1997 = vrot.lane.b32.xlu1 %v5528_v36, %s4920_s9  ;;  %1954 = vrot.lane.b32.xlu0 %v1925_v10, %s4920_s9 }
 0x2fb   : > { %1999 = vrot.lane.b32.xlu2 %v5533_v38, %s4920_s9 }
 0x2fc   : > { %v1709_v30 = vpop.permute.xlu1 %1708  ;;  %v1707_v31 = vpop.permute.xlu0 %1706 }
 0x2fd   : > { %1731 = vst.msk [vmem:[#allocation4 + $0x2c0] sm:$0xff] %vm11004_vm0, %v1709_v30  ;;  %v1770_v32 = vpop.permute.xlu2 %1769  ;;  %v212_v30 = vld [vmem:[%s4962_s20 + $0x28] sm:$0xff] }
 0x2fe   : > { %1730 = vst.msk [vmem:[#allocation4 + $0x2b8] sm:$0xff] %vm11004_vm0, %v1707_v31 }
 0x2ff   : > { %1792 = vst.msk [vmem:[#allocation2 + $0x310] sm:$0xff] %vm11004_vm0, %v1770_v32  ;;  %v213_v32 = vld [vmem:[%s4962_s20 + $0x30] sm:$0xff] }
 0x300   : > { %223 = vst.msk [vmem:[#allocation2 + $0x28] sm:$0xff] %vm11004_vm0, %v212_v30  ;;  %v6168_v30 = vmov inf  }
 0x301   : > { %224 = vst.msk [vmem:[#allocation2 + $0x30] sm:$0xff] %vm11004_vm0, %v213_v32 }
 0x302   : > { %2003 = vrot.lane.b32.xlu1 %v5543_v42, %s4920_s9  ;;  %2001 = vrot.lane.b32.xlu0 %v5546_v43, %s4920_s9 }
 0x303   : > { %2005 = vrot.lane.b32.xlu2 %v5550_v44, %s4920_s9 }
 0x304   : > { %v1756_v36 = vpop.permute.xlu1 %1755  ;;  %v1754_v18 = vpop.permute.xlu0 %1753 }
 0x305   : > { %1785 = vst.msk [vmem:[#allocation2 + $0x2d8] sm:$0xff] %vm11004_vm0, %v1756_v36  ;;  %v1817_v38 = vpop.permute.xlu2 %1816  ;;  %v214_v36 = vld [vmem:[%s4962_s20 + $0x38] sm:$0xff] }
 0x306   : > { %1784 = vst.msk [vmem:[#allocation2 + $0x2d0] sm:$0xff] %vm11004_vm0, %v1754_v18  ;;  %v215_v18 = vld [vmem:[%s4962_s20 + $0x40] sm:$0xff] }
 0x307   : > { %1846 = vst.msk [vmem:[#allocation3 + $0x2d8] sm:$0xff] %vm11004_vm0, %v1817_v38  ;;  %v229_v38 = vld [vmem:[%s5011_s24] sm:$0xff] }
 0x308   : > { %225 = vst.msk [vmem:[#allocation2 + $0x38] sm:$0xff] %vm11004_vm0, %v214_v36 }
 0x309   : > { %226 = vst.msk [vmem:[#allocation2 + $0x40] sm:$0xff] %vm11004_vm0, %v215_v18 }
 0x30a   : > { %2009 = vrot.lane.b32.xlu1 %v5561_v48, %s4920_s9  ;;  %2007 = vrot.lane.b32.xlu0 %v5564_v49, %s4920_s9  ;;  %239 = vst.msk [vmem:[#allocation3] sm:$0xff] %vm11004_vm0, %v229_v38 }
 0x30b   : > { %2011 = vrot.lane.b32.xlu2 %v5568_v50, %s4920_s9 }
 0x30c   : > { %v1762_v42 = vpop.permute.xlu1 %1761  ;;  %v1760_v43 = vpop.permute.xlu0 %1759 }
 0x30d   : > { %1788 = vst.msk [vmem:[#allocation2 + $0x2f0] sm:$0xff] %vm11004_vm0, %v1762_v42  ;;  %v1823_v44 = vpop.permute.xlu2 %1822 }
 0x30e   : > { %1787 = vst.msk [vmem:[#allocation2 + $0x2e8] sm:$0xff] %vm11004_vm0, %v1760_v43 }
 0x30f   : > { %1849 = vst.msk [vmem:[#allocation3 + $0x2f0] sm:$0xff] %vm11004_vm0, %v1823_v44  ;;  %v230_v44 = vld [vmem:[%s5011_s24 + $0x8] sm:$0xff] }
 0x310   : > { %240 = vst.msk [vmem:[#allocation3 + $0x8] sm:$0xff] %vm11004_vm0, %v230_v44 }
 0x312   : > { %2015 = vrot.lane.b32.xlu1 %v1986_v29, %s4920_s9  ;;  %2013 = vrot.lane.b32.xlu0 %v5580_v2, %s4920_s9  ;;  %v231_v29 = vld [vmem:[%s5011_s24 + $0x10] sm:$0xff] }
 0x313   : > { %2058 = vrot.lane.b32.xlu2 %v5584_v3, %s4920_s9  ;;  %241 = vst.msk [vmem:[#allocation3 + $0x10] sm:$0xff] %vm11004_vm0, %v231_v29 }
 0x314   : > { %v1768_v48 = vpop.permute.xlu1 %1767  ;;  %v1766_v49 = vpop.permute.xlu0 %1765 }
 0x315   : > { %1791 = vst.msk [vmem:[#allocation2 + $0x308] sm:$0xff] %vm11004_vm0, %v1768_v48  ;;  %v1829_v50 = vpop.permute.xlu2 %1828  ;;  %v232_v48 = vld [vmem:[%s5011_s24 + $0x18] sm:$0xff] }
 0x316   : > { %1790 = vst.msk [vmem:[#allocation2 + $0x300] sm:$0xff] %vm11004_vm0, %v1766_v49  ;;  %v233_v49 = vld [vmem:[%s5011_s24 + $0x20] sm:$0xff] }
 0x317   : > { %1852 = vst.msk [vmem:[#allocation3 + $0x308] sm:$0xff] %vm11004_vm0, %v1829_v50  ;;  %v234_v50 = vld [vmem:[%s5011_s24 + $0x28] sm:$0xff] }
 0x318   : > { %242 = vst.msk [vmem:[#allocation3 + $0x18] sm:$0xff] %vm11004_vm0, %v232_v48 }
 0x319   : > { %243 = vst.msk [vmem:[#allocation3 + $0x20] sm:$0xff] %vm11004_vm0, %v233_v49 }
 0x31a   : > { %2062 = vrot.lane.b32.xlu1 %v5598_v9, %s4920_s9  ;;  %2060 = vrot.lane.b32.xlu0 %v5601_v53, %s4920_s9  ;;  %244 = vst.msk [vmem:[#allocation3 + $0x28] sm:$0xff] %vm11004_vm0, %v234_v50 }
 0x31b   : > { %2064 = vrot.lane.b32.xlu2 %v5605_v11, %s4920_s9 }
 0x31c   : > { %v1815_v33 = vpop.permute.xlu1 %1814  ;;  %v1772_v2 = vpop.permute.xlu0 %1771 }
 0x31d   : > { %1845 = vst.msk [vmem:[#allocation3 + $0x2d0] sm:$0xff] %vm11004_vm0, %v1815_v33  ;;  %v1876_v3 = vpop.permute.xlu2 %1875  ;;  %v235_v33 = vld [vmem:[%s5011_s24 + $0x30] sm:$0xff] }
 0x31e   : > { %1793 = vst.msk [vmem:[#allocation2 + $0x318] sm:$0xf] %vm227_vm1, %v1772_v2 }
 0x31f   : > { %1906 = vst.msk [vmem:[#allocation4 + $0x2d0] sm:$0xff] %vm11004_vm0, %v1876_v3 }
 0x320   : > { %245 = vst.msk [vmem:[#allocation3 + $0x30] sm:$0xff] %vm11004_vm0, %v235_v33 }
 0x322   : > { %2068 = vrot.lane.b32.xlu1 %v5616_v54, %s4920_s9  ;;  %2066 = vrot.lane.b32.xlu0 %v5619_v15, %s4920_s9 }
 0x323   : > { %2070 = vrot.lane.b32.xlu2 %v5623_v16, %s4920_s9 }
 0x324   : > { %v1821_v9 = vpop.permute.xlu1 %1820  ;;  %v1819_v53 = vpop.permute.xlu0 %1818 }
 0x325   : > { %1848 = vst.msk [vmem:[#allocation3 + $0x2e8] sm:$0xff] %vm11004_vm0, %v1821_v9  ;;  %v1882_v11 = vpop.permute.xlu2 %1881  ;;  %v236_v9 = vld [vmem:[%s5011_s24 + $0x38] sm:$0xff] }
 0x326   : > { %1847 = vst.msk [vmem:[#allocation3 + $0x2e0] sm:$0xff] %vm11004_vm0, %v1819_v53  ;;  %v237_v53 = vld [vmem:[%s5011_s24 + $0x40] sm:$0xff] }
 0x327   : > { %1909 = vst.msk [vmem:[#allocation4 + $0x2e8] sm:$0xff] %vm11004_vm0, %v1882_v11  ;;  %v249_v11 = vld [vmem:[%s5065_s27] sm:$0xff] }
 0x328   : > { %246 = vst.msk [vmem:[#allocation3 + $0x38] sm:$0xff] %vm11004_vm0, %v236_v9 }
 0x329   : > { %247 = vst.msk [vmem:[#allocation3 + $0x40] sm:$0xff] %vm11004_vm0, %v237_v53 }
 0x32a   : > { %2074 = vrot.lane.b32.xlu1 %v5634_v20, %s4920_s9  ;;  %2072 = vrot.lane.b32.xlu0 %v5637_v21, %s4920_s9  ;;  %259 = vst.msk [vmem:[#allocation4] sm:$0xff] %vm11004_vm0, %v249_v11 }
 0x32b   : > { %2076 = vrot.lane.b32.xlu2 %v2047_v34, %s4920_s9  ;;  %v250_v34 = vld [vmem:[%s5065_s27 + $0x8] sm:$0xff] }
 0x32c   : > { %v1827_v54 = vpop.permute.xlu1 %1826  ;;  %v1825_v15 = vpop.permute.xlu0 %1824  ;;  %260 = vst.msk [vmem:[#allocation4 + $0x8] sm:$0xff] %vm11004_vm0, %v250_v34 }
 0x32d   : > { %1851 = vst.msk [vmem:[#allocation3 + $0x300] sm:$0xff] %vm11004_vm0, %v1827_v54  ;;  %v1888_v16 = vpop.permute.xlu2 %1887  ;;  %v251_v54 = vld [vmem:[%s5065_s27 + $0x10] sm:$0xff] }
 0x32e   : > { %1850 = vst.msk [vmem:[#allocation3 + $0x2f8] sm:$0xff] %vm11004_vm0, %v1825_v15  ;;  %v252_v15 = vld [vmem:[%s5065_s27 + $0x18] sm:$0xff] }
 0x32f   : > { %1912 = vst.msk [vmem:[#allocation4 + $0x300] sm:$0xff] %vm11004_vm0, %v1888_v16 }
 0x330   : > { %261 = vst.msk [vmem:[#allocation4 + $0x10] sm:$0xff] %vm11004_vm0, %v251_v54 }
 0x331   : > { %262 = vst.msk [vmem:[#allocation4 + $0x18] sm:$0xff] %vm11004_vm0, %v252_v15 }
 0x334   : > { %v1833_v35 = vpop.permute.xlu1 %1832  ;;  %v1831_v37 = vpop.permute.xlu0 %1830 }
 0x335   : > { %1854 = vst.msk [vmem:[#allocation3 + $0x318] sm:$0xf] %vm227_vm1, %v1833_v35  ;;  %v1894_v20 = vpop.permute.xlu2 %1893 }
 0x336   : > { %1853 = vst.msk [vmem:[#allocation3 + $0x310] sm:$0xff] %vm11004_vm0, %v1831_v37  ;;  %v253_v37 = vld [vmem:[%s5065_s27 + $0x20] sm:$0xff] }
 0x337   : > { %1915 = vst.msk [vmem:[#allocation4 + $0x318] sm:$0xf] %vm227_vm1, %v1894_v20  ;;  %v254_v20 = vld [vmem:[%s5065_s27 + $0x28] sm:$0xff] }
 0x338   : > { %263 = vst.msk [vmem:[#allocation4 + $0x20] sm:$0xff] %vm11004_vm0, %v253_v37 }
 0x339   : > { %264 = vst.msk [vmem:[#allocation4 + $0x28] sm:$0xff] %vm11004_vm0, %v254_v20 }
 0x33c   : > { %v1880_v21 = vpop.permute.xlu1 %1879  ;;  %v1878_v39 = vpop.permute.xlu0 %1877 }
 0x33d   : > { %1908 = vst.msk [vmem:[#allocation4 + $0x2e0] sm:$0xff] %vm11004_vm0, %v1880_v21  ;;  %v1941_v40 = vpop.permute.xlu2 %1940  ;;  %v255_v21 = vld [vmem:[%s5065_s27 + $0x30] sm:$0xff] }
 0x33e   : > { %1907 = vst.msk [vmem:[#allocation4 + $0x2d8] sm:$0xff] %vm11004_vm0, %v1878_v39  ;;  %v256_v39 = vld [vmem:[%s5065_s27 + $0x38] sm:$0xff] }
 0x33f   : > { %1969 = vst.msk [vmem:[#allocation2 + $0x330] sm:$0xff] %vm11004_vm0, %v1941_v40  ;;  %v257_v40 = vld [vmem:[%s5065_s27 + $0x40] sm:$0xff] }
 0x340   : > { %265 = vst.msk [vmem:[#allocation4 + $0x30] sm:$0xff] %vm11004_vm0, %v255_v21 }
 0x341   : > { %266 = vst.msk [vmem:[#allocation4 + $0x38] sm:$0xff] %vm11004_vm0, %v256_v39 }
 0x342   : > { %267 = vst.msk [vmem:[#allocation4 + $0x40] sm:$0xff] %vm11004_vm0, %v257_v40 }
 0x344   : > { %v1886_v41 = vpop.permute.xlu1 %1885  ;;  %v1884_v45 = vpop.permute.xlu0 %1883 }
 0x345   : > { %1911 = vst.msk [vmem:[#allocation4 + $0x2f8] sm:$0xff] %vm11004_vm0, %v1886_v41  ;;  %v1947_v46 = vpop.permute.xlu2 %1946  ;;  %v6106_v41 = vmov 0.0  }
 0x346   : > { %1910 = vst.msk [vmem:[#allocation4 + $0x2f0] sm:$0xff] %vm11004_vm0, %v1884_v45  ;;  %v6108_v45 = vmov 0.0  }
 0x347   : > { %1972 = vst.msk [vmem:[#allocation2 + $0x348] sm:$0xff] %vm11004_vm0, %v1947_v46  ;;  %v6110_v46 = vmov 0.0  }
 0x34c   : > { %v1892_v47 = vpop.permute.xlu1 %1891  ;;  %v1890_v51 = vpop.permute.xlu0 %1889 }
 0x34d   : > { %1914 = vst.msk [vmem:[#allocation4 + $0x310] sm:$0xff] %vm11004_vm0, %v1892_v47  ;;  %v1953_v1 = vpop.permute.xlu2 %1952  ;;  %v6112_v47 = vmov 0.0  }
 0x34e   : > { %1913 = vst.msk [vmem:[#allocation4 + $0x308] sm:$0xff] %vm11004_vm0, %v1890_v51  ;;  %v6114_v51 = vmov 0.0  }
 0x34f   : > { %1975 = vst.msk [vmem:[#allocation2 + $0x360] sm:$0xff] %vm11004_vm0, %v1953_v1  ;;  %v6116_v1 = vmov 0.0  }
 0x354   : > { %v1939_v4 = vpop.permute.xlu1 %1938  ;;  %v1937_v0 = vpop.permute.xlu0 %1936 }
 0x355   : > { %1968 = vst.msk [vmem:[#allocation2 + $0x328] sm:$0xff] %vm11004_vm0, %v1939_v4  ;;  %v2000_v52 = vpop.permute.xlu2 %1999  ;;  %v6118_v4 = vmov 0.0  }
 0x356   : > { %1967 = vst.msk [vmem:[#allocation2 + $0x320] sm:$0xff] %vm11004_vm0, %v1937_v0  ;;  %v6120_v0 = vmov 0.0  }
 0x357   : > { %2029 = vst.msk [vmem:[#allocation3 + $0x328] sm:$0xff] %vm11004_vm0, %v2000_v52  ;;  %v6122_v52 = vmov 0.0  }
 0x35c   : > { %v1945_v6 = vpop.permute.xlu1 %1944  ;;  %v1943_v8 = vpop.permute.xlu0 %1942 }
 0x35d   : > { %1971 = vst.msk [vmem:[#allocation2 + $0x340] sm:$0xff] %vm11004_vm0, %v1945_v6  ;;  %v2006_v12 = vpop.permute.xlu2 %2005  ;;  %v6124_v6 = vmov 0.0  }
 0x35e   : > { %1970 = vst.msk [vmem:[#allocation2 + $0x338] sm:$0xff] %vm11004_vm0, %v1943_v8  ;;  %v6126_v8 = vmov 0.0  }
 0x35f   : > { %2032 = vst.msk [vmem:[#allocation3 + $0x340] sm:$0xff] %vm11004_vm0, %v2006_v12  ;;  %v6128_v12 = vmov 0.0  }
 0x364   : > { %v1951_v13 = vpop.permute.xlu1 %1950  ;;  %v1949_v14 = vpop.permute.xlu0 %1948 }
 0x365   : > { %1974 = vst.msk [vmem:[#allocation2 + $0x358] sm:$0xff] %vm11004_vm0, %v1951_v13  ;;  %v2012_v17 = vpop.permute.xlu2 %2011  ;;  %v6130_v13 = vmov 0.0  }
 0x366   : > { %1973 = vst.msk [vmem:[#allocation2 + $0x350] sm:$0xff] %vm11004_vm0, %v1949_v14  ;;  %v6132_v14 = vmov 0.0  }
 0x367   : > { %2035 = vst.msk [vmem:[#allocation3 + $0x358] sm:$0xff] %vm11004_vm0, %v2012_v17  ;;  %v6134_v17 = vmov 0.0  }
 0x36c   : > { %v1998_v55 = vpop.permute.xlu1 %1997  ;;  %v1955_v19 = vpop.permute.xlu0 %1954 }
 0x36d   : > { %2028 = vst.msk [vmem:[#allocation3 + $0x320] sm:$0xff] %vm11004_vm0, %v1998_v55  ;;  %v2059_v22 = vpop.permute.xlu2 %2058  ;;  %v6136_v55 = vmov 0.0  }
 0x36e   : > { %1976 = vst.msk [vmem:[#allocation2 + $0x368] sm:$0xf] %vm227_vm1, %v1955_v19  ;;  %v6138_v19 = vmov inf  }
 0x36f   : > { %2089 = vst.msk [vmem:[#allocation4 + $0x320] sm:$0xff] %vm11004_vm0, %v2059_v22  ;;  %v6140_v22 = vmov inf  }
 0x374   : > { %v2004_v56 = vpop.permute.xlu1 %2003  ;;  %v2002_v24 = vpop.permute.xlu0 %2001 }
 0x375   : > { %2031 = vst.msk [vmem:[#allocation3 + $0x338] sm:$0xff] %vm11004_vm0, %v2004_v56  ;;  %v2065_v25 = vpop.permute.xlu2 %2064  ;;  %v6142_v56 = vmov inf  }
 0x376   : > { %2030 = vst.msk [vmem:[#allocation3 + $0x330] sm:$0xff] %vm11004_vm0, %v2002_v24  ;;  %v6144_v24 = vmov inf  }
 0x377   : > { %2092 = vst.msk [vmem:[#allocation4 + $0x338] sm:$0xff] %vm11004_vm0, %v2065_v25  ;;  %v6146_v25 = vmov inf  }
 0x37c   : > { %v2010_v26 = vpop.permute.xlu1 %2009  ;;  %v2008_v28 = vpop.permute.xlu0 %2007 }
 0x37d   : > { %2034 = vst.msk [vmem:[#allocation3 + $0x350] sm:$0xff] %vm11004_vm0, %v2010_v26  ;;  %v2071_v57 = vpop.permute.xlu2 %2070  ;;  %v6148_v26 = vmov inf  }
 0x37e   : > { %2033 = vst.msk [vmem:[#allocation3 + $0x348] sm:$0xff] %vm11004_vm0, %v2008_v28  ;;  %v6150_v28 = vmov inf  }
 0x37f   : > { %2095 = vst.msk [vmem:[#allocation4 + $0x350] sm:$0xff] %vm11004_vm0, %v2071_v57  ;;  %v6154_v57 = vmov inf  }
 0x384   : > { %v2016_v63 = vpop.permute.xlu1 %2015  ;;  %v2014_v10 = vpop.permute.xlu0 %2013 }
 0x385   : > { %2037 = vst.msk [vmem:[#allocation3 + $0x368] sm:$0xf] %vm227_vm1, %v2016_v63  ;;  %v2077_v31 = vpop.permute.xlu2 %2076  ;;  %v6164_v63 = vmov inf  }
 0x386   : > { %2036 = vst.msk [vmem:[#allocation3 + $0x360] sm:$0xff] %vm11004_vm0, %v2014_v10  ;;  %v6166_v10 = vmov inf  }
 0x387   : > { %2098 = vst.msk [vmem:[#allocation4 + $0x368] sm:$0xf] %vm227_vm1, %v2077_v31 }
 0x38c   : > { %v2063_v42 = vpop.permute.xlu1 %2062  ;;  %v2061_v43 = vpop.permute.xlu0 %2060 }
 0x38d   : > { %2091 = vst.msk [vmem:[#allocation4 + $0x330] sm:$0xff] %vm11004_vm0, %v2063_v42 }
 0x38e   : > { %2090 = vst.msk [vmem:[#allocation4 + $0x328] sm:$0xff] %vm11004_vm0, %v2061_v43 }
 0x394   : > { %v2069_v2 = vpop.permute.xlu1 %2068  ;;  %v2067_v3 = vpop.permute.xlu0 %2066 }
 0x395   : > { %2094 = vst.msk [vmem:[#allocation4 + $0x348] sm:$0xff] %vm11004_vm0, %v2069_v2 }
 0x396   : > { %2093 = vst.msk [vmem:[#allocation4 + $0x340] sm:$0xff] %vm11004_vm0, %v2067_v3 }
 0x39c   : > { %v2075_v16 = vpop.permute.xlu1 %2074  ;;  %v2073_v35 = vpop.permute.xlu0 %2072 }
 0x39d   : > { %2097 = vst.msk [vmem:[#allocation4 + $0x360] sm:$0xff] %vm11004_vm0, %v2075_v16 }
 0x39e   : > { %2096 = vst.msk [vmem:[#allocation4 + $0x358] sm:$0xff] %vm11004_vm0, %v2073_v35 }
 0x39f LB: >> { %v11103_v23 = vld [vmem:[#allocation7_spill] sm:$0xff]  ;;  %v11104_v5 = vld [vmem:[#allocation5_spill] sm:$0xff]  ;;  %v11105_v59 = vld [vmem:[#allocation8_spill] sm:$0xff]  ;;  %s2141_s11 = smul.u32 6, %s4909_s10  ;;  %s2108_s18 = sadd.s32 1, %s4909_s10   ;;  %v4793_v47 = vphi %v6112_v47, %v11600_v47   ;;  %v4789_v46 = vphi %v6110_v46, %v11599_v46   ;;  %v4785_v45 = vphi %v6108_v45, %v11598_v45   ;;  %v4781_v41 = vphi %v6106_v41, %v11597_v41   ;;  %s4909_s10 = sphi %s6170_s10, %s11628_s10   ;;  %v4905_v30 = vphi %v6168_v30, %v11627_v30   ;;  %v4901_v10 = vphi %v6166_v10, %v11626_v10   ;;  %v4897_v63 = vphi %v6164_v63, %v11625_v63   ;;  %v4893_v62 = vphi %v6162_v62, %v11624_v62   ;;  %v4889_v61 = vphi %v6160_v61, %v11623_v61   ;;  %v4885_v27 = vphi %v6158_v27, %v11622_v27   ;;  %v4881_v58 = vphi %v6156_v58, %v11621_v58   ;;  %v4877_v57 = vphi %v6154_v57, %v11620_v57   ;;  %v4873_v60 = vphi %v6152_v60, %v11619_v60   ;;  %v4869_v28 = vphi %v6150_v28, %v11618_v28   ;;  %v4865_v26 = vphi %v6148_v26, %v11617_v26   ;;  %v4861_v25 = vphi %v6146_v25, %v10702_v25   ;;  %v4857_v24 = vphi %v6144_v24, %v11616_v24   ;;  %v4853_v56 = vphi %v6142_v56, %v11615_v56   ;;  %v4849_v22 = vphi %v6140_v22, %v11614_v22   ;;  %v4845_v19 = vphi %v6138_v19, %v11613_v19   ;;  %v4841_v55 = vphi %v6136_v55, %v11612_v55   ;;  %v4837_v17 = vphi %v6134_v17, %v11611_v17   ;;  %v4833_v14 = vphi %v6132_v14, %v11610_v14   ;;  %v4829_v13 = vphi %v6130_v13, %v11609_v13   ;;  %v4825_v12 = vphi %v6128_v12, %v11608_v12   ;;  %v4821_v8 = vphi %v6126_v8, %v11607_v8   ;;  %v4817_v6 = vphi %v6124_v6, %v11606_v6   ;;  %v4813_v52 = vphi %v6122_v52, %v11605_v52   ;;  %v4809_v0 = vphi %v6120_v0, %v11604_v0   ;;  %v4805_v4 = vphi %v6118_v4, %v11603_v4   ;;  %v4801_v1 = vphi %v6116_v1, %v11602_v1   ;;  %v4797_v51 = vphi %v6114_v51, %v11601_v51  }
 0x3a0   : >> { %v11106_v7 = vld [vmem:[#allocation6_spill] sm:$0xff]  ;;  %p10896_p4 = scmp.ge.s32.totalorder %s2108_s18, 11   ;;  %s11628_s10 = smov %s2108_s18 }
 0x3a1   : >> { %s6272_s14 = scalar_lea.vmem [#allocation3], %s2141_s11  ;;  %s6276_s15 = scalar_lea.vmem [#allocation2], %s2141_s11 }
 0x3a2   : >> { %v2146_v31 = vld [vmem:[%s6272_s14] sm:$0xff]  ;;  %v2147_v32 = vld [vmem:[%s6272_s14 + $0x8] sm:$0xff]  ;;  %s6294_s16 = scalar_lea.vmem [#allocation4], %s2141_s11 }
 0x3a3   : >> { %v2151_v36 = vld [vmem:[%s6276_s15] sm:$0xff]  ;;  %v2152_v18 = vld [vmem:[%s6276_s15 + $0x8] sm:$0xff]  ;;  %v2148_v38 = vsub.f32 %v11103_v23, %v2146_v31  ;;  %v2149_v42 = vsub.f32 %v11105_v59, %v2147_v32 }
 0x3a4   : >> { %v6283_v43 = vsub.f32 %v11106_v7, %v2151_v36  ;;  %v6286_v44 = vsub.f32 %v11104_v5, %v2152_v18 }
 0x3a5   : >> { %v4140_v29 = vclamps-f32 %v2148_v38, 1.0  ;;  %v4141_v48 = vclamps-f32 %v2149_v42, 1.0  ;;  %v6297_v35 = vld [vmem:[%s6294_s16] sm:$0xff]  ;;  %v6300_v37 = vld [vmem:[%s6294_s16 + $0x8] sm:$0xff] }
 0x3a6   : >> { %v2169_v49 = vand.u32 2147483647, %v6283_v43  ;;  %v2170_v50 = vand.u32 2147483647, %v6286_v44  ;;  %v2203_v34 = vmul.f32 %v6283_v43, %v6283_v43  ;;  %v2204_v54 = vmul.f32 %v6286_v44, %v6286_v44 }
 0x3a7   : >> { %v2159_v33 = vsub.f32 %v2148_v38, %v4140_v29  ;;  %v2160_v2 = vsub.f32 %v2149_v42, %v4141_v48  ;;  %vm2221_vm2 = vcmp.lt.f32.partialorder %v6297_v35, %v4897_v63  ;;  %vm2222_vm4 = vcmp.lt.f32.partialorder %v6300_v37, %v4893_v62 }
 0x3a8   : >> { %v2171_v3 = vadd.f32 1e-08, %v2169_v49  ;;  %v2172_v9 = vadd.f32 1e-08, %v2170_v50  ;;  %v2205_v20 = vadd.f32 1.0, %v2203_v34  ;;  %v2206_v21 = vadd.f32 1.0, %v2204_v54 }
 0x3a9   : >> { %v2161_v53 = vand.u32 2147483647, %v2159_v33  ;;  %v2162_v11 = vand.u32 2147483647, %v2160_v2  ;;  %vm2223_vm5 = vcmp.lt.f32.partialorder %v6297_v35, %v4889_v61  ;;  %vm2219_vm6 = vcmp.lt.f32.partialorder %v6297_v35, %v4905_v30 }
 0x3aa   : >> { %4507 = vrcp.f32 %v2171_v3  ;;  %vm2178_vm3 = vweird.f32 %v2171_v3  ;;  %v2182_v32 = vand.u32 2147483647, %v2171_v3  ;;  %v2184_v36 = vand.u32 2147483648, %v2171_v3 }
 0x3ab   : >> { %4509 = vrcp.f32 %v2172_v9  ;;  %v2163_v15 = vadd.f32 1.0, %v2161_v53  ;;  %v2164_v16 = vadd.f32 1.0, %v2162_v11  ;;  %v2197_v38 = vand.u32 2147483647, %v2172_v9 }
 0x3ac   : >> { %vm2224_vm7 = vcmp.lt.f32.partialorder %v6300_v37, %v4885_v27  ;;  %v2199_v29 = vand.u32 2147483648, %v2172_v9  ;;  %vm2193_vm10 = vweird.f32 %v2172_v9  ;;  %vm2225_vm12 = vcmp.lt.f32.partialorder %v6297_v35, %v4881_v58 }
 0x3ad   : >> { %4511 = vrcp.f32 %v2163_v15  ;;  %vm6316_vm13 = vcmp.eq.f32.partialorder %v2182_v32, 8.507059e+37  ;;  %vm2226_vm14 = vcmp.lt.f32.partialorder %v6300_v37, %v4877_v57  ;;  %vm6334_vm9 = vcmp.eq.f32.partialorder %v2197_v38, 8.507059e+37 }
 0x3ae   : >> { %4513 = vrcp.f32 %v2164_v16  ;;  %vm2233_vm1 = vcmp.lt.f32.partialorder %v6297_v35, %v4849_v22 }
 0x3af   : >> { %4515 = vlog2.f32 %v2205_v20 }
 0x3b0   : >> { %v4508_v39 = vpop.eup %4507  ;;  %4517 = vlog2.f32 %v2206_v21 }
 0x3b1   : >> { %v4510_v40 = vpop.eup %4509  ;;  %v2174_v31 = vmul.f32 %v4508_v39, %v2171_v3  ;;  %vm2179_vm8 = vweird.f32 %v4508_v39 }
 0x3b2   : >> { %v2189_v18 = vmul.f32 %v4510_v40, %v2172_v9  ;;  %vm2194_vm11 = vweird.f32 %v4510_v40  ;;  %vm6324_vm15 = vmor %vm2178_vm3, %vm2179_vm8  ;;  %v2185_v9 = vor.u32 1.1754944e-38, %v2184_v36  ;;  %vm2229_vm8 = vcmp.lt.f32.partialorder %v6297_v35, %v4865_v26 }
 0x3b3   : >> { %v2175_v42 = vsub.f32 1.0, %v2174_v31  ;;  %v4512_v48 = vpop.eup %4511  ;;  %vm6330_vm0 = vmor %vm2193_vm10, %vm2194_vm11  ;;  %vm2230_vm10 = vcmp.lt.f32.partialorder %v6300_v37, %v4861_v25  ;;  %vm2232_vm3 = vcmp.lt.f32.partialorder %v6300_v37, %v4853_v56  ;;  %vm2234_vm11 = vcmp.lt.f32.partialorder %v6300_v37, %v4845_v19 }
 0x3b4   : >> { %v2190_v49 = vsub.f32 1.0, %v2189_v18  ;;  %v4514_v50 = vpop.eup %4513  ;;  %v2167_v53 = vmul.f32 %v4512_v48, %v2159_v33 }
 0x3b5   : >> { %v2176_v11 = vmul.f32 %v4508_v39, %v2175_v42  ;;  %v2168_v54 = vmul.f32 %v4514_v50, %v2160_v2  ;;  %v2200_v2 = vor.u32 1.1754944e-38, %v2199_v29  ;;  %v4516_v3 = vpop.eup %4515  ;;  %v2239_v50 = vsel %vm2221_vm2, %v6297_v35, %v4897_v63 }
 0x3b6   : >> { %v2191_v16 = vmul.f32 %v4510_v40, %v2190_v49  ;;  %v4518_v32 = vpop.eup %4517  ;;  %v2211_v18 = vsub.f32 0.0, %v2167_v53  ;;  %v2208_v49 = vmul.f32 0.6931472, %v4516_v3  ;;  %v4144_v53 = vld [vmem:[%s6272_s14 + $0x50] sm:$0xff] }
 0x3b7   : >> { %v2177_v33 = vadd.f32 %v4508_v39, %v2176_v11  ;;  %v2212_v29 = vsub.f32 0.0, %v2168_v54  ;;  %v4145_v11 = vld [vmem:[%s6272_s14 + $0x58] sm:$0xff]  ;;  %v2210_v34 = vmul.f32 0.6931472, %v4518_v32  ;;  %v2247_v54 = vsel %vm2223_vm5, %v6297_v35, %v4889_v61 }
 0x3b8   : >> { %v2192_v31 = vadd.f32 %v4510_v40, %v2191_v16  ;;  %v2255_v16 = vsel %vm2225_vm12, %v6297_v35, %v4881_v58  ;;  %v2302_v21 = vsub.f32 %v11103_v23, %v4144_v53  ;;  %v2272_v53 = vsel %vm2230_vm10, %v6300_v37, %v4861_v25 }
 0x3b9   : >> { %v2181_v36 = vsel %vm6324_vm15, %v4508_v39, %v2177_v33  ;;  %vm11118_vm15 = vcmp.lt.f32.partialorder %v6300_v37, %v4869_v28 }
 0x3ba   : >> { %v2186_v38 = vsel %vm6316_vm13, %v2185_v9, %v2181_v36  ;;  %v2196_v42 = vsel %vm6330_vm0, %v4510_v40, %v2192_v31  ;;  %v2248_v9 = vsel %vm2224_vm7, %v6300_v37, %v4885_v27  ;;  %vm11115_vm0 = vcmp.lt.f32.partialorder %v6300_v37, %v4901_v10 }
 0x3bb   : >> { %v2187_v48 = vmul.f32 %v2186_v38, %v6283_v43  ;;  %v2201_v39 = vsel %vm6334_vm9, %v2200_v2, %v2196_v42  ;;  %v2240_v43 = vsel %vm2222_vm4, %v6300_v37, %v4893_v62  ;;  %v6401_v20 = vsel %vm11115_vm0, %v6300_v37, %v4901_v10  ;;  %vm11116_vm9 = vmmov %vm11115_vm0 }
 0x3bc   : >> { %v2202_v40 = vmul.f32 %v2201_v39, %v6286_v44  ;;  %v6384_v44 = vsel %vm2219_vm6, %v6297_v35, %v4905_v30  ;;  %v2303_v2 = vsub.f32 %v11105_v59, %v4145_v11  ;;  %v6409_v31 = vsel %vm2219_vm6, %v4905_v30, %v2239_v50  ;;  %v4147_v11 = vld [vmem:[%s6276_s15 + $0x58] sm:$0xff] }
 0x3bd   : >> { %v2213_v15 = vmul.f32 %v2211_v18, %v2187_v48  ;;  %v6415_v32 = vsel %vm11116_vm9, %v4901_v10, %v2240_v43  ;;  %v6421_v36 = vsel %vm2221_vm2, %v4897_v63, %v2247_v54  ;;  %v6427_v38 = vsel %vm2222_vm4, %v4893_v62, %v2248_v9  ;;  %v4146_v48 = vld [vmem:[%s6276_s15 + $0x50] sm:$0xff] }
 0x3be   : >> { %v2214_v33 = vmul.f32 %v2212_v29, %v2202_v40  ;;  %v2256_v42 = vsel %vm2226_vm14, %v6300_v37, %v4877_v57  ;;  %v6438_v29 = vsel %vm2223_vm5, %v4889_v61, %v2255_v16  ;;  %vm11117_vm13 = vcmp.lt.f32.partialorder %v6297_v35, %v4873_v60 }
 0x3bf   : >> { %v2215_v3 = vmul.f32 %v2213_v15, %v2208_v49  ;;  %v2263_v39 = vsel %vm11117_vm13, %v6297_v35, %v4873_v60  ;;  %v2264_v49 = vsel %vm11118_vm15, %v6300_v37, %v4869_v28  ;;  %v2271_v50 = vsel %vm2229_vm8, %v6297_v35, %v4865_v26  ;;  %vm11122_vm9 = vmmov %vm11117_vm13 }
 0x3c0   : >> { %v2216_v18 = vmul.f32 %v2214_v33, %v2210_v34  ;;  %vm11119_vm0 = vcmp.lt.f32.partialorder %v6297_v35, %v4857_v24  ;;  %v4148_v43 = vclamps-f32 %v2302_v21, 1.0  ;;  %v4149_v54 = vclamps-f32 %v2303_v2, 1.0  ;;  %vm11123_vm13 = vmmov %vm11118_vm15 }
 0x3c1   : >> { %v2217_v40 = vmax.f32 %v2215_v3, 0.0  ;;  %v2279_v34 = vsel %vm11119_vm0, %v6297_v35, %v4857_v24  ;;  %v6471_v9 = vsel %vm2224_vm7, %v4885_v27, %v2256_v42  ;;  %v2280_v16 = vsel %vm2232_vm3, %v6300_v37, %v4853_v56  ;;  %vm11124_vm15 = vmmov %vm11119_vm0 }
 0x3c2   : >> { %v2218_v15 = vmax.f32 %v2216_v18, 0.0  ;;  %v6479_v33 = vsub.f32 %v11106_v7, %v4146_v48  ;;  %v6485_v3 = vsel %vm2225_vm12, %v4881_v58, %v2263_v39  ;;  %v2287_v18 = vsel %vm2233_vm1, %v6297_v35, %v4849_v22 }
 0x3c3   : >> { %v2288_v42 = vsel %vm2234_vm11, %v6300_v37, %v4845_v19  ;;  %v6498_v48 = vsub.f32 %v11104_v5, %v4147_v11  ;;  %v6504_v39 = vsel %vm2226_vm14, %v4877_v57, %v2264_v49  ;;  %v6510_v7 = vsel %vm11122_vm9, %v4873_v60, %v2271_v50 }
 0x3c4   : >> { %11120 = vst [vmem:[#allocation9_spill] sm:$0xff] %v6479_v33  ;;  %v6516_v59 = vsel %vm11123_vm13, %v4869_v28, %v2272_v53  ;;  %v6522_v11 = vsel %vm2229_vm8, %v4865_v26, %v2279_v34  ;;  %v2241_v49 = vsel %vm2221_vm2, %v2217_v40, %v4833_v14  ;;  %v6532_v50 = vsel %vm2230_vm10, %v4861_v25, %v2280_v16 }
 0x3c5   : >> { %11121 = vst [vmem:[#allocation10_spill] sm:$0xff] %v6498_v48  ;;  %v6534_v5 = vsub.f32 %v2302_v21, %v4148_v43  ;;  %v6536_v53 = vsub.f32 %v2303_v2, %v4149_v54  ;;  %v2242_v34 = vsel %vm2222_vm4, %v2218_v15, %v4829_v13  ;;  %v6546_v23 = vsel %vm11124_vm15, %v4857_v24, %v2287_v18 }
 0x3c6   : >> { %v6552_v16 = vsel %vm2232_vm3, %v4853_v56, %v2288_v42  ;;  %v2323_v21 = vand.u32 2147483647, %v6479_v33  ;;  %v2249_v2 = vsel %vm2223_vm5, %v2217_v40, %v4825_v12  ;;  %v2324_v43 = vand.u32 2147483647, %v6498_v48 }
 0x3c7   : >> { %11125 = vst [vmem:[#allocation11_spill] sm:$0xff] %v6552_v16  ;;  %v2357_v54 = vmul.f32 %v6479_v33, %v6479_v33  ;;  %v2358_v18 = vmul.f32 %v6498_v48, %v6498_v48  ;;  %v6568_v42 = vsel %vm2219_vm6, %v2217_v40, %v4841_v55  ;;  %vm11127_vm0 = vcmp.lt.f32.partialorder %v6300_v37, %v4901_v10 }
 0x3c8   : >> { %11126 = vst [vmem:[#allocation12_spill] sm:$0xff] %v6568_v42  ;;  %v6574_v16 = vsel %vm11127_vm0, %v2218_v15, %v4837_v17  ;;  %v6580_v33 = vsel %vm2219_vm6, %v4841_v55, %v2241_v49  ;;  %v2257_v48 = vsel %vm2225_vm12, %v2217_v40, %v4817_v6  ;;  %vm11129_vm9 = vmmov %vm11127_vm0  ;;  %v2315_v55 = vand.u32 2147483647, %v6534_v5 }
 0x3c9   : >> { %11128 = vst [vmem:[#allocation13_spill] sm:$0xff] %v6574_v16  ;;  %v6590_v42 = vsel %vm11129_vm9, %v4837_v17, %v2242_v34  ;;  %v2250_v16 = vsel %vm2224_vm7, %v2218_v15, %v4821_v8  ;;  %v2316_v30 = vand.u32 2147483647, %v6536_v53  ;;  %v6602_v49 = vsel %vm2221_vm2, %v4833_v14, %v2249_v2  ;;  %vm11133_vm2 = vmmov %vm11124_vm15 }
 0x3ca   : >> { %11130 = vst [vmem:[#allocation14_spill] sm:$0xff] %v6590_v42  ;;  %v2258_v17 = vsel %vm2226_vm14, %v2218_v15, %v4813_v52  ;;  %vm11132_vm6 = vcmp.lt.f32.partialorder %v6297_v35, %v4873_v60  ;;  %v2325_v34 = vadd.f32 1e-08, %v2323_v21  ;;  %v2266_v42 = vsel %vm11123_vm13, %v2218_v15, %v4805_v4  ;;  %v6688_v60 = vld [vmem:[%s6294_s16 + $0x58] sm:$0xff] }
 0x3cb   : >> { %11131 = vst [vmem:[#allocation15_spill] sm:$0xff] %v6602_v49  ;;  %v2265_v10 = vsel %vm11132_vm6, %v2217_v40, %v4809_v0  ;;  %v2273_v14 = vsel %vm2229_vm8, %v2217_v40, %v4801_v1  ;;  %v2317_v63 = vadd.f32 1.0, %v2315_v55  ;;  %v6620_v2 = vadd.f32 1e-08, %v2324_v43  ;;  %v6639_v43 = vld [vmem:[%s6294_s16 + $0x50] sm:$0xff] }
 0x3cc   : >> { %v6626_v49 = vsel %vm2222_vm4, %v4829_v13, %v2250_v16  ;;  %v6632_v21 = vsel %vm2223_vm5, %v4825_v12, %v2257_v48  ;;  %v2274_v55 = vsel %vm2230_vm10, %v2218_v15, %v4797_v51  ;;  %4519 = vrcp.f32 %v2325_v34  ;;  %vm11134_vm4 = vmmov %vm11132_vm6 }
 0x3cd   : >> { %v6645_v13 = vsel %vm2224_vm7, %v4821_v8, %v2258_v17  ;;  %v6651_v12 = vsel %vm2225_vm12, %v4817_v6, %v2265_v10  ;;  %v2281_v61 = vsel %vm11133_vm2, %v2217_v40, %v4793_v47  ;;  %v2318_v62 = vadd.f32 1.0, %v2316_v30  ;;  %vm11135_vm5 = vmmov %vm11123_vm13 }
 0x3ce   : >> { %v6661_v48 = vsel %vm2226_vm14, %v4813_v52, %v2266_v42  ;;  %v6667_v8 = vsel %vm11134_vm4, %v4809_v0, %v2273_v14  ;;  %v2282_v6 = vsel %vm2232_vm3, %v2218_v15, %v4789_v46  ;;  %4521 = vrcp.f32 %v2317_v63  ;;  %vm11136_vm14 = vmmov %vm11133_vm2 }
 0x3cf   : >> { %v6677_v58 = vsel %vm11135_vm5, %v4805_v4, %v2274_v55  ;;  %v2289_v52 = vsel %vm2233_vm1, %v2217_v40, %v4785_v45  ;;  %v2290_v0 = vsel %vm2234_vm11, %v2218_v15, %v4781_v41  ;;  %4523 = vrcp.f32 %v6620_v2  ;;  %v11154_v55 = vld [vmem:[#allocation6_spill] sm:$0xff] }
 0x3d0   : >> { %vm2375_vm7 = vcmp.lt.f32.partialorder %v6639_v43, %v6409_v31  ;;  %v6697_v4 = vsel %vm2229_vm8, %v4801_v1, %v2281_v61  ;;  %v2336_v22 = vand.u32 2147483647, %v2325_v34  ;;  %v2338_v45 = vand.u32 2147483648, %v2325_v34 }
 0x3d1   : >> { %v2359_v28 = vadd.f32 1.0, %v2357_v54  ;;  %v6703_v41 = vsel %vm2230_vm10, %v4797_v51, %v2282_v6  ;;  %4525 = vrcp.f32 %v2318_v62  ;;  %v2351_v19 = vand.u32 2147483647, %v6620_v2  ;;  %v11145_v62 = vld [vmem:[#allocation11_spill] sm:$0xff] }
 0x3d2   : >> { %v2353_v57 = vand.u32 2147483648, %v6620_v2  ;;  %vm2373_vm12 = vcmp.lt.f32.partialorder %v6639_v43, %v6384_v44  ;;  %v4520_v26 = vpop.eup %4519  ;;  %v6713_v1 = vsel %vm11136_vm14, %v4793_v47, %v2289_v52  ;;  %v6719_v51 = vsel %vm2232_vm3, %v4789_v46, %v2290_v0 }
 0x3d3   : >> { %v2360_v25 = vadd.f32 1.0, %v2358_v18  ;;  %vm2374_vm1 = vcmp.lt.f32.partialorder %v6688_v60, %v6401_v20  ;;  %v2328_v27 = vmul.f32 %v4520_v26, %v2325_v34  ;;  %vm2332_vm8 = vweird.f32 %v2325_v34 }
 0x3d4   : >> { %vm2347_vm10 = vweird.f32 %v6620_v2  ;;  %vm2376_vm11 = vcmp.lt.f32.partialorder %v6688_v60, %v6415_v32  ;;  %v4522_v24 = vpop.eup %4521  ;;  %vm6726_vm15 = vcmp.eq.f32.partialorder %v2336_v22, 8.507059e+37  ;;  %v2339_v35 = vor.u32 1.1754944e-38, %v2338_v45 }
 0x3d5   : >> { %4527 = vlog2.f32 %v2359_v28  ;;  %vm2377_vm3 = vcmp.lt.f32.partialorder %v6639_v43, %v6421_v36  ;;  %v4524_v46 = vpop.eup %4523  ;;  %v2329_v56 = vsub.f32 1.0, %v2328_v27  ;;  %vm2333_vm0 = vweird.f32 %v4520_v26  ;;  %v11146_v28 = vld [vmem:[#allocation9_spill] sm:$0xff]  ;;  %v4152_v27 = vld [vmem:[%s6272_s14 + $0xa0] sm:$0xff] }
 0x3d6   : >> { %vm6732_vm9 = vcmp.eq.f32.partialorder %v2351_v19, 8.507059e+37  ;;  %v2354_v40 = vor.u32 1.1754944e-38, %v2353_v57  ;;  %v2343_v15 = vmul.f32 %v4524_v46, %v6620_v2  ;;  %v2321_v54 = vmul.f32 %v4522_v24, %v6534_v5  ;;  %vm6747_vm5 = vmor %vm2332_vm8, %vm2333_vm0 }
 0x3d7   : >> { %v4526_v16 = vpop.eup %4525  ;;  %v2330_v18 = vmul.f32 %v4520_v26, %v2329_v56  ;;  %4529 = vlog2.f32 %v2360_v25  ;;  %vm2348_vm14 = vweird.f32 %v4524_v46  ;;  %vm2382_vm13 = vcmp.lt.f32.partialorder %v6688_v60, %v6504_v39 }
 0x3d8   : >> { %v2344_v30 = vsub.f32 1.0, %v2343_v15  ;;  %vm2383_vm2 = vcmp.lt.f32.partialorder %v6639_v43, %v6510_v7  ;;  %vm2384_vm6 = vcmp.lt.f32.partialorder %v6688_v60, %v6516_v59  ;;  %vm2385_vm4 = vcmp.lt.f32.partialorder %v6639_v43, %v6522_v11  ;;  %vm6778_vm8 = vmor %vm2347_vm10, %vm2348_vm14  ;;  %v4153_v15 = vld [vmem:[%s6272_s14 + $0xa8] sm:$0xff] }
 0x3d9   : >> { %v2331_v17 = vadd.f32 %v4520_v26, %v2330_v18  ;;  %v2322_v10 = vmul.f32 %v4526_v16, %v6536_v53  ;;  %v2393_v14 = vsel %vm2375_vm7, %v6639_v43, %v6409_v31  ;;  %v2394_v63 = vsel %vm2376_vm11, %v6688_v60, %v6415_v32  ;;  %v4154_v16 = vld [vmem:[%s6276_s15 + $0xa0] sm:$0xff] }
 0x3da   : >> { %v2345_v34 = vmul.f32 %v4524_v46, %v2344_v30  ;;  %v2365_v61 = vsub.f32 0.0, %v2321_v54  ;;  %vm2388_vm0 = vcmp.lt.f32.partialorder %v6688_v60, %v11145_v62  ;;  %v2401_v6 = vsel %vm2377_vm3, %v6639_v43, %v6421_v36  ;;  %v11150_v30 = vld [vmem:[#allocation10_spill] sm:$0xff] }
 0x3db   : >> { %v4528_v5 = vpop.eup %4527  ;;  %v2335_v53 = vsel %vm6747_vm5, %v4520_v26, %v2331_v17  ;;  %v6796_v0 = vsel %vm2373_vm12, %v6639_v43, %v6384_v44  ;;  %v6803_v22 = vsel %vm2374_vm1, %v6688_v60, %v6401_v20  ;;  %v6810_v26 = vsel %vm2373_vm12, %v6384_v44, %v2393_v14 }
 0x3dc   : >> { %v2340_v52 = vsel %vm6726_vm15, %v2339_v35, %v2335_v53  ;;  %v2346_v2 = vadd.f32 %v4524_v46, %v2345_v34  ;;  %v2362_v57 = vmul.f32 0.6931472, %v4528_v5  ;;  %v6816_v25 = vsel %vm2374_vm1, %v6401_v20, %v2394_v63  ;;  %v11153_v63 = vld [vmem:[#allocation8_spill] sm:$0xff] }
 0x3dd   : >> { %v4530_v45 = vpop.eup %4529  ;;  %v2341_v19 = vmul.f32 %v2340_v52, %v11146_v28  ;;  %v2366_v47 = vsub.f32 0.0, %v2322_v10  ;;  %vm11147_vm10 = vcmp.lt.f32.partialorder %v6688_v60, %v6427_v38  ;;  %v6830_v56 = vsel %vm2375_vm7, %v6409_v31, %v2401_v6  ;;  %v4155_v28 = vld [vmem:[%s6276_s15 + $0xa8] sm:$0xff] }
 0x3de   : >> { %v2350_v24 = vsel %vm6778_vm8, %v4524_v46, %v2346_v2  ;;  %v2402_v35 = vsel %vm11147_vm10, %v6688_v60, %v6427_v38  ;;  %vm11148_vm15 = vcmp.lt.f32.partialorder %v6639_v43, %v6438_v29  ;;  %vm11149_vm5 = vcmp.lt.f32.partialorder %v6688_v60, %v6471_v9  ;;  %vm11155_vm14 = vmmov %vm11147_vm10 }
 0x3df   : >> { %v2355_v54 = vsel %vm6732_vm9, %v2354_v40, %v2350_v24  ;;  %v2367_v46 = vmul.f32 %v2365_v61, %v2341_v19  ;;  %v2409_v18 = vsel %vm11148_vm15, %v6639_v43, %v6438_v29  ;;  %v2410_v42 = vsel %vm11149_vm5, %v6688_v60, %v6471_v9  ;;  %v11152_v40 = vld [vmem:[#allocation7_spill] sm:$0xff]  ;;  %vm11156_vm8 = vmmov %vm11148_vm15 }
 0x3e0   : >> { %v2356_v17 = vmul.f32 %v2355_v54, %v11150_v30  ;;  %v2364_v5 = vmul.f32 0.6931472, %v4530_v45  ;;  %vm11151_vm9 = vcmp.lt.f32.partialorder %v6639_v43, %v6485_v3  ;;  %v2456_v10 = vsub.f32 %v11152_v40, %v4152_v27 }
 0x3e1   : >> { %v2417_v37 = vsel %vm11151_vm9, %v6639_v43, %v6485_v3  ;;  %v2369_v34 = vmul.f32 %v2367_v46, %v2362_v57  ;;  %v6857_v14 = vsel %vm2376_vm11, %v6415_v32, %v2402_v35  ;;  %v2457_v53 = vsub.f32 %v11153_v63, %v4153_v15  ;;  %v11159_v46 = vld [vmem:[#allocation5_spill] sm:$0xff] }
 0x3e2   : >> { %v6861_v61 = vsub.f32 %v11154_v55, %v4154_v16  ;;  %v2368_v6 = vmul.f32 %v2366_v47, %v2356_v17  ;;  %v6867_v52 = vsel %vm2377_vm3, %v6421_v36, %v2409_v18  ;;  %v6873_v2 = vsel %vm11155_vm14, %v6427_v38, %v2410_v42  ;;  %vm11163_vm14 = vmmov %vm11156_vm8 }
 0x3e3   : >> { %v2418_v45 = vsel %vm2382_vm13, %v6688_v60, %v6504_v39  ;;  %v2371_v19 = vmax.f32 %v2369_v34, 0.0  ;;  %v6885_v57 = vsel %vm11156_vm8, %v6438_v29, %v2417_v37  ;;  %v2425_v27 = vsel %vm2383_vm2, %v6639_v43, %v6510_v7 }
 0x3e4   : >> { %v2426_v24 = vsel %vm2384_vm6, %v6688_v60, %v6516_v59  ;;  %v2370_v47 = vmul.f32 %v2368_v6, %v2364_v5  ;;  %v2433_v35 = vsel %vm2385_vm4, %v6639_v43, %v6522_v11  ;;  %vm11157_vm10 = vcmp.lt.f32.partialorder %v6688_v60, %v6532_v50 }
 0x3e5   : >> { %v2434_v15 = vsel %vm11157_vm10, %v6688_v60, %v6532_v50  ;;  %v4156_v16 = vclamps-f32 %v2456_v10, 1.0  ;;  %vm11158_vm15 = vcmp.lt.f32.partialorder %v6639_v43, %v6546_v23  ;;  %v6913_v18 = vsub.f32 %v11159_v46, %v4155_v28  ;;  %vm11164_vm8 = vmmov %vm11157_vm10 }
 0x3e6   : >> { %v2441_v54 = vsel %vm11158_vm15, %v6639_v43, %v6546_v23  ;;  %v4157_v42 = vclamps-f32 %v2457_v53, 1.0  ;;  %v2477_v30 = vand.u32 2147483647, %v6861_v61  ;;  %v6920_v17 = vsel %vm11149_vm5, %v6471_v9, %v2418_v45 }
 0x3e7   : >> { %v6926_v5 = vsel %vm11151_vm9, %v6485_v3, %v2425_v27  ;;  %v6932_v37 = vsel %vm2382_vm13, %v6504_v39, %v2426_v24  ;;  %v2442_v34 = vsel %vm2388_vm0, %v6688_v60, %v11145_v62  ;;  %v2372_v6 = vmax.f32 %v2370_v47, 0.0  ;;  %v11162_v24 = vld [vmem:[#allocation15_spill] sm:$0xff] }
 0x3e8   : >> { %v2395_v45 = vsel %vm2375_vm7, %v2371_v19, %v6580_v33  ;;  %v6947_v28 = vsel %vm2383_vm2, %v6510_v7, %v2433_v35  ;;  %v6953_v27 = vsel %vm2384_vm6, %v6516_v59, %v2434_v15  ;;  %v2403_v47 = vsel %vm2377_vm3, %v2371_v19, %v11162_v24 }
 0x3e9   : >> { %11160 = vst [vmem:[#allocation11_spill] sm:$0xff] %v6947_v28  ;;  %v2411_v46 = vsel %vm11163_vm14, %v2371_v19, %v6632_v21  ;;  %v6967_v35 = vsel %vm2385_vm4, %v6522_v11, %v2441_v54  ;;  %v6969_v55 = vsub.f32 %v2456_v10, %v4156_v16  ;;  %v6975_v15 = vsel %vm11164_vm8, %v6532_v50, %v2442_v34  ;;  %v11166_v28 = vld [vmem:[#allocation12_spill] sm:$0xff] }
 0x3ea   : >> { %11161 = vst [vmem:[#allocation9_spill] sm:$0xff] %v6953_v27  ;;  %v6977_v63 = vsub.f32 %v2457_v53, %v4157_v42  ;;  %v2478_v40 = vand.u32 2147483647, %v6913_v18  ;;  %v6980_v27 = vadd.f32 1e-08, %v2477_v30  ;;  %v6986_v54 = vsel %vm2373_vm12, %v2371_v19, %v11166_v28  ;;  %v11169_v42 = vld [vmem:[#allocation14_spill] sm:$0xff] }
 0x3eb   : >> { %11165 = vst [vmem:[#allocation10_spill] sm:$0xff] %v6975_v15  ;;  %v6992_v10 = vsel %vm2373_vm12, %v11166_v28, %v2395_v45  ;;  %v2511_v53 = vmul.f32 %v6861_v61, %v6861_v61  ;;  %v2512_v16 = vmul.f32 %v6913_v18, %v6913_v18  ;;  %v2396_v30 = vsel %vm2376_vm11, %v2372_v6, %v11169_v42  ;;  %vm11172_vm12 = vmmov %vm11151_vm9 }
 0x3ec   : >> { %11167 = vst [vmem:[#allocation15_spill] sm:$0xff] %v6986_v54  ;;  %v7006_v34 = vsel %vm2375_vm7, %v6580_v33, %v2403_v47  ;;  %v7012_v44 = vsel %vm2377_vm3, %v11162_v24, %v2411_v46  ;;  %v2419_v45 = vsel %vm11172_vm12, %v2371_v19, %v6651_v12  ;;  %vm11173_vm10 = vcmp.lt.f32.partialorder %v6688_v60, %v6427_v38  ;;  %vm11174_vm7 = vmmov %vm11149_vm5 }
 0x3ed   : >> { %11168 = vst [vmem:[#allocation12_spill] sm:$0xff] %v6992_v10  ;;  %v2404_v28 = vsel %vm11173_vm10, %v2372_v6, %v6626_v49  ;;  %v2427_v31 = vsel %vm2383_vm2, %v2371_v19, %v6667_v8  ;;  %v2435_v36 = vsel %vm2385_vm4, %v2371_v19, %v6697_v4  ;;  %v2469_v33 = vand.u32 2147483647, %v6969_v55  ;;  %vm11177_vm3 = vmmov %vm11158_vm15 }
 0x3ee   : >> { %11170 = vst [vmem:[#allocation14_spill] sm:$0xff] %v7006_v34  ;;  %v2412_v46 = vsel %vm11174_vm7, %v2372_v6, %v6645_v13  ;;  %v2470_v24 = vand.u32 2147483647, %v6977_v63  ;;  %v7036_v47 = vadd.f32 1e-08, %v2478_v40  ;;  %4531 = vrcp.f32 %v6980_v27  ;;  %vm11179_vm15 = vmmov %vm11163_vm14 }
 0x3ef   : >> { %11171 = vst [vmem:[#allocation16_spill] sm:$0xff] %v7012_v44  ;;  %v11175_v44 = vld [vmem:[#allocation13_spill] sm:$0xff]  ;;  %v2443_v40 = vsel %vm11177_vm3, %v2371_v19, %v6713_v1  ;;  %v2471_v10 = vadd.f32 1.0, %v2469_v33  ;;  %v2420_v15 = vsel %vm2382_vm13, %v2372_v6, %v6661_v48  ;;  %v7068_v23 = vsel %vm2376_vm11, %v11169_v42, %v2404_v28  ;;  %vm11180_vm5 = vmmov %vm11164_vm8 }
 0x3f0   : >> { %v7043_v54 = vsel %vm2374_vm1, %v2372_v6, %v11175_v44  ;;  %v7049_v34 = vsel %vm2374_vm1, %v11175_v44, %v2396_v30  ;;  %v2472_v20 = vadd.f32 1.0, %v2470_v24  ;;  %4533 = vrcp.f32 %v7036_v47  ;;  %vm11178_vm1 = vmmov %vm11173_vm10 }
 0x3f1   : >> { %11176 = vst [vmem:[#allocation13_spill] sm:$0xff] %v7043_v54  ;;  %v2428_v54 = vsel %vm2384_vm6, %v2372_v6, %v6677_v58  ;;  %v7074_v1 = vsel %vm11178_vm1, %v6626_v49, %v2412_v46  ;;  %v7080_v19 = vsel %vm11179_vm15, %v6632_v21, %v2419_v45  ;;  %4535 = vrcp.f32 %v2471_v10  ;;  %vm11181_vm11 = vmmov %vm11174_vm7 }
 0x3f2   : >> { %v2436_v32 = vsel %vm11180_vm5, %v2372_v6, %v6703_v41  ;;  %v2444_v42 = vsel %vm2388_vm0, %v2372_v6, %v6719_v51  ;;  %4537 = vrcp.f32 %v2472_v20  ;;  %v2513_v38 = vadd.f32 1.0, %v2511_v53  ;;  %v7109_v51 = vld [vmem:[%s6294_s16 + $0xa0] sm:$0xff] }
 0x3f3   : >> { %v7094_v29 = vsel %vm11181_vm11, %v6645_v13, %v2420_v15  ;;  %v7100_v49 = vsel %vm11151_vm9, %v6651_v12, %v2427_v31  ;;  %v7106_v21 = vsel %vm2382_vm13, %v6661_v48, %v2428_v54  ;;  %v2514_v62 = vadd.f32 1.0, %v2512_v16  ;;  %v7118_v13 = vld [vmem:[%s6294_s16 + $0xa8] sm:$0xff]  ;;  %vm11182_vm13 = vmmov %vm11180_vm5 }
 0x3f4   : >> { %v4532_v6 = vpop.eup %4531  ;;  %v7115_v9 = vsel %vm2383_vm2, %v6667_v8, %v2435_v36  ;;  %v2490_v3 = vand.u32 2147483647, %v6980_v27  ;;  %v2492_v12 = vand.u32 2147483648, %v6980_v27  ;;  %v2505_v39 = vand.u32 2147483647, %v7036_v47 }
 0x3f5   : >> { %v7127_v48 = vsel %vm2384_vm6, %v6677_v58, %v2436_v32  ;;  %v7133_v7 = vsel %vm2385_vm4, %v6697_v4, %v2443_v40  ;;  %v7139_v8 = vsel %vm11182_vm13, %v6703_v41, %v2444_v42  ;;  %v2482_v15 = vmul.f32 %v4532_v6, %v6980_v27  ;;  %v11192_v40 = vld [vmem:[#allocation9_spill] sm:$0xff] }
 0x3f6   : >> { %v4534_v54 = vpop.eup %4533  ;;  %vm2486_vm2 = vweird.f32 %v6980_v27  ;;  %vm2501_vm6 = vweird.f32 %v7036_v47  ;;  %v2507_v59 = vand.u32 2147483648, %v7036_v47  ;;  %4539 = vlog2.f32 %v2513_v38  ;;  %v4160_v41 = vld [vmem:[%s6272_s14 + $0xf0] sm:$0xff] }
 0x3f7   : >> { %v4536_v58 = vpop.eup %4535  ;;  %v2483_v11 = vsub.f32 1.0, %v2482_v15  ;;  %vm2487_vm4 = vweird.f32 %v4532_v6  ;;  %v2497_v43 = vmul.f32 %v4534_v54, %v7036_v47  ;;  %4541 = vlog2.f32 %v2514_v62  ;;  %v11191_v47 = vld [vmem:[#allocation11_spill] sm:$0xff] }
 0x3f8   : >> { %vm2527_vm0 = vcmp.lt.f32.partialorder %v7109_v51, %v6796_v0  ;;  %v4538_v50 = vpop.eup %4537  ;;  %vm7150_vm8 = vcmp.eq.f32.partialorder %v2490_v3, 8.507059e+37  ;;  %v2493_v4 = vor.u32 1.1754944e-38, %v2492_v12  ;;  %vm7154_vm12 = vcmp.eq.f32.partialorder %v2505_v39, 8.507059e+37  ;;  %vm7163_vm3 = vmor %vm2486_vm2, %vm2487_vm4 }
 0x3f9   : >> { %vm2529_vm10 = vcmp.lt.f32.partialorder %v7109_v51, %v6810_v26  ;;  %v2475_v10 = vmul.f32 %v4536_v58, %v6969_v55  ;;  %v2484_v53 = vmul.f32 %v4532_v6, %v2483_v11  ;;  %v2498_v16 = vsub.f32 1.0, %v2497_v43 }
 0x3fa   : >> { %vm2502_vm7 = vweird.f32 %v4534_v54  ;;  %v2508_v44 = vor.u32 1.1754944e-38, %v2507_v59  ;;  %vm2530_vm1 = vcmp.lt.f32.partialorder %v7118_v13, %v6816_v25  ;;  %vm2531_vm15 = vcmp.lt.f32.partialorder %v7109_v51, %v6830_v56  ;;  %v11193_v59 = vld [vmem:[#allocation10_spill] sm:$0xff] }
 0x3fb   : >> { %vm2532_vm5 = vcmp.lt.f32.partialorder %v7118_v13, %v6857_v14  ;;  %v2476_v55 = vmul.f32 %v4538_v50, %v6977_v63  ;;  %v2485_v45 = vadd.f32 %v4532_v6, %v2484_v53  ;;  %v2499_v28 = vmul.f32 %v4534_v54, %v2498_v16  ;;  %vm7178_vm9 = vmor %vm2501_vm6, %vm2502_vm7 }
 0x3fc   : >> { %vm2533_vm11 = vcmp.lt.f32.partialorder %v7109_v51, %v6867_v52  ;;  %v4540_v27 = vpop.eup %4539  ;;  %vm2534_vm13 = vcmp.lt.f32.partialorder %v7118_v13, %v6873_v2  ;;  %vm2535_vm2 = vcmp.lt.f32.partialorder %v7109_v51, %v6885_v57  ;;  %vm2537_vm14 = vcmp.lt.f32.partialorder %v7109_v51, %v6926_v5 }
 0x3fd   : >> { %v4542_v63 = vpop.eup %4541  ;;  %v2489_v36 = vsel %vm7163_vm3, %v4532_v6, %v2485_v45  ;;  %v2500_v33 = vadd.f32 %v4534_v54, %v2499_v28  ;;  %v2519_v46 = vsub.f32 0.0, %v2475_v10  ;;  %vm2538_vm6 = vcmp.lt.f32.partialorder %v7118_v13, %v6932_v37 }
 0x3fe   : >> { %v2494_v24 = vsel %vm7150_vm8, %v2493_v4, %v2489_v36  ;;  %vm2539_vm7 = vcmp.lt.f32.partialorder %v7109_v51, %v11191_v47  ;;  %vm2540_vm4 = vcmp.lt.f32.partialorder %v7118_v13, %v11192_v40  ;;  %v2547_v20 = vsel %vm2529_vm10, %v7109_v51, %v6810_v26 }
 0x3ff   : >> { %v2495_v32 = vmul.f32 %v2494_v24, %v6861_v61  ;;  %v2504_v42 = vsel %vm7178_vm9, %v4534_v54, %v2500_v33  ;;  %v2516_v38 = vmul.f32 0.6931472, %v4540_v27  ;;  %v2520_v62 = vsub.f32 0.0, %v2476_v55  ;;  %v11197_v33 = vld [vmem:[#allocation7_spill] sm:$0xff] }
 0x400   : >> { %v2509_v6 = vsel %vm7154_vm12, %v2508_v44, %v2504_v42  ;;  %v2518_v3 = vmul.f32 0.6931472, %v4542_v63  ;;  %vm2541_vm8 = vcmp.lt.f32.partialorder %v7109_v51, %v6967_v35  ;;  %v2548_v12 = vsel %vm2530_vm1, %v7118_v13, %v6816_v25  ;;  %v4161_v44 = vld [vmem:[%s6272_s14 + $0xf8] sm:$0xff]  ;;  %v11198_v42 = vld [vmem:[#allocation8_spill] sm:$0xff] }
 0x401   : >> { %v2510_v61 = vmul.f32 %v2509_v6, %v6913_v18  ;;  %v2521_v39 = vmul.f32 %v2519_v46, %v2495_v32  ;;  %v2555_v15 = vsel %vm2531_vm15, %v7109_v51, %v6830_v56  ;;  %v2556_v54 = vsel %vm2532_vm5, %v7118_v13, %v6857_v14 }
 0x402   : >> { %vm2542_vm12 = vcmp.lt.f32.partialorder %v7118_v13, %v11193_v59  ;;  %v7235_v18 = vsel %vm2527_vm0, %v7109_v51, %v6796_v0  ;;  %vm11194_vm3 = vcmp.lt.f32.partialorder %v7118_v13, %v6803_v22  ;;  %v7248_v11 = vsel %vm2527_vm0, %v6796_v0, %v2547_v20 }
 0x403   : >> { %v7242_v58 = vsel %vm11194_vm3, %v7118_v13, %v6803_v22  ;;  %v2522_v43 = vmul.f32 %v2520_v62, %v2510_v61  ;;  %v2523_v50 = vmul.f32 %v2521_v39, %v2516_v38  ;;  %vm11195_vm9 = vmmov %vm11194_vm3  ;;  %v2563_v4 = vsel %vm2533_vm11, %v7109_v51, %v6867_v52  ;;  %v4162_v61 = vld [vmem:[%s6276_s15 + $0xf0] sm:$0xff]  ;;  %v4163_v39 = vld [vmem:[%s6276_s15 + $0xf8] sm:$0xff] }
 0x404   : >> { %v7254_v60 = vsel %vm11195_vm9, %v6803_v22, %v2548_v12  ;;  %v7266_v10 = vsel %vm2529_vm10, %v6810_v26, %v2555_v15  ;;  %v7272_v53 = vsel %vm2530_vm1, %v6816_v25, %v2556_v54  ;;  %v2564_v16 = vsel %vm2534_vm13, %v7118_v13, %v6873_v2 }
 0x405   : >> { %v2571_v30 = vsel %vm2535_vm2, %v7109_v51, %v6885_v57  ;;  %v2524_v55 = vmul.f32 %v2522_v43, %v2518_v3  ;;  %vm11196_vm3 = vcmp.lt.f32.partialorder %v7118_v13, %v6920_v17  ;;  %v2579_v28 = vsel %vm2537_vm14, %v7109_v51, %v6926_v5 }
 0x406   : >> { %v2572_v45 = vsel %vm11196_vm3, %v7118_v13, %v6920_v17  ;;  %v2580_v27 = vsel %vm2538_vm6, %v7118_v13, %v6932_v37  ;;  %v2525_v31 = vmax.f32 %v2523_v50, 0.0  ;;  %v2587_v63 = vsel %vm2539_vm7, %v7109_v51, %v11191_v47  ;;  %vm11199_vm9 = vmmov %vm11196_vm3 }
 0x407   : >> { %v2588_v36 = vsel %vm2540_vm4, %v7118_v13, %v11192_v40  ;;  %v2610_v46 = vsub.f32 %v11197_v33, %v4160_v41  ;;  %v2526_v24 = vmax.f32 %v2524_v55, 0.0  ;;  %v7315_v20 = vsel %vm2531_vm15, %v6830_v56, %v2563_v4  ;;  %v4168_v4 = vld [vmem:[%s6272_s14 + $0x140] sm:$0xff]  ;;  %v11203_v41 = vld [vmem:[#allocation12_spill] sm:$0xff] }
 0x408   : >> { %v2595_v32 = vsel %vm2541_vm8, %v7109_v51, %v6967_v35  ;;  %v2611_v38 = vsub.f32 %v11198_v42, %v4161_v44  ;;  %v7327_v62 = vsel %vm2532_vm5, %v6857_v14, %v2564_v16  ;;  %v7333_v6 = vsel %vm2533_vm11, %v6867_v52, %v2571_v30  ;;  %v11204_v30 = vld [vmem:[#allocation14_spill] sm:$0xff] }
 0x409   : >> { %v7339_v3 = vsel %vm2534_vm13, %v6873_v2, %v2572_v45  ;;  %v7345_v12 = vsel %vm2535_vm2, %v6885_v57, %v2579_v28  ;;  %v7353_v15 = vsel %vm11199_vm9, %v6920_v17, %v2580_v27  ;;  %v7359_v54 = vsel %vm2537_vm14, %v6926_v5, %v2587_v63  ;;  %v11205_v27 = vld [vmem:[#allocation6_spill] sm:$0xff] }
 0x40a   : >> { %11200 = vst [vmem:[#allocation11_spill] sm:$0xff] %v7353_v15  ;;  %v7365_v43 = vsel %vm2538_vm6, %v6932_v37, %v2588_v36  ;;  %v2596_v50 = vsel %vm2542_vm12, %v7118_v13, %v11193_v59  ;;  %v2549_v16 = vsel %vm2529_vm10, %v2525_v31, %v11203_v41  ;;  %v2557_v44 = vsel %vm2531_vm15, %v2525_v31, %v11204_v30  ;;  %v11206_v36 = vld [vmem:[#allocation5_spill] sm:$0xff] }
 0x40b   : >> { %11201 = vst [vmem:[#allocation9_spill] sm:$0xff] %v7359_v54  ;;  %v7385_v55 = vsel %vm2539_vm7, %v11191_v47, %v2595_v32  ;;  %v4164_v45 = vclamps-f32 %v2610_v46, 1.0  ;;  %v2550_v28 = vsel %vm2530_vm1, %v2526_v24, %v7049_v34  ;;  %v7392_v63 = vsub.f32 %v11205_v27, %v4162_v61  ;;  %v11207_v54 = vld [vmem:[#allocation15_spill] sm:$0xff]  ;;  %v11209_v27 = vld [vmem:[#allocation16_spill] sm:$0xff] }
 0x40c   : >> { %11202 = vst [vmem:[#allocation10_spill] sm:$0xff] %v7365_v43  ;;  %v7395_v42 = vsub.f32 %v11206_v36, %v4163_v39  ;;  %v4165_v43 = vclamps-f32 %v2611_v38, 1.0  ;;  %v7401_v15 = vsel %vm2527_vm0, %v2525_v31, %v11207_v54  ;;  %v2558_v32 = vsel %vm2532_vm5, %v2526_v24, %v7068_v23 }
 0x40d   : >> { %11208 = vst [vmem:[#allocation12_spill] sm:$0xff] %v7401_v15  ;;  %v7411_v61 = vsel %vm2540_vm4, %v11192_v40, %v2596_v50  ;;  %v7414_v39 = vsub.f32 %v11197_v33, %v4168_v4  ;;  %v7420_v36 = vsel %vm2527_vm0, %v11207_v54, %v2549_v16  ;;  %v7426_v15 = vsel %vm2529_vm10, %v11203_v41, %v2557_v44  ;;  %v11210_v33 = vld [vmem:[#allocation13_spill] sm:$0xff] }
 0x40e   : >> { %v2565_v50 = vsel %vm2533_vm11, %v2525_v31, %v11209_v27  ;;  %v2566_v4 = vsel %vm2534_vm13, %v2526_v24, %v7074_v1  ;;  %vm11211_vm0 = vcmp.lt.f32.partialorder %v7118_v13, %v6803_v22  ;;  %v2573_v54 = vsel %vm2535_vm2, %v2525_v31, %v7080_v19 }
 0x40f   : >> { %v7440_v0 = vsel %vm11211_vm0, %v2526_v24, %v11210_v33  ;;  %vm11213_vm10 = vmmov %vm11211_vm0  ;;  %v7452_v41 = vsub.f32 %v2610_v46, %v4164_v45  ;;  %v7458_v16 = vsel %vm2530_vm1, %v7049_v34, %v2558_v32  ;;  %v7460_v44 = vsub.f32 %v2611_v38, %v4165_v43 }
 0x410   : >> { %11212 = vst [vmem:[#allocation14_spill] sm:$0xff] %v7440_v0  ;;  %v7446_v26 = vsel %vm11213_vm10, %v11210_v33, %v2550_v28  ;;  %v2631_v0 = vand.u32 2147483647, %v7392_v63  ;;  %v2632_v22 = vand.u32 2147483647, %v7395_v42  ;;  %v7468_v33 = vsel %vm2531_vm15, %v11204_v30, %v2565_v50  ;;  %vm11214_vm1 = vmmov %vm11196_vm3 }
 0x411   : >> { %v7474_v46 = vsel %vm2532_vm5, %v7068_v23, %v2566_v4  ;;  %v2574_v25 = vsel %vm11214_vm1, %v2526_v24, %v7094_v29  ;;  %v2623_v34 = vand.u32 2147483647, %v7452_v41  ;;  %v7485_v56 = vsel %vm2533_vm11, %v11209_v27, %v2573_v54  ;;  %vm11215_vm15 = vmmov %vm11214_vm1 }
 0x412   : >> { %v2581_v14 = vsel %vm2537_vm14, %v2525_v31, %v7100_v49  ;;  %v2624_v23 = vand.u32 2147483647, %v7460_v44  ;;  %v2633_v38 = vadd.f32 1e-08, %v2631_v0  ;;  %v2582_v43 = vsel %vm2538_vm6, %v2526_v24, %v7106_v21 }
 0x413   : >> { %v2589_v52 = vsel %vm2539_vm7, %v2525_v31, %v7115_v9  ;;  %v2625_v30 = vadd.f32 1.0, %v2623_v34  ;;  %v7500_v45 = vadd.f32 1e-08, %v2632_v22  ;;  %v2590_v28 = vsel %vm2540_vm4, %v2526_v24, %v7127_v48 }
 0x414   : >> { %v2597_v27 = vsel %vm2541_vm8, %v2525_v31, %v7133_v7  ;;  %4543 = vrcp.f32 %v2633_v38  ;;  %v2665_v32 = vmul.f32 %v7392_v63, %v7392_v63  ;;  %v7516_v50 = vsel %vm2534_vm13, %v7074_v1, %v2574_v25 }
 0x415   : >> { %v2598_v4 = vsel %vm2542_vm12, %v2526_v24, %v7139_v8  ;;  %v2626_v0 = vadd.f32 1.0, %v2624_v23  ;;  %v2666_v35 = vmul.f32 %v7395_v42, %v7395_v42  ;;  %v7528_v7 = vsel %vm2535_vm2, %v7080_v19, %v2581_v14  ;;  %v7543_v8 = vld [vmem:[%s6294_s16 + $0xf0] sm:$0xff]  ;;  %v7558_v19 = vld [vmem:[%s6294_s16 + $0xf8] sm:$0xff] }
 0x416   : >> { %v7534_v2 = vsel %vm11215_vm15, %v7094_v29, %v2582_v43  ;;  %v7540_v1 = vsel %vm2537_vm14, %v7100_v49, %v2589_v52  ;;  %4545 = vrcp.f32 %v2625_v30  ;;  %v7549_v57 = vsel %vm2538_vm6, %v7106_v21, %v2590_v28  ;;  %v11222_v30 = vld [vmem:[#allocation11_spill] sm:$0xff]  ;;  %v11223_v28 = vld [vmem:[#allocation9_spill] sm:$0xff]  ;;  %v4169_v43 = vld [vmem:[%s6272_s14 + $0x148] sm:$0xff] }
 0x417   : >> { %v7555_v17 = vsel %vm2539_vm7, %v7115_v9, %v2597_v27  ;;  %v2644_v5 = vand.u32 2147483647, %v2633_v38  ;;  %4547 = vrcp.f32 %v7500_v45  ;;  %v7565_v29 = vsel %vm2540_vm4, %v7127_v48, %v2598_v4 }
 0x418   : >> { %v2646_v37 = vand.u32 2147483648, %v2633_v38  ;;  %v2659_v49 = vand.u32 2147483647, %v7500_v45  ;;  %v2667_v21 = vadd.f32 1.0, %v2665_v32  ;;  %4549 = vrcp.f32 %v2626_v0 }
 0x419   : >> { %v2661_v51 = vand.u32 2147483648, %v7500_v45  ;;  %v2668_v9 = vadd.f32 1.0, %v2666_v35  ;;  %vm2681_vm14 = vcmp.lt.f32.partialorder %v7543_v8, %v7235_v18  ;;  %vm2640_vm5 = vweird.f32 %v2633_v38 }
 0x41a   : >> { %v4544_v47 = vpop.eup %4543  ;;  %vm2682_vm11 = vcmp.lt.f32.partialorder %v7558_v19, %v7242_v58  ;;  %vm2683_vm13 = vcmp.lt.f32.partialorder %v7543_v8, %v7248_v11  ;;  %vm2684_vm2 = vcmp.lt.f32.partialorder %v7558_v19, %v7254_v60  ;;  %vm7577_vm4 = vcmp.eq.f32.partialorder %v2644_v5, 8.507059e+37 }
 0x41b   : >> { %v2636_v13 = vmul.f32 %v4544_v47, %v2633_v38  ;;  %vm2655_vm6 = vweird.f32 %v7500_v45  ;;  %vm2685_vm7 = vcmp.lt.f32.partialorder %v7543_v8, %v7266_v10  ;;  %v2647_v59 = vor.u32 1.1754944e-38, %v2646_v37  ;;  %v11224_v38 = vld [vmem:[#allocation10_spill] sm:$0xff] }
 0x41c   : >> { %v4546_v40 = vpop.eup %4545  ;;  %vm7584_vm8 = vcmp.eq.f32.partialorder %v2659_v49, 8.507059e+37  ;;  %4551 = vlog2.f32 %v2667_v21  ;;  %vm2641_vm3 = vweird.f32 %v4544_v47  ;;  %v2662_v22 = vor.u32 1.1754944e-38, %v2661_v51 }
 0x41d   : >> { %v4548_v24 = vpop.eup %4547  ;;  %v2637_v54 = vsub.f32 1.0, %v2636_v13  ;;  %4553 = vlog2.f32 %v2668_v9  ;;  %v2629_v14 = vmul.f32 %v4546_v40, %v7452_v41  ;;  %vm2690_vm1 = vcmp.lt.f32.partialorder %v7558_v19, %v7339_v3  ;;  %vm7603_vm12 = vmor %vm2640_vm5, %vm2641_vm3 }
 0x41e   : >> { %v2651_v25 = vmul.f32 %v4548_v24, %v7500_v45  ;;  %v4550_v34 = vpop.eup %4549  ;;  %vm2691_vm15 = vcmp.lt.f32.partialorder %v7543_v8, %v7345_v12  ;;  %vm2656_vm0 = vweird.f32 %v4548_v24  ;;  %vm2692_vm10 = vcmp.lt.f32.partialorder %v7558_v19, %v11222_v30 }
 0x41f   : >> { %v2638_v23 = vmul.f32 %v4544_v47, %v2637_v54  ;;  %v2701_v41 = vsel %vm2683_vm13, %v7543_v8, %v7248_v11  ;;  %vm2694_vm5 = vcmp.lt.f32.partialorder %v7558_v19, %v11224_v38  ;;  %v2702_v32 = vsel %vm2684_vm2, %v7558_v19, %v7254_v60  ;;  %vm7640_vm3 = vmor %vm2655_vm6, %vm2656_vm0 }
 0x420   : >> { %v2652_v52 = vsub.f32 1.0, %v2651_v25  ;;  %v2630_v0 = vmul.f32 %v4550_v34, %v7460_v44  ;;  %vm2696_vm9 = vcmp.lt.f32.partialorder %v7558_v19, %v7411_v61  ;;  %v7633_v5 = vsel %vm2681_vm14, %v7543_v8, %v7235_v18  ;;  %v4171_v44 = vld [vmem:[%s6276_s15 + $0x148] sm:$0xff] }
 0x421   : >> { %v2639_v27 = vadd.f32 %v4544_v47, %v2638_v23  ;;  %v2673_v21 = vsub.f32 0.0, %v2629_v14  ;;  %v7649_v51 = vsel %vm2682_vm11, %v7558_v19, %v7242_v58  ;;  %v7655_v9 = vsel %vm2681_vm14, %v7235_v18, %v2701_v41 }
 0x422   : >> { %v4552_v4 = vpop.eup %4551  ;;  %v2653_v35 = vmul.f32 %v4548_v24, %v2652_v52  ;;  %v7663_v13 = vsel %vm2682_vm11, %v7242_v58, %v2702_v32  ;;  %v2709_v40 = vsel %vm2685_vm7, %v7543_v8, %v7266_v10  ;;  %vm11228_vm6 = vcmp.lt.f32.partialorder %v7543_v8, %v7315_v20  ;;  %v4170_v52 = vld [vmem:[%s6276_s15 + $0x140] sm:$0xff] }
 0x423   : >> { %v4554_v37 = vpop.eup %4553  ;;  %v2643_v49 = vsel %vm7603_vm12, %v4544_v47, %v2639_v27  ;;  %v2670_v25 = vmul.f32 0.6931472, %v4552_v4  ;;  %v2674_v23 = vsub.f32 0.0, %v2630_v0  ;;  %vm11229_vm12 = vcmp.lt.f32.partialorder %v7558_v19, %v7327_v62 }
 0x424   : >> { %v2648_v45 = vsel %vm7577_vm4, %v2647_v59, %v2643_v49  ;;  %v2654_v47 = vadd.f32 %v4548_v24, %v2653_v35  ;;  %vm11227_vm4 = vcmp.lt.f32.partialorder %v7558_v19, %v7272_v53  ;;  %v2717_v59 = vsel %vm11228_vm6, %v7543_v8, %v7315_v20 }
 0x425   : >> { %v2649_v54 = vmul.f32 %v2648_v45, %v7392_v63  ;;  %v2710_v48 = vsel %vm11227_vm4, %v7558_v19, %v7272_v53  ;;  %v2672_v14 = vmul.f32 0.6931472, %v4554_v37  ;;  %v2718_v63 = vsel %vm11229_vm12, %v7558_v19, %v7327_v62  ;;  %v11232_v37 = vld [vmem:[#allocation8_spill] sm:$0xff] }
 0x426   : >> { %v2658_v34 = vsel %vm7640_vm3, %v4548_v24, %v2654_v47  ;;  %vm11230_vm0 = vcmp.lt.f32.partialorder %v7543_v8, %v7333_v6  ;;  %v2726_v32 = vsel %vm2690_vm1, %v7558_v19, %v7339_v3  ;;  %v7707_v31 = vsel %vm2683_vm13, %v7248_v11, %v2709_v40  ;;  %vm11235_vm3 = vmmov %vm11228_vm6 }
 0x427   : >> { %v2663_v41 = vsel %vm7584_vm8, %v2662_v22, %v2658_v34  ;;  %v2675_v27 = vmul.f32 %v2673_v21, %v2649_v54  ;;  %v2725_v24 = vsel %vm11230_vm0, %v7543_v8, %v7333_v6  ;;  %v7713_v22 = vsel %vm2684_vm2, %v7254_v60, %v2710_v48  ;;  %vm11231_vm8 = vmmov %vm11227_vm4  ;;  %v11233_v21 = vld [vmem:[#allocation6_spill] sm:$0xff]  ;;  %v7929_v60 = vld [vmem:[%s6294_s16 + $0x140] sm:$0xff] }
 0x428   : >> { %v2664_v4 = vmul.f32 %v2663_v41, %v7395_v42  ;;  %v7719_v0 = vsel %vm2685_vm7, %v7266_v10, %v2717_v59  ;;  %v7725_v42 = vsel %vm11231_vm8, %v7272_v53, %v2718_v63  ;;  %v2765_v49 = vsub.f32 %v11232_v37, %v4169_v43  ;;  %vm11236_vm4 = vmmov %vm11229_vm12 }
 0x429   : >> { %v2677_v35 = vmul.f32 %v2675_v27, %v2670_v25  ;;  %v7730_v45 = vsub.f32 %v11233_v21, %v4170_v52  ;;  %v7736_v40 = vsel %vm11235_vm3, %v7315_v20, %v2725_v24  ;;  %v7742_v54 = vsel %vm11236_vm4, %v7327_v62, %v2726_v32  ;;  %v11239_v52 = vld [vmem:[#allocation5_spill] sm:$0xff]  ;;  %vm11244_vm8 = vmmov %vm11235_vm3 }
 0x42a   : >> { %v2676_v47 = vmul.f32 %v2674_v23, %v2664_v4  ;;  %v2733_v25 = vsel %vm2691_vm15, %v7543_v8, %v7345_v12  ;;  %v2734_v59 = vsel %vm2692_vm10, %v7558_v19, %v11222_v30  ;;  %vm11237_vm6 = vcmp.lt.f32.partialorder %v7543_v8, %v11223_v28 }
 0x42b   : >> { %11234 = vst [vmem:[#allocation15_spill] sm:$0xff] %v7730_v45  ;;  %v2679_v48 = vmax.f32 %v2677_v35, 0.0  ;;  %v2741_v34 = vsel %vm11237_vm6, %v7543_v8, %v11223_v28  ;;  %v2742_v23 = vsel %vm2694_vm5, %v7558_v19, %v11224_v38  ;;  %vm11238_vm12 = vcmp.lt.f32.partialorder %v7543_v8, %v7385_v55  ;;  %vm11245_vm3 = vmmov %vm11237_vm6 }
 0x42c   : >> { %v2678_v63 = vmul.f32 %v2676_v47, %v2672_v14  ;;  %v2749_v43 = vsel %vm11238_vm12, %v7543_v8, %v7385_v55  ;;  %v7770_v41 = vsub.f32 %v11239_v52, %v4171_v44  ;;  %v4172_v27 = vclamps-f32 %v7414_v39, 1.0  ;;  %vm11252_vm6 = vmmov %vm11238_vm12 }
 0x42d   : >> { %v2750_v24 = vsel %vm2696_vm9, %v7558_v19, %v7411_v61  ;;  %v4173_v32 = vclamps-f32 %v2765_v49, 1.0  ;;  %v2785_v14 = vand.u32 2147483647, %v7730_v45  ;;  %v2819_v4 = vmul.f32 %v7730_v45, %v7730_v45 }
 0x42e   : >> { %v7785_v35 = vsel %vm11230_vm0, %v7333_v6, %v2733_v25  ;;  %v7791_v44 = vsel %vm2690_vm1, %v7339_v3, %v2734_v59  ;;  %v7797_v47 = vsel %vm2691_vm15, %v7345_v12, %v2741_v34  ;;  %v7803_v52 = vsel %vm2692_vm10, %v11222_v30, %v2742_v23 }
 0x42f   : >> { %11240 = vst [vmem:[#allocation16_spill] sm:$0xff] %v7785_v35  ;;  %v2680_v25 = vmax.f32 %v2678_v63, 0.0  ;;  %v2703_v21 = vsel %vm2683_vm13, %v2679_v48, %v7420_v36  ;;  %v2711_v59 = vsel %vm2685_vm7, %v2679_v48, %v7426_v15  ;;  %v2719_v34 = vsel %vm11244_vm8, %v2679_v48, %v7468_v33 }
 0x430   : >> { %11241 = vst [vmem:[#allocation13_spill] sm:$0xff] %v7791_v44  ;;  %v7821_v23 = vsel %vm11245_vm3, %v11223_v28, %v2749_v43  ;;  %v7827_v63 = vsel %vm2694_vm5, %v11224_v38, %v2750_v24  ;;  %v7830_v37 = vsub.f32 %v7414_v39, %v4172_v27  ;;  %v2786_v45 = vand.u32 2147483647, %v7770_v41 }
 0x431   : >> { %11242 = vst [vmem:[#allocation11_spill] sm:$0xff] %v7797_v47  ;;  %v7835_v47 = vadd.f32 1e-08, %v2785_v14  ;;  %v2820_v44 = vmul.f32 %v7770_v41, %v7770_v41  ;;  %v2821_v43 = vadd.f32 1.0, %v2819_v4  ;;  %v7861_v27 = vsel %vm2685_vm7, %v7426_v15, %v2719_v34  ;;  %vm11250_vm7 = vmmov %vm11230_vm0  ;;  %v11253_v14 = vld [vmem:[#allocation14_spill] sm:$0xff] }
 0x432   : >> { %11243 = vst [vmem:[#allocation9_spill] sm:$0xff] %v7803_v52  ;;  %v7833_v52 = vsub.f32 %v2765_v49, %v4173_v32  ;;  %v7855_v49 = vsel %vm2683_vm13, %v7420_v36, %v2711_v59  ;;  %v2704_v24 = vsel %vm2684_vm2, %v2680_v25, %v7446_v26  ;;  %vm11249_vm13 = vmmov %vm11236_vm4  ;;  %v2727_v10 = vsel %vm11250_vm7, %v2679_v48, %v7485_v56 }
 0x433   : >> { %11246 = vst [vmem:[#allocation10_spill] sm:$0xff] %v7821_v23  ;;  %v11247_v23 = vld [vmem:[#allocation12_spill] sm:$0xff]  ;;  %v2720_v11 = vsel %vm11249_vm13, %v2680_v25, %v7474_v46  ;;  %v2735_v15 = vsel %vm2691_vm15, %v2679_v48, %v7528_v7  ;;  %vm11251_vm4 = vmmov %vm11245_vm3  ;;  %v2777_v32 = vand.u32 2147483647, %v7830_v37  ;;  %v7896_v4 = vsel %vm2682_vm11, %v2680_v25, %v11253_v14 }
 0x434   : >> { %v7843_v35 = vsel %vm2681_vm14, %v2679_v48, %v11247_v23  ;;  %v7849_v39 = vsel %vm2681_vm14, %v11247_v23, %v2703_v21  ;;  %vm11248_vm14 = vcmp.lt.f32.partialorder %v7558_v19, %v7272_v53  ;;  %v2743_v36 = vsel %vm11251_vm4, %v2679_v48, %v7540_v1 }
 0x435   : >> { %v2712_v18 = vsel %vm11248_vm14, %v2680_v25, %v7458_v16  ;;  %v2751_v21 = vsel %vm11252_vm6, %v2679_v48, %v7555_v17  ;;  %v2778_v59 = vand.u32 2147483647, %v7833_v52  ;;  %v7899_v34 = vadd.f32 1e-08, %v2786_v45  ;;  %vm11254_vm12 = vmmov %vm11248_vm14 }
 0x436   : >> { %4555 = vrcp.f32 %v7835_v47  ;;  %v7906_v55 = vsel %vm2682_vm11, %v11253_v14, %v2704_v24  ;;  %v7912_v17 = vsel %vm2684_vm2, %v7446_v26, %v2712_v18  ;;  %v7918_v45 = vsel %vm11254_vm12, %v7458_v16, %v2720_v11  ;;  %vm11255_vm11 = vmmov %vm11244_vm8 }
 0x437   : >> { %v2779_v48 = vadd.f32 1.0, %v2777_v32  ;;  %v2728_v58 = vsel %vm2690_vm1, %v2680_v25, %v7516_v50  ;;  %v2736_v23 = vsel %vm2692_vm10, %v2680_v25, %v7534_v2  ;;  %v2780_v26 = vadd.f32 1.0, %v2778_v59  ;;  %vm11256_vm2 = vmmov %vm11249_vm13  ;;  %v11266_v59 = vld [vmem:[#allocation16_spill] sm:$0xff] }
 0x438   : >> { %4557 = vrcp.f32 %v7899_v34  ;;  %v7936_v53 = vsel %vm11255_vm11, %v7468_v33, %v2727_v10  ;;  %v2744_v16 = vsel %vm2694_vm5, %v2680_v25, %v7549_v57  ;;  %v2752_v24 = vsel %vm2696_vm9, %v2680_v25, %v7565_v29 }
 0x439   : >> { %4559 = vrcp.f32 %v2779_v48  ;;  %v2798_v18 = vand.u32 2147483647, %v7835_v47  ;;  %v2800_v11 = vand.u32 2147483648, %v7835_v47  ;;  %v2813_v20 = vand.u32 2147483647, %v7899_v34  ;;  %v11267_v48 = vld [vmem:[#allocation13_spill] sm:$0xff] }
 0x43a   : >> { %4561 = vrcp.f32 %v2780_v26  ;;  %v7953_v33 = vsel %vm11256_vm2, %v7474_v46, %v2728_v58  ;;  %v7959_v61 = vsel %vm11230_vm0, %v7485_v56, %v2735_v15  ;;  %v7965_v29 = vsel %vm2690_vm1, %v7516_v50, %v2736_v23  ;;  %vm11257_vm1 = vmmov %vm11245_vm3  ;;  %v7995_v50 = vld [vmem:[%s6294_s16 + $0x148] sm:$0xff]  ;;  %v11269_v26 = vld [vmem:[#allocation9_spill] sm:$0xff] }
 0x43b   : >> { %v7971_v25 = vsel %vm2691_vm15, %v7528_v7, %v2743_v36  ;;  %vm2837_vm9 = vcmp.lt.f32.partialorder %v7929_v60, %v7655_v9  ;;  %v7979_v6 = vsel %vm2692_vm10, %v7534_v2, %v2744_v16  ;;  %v7985_v3 = vsel %vm11257_vm1, %v7540_v1, %v2751_v21 }
 0x43c   : >> { %v4556_v62 = vpop.eup %4555  ;;  %v2815_v12 = vand.u32 2147483648, %v7899_v34  ;;  %v2822_v46 = vadd.f32 1.0, %v2820_v44  ;;  %v7992_v56 = vsel %vm2694_vm5, %v7549_v57, %v2752_v24  ;;  %vm2794_vm10 = vweird.f32 %v7835_v47 }
 0x43d   : >> { %v2790_v7 = vmul.f32 %v4556_v62, %v7835_v47  ;;  %4563 = vlog2.f32 %v2821_v43  ;;  %vm7999_vm15 = vcmp.eq.f32.partialorder %v2798_v18, 8.507059e+37  ;;  %v2801_v8 = vor.u32 1.1754944e-38, %v2800_v11  ;;  %v11270_v11 = vld [vmem:[#allocation10_spill] sm:$0xff] }
 0x43e   : >> { %v4558_v2 = vpop.eup %4557  ;;  %vm2809_vm8 = vweird.f32 %v7899_v34  ;;  %vm8004_vm3 = vcmp.eq.f32.partialorder %v2813_v20, 8.507059e+37  ;;  %vm2795_vm5 = vweird.f32 %v4556_v62  ;;  %v2816_v44 = vor.u32 1.1754944e-38, %v2815_v12 }
 0x43f   : >> { %v4560_v57 = vpop.eup %4559  ;;  %v2791_v19 = vsub.f32 1.0, %v2790_v7  ;;  %v2805_v28 = vmul.f32 %v4558_v2, %v7899_v34  ;;  %4565 = vlog2.f32 %v2822_v46  ;;  %vm2838_vm7 = vcmp.lt.f32.partialorder %v7995_v50, %v7663_v13  ;;  %vm8018_vm6 = vmor %vm2794_vm10, %vm2795_vm5 }
 0x440   : >> { %v4562_v38 = vpop.eup %4561  ;;  %v2783_v43 = vmul.f32 %v4560_v57, %v7830_v37  ;;  %vm2810_vm4 = vweird.f32 %v4558_v2  ;;  %vm2839_vm12 = vcmp.lt.f32.partialorder %v7929_v60, %v7707_v31  ;;  %vm2840_vm11 = vcmp.lt.f32.partialorder %v7995_v50, %v7713_v22 }
 0x441   : >> { %v2792_v10 = vmul.f32 %v4556_v62, %v2791_v19  ;;  %v2806_v15 = vsub.f32 1.0, %v2805_v28  ;;  %vm2841_vm2 = vcmp.lt.f32.partialorder %v7929_v60, %v7719_v0  ;;  %v2784_v21 = vmul.f32 %v4562_v38, %v7833_v52  ;;  %vm8035_vm10 = vmor %vm2809_vm8, %vm2810_vm4  ;;  %v11268_v52 = vld [vmem:[#allocation11_spill] sm:$0xff] }
 0x442   : >> { %vm2843_vm1 = vcmp.lt.f32.partialorder %v7929_v60, %v7736_v40  ;;  %vm2844_vm5 = vcmp.lt.f32.partialorder %v7995_v50, %v7742_v54  ;;  %vm2845_vm0 = vcmp.lt.f32.partialorder %v7929_v60, %v11266_v59  ;;  %vm2846_vm13 = vcmp.lt.f32.partialorder %v7995_v50, %v11267_v48 }
 0x443   : >> { %v4564_v37 = vpop.eup %4563  ;;  %v2793_v47 = vadd.f32 %v4556_v62, %v2792_v10  ;;  %v2807_v32 = vmul.f32 %v4558_v2, %v2806_v15  ;;  %vm2847_vm14 = vcmp.lt.f32.partialorder %v7929_v60, %v11268_v52  ;;  %v2827_v23 = vsub.f32 0.0, %v2783_v43 }
 0x444   : >> { %vm2848_vm8 = vcmp.lt.f32.partialorder %v7995_v50, %v11269_v26  ;;  %v2824_v18 = vmul.f32 0.6931472, %v4564_v37  ;;  %vm2849_vm4 = vcmp.lt.f32.partialorder %v7929_v60, %v11270_v11  ;;  %v2855_v20 = vsel %vm2837_vm9, %v7929_v60, %v7655_v9 }
 0x445   : >> { %v2797_v58 = vsel %vm8018_vm6, %v4556_v62, %v2793_v47  ;;  %v2808_v34 = vadd.f32 %v4558_v2, %v2807_v32  ;;  %v4566_v16 = vpop.eup %4565  ;;  %v11271_v62 = vld [vmem:[#allocation15_spill] sm:$0xff]  ;;  %v2828_v7 = vsub.f32 0.0, %v2784_v21  ;;  %v2856_v1 = vsel %vm2838_vm7, %v7995_v50, %v7663_v13  ;;  %v4176_v47 = vld [vmem:[%s6272_s14 + $0x190] sm:$0xff] }
 0x446   : >> { %v2802_v24 = vsel %vm7999_vm15, %v2801_v8, %v2797_v58  ;;  %v2864_v57 = vsel %vm2840_vm11, %v7995_v50, %v7713_v22  ;;  %v2826_v30 = vmul.f32 0.6931472, %v4566_v16  ;;  %v2871_v38 = vsel %vm2841_vm2, %v7929_v60, %v7719_v0 }
 0x447   : >> { %v2803_v12 = vmul.f32 %v2802_v24, %v11271_v62  ;;  %v2812_v46 = vsel %vm8035_vm10, %v4558_v2, %v2808_v34  ;;  %v2863_v2 = vsel %vm2839_vm12, %v7929_v60, %v7707_v31  ;;  %vm11273_vm6 = vcmp.lt.f32.partialorder %v7995_v50, %v7649_v51 }
 0x448   : >> { %v2817_v8 = vsel %vm8004_vm3, %v2816_v44, %v2812_v46  ;;  %vm11272_vm3 = vcmp.lt.f32.partialorder %v7929_v60, %v7633_v5  ;;  %vm11275_vm15 = vmmov %vm11273_vm6  ;;  %v8118_v37 = vsel %vm2837_vm9, %v7655_v9, %v2863_v2  ;;  %v8124_v21 = vsel %vm2838_vm7, %v7663_v13, %v2864_v57 }
 0x449   : >> { %v2818_v19 = vmul.f32 %v2817_v8, %v7770_v41  ;;  %v2829_v28 = vmul.f32 %v2827_v23, %v2803_v12  ;;  %v8093_v44 = vsel %vm11272_vm3, %v7929_v60, %v7633_v5  ;;  %v8100_v41 = vsel %vm11273_vm6, %v7995_v50, %v7649_v51  ;;  %vm11274_vm10 = vmmov %vm11272_vm3  ;;  %v4177_v23 = vld [vmem:[%s6272_s14 + $0x198] sm:$0xff]  ;;  %v4178_v8 = vld [vmem:[%s6276_s15 + $0x190] sm:$0xff] }
 0x44a   : >> { %v8106_v43 = vsel %vm11274_vm10, %v7633_v5, %v2855_v20  ;;  %v8112_v10 = vsel %vm11275_vm15, %v7649_v51, %v2856_v1  ;;  %vm11276_vm15 = vcmp.lt.f32.partialorder %v7995_v50, %v7725_v42  ;;  %v8136_v14 = vsel %vm2839_vm12, %v7707_v31, %v2871_v38  ;;  %v4179_v38 = vld [vmem:[%s6276_s15 + $0x198] sm:$0xff] }
 0x44b   : >> { %v2830_v15 = vmul.f32 %v2828_v7, %v2818_v19  ;;  %v2831_v36 = vmul.f32 %v2829_v28, %v2824_v18  ;;  %v2872_v32 = vsel %vm11276_vm15, %v7995_v50, %v7725_v42  ;;  %v2879_v58 = vsel %vm2843_vm1, %v7929_v60, %v7736_v40  ;;  %v11277_v7 = vld [vmem:[#allocation7_spill] sm:$0xff]  ;;  %vm11279_vm3 = vmmov %vm11276_vm15 }
 0x44c   : >> { %v2880_v34 = vsel %vm2844_vm5, %v7995_v50, %v7742_v54  ;;  %v2887_v24 = vsel %vm2845_vm0, %v7929_v60, %v11266_v59  ;;  %v2888_v18 = vsel %vm2846_vm13, %v7995_v50, %v11267_v48  ;;  %v2895_v20 = vsel %vm2847_vm14, %v7929_v60, %v11268_v52  ;;  %vm11290_vm15 = vmmov %vm11279_vm3 }
 0x44d   : >> { %v2832_v16 = vmul.f32 %v2830_v15, %v2826_v30  ;;  %v2833_v62 = vmax.f32 %v2831_v36, 0.0  ;;  %v2896_v12 = vsel %vm2848_vm8, %v7995_v50, %v11269_v26  ;;  %v2903_v46 = vsel %vm2849_vm4, %v7929_v60, %v11270_v11  ;;  %v11278_v30 = vld [vmem:[#allocation8_spill] sm:$0xff] }
 0x44e   : >> { %v2918_v1 = vsub.f32 %v11277_v7, %v4176_v47  ;;  %v8180_v57 = vsel %vm2840_vm11, %v7713_v22, %v2872_v32  ;;  %v8186_v19 = vsel %vm2841_vm2, %v7719_v0, %v2879_v58  ;;  %v2919_v28 = vsub.f32 %v11278_v30, %v4177_v23  ;;  %v11288_v30 = vld [vmem:[#allocation5_spill] sm:$0xff] }
 0x44f   : >> { %v2834_v2 = vmax.f32 %v2832_v16, 0.0  ;;  %v8194_v15 = vsel %vm11279_vm3, %v7725_v42, %v2880_v34  ;;  %v8200_v36 = vsel %vm2843_vm1, %v7736_v40, %v2887_v24  ;;  %v8206_v47 = vsel %vm2844_vm5, %v7742_v54, %v2888_v18  ;;  %v11287_v16 = vld [vmem:[#allocation6_spill] sm:$0xff]  ;;  %v4184_v18 = vld [vmem:[%s6272_s14 + $0x1e0] sm:$0xff]  ;;  %v8388_v40 = vld [vmem:[%s6294_s16 + $0x190] sm:$0xff] }
 0x450   : >> { %11280 = vst [vmem:[#allocation12_spill] sm:$0xff] %v8194_v15  ;;  %v8212_v32 = vsel %vm2845_vm0, %v11266_v59, %v2895_v20  ;;  %v8218_v58 = vsel %vm2846_vm13, %v11267_v48, %v2896_v12  ;;  %vm11285_vm6 = vcmp.lt.f32.partialorder %v7995_v50, %v7827_v63  ;;  %v8229_v23 = vsel %vm2847_vm14, %v11268_v52, %v2903_v46 }
 0x451   : >> { %11281 = vst [vmem:[#allocation14_spill] sm:$0xff] %v8200_v36  ;;  %v2904_v34 = vsel %vm11285_vm6, %v7995_v50, %v7827_v63  ;;  %v8232_v24 = vsub.f32 %v11287_v16, %v4178_v8  ;;  %v2857_v20 = vsel %vm2837_vm9, %v2833_v62, %v7849_v39  ;;  %v2865_v12 = vsel %vm2839_vm12, %v2833_v62, %v7855_v49  ;;  %vm11293_vm6 = vmmov %vm11274_vm10 }
 0x452   : >> { %11282 = vst [vmem:[#allocation16_spill] sm:$0xff] %v8206_v47  ;;  %v2858_v46 = vsel %vm2838_vm7, %v2834_v2, %v7906_v55  ;;  %v2866_v8 = vsel %vm2840_vm11, %v2834_v2, %v7912_v17  ;;  %v2873_v16 = vsel %vm2841_vm2, %v2833_v62, %v7861_v27  ;;  %v8272_v47 = vsel %vm2848_vm8, %v11269_v26, %v2904_v34 }
 0x453   : >> { %11283 = vst [vmem:[#allocation13_spill] sm:$0xff] %v8212_v32  ;;  %v4180_v32 = vclamps-f32 %v2918_v1, 1.0  ;;  %v8275_v36 = vsub.f32 %v11277_v7, %v4184_v18  ;;  %vm11291_vm3 = vcmp.lt.f32.partialorder %v7995_v50, %v7649_v51  ;;  %v8293_v34 = vsel %vm2837_vm9, %v7849_v39, %v2865_v12  ;;  %vm11295_vm9 = vmmov %vm11290_vm15 }
 0x454   : >> { %11284 = vst [vmem:[#allocation11_spill] sm:$0xff] %v8218_v58  ;;  %v8244_v58 = vsub.f32 %v11288_v30, %v4179_v38  ;;  %v8262_v38 = vsel %vm11274_vm10, %v2833_v62, %v7843_v35  ;;  %v2874_v30 = vsel %vm11290_vm15, %v2834_v2, %v7918_v45  ;;  %v8281_v15 = vsel %vm11291_vm3, %v2834_v2, %v7896_v4  ;;  %vm11294_vm10 = vmmov %vm11291_vm3 }
 0x455   : >> { %11286 = vst [vmem:[#allocation9_spill] sm:$0xff] %v8229_v23  ;;  %v4181_v23 = vclamps-f32 %v2919_v28, 1.0  ;;  %v2881_v18 = vsel %vm2843_vm1, %v2833_v62, %v7936_v53  ;;  %v8309_v5 = vsel %vm2838_vm7, %v7906_v55, %v2866_v8  ;;  %v8315_v9 = vsel %vm2839_vm12, %v7855_v49, %v2873_v16 }
 0x456   : >> { %11289 = vst [vmem:[#allocation10_spill] sm:$0xff] %v8262_v38  ;;  %v8287_v38 = vsel %vm11293_vm6, %v7843_v35, %v2857_v20  ;;  %v8317_v35 = vsub.f32 %v2918_v1, %v4180_v32  ;;  %v8323_v51 = vsel %vm2840_vm11, %v7912_v17, %v2874_v30  ;;  %v2939_v13 = vand.u32 2147483647, %v8232_v24 }
 0x457   : >> { %11292 = vst [vmem:[#allocation15_spill] sm:$0xff] %v8281_v15  ;;  %v8303_v15 = vsel %vm11294_vm10, %v7896_v4, %v2858_v46  ;;  %v8325_v39 = vsub.f32 %v2919_v28, %v4181_v23  ;;  %v2940_v4 = vand.u32 2147483647, %v8244_v58  ;;  %v2882_v31 = vsel %vm2844_vm5, %v2834_v2, %v7953_v33 }
 0x458   : >> { %v8337_v49 = vsel %vm2841_vm2, %v7861_v27, %v2881_v18  ;;  %v2889_v22 = vsel %vm2845_vm0, %v2833_v62, %v7959_v61  ;;  %v2931_v55 = vand.u32 2147483647, %v8317_v35  ;;  %v2890_v17 = vsel %vm2846_vm13, %v2834_v2, %v7965_v29 }
 0x459   : >> { %v2897_v0 = vsel %vm2847_vm14, %v2833_v62, %v7971_v25  ;;  %v2932_v27 = vand.u32 2147483647, %v8325_v39  ;;  %v2941_v1 = vadd.f32 1e-08, %v2939_v13  ;;  %v2898_v30 = vsel %vm2848_vm8, %v2834_v2, %v7979_v6 }
 0x45a   : >> { %v2933_v28 = vadd.f32 1.0, %v2931_v55  ;;  %v8357_v32 = vadd.f32 1e-08, %v2940_v4  ;;  %v2973_v23 = vmul.f32 %v8232_v24, %v8232_v24  ;;  %v8365_v16 = vsel %vm11295_vm9, %v7918_v45, %v2882_v31  ;;  %v11301_v4 = vld [vmem:[#allocation12_spill] sm:$0xff]  ;;  %v11302_v31 = vld [vmem:[#allocation14_spill] sm:$0xff] }
 0x45b   : >> { %v8371_v20 = vsel %vm2843_vm1, %v7936_v53, %v2889_v22  ;;  %v2905_v12 = vsel %vm2849_vm4, %v2833_v62, %v7985_v3  ;;  %4567 = vrcp.f32 %v2941_v1  ;;  %v8381_v46 = vsel %vm2844_vm5, %v7953_v33, %v2890_v17 }
 0x45c   : >> { %vm11296_vm7 = vcmp.lt.f32.partialorder %v7995_v50, %v7827_v63  ;;  %v2934_v45 = vadd.f32 1.0, %v2932_v27  ;;  %v2974_v53 = vmul.f32 %v8244_v58, %v8244_v58  ;;  %v8396_v3 = vsel %vm2845_vm0, %v7959_v61, %v2897_v0  ;;  %v8405_v63 = vld [vmem:[%s6294_s16 + $0x198] sm:$0xff]  ;;  %v11303_v0 = vld [vmem:[#allocation16_spill] sm:$0xff]  ;;  %v11304_v27 = vld [vmem:[#allocation13_spill] sm:$0xff] }
 0x45d   : >> { %v2906_v42 = vsel %vm11296_vm7, %v2834_v2, %v7992_v56  ;;  %v8402_v54 = vsel %vm2846_vm13, %v7965_v29, %v2898_v30  ;;  %4569 = vrcp.f32 %v2933_v28  ;;  %v2952_v33 = vand.u32 2147483647, %v2941_v1 }
 0x45e   : >> { %v8411_v56 = vsel %vm2847_vm14, %v7971_v25, %v2905_v12  ;;  %v2954_v11 = vand.u32 2147483648, %v2941_v1  ;;  %4571 = vrcp.f32 %v8357_v32  ;;  %v2975_v61 = vadd.f32 1.0, %v2973_v23 }
 0x45f   : >> { %v8418_v29 = vsel %vm2848_vm8, %v7979_v6, %v2906_v42  ;;  %v2967_v59 = vand.u32 2147483647, %v8357_v32  ;;  %v2969_v48 = vand.u32 2147483648, %v8357_v32  ;;  %vm2989_vm13 = vcmp.lt.f32.partialorder %v8388_v40, %v8093_v44 }
 0x460   : >> { %4573 = vrcp.f32 %v2934_v45  ;;  %v2976_v60 = vadd.f32 1.0, %v2974_v53  ;;  %vm2990_vm14 = vcmp.lt.f32.partialorder %v8405_v63, %v8100_v41  ;;  %vm2991_vm12 = vcmp.lt.f32.partialorder %v8388_v40, %v8106_v43  ;;  %v11308_v53 = vld [vmem:[#allocation9_spill] sm:$0xff] }
 0x461   : >> { %v4568_v25 = vpop.eup %4567  ;;  %vm2948_vm11 = vweird.f32 %v2941_v1  ;;  %vm8428_vm2 = vcmp.eq.f32.partialorder %v2952_v33, 8.507059e+37  ;;  %vm2963_vm0 = vweird.f32 %v8357_v32  ;;  %vm2992_vm1 = vcmp.lt.f32.partialorder %v8405_v63, %v8112_v10 }
 0x462   : >> { %v2944_v50 = vmul.f32 %v4568_v25, %v2941_v1  ;;  %v2955_v52 = vor.u32 1.1754944e-38, %v2954_v11  ;;  %4575 = vlog2.f32 %v2975_v61  ;;  %vm2993_vm5 = vcmp.lt.f32.partialorder %v8388_v40, %v8118_v37 }
 0x463   : >> { %v4570_v26 = vpop.eup %4569  ;;  %vm8437_vm8 = vcmp.eq.f32.partialorder %v2967_v59, 8.507059e+37  ;;  %v2970_v2 = vor.u32 1.1754944e-38, %v2969_v48  ;;  %vm2994_vm4 = vcmp.lt.f32.partialorder %v8405_v63, %v8124_v21  ;;  %vm2949_vm3 = vweird.f32 %v4568_v25 }
 0x464   : >> { %v4572_v8 = vpop.eup %4571  ;;  %v2945_v18 = vsub.f32 1.0, %v2944_v50  ;;  %4577 = vlog2.f32 %v2976_v60  ;;  %v2937_v55 = vmul.f32 %v4570_v26, %v8317_v35  ;;  %vm3000_vm15 = vcmp.lt.f32.partialorder %v8405_v63, %v11303_v0  ;;  %vm8465_vm9 = vmor %vm2948_vm11, %vm2949_vm3  ;;  %v11307_v35 = vld [vmem:[#allocation11_spill] sm:$0xff] }
 0x465   : >> { %v2959_v13 = vmul.f32 %v4572_v8, %v8357_v32  ;;  %v3009_v30 = vsel %vm2991_vm12, %v8388_v40, %v8106_v43  ;;  %vm2964_vm7 = vweird.f32 %v4572_v8  ;;  %vm3002_vm10 = vcmp.lt.f32.partialorder %v8405_v63, %v11307_v35 }
 0x466   : >> { %v4574_v22 = vpop.eup %4573  ;;  %v2946_v17 = vmul.f32 %v4568_v25, %v2945_v18  ;;  %v3010_v12 = vsel %vm2992_vm1, %v8405_v63, %v8112_v10  ;;  %vm3003_vm6 = vcmp.lt.f32.partialorder %v8388_v40, %v11308_v53  ;;  %vm3004_vm11 = vcmp.lt.f32.partialorder %v8405_v63, %v8272_v47  ;;  %vm8505_vm3 = vmor %vm2963_vm0, %vm2964_vm7 }
 0x467   : >> { %v2960_v23 = vsub.f32 1.0, %v2959_v13  ;;  %v8485_v1 = vsel %vm2989_vm13, %v8388_v40, %v8093_v44  ;;  %v2938_v33 = vmul.f32 %v4574_v22, %v8325_v39  ;;  %v8493_v61 = vsel %vm2990_vm14, %v8405_v63, %v8100_v41 }
 0x468   : >> { %v4576_v42 = vpop.eup %4575  ;;  %v2947_v45 = vadd.f32 %v4568_v25, %v2946_v17  ;;  %v8499_v59 = vsel %vm2989_vm13, %v8093_v44, %v3009_v30  ;;  %v2981_v50 = vsub.f32 0.0, %v2937_v55  ;;  %v8513_v26 = vsel %vm2990_vm14, %v8100_v41, %v3010_v12  ;;  %v4185_v12 = vld [vmem:[%s6272_s14 + $0x1e8] sm:$0xff] }
 0x469   : >> { %v2961_v11 = vmul.f32 %v4572_v8, %v2960_v23  ;;  %v2978_v13 = vmul.f32 0.6931472, %v4576_v42  ;;  %v3018_v22 = vsel %vm2994_vm4, %v8405_v63, %v8124_v21  ;;  %vm11311_vm0 = vcmp.lt.f32.partialorder %v8388_v40, %v8136_v14  ;;  %v4186_v42 = vld [vmem:[%s6276_s15 + $0x1e0] sm:$0xff] }
 0x46a   : >> { %v4578_v48 = vpop.eup %4577  ;;  %v2951_v60 = vsel %vm8465_vm9, %v4568_v25, %v2947_v45  ;;  %v3017_v25 = vsel %vm2993_vm5, %v8388_v40, %v8118_v37  ;;  %v3025_v17 = vsel %vm11311_vm0, %v8388_v40, %v8136_v14  ;;  %vm11313_vm9 = vcmp.lt.f32.partialorder %v8388_v40, %v8186_v19 }
 0x46b   : >> { %v2956_v32 = vsel %vm8428_vm2, %v2955_v52, %v2951_v60  ;;  %v2962_v18 = vadd.f32 %v4572_v8, %v2961_v11  ;;  %vm11312_vm2 = vcmp.lt.f32.partialorder %v8405_v63, %v8180_v57  ;;  %v3033_v52 = vsel %vm11313_vm9, %v8388_v40, %v8186_v19 }
 0x46c   : >> { %v2957_v55 = vmul.f32 %v2956_v32, %v8232_v24  ;;  %v3026_v6 = vsel %vm11312_vm2, %v8405_v63, %v8180_v57  ;;  %v2980_v30 = vmul.f32 0.6931472, %v4578_v48  ;;  %v2982_v28 = vsub.f32 0.0, %v2938_v33  ;;  %v4187_v32 = vld [vmem:[%s6276_s15 + $0x1e8] sm:$0xff] }
 0x46d   : >> { %v2966_v24 = vsel %vm8505_vm3, %v4572_v8, %v2962_v18  ;;  %v8549_v23 = vsel %vm2991_vm12, %v8106_v43, %v3017_v25  ;;  %v8559_v8 = vsel %vm2992_vm1, %v8112_v10, %v3018_v22  ;;  %vm11314_vm7 = vcmp.lt.f32.partialorder %v8405_v63, %v11301_v4  ;;  %v11318_v18 = vld [vmem:[#allocation6_spill] sm:$0xff] }
 0x46e   : >> { %v2971_v45 = vsel %vm8437_vm8, %v2970_v2, %v2966_v24  ;;  %v2983_v11 = vmul.f32 %v2981_v50, %v2957_v55  ;;  %v3034_v33 = vsel %vm11314_vm7, %v8405_v63, %v11301_v4  ;;  %v8571_v62 = vsel %vm2993_vm5, %v8118_v37, %v3025_v17  ;;  %vm11315_vm8 = vmmov %vm11311_vm0  ;;  %v11317_v50 = vld [vmem:[#allocation8_spill] sm:$0xff] }
 0x46f   : >> { %v2972_v48 = vmul.f32 %v2971_v45, %v8244_v58  ;;  %v8577_v2 = vsel %vm2994_vm4, %v8124_v21, %v3026_v6  ;;  %v8583_v60 = vsel %vm11315_vm8, %v8136_v14, %v3033_v52  ;;  %vm11316_vm3 = vcmp.lt.f32.partialorder %v8388_v40, %v11302_v31  ;;  %vm11320_vm0 = vmmov %vm11312_vm2 }
 0x470   : >> { %v2985_v39 = vmul.f32 %v2983_v11, %v2978_v13  ;;  %v3041_v58 = vsel %vm11316_vm3, %v8388_v40, %v11302_v31  ;;  %v3073_v25 = vsub.f32 %v11317_v50, %v4185_v12  ;;  %v8593_v22 = vsub.f32 %v11318_v18, %v4186_v42  ;;  %v11323_v11 = vld [vmem:[#allocation5_spill] sm:$0xff]  ;;  %vm11325_vm8 = vmmov %vm11316_vm3 }
 0x471   : >> { %v2984_v55 = vmul.f32 %v2982_v28, %v2972_v48  ;;  %v8599_v17 = vsel %vm11320_vm0, %v8180_v57, %v3034_v33  ;;  %v3042_v13 = vsel %vm3000_vm15, %v8405_v63, %v11303_v0  ;;  %vm11321_vm2 = vcmp.lt.f32.partialorder %v8388_v40, %v11304_v27  ;;  %v4192_v50 = vld [vmem:[%s6272_s14 + $0x230] sm:$0xff] }
 0x472   : >> { %11319 = vst [vmem:[#allocation12_spill] sm:$0xff] %v8593_v22  ;;  %v3049_v6 = vsel %vm11321_vm2, %v8388_v40, %v11304_v27  ;;  %v2987_v52 = vmax.f32 %v2985_v39, 0.0  ;;  %v3050_v24 = vsel %vm3002_vm10, %v8405_v63, %v11307_v35  ;;  %v3057_v28 = vsel %vm3003_vm6, %v8388_v40, %v11308_v53  ;;  %vm11328_vm3 = vmmov %vm11321_vm2 }
 0x473   : >> { %v3058_v12 = vsel %vm3004_vm11, %v8405_v63, %v8272_v47  ;;  %v2986_v42 = vmul.f32 %v2984_v55, %v2980_v30  ;;  %v8630_v45 = vsel %vm11313_vm9, %v8186_v19, %v3041_v58  ;;  %v8633_v33 = vsub.f32 %v11323_v11, %v4187_v32  ;;  %vm11333_vm2 = vmmov %vm11313_vm9  ;;  %v8829_v19 = vld [vmem:[%s6294_s16 + $0x1e0] sm:$0xff] }
 0x474   : >> { %11322 = vst [vmem:[#allocation14_spill] sm:$0xff] %v8630_v45  ;;  %v4188_v48 = vclamps-f32 %v8275_v36, 1.0  ;;  %v8640_v39 = vsel %vm11314_vm7, %v11301_v4, %v3042_v13  ;;  %v4189_v18 = vclamps-f32 %v3073_v25, 1.0  ;;  %v3093_v30 = vand.u32 2147483647, %v8593_v22  ;;  %vm11339_vm9 = vmmov %vm11314_vm7  ;;  %v8844_v4 = vld [vmem:[%s6294_s16 + $0x1e8] sm:$0xff] }
 0x475   : >> { %11324 = vst [vmem:[#allocation16_spill] sm:$0xff] %v8640_v39  ;;  %v3127_v55 = vmul.f32 %v8593_v22, %v8593_v22  ;;  %v8650_v58 = vsel %vm11325_vm8, %v11302_v31, %v3049_v6  ;;  %v8656_v32 = vsel %vm3000_vm15, %v11303_v0, %v3050_v24  ;;  %v8662_v13 = vsel %vm11328_vm3, %v11304_v27, %v3057_v28 }
 0x476   : >> { %11326 = vst [vmem:[#allocation13_spill] sm:$0xff] %v8650_v58  ;;  %v8668_v11 = vsel %vm3002_vm10, %v11307_v35, %v3058_v12  ;;  %v2988_v6 = vmax.f32 %v2986_v42, 0.0  ;;  %v3011_v22 = vsel %vm2991_vm12, %v2987_v52, %v8287_v38  ;;  %v3019_v24 = vsel %vm2993_vm5, %v2987_v52, %v8293_v34 }
 0x477   : >> { %11327 = vst [vmem:[#allocation11_spill] sm:$0xff] %v8656_v32  ;;  %vm11331_vm0 = vcmp.lt.f32.partialorder %v8388_v40, %v8136_v14  ;;  %v3094_v12 = vand.u32 2147483647, %v8633_v33  ;;  %v3128_v42 = vmul.f32 %v8633_v33, %v8633_v33  ;;  %v11332_v32 = vld [vmem:[#allocation10_spill] sm:$0xff]  ;;  %v8697_v39 = vsub.f32 %v3073_v25, %v4189_v18 }
 0x478   : >> { %11329 = vst [vmem:[#allocation9_spill] sm:$0xff] %v8662_v13  ;;  %v3027_v28 = vsel %vm11331_vm0, %v2987_v52, %v8315_v9  ;;  %v8683_v13 = vsub.f32 %v8275_v36, %v4188_v48  ;;  %v8695_v58 = vsel %vm2989_vm13, %v2987_v52, %v11332_v32  ;;  %v8699_v45 = vadd.f32 1e-08, %v3093_v30 }
 0x479   : >> { %11330 = vst [vmem:[#allocation17_spill] sm:$0xff] %v8668_v11  ;;  %v8689_v11 = vsub.f32 %v11277_v7, %v4192_v50  ;;  %v3129_v36 = vadd.f32 1.0, %v3127_v55  ;;  %v8705_v48 = vsel %vm2989_vm13, %v11332_v32, %v3011_v22  ;;  %v8711_v50 = vsel %vm2991_vm12, %v8287_v38, %v3019_v24  ;;  %vm11335_vm12 = vmmov %vm11325_vm8 }
 0x47a   : >> { %v8717_v25 = vsel %vm2993_vm5, %v8293_v34, %v3027_v28  ;;  %v3035_v18 = vsel %vm11333_vm2, %v2987_v52, %v8337_v49  ;;  %v3012_v44 = vsel %vm2992_vm1, %v2988_v6, %v8303_v15  ;;  %v3020_v43 = vsel %vm2994_vm4, %v2988_v6, %v8309_v5  ;;  %v11336_v34 = vld [vmem:[#allocation15_spill] sm:$0xff]  ;;  %vm11338_vm5 = vmmov %vm11328_vm3 }
 0x47b   : >> { %vm11334_vm13 = vcmp.lt.f32.partialorder %v8405_v63, %v8180_v57  ;;  %v3043_v38 = vsel %vm11335_vm12, %v2987_v52, %v8371_v20  ;;  %v8743_v22 = vsel %vm2990_vm14, %v2988_v6, %v11336_v34  ;;  %v3051_v30 = vsel %vm11338_vm5, %v2987_v52, %v8396_v3 }
 0x47c   : >> { %v3028_v37 = vsel %vm11334_vm13, %v2988_v6, %v8323_v51  ;;  %11337 = vst [vmem:[#allocation10_spill] sm:$0xff] %v8743_v22  ;;  %v3059_v55 = vsel %vm3003_vm6, %v2987_v52, %v8411_v56  ;;  %v3085_v32 = vand.u32 2147483647, %v8683_v13  ;;  %v3036_v24 = vsel %vm11339_vm9, %v2988_v6, %v8365_v16  ;;  %vm11343_vm6 = vmmov %vm11314_vm7 }
 0x47d   : >> { %v3086_v28 = vand.u32 2147483647, %v8697_v39  ;;  %v3096_v7 = vadd.f32 1e-08, %v3094_v12  ;;  %4579 = vrcp.f32 %v8699_v45  ;;  %v8764_v22 = vsel %vm2990_vm14, %v11336_v34, %v3012_v44  ;;  %vm11340_vm14 = vmmov %vm11331_vm0 }
 0x47e   : >> { %v8770_v56 = vsel %vm2992_vm1, %v8303_v15, %v3020_v43  ;;  %v8776_v53 = vsel %vm2994_vm4, %v8309_v5, %v3028_v37  ;;  %v3087_v52 = vadd.f32 1.0, %v3085_v32  ;;  %v3044_v41 = vsel %vm3000_vm15, %v2988_v6, %v8381_v46  ;;  %vm11341_vm1 = vmmov %vm11334_vm13  ;;  %v11354_v32 = vld [vmem:[#allocation14_spill] sm:$0xff] }
 0x47f   : >> { %v3052_v10 = vsel %vm3002_vm10, %v2988_v6, %v8402_v54  ;;  %v3088_v15 = vadd.f32 1.0, %v3086_v28  ;;  %4581 = vrcp.f32 %v3096_v7  ;;  %v8790_v21 = vsel %vm11340_vm14, %v8315_v9, %v3035_v18  ;;  %vm11342_vm4 = vmmov %vm11333_vm2 }
 0x480   : >> { %v8796_v5 = vsel %vm11341_vm1, %v8323_v51, %v3036_v24  ;;  %v3060_v12 = vsel %vm3004_vm11, %v2988_v6, %v8418_v29  ;;  %4583 = vrcp.f32 %v3087_v52  ;;  %v3106_v44 = vand.u32 2147483647, %v8699_v45  ;;  %vm11344_vm11 = vmmov %vm11325_vm8  ;;  %v11355_v24 = vld [vmem:[#allocation16_spill] sm:$0xff] }
 0x481   : >> { %4585 = vrcp.f32 %v3088_v15  ;;  %v3108_v14 = vand.u32 2147483648, %v8699_v45  ;;  %v3121_v9 = vand.u32 2147483647, %v3096_v7  ;;  %v8808_v57 = vsel %vm11342_vm4, %v8337_v49, %v3043_v38  ;;  %vm11345_vm7 = vmmov %vm11328_vm3 }
 0x482   : >> { %v8814_v51 = vsel %vm11343_vm6, %v8365_v16, %v3044_v41  ;;  %v8820_v47 = vsel %vm11344_vm11, %v8371_v20, %v3051_v30  ;;  %v8826_v29 = vsel %vm3000_vm15, %v8381_v46, %v3052_v10  ;;  %v8835_v16 = vsel %vm11345_vm7, %v8396_v3, %v3059_v55  ;;  %v11357_v41 = vld [vmem:[#allocation11_spill] sm:$0xff] }
 0x483   : >> { %v4580_v49 = vpop.eup %4579  ;;  %v8841_v20 = vsel %vm3002_vm10, %v8402_v54, %v3060_v12  ;;  %v3123_v31 = vand.u32 2147483648, %v3096_v7  ;;  %v3130_v46 = vadd.f32 1.0, %v3128_v42  ;;  %vm3102_vm15 = vweird.f32 %v8699_v45 }
 0x484   : >> { %v3098_v0 = vmul.f32 %v4580_v49, %v8699_v45  ;;  %vm3117_vm8 = vweird.f32 %v3096_v7  ;;  %4587 = vlog2.f32 %v3129_v36  ;;  %vm8848_vm3 = vcmp.eq.f32.partialorder %v3106_v44, 8.507059e+37 }
 0x485   : >> { %v4582_v6 = vpop.eup %4581  ;;  %v3109_v3 = vor.u32 1.1754944e-38, %v3108_v14  ;;  %vm8852_vm0 = vcmp.eq.f32.partialorder %v3121_v9, 8.507059e+37  ;;  %vm3143_vm10 = vcmp.lt.f32.partialorder %v8829_v19, %v8485_v1  ;;  %vm3103_vm2 = vweird.f32 %v4580_v49  ;;  %v11358_v9 = vld [vmem:[#allocation12_spill] sm:$0xff] }
 0x486   : >> { %v4584_v54 = vpop.eup %4583  ;;  %v3099_v27 = vsub.f32 1.0, %v3098_v0  ;;  %v3113_v35 = vmul.f32 %v4582_v6, %v3096_v7  ;;  %vm3144_vm13 = vcmp.lt.f32.partialorder %v8844_v4, %v8493_v61  ;;  %v3124_v36 = vor.u32 1.1754944e-38, %v3123_v31  ;;  %vm8867_vm14 = vmor %vm3102_vm15, %vm3103_vm2 }
 0x487   : >> { %v4586_v42 = vpop.eup %4585  ;;  %4589 = vlog2.f32 %v3130_v46  ;;  %vm3145_vm12 = vcmp.lt.f32.partialorder %v8829_v19, %v8499_v59  ;;  %vm3146_vm5 = vcmp.lt.f32.partialorder %v8844_v4, %v8513_v26  ;;  %v3091_v18 = vmul.f32 %v4584_v54, %v8683_v13  ;;  %v11360_v54 = vld [vmem:[#allocation17_spill] sm:$0xff] }
 0x488   : >> { %v3100_v43 = vmul.f32 %v4580_v49, %v3099_v27  ;;  %v3114_v37 = vsub.f32 1.0, %v3113_v35  ;;  %vm3118_vm9 = vweird.f32 %v4582_v6  ;;  %vm3147_vm1 = vcmp.lt.f32.partialorder %v8829_v19, %v8549_v23 }
 0x489   : >> { %v3092_v34 = vmul.f32 %v4586_v42, %v8697_v39  ;;  %vm3151_vm7 = vcmp.lt.f32.partialorder %v8829_v19, %v8583_v60  ;;  %vm8883_vm15 = vmor %vm3117_vm8, %vm3118_vm9  ;;  %vm3152_vm2 = vcmp.lt.f32.partialorder %v8844_v4, %v8599_v17  ;;  %vm3153_vm6 = vcmp.lt.f32.partialorder %v8829_v19, %v11354_v32  ;;  %v11356_v39 = vld [vmem:[#allocation13_spill] sm:$0xff] }
 0x48a   : >> { %v4588_v13 = vpop.eup %4587  ;;  %v3101_v45 = vadd.f32 %v4580_v49, %v3100_v43  ;;  %v3115_v30 = vmul.f32 %v4582_v6, %v3114_v37  ;;  %vm3154_vm11 = vcmp.lt.f32.partialorder %v8844_v4, %v11355_v24  ;;  %vm3155_vm4 = vcmp.lt.f32.partialorder %v8829_v19, %v11356_v39 }
 0x48b   : >> { %v3135_v52 = vsub.f32 0.0, %v3091_v18  ;;  %vm3156_vm8 = vcmp.lt.f32.partialorder %v8844_v4, %v11357_v41  ;;  %v3132_v12 = vmul.f32 0.6931472, %v4588_v13  ;;  %v3163_v44 = vsel %vm3145_vm12, %v8829_v19, %v8499_v59 }
 0x48c   : >> { %v3105_v28 = vsel %vm8867_vm14, %v4580_v49, %v3101_v45  ;;  %v3116_v7 = vadd.f32 %v4582_v6, %v3115_v30  ;;  %v3164_v14 = vsel %vm3146_vm5, %v8844_v4, %v8513_v26  ;;  %v3136_v46 = vsub.f32 0.0, %v3092_v34  ;;  %v4193_v45 = vld [vmem:[%s6272_s14 + $0x238] sm:$0xff] }
 0x48d   : >> { %v4590_v10 = vpop.eup %4589  ;;  %v3110_v15 = vsel %vm8848_vm3, %v3109_v3, %v3105_v28  ;;  %v3171_v0 = vsel %vm3147_vm1, %v8829_v19, %v8549_v23  ;;  %v11359_v3 = vld [vmem:[#allocation9_spill] sm:$0xff]  ;;  %vm3158_vm9 = vcmp.lt.f32.partialorder %v8844_v4, %v11360_v54  ;;  %v8938_v42 = vsel %vm3144_vm13, %v8844_v4, %v8493_v61 }
 0x48e   : >> { %v3111_v49 = vmul.f32 %v3110_v15, %v11358_v9  ;;  %v3120_v31 = vsel %vm8883_vm15, %v4582_v6, %v3116_v7  ;;  %vm3157_vm3 = vcmp.lt.f32.partialorder %v8829_v19, %v11359_v3  ;;  %v8930_v6 = vsel %vm3143_vm10, %v8829_v19, %v8485_v1 }
 0x48f   : >> { %v3125_v40 = vsel %vm8852_vm0, %v3124_v36, %v3120_v31  ;;  %v3134_v35 = vmul.f32 0.6931472, %v4590_v10  ;;  %v8944_v36 = vsel %vm3143_vm10, %v8485_v1, %v3163_v44  ;;  %vm11361_vm0 = vcmp.lt.f32.partialorder %v8844_v4, %v8559_v8  ;;  %v11364_v31 = vld [vmem:[#allocation8_spill] sm:$0xff] }
 0x490   : >> { %v3126_v27 = vmul.f32 %v3125_v40, %v8633_v33  ;;  %v3137_v63 = vmul.f32 %v3135_v52, %v3111_v49  ;;  %v8950_v33 = vsel %vm3144_vm13, %v8493_v61, %v3164_v14  ;;  %v3172_v18 = vsel %vm11361_vm0, %v8844_v4, %v8559_v8  ;;  %v4194_v52 = vld [vmem:[%s6276_s15 + $0x230] sm:$0xff] }
 0x491   : >> { %v8961_v43 = vsel %vm3145_vm12, %v8499_v59, %v3171_v0  ;;  %vm11362_vm14 = vcmp.lt.f32.partialorder %v8829_v19, %v8571_v62  ;;  %vm11363_vm15 = vcmp.lt.f32.partialorder %v8844_v4, %v8577_v2  ;;  %v3187_v30 = vsel %vm3151_vm7, %v8829_v19, %v8583_v60  ;;  %v4195_v0 = vld [vmem:[%s6276_s15 + $0x238] sm:$0xff] }
 0x492   : >> { %v3138_v37 = vmul.f32 %v3136_v46, %v3126_v27  ;;  %v3139_v38 = vmul.f32 %v3137_v63, %v3132_v12  ;;  %v3179_v13 = vsel %vm11362_vm14, %v8829_v19, %v8571_v62  ;;  %v3180_v34 = vsel %vm11363_vm15, %v8844_v4, %v8577_v2  ;;  %v11366_v63 = vld [vmem:[#allocation6_spill] sm:$0xff] }
 0x493   : >> { %v3188_v55 = vsel %vm3152_vm2, %v8844_v4, %v8599_v17  ;;  %v3195_v28 = vsel %vm3153_vm6, %v8829_v19, %v11354_v32  ;;  %v3196_v7 = vsel %vm3154_vm11, %v8844_v4, %v11355_v24  ;;  %v3203_v12 = vsel %vm3155_vm4, %v8829_v19, %v11356_v39 }
 0x494   : >> { %v3140_v10 = vmul.f32 %v3138_v37, %v3134_v35  ;;  %v3141_v15 = vmax.f32 %v3139_v38, 0.0  ;;  %v3204_v44 = vsel %vm3156_vm8, %v8844_v4, %v11357_v41  ;;  %v9009_v14 = vsel %vm3146_vm5, %v8513_v26, %v3172_v18 }
 0x495   : >> { %v9015_v9 = vsel %vm3147_vm1, %v8549_v23, %v3179_v13  ;;  %v9021_v49 = vsel %vm11361_vm0, %v8559_v8, %v3180_v34  ;;  %v3227_v46 = vsub.f32 %v11364_v31, %v4193_v45  ;;  %v9029_v27 = vsel %vm11362_vm14, %v8571_v62, %v3187_v30 }
 0x496   : >> { %v3142_v40 = vmax.f32 %v3140_v10, 0.0  ;;  %v9035_v35 = vsel %vm11363_vm15, %v8577_v2, %v3188_v55  ;;  %v9038_v18 = vsub.f32 %v11366_v63, %v4194_v52  ;;  %v9044_v37 = vsel %vm3151_vm7, %v8583_v60, %v3195_v28  ;;  %v11371_v28 = vld [vmem:[#allocation5_spill] sm:$0xff] }
 0x497   : >> { %11365 = vst [vmem:[#allocation15_spill] sm:$0xff] %v9035_v35  ;;  %v9050_v38 = vsel %vm3152_vm2, %v8599_v17, %v3196_v7  ;;  %v9056_v13 = vsel %vm3153_vm6, %v11354_v32, %v3203_v12  ;;  %v9062_v34 = vsel %vm3154_vm11, %v11355_v24, %v3204_v44  ;;  %v3165_v45 = vsel %vm3145_vm12, %v3141_v15, %v8705_v48  ;;  %v11373_v35 = vld [vmem:[#allocation10_spill] sm:$0xff] }
 0x498   : >> { %11367 = vst [vmem:[#allocation14_spill] sm:$0xff] %v9044_v37  ;;  %v3211_v30 = vsel %vm3157_vm3, %v8829_v19, %v11359_v3  ;;  %v3212_v55 = vsel %vm3158_vm9, %v8844_v4, %v11360_v54  ;;  %v9079_v7 = vsub.f32 %v11371_v28, %v4195_v0  ;;  %v3166_v52 = vsel %vm3146_vm5, %v3142_v40, %v8764_v22 }
 0x499   : >> { %11368 = vst [vmem:[#allocation16_spill] sm:$0xff] %v9050_v38  ;;  %v3173_v10 = vsel %vm3147_vm1, %v3141_v15, %v8711_v50  ;;  %v4196_v12 = vclamps-f32 %v8689_v11, 1.0  ;;  %v4197_v44 = vclamps-f32 %v3227_v46, 1.0  ;;  %v3174_v63 = vsel %vm11361_vm0, %v3142_v40, %v8770_v56 }
 0x49a   : >> { %11369 = vst [vmem:[#allocation13_spill] sm:$0xff] %v9056_v13  ;;  %v3181_v0 = vsel %vm11362_vm14, %v3141_v15, %v8717_v25  ;;  %v3182_v28 = vsel %vm11363_vm15, %v3142_v40, %v8776_v53  ;;  %v3247_v31 = vand.u32 2147483647, %v9038_v18  ;;  %v9113_v13 = vsel %vm3143_vm10, %v8695_v58, %v3165_v45 }
 0x49b   : >> { %11370 = vst [vmem:[#allocation11_spill] sm:$0xff] %v9062_v34  ;;  %v9107_v34 = vsel %vm3143_vm10, %v3141_v15, %v8695_v58  ;;  %v9119_v38 = vsel %vm3155_vm4, %v11356_v39, %v3211_v30  ;;  %v9125_v37 = vsel %vm3156_vm8, %v11357_v41, %v3212_v55  ;;  %v9137_v1 = vsel %vm3144_vm13, %v11373_v35, %v3166_v52  ;;  %vm11374_vm10 = vmmov %vm11361_vm0 }
 0x49c   : >> { %11372 = vst [vmem:[#allocation12_spill] sm:$0xff] %v9107_v34  ;;  %v9131_v34 = vsel %vm3144_vm13, %v3142_v40, %v11373_v35  ;;  %v9143_v58 = vsel %vm3145_vm12, %v8705_v48, %v3173_v10  ;;  %v3189_v45 = vsel %vm3151_vm7, %v3141_v15, %v8790_v21  ;;  %v9153_v30 = vsel %vm3146_vm5, %v8764_v22, %v3174_v63  ;;  %vm11375_vm13 = vmmov %vm11362_vm14 }
 0x49d   : >> { %v9159_v61 = vsel %vm3147_vm1, %v8711_v50, %v3181_v0  ;;  %v9165_v59 = vsel %vm11374_vm10, %v8770_v56, %v3182_v28  ;;  %v3237_v48 = vsub.f32 %v8689_v11, %v4196_v12  ;;  %v3190_v26 = vsel %vm3152_vm2, %v3142_v40, %v8796_v5  ;;  %vm11376_vm12 = vmmov %vm11363_vm15  ;;  %v9220_v0 = vld [vmem:[%s6294_s16 + $0x230] sm:$0xff] }
 0x49e   : >> { %v9172_v22 = vsub.f32 %v3227_v46, %v4197_v44  ;;  %v3248_v35 = vand.u32 2147483647, %v9079_v7  ;;  %v3249_v23 = vadd.f32 1e-08, %v3247_v31  ;;  %v9179_v50 = vsel %vm11375_vm13, %v8717_v25, %v3189_v45  ;;  %v9223_v45 = vld [vmem:[%s6294_s16 + $0x238] sm:$0xff] }
 0x49f   : >> { %v3197_v8 = vsel %vm3153_vm6, %v3141_v15, %v8808_v57  ;;  %v3239_v11 = vand.u32 2147483647, %v3237_v48  ;;  %v3281_v56 = vmul.f32 %v9038_v18, %v9038_v18  ;;  %v3198_v31 = vsel %vm3154_vm11, %v3142_v40, %v8814_v51 }
 0x4a0   : >> { %v3240_v46 = vand.u32 2147483647, %v9172_v22  ;;  %v9192_v62 = vadd.f32 1e-08, %v3248_v35  ;;  %4591 = vrcp.f32 %v3249_v23  ;;  %v9198_v25 = vsel %vm11376_vm12, %v8776_v53, %v3190_v26 }
 0x4a1   : >> { %v3205_v63 = vsel %vm3155_vm4, %v3141_v15, %v8820_v47  ;;  %v3206_v55 = vsel %vm3156_vm8, %v3142_v40, %v8826_v29  ;;  %v3241_v28 = vadd.f32 1.0, %v3239_v11  ;;  %v3213_v52 = vsel %vm3157_vm3, %v3141_v15, %v8835_v16 }
 0x4a2   : >> { %v3242_v10 = vadd.f32 1.0, %v3240_v46  ;;  %4593 = vrcp.f32 %v9192_v62  ;;  %v3282_v2 = vmul.f32 %v9079_v7, %v9079_v7  ;;  %v3214_v53 = vsel %vm3158_vm9, %v3142_v40, %v8841_v20  ;;  %v11383_v46 = vld [vmem:[#allocation15_spill] sm:$0xff] }
 0x4a3   : >> { %4595 = vrcp.f32 %v3241_v28  ;;  %v3260_v12 = vand.u32 2147483647, %v3249_v23  ;;  %v3283_v44 = vadd.f32 1.0, %v3281_v56  ;;  %v3262_v16 = vand.u32 2147483648, %v3249_v23  ;;  %v11384_v28 = vld [vmem:[#allocation14_spill] sm:$0xff] }
 0x4a4   : >> { %4597 = vrcp.f32 %v3242_v10  ;;  %v3275_v3 = vand.u32 2147483647, %v9192_v62  ;;  %v3277_v15 = vand.u32 2147483648, %v9192_v62  ;;  %v9231_v26 = vsel %vm3151_vm7, %v8790_v21, %v3197_v8  ;;  %v11389_v10 = vld [vmem:[#allocation11_spill] sm:$0xff] }
 0x4a5   : >> { %v9237_v20 = vsel %vm3152_vm2, %v8796_v5, %v3198_v31  ;;  %v9243_v54 = vsel %vm3153_vm6, %v8808_v57, %v3205_v63  ;;  %v9249_v40 = vsel %vm3154_vm11, %v8814_v51, %v3206_v55  ;;  %v9255_v17 = vsel %vm3155_vm4, %v8820_v47, %v3213_v52  ;;  %v11388_v52 = vld [vmem:[#allocation13_spill] sm:$0xff] }
 0x4a6   : >> { %v4592_v60 = vpop.eup %4591  ;;  %v9261_v21 = vsel %vm3156_vm8, %v8826_v29, %v3214_v53  ;;  %vm3256_vm5 = vweird.f32 %v3249_v23  ;;  %v3284_v5 = vadd.f32 1.0, %v3282_v2  ;;  %vm9263_vm1 = vcmp.eq.f32.partialorder %v3260_v12, 8.507059e+37 }
 0x4a7   : >> { %v3252_v57 = vmul.f32 %v4592_v60, %v3249_v23  ;;  %vm3271_vm6 = vweird.f32 %v9192_v62  ;;  %4599 = vlog2.f32 %v3283_v44  ;;  %vm3297_vm4 = vcmp.lt.f32.partialorder %v9220_v0, %v8930_v6 }
 0x4a8   : >> { %v4594_v51 = vpop.eup %4593  ;;  %v3263_v47 = vor.u32 1.1754944e-38, %v3262_v16  ;;  %vm9272_vm7 = vcmp.eq.f32.partialorder %v3275_v3, 8.507059e+37  ;;  %v3278_v19 = vor.u32 1.1754944e-38, %v3277_v15  ;;  %vm3299_vm2 = vcmp.lt.f32.partialorder %v9220_v0, %v8944_v36 }
 0x4a9   : >> { %v4596_v4 = vpop.eup %4595  ;;  %v3253_v24 = vsub.f32 1.0, %v3252_v57  ;;  %vm3257_vm8 = vweird.f32 %v4592_v60  ;;  %v3267_v39 = vmul.f32 %v4594_v51, %v9192_v62  ;;  %vm3300_vm3 = vcmp.lt.f32.partialorder %v9223_v45, %v8950_v33 }
 0x4aa   : >> { %v4598_v41 = vpop.eup %4597  ;;  %4601 = vlog2.f32 %v3284_v5  ;;  %vm3301_vm9 = vcmp.lt.f32.partialorder %v9220_v0, %v8961_v43  ;;  %vm3302_vm0 = vcmp.lt.f32.partialorder %v9223_v45, %v9009_v14  ;;  %v3245_v35 = vmul.f32 %v4596_v4, %v3237_v48  ;;  %vm9289_vm10 = vmor %vm3256_vm5, %vm3257_vm8 }
 0x4ab   : >> { %v3254_v8 = vmul.f32 %v4592_v60, %v3253_v24  ;;  %v3268_v11 = vsub.f32 1.0, %v3267_v39  ;;  %vm3272_vm15 = vweird.f32 %v4594_v51  ;;  %v3246_v56 = vmul.f32 %v4598_v41, %v9172_v22  ;;  %v11385_v22 = vld [vmem:[#allocation16_spill] sm:$0xff] }
 0x4ac   : >> { %vm3308_vm5 = vcmp.lt.f32.partialorder %v9223_v45, %v11385_v22  ;;  %vm9305_vm8 = vmor %vm3271_vm6, %vm3272_vm15  ;;  %vm3309_vm12 = vcmp.lt.f32.partialorder %v9220_v0, %v11388_v52  ;;  %vm3310_vm14 = vcmp.lt.f32.partialorder %v9223_v45, %v11389_v10  ;;  %vm3311_vm13 = vcmp.lt.f32.partialorder %v9220_v0, %v9119_v38 }
 0x4ad   : >> { %v4600_v48 = vpop.eup %4599  ;;  %v3255_v63 = vadd.f32 %v4592_v60, %v3254_v8  ;;  %v3269_v55 = vmul.f32 %v4594_v51, %v3268_v11  ;;  %vm3312_vm11 = vcmp.lt.f32.partialorder %v9223_v45, %v9125_v37  ;;  %v3289_v53 = vsub.f32 0.0, %v3245_v35 }
 0x4ae   : >> { %v3317_v12 = vsel %vm3299_vm2, %v9220_v0, %v8944_v36  ;;  %v3286_v3 = vmul.f32 0.6931472, %v4600_v48  ;;  %v3290_v15 = vsub.f32 0.0, %v3246_v56  ;;  %v3325_v32 = vsel %vm3301_vm9, %v9220_v0, %v8961_v43 }
 0x4af   : >> { %v3259_v2 = vsel %vm9289_vm10, %v4592_v60, %v3255_v63  ;;  %v3270_v62 = vadd.f32 %v4594_v51, %v3269_v55  ;;  %v3318_v60 = vsel %vm3300_vm3, %v9223_v45, %v8950_v33  ;;  %vm11391_vm6 = vcmp.lt.f32.partialorder %v9220_v0, %v9015_v9  ;;  %v4200_v55 = vld [vmem:[%s6272_s14 + $0x280] sm:$0xff] }
 0x4b0   : >> { %v4602_v44 = vpop.eup %4601  ;;  %v3264_v16 = vsel %vm9263_vm1, %v3263_v47, %v3259_v2  ;;  %v3326_v47 = vsel %vm3302_vm0, %v9223_v45, %v9009_v14  ;;  %vm11390_vm1 = vcmp.lt.f32.partialorder %v9223_v45, %v8938_v42  ;;  %v3333_v29 = vsel %vm11391_vm6, %v9220_v0, %v9015_v9 }
 0x4b1   : >> { %v3265_v5 = vmul.f32 %v3264_v16, %v9038_v18  ;;  %v3274_v57 = vsel %vm9305_vm8, %v4594_v51, %v3270_v62  ;;  %v9351_v18 = vsel %vm3297_vm4, %v9220_v0, %v8930_v6  ;;  %v9358_v51 = vsel %vm11390_vm1, %v9223_v45, %v8938_v42 }
 0x4b2   : >> { %v3279_v4 = vsel %vm9272_vm7, %v3278_v19, %v3274_v57  ;;  %v3288_v24 = vmul.f32 0.6931472, %v4602_v44  ;;  %v9370_v41 = vsel %vm3297_vm4, %v8930_v6, %v3317_v12  ;;  %vm11392_vm7 = vmmov %vm11390_vm1  ;;  %v9388_v8 = vsel %vm3300_vm3, %v8950_v33, %v3326_v47  ;;  %v4201_v12 = vld [vmem:[%s6272_s14 + $0x288] sm:$0xff] }
 0x4b3   : >> { %v3280_v19 = vmul.f32 %v3279_v4, %v9079_v7  ;;  %v3291_v39 = vmul.f32 %v3289_v53, %v3265_v5  ;;  %v9376_v35 = vsel %vm11392_vm7, %v8938_v42, %v3318_v60  ;;  %v9382_v7 = vsel %vm3299_vm2, %v8944_v36, %v3325_v32  ;;  %v11397_v32 = vld [vmem:[#allocation7_spill] sm:$0xff] }
 0x4b4   : >> { %vm11393_vm15 = vcmp.lt.f32.partialorder %v9223_v45, %v9021_v49  ;;  %v9399_v48 = vsel %vm3301_vm9, %v8961_v43, %v3333_v29  ;;  %vm11394_vm10 = vcmp.lt.f32.partialorder %v9220_v0, %v9029_v27  ;;  %vm11395_vm8 = vcmp.lt.f32.partialorder %v9223_v45, %v11383_v46  ;;  %v4202_v4 = vld [vmem:[%s6276_s15 + $0x280] sm:$0xff] }
 0x4b5   : >> { %v3334_v11 = vsel %vm11393_vm15, %v9223_v45, %v9021_v49  ;;  %v3292_v56 = vmul.f32 %v3290_v15, %v3280_v19  ;;  %v3293_v31 = vmul.f32 %v3291_v39, %v3286_v3  ;;  %v3341_v63 = vsel %vm11394_vm10, %v9220_v0, %v9029_v27  ;;  %vm11398_vm7 = vmmov %vm11393_vm15  ;;  %v11402_v39 = vld [vmem:[#allocation8_spill] sm:$0xff] }
 0x4b6   : >> { %v3342_v23 = vsel %vm11395_vm8, %v9223_v45, %v11383_v46  ;;  %vm11396_vm1 = vcmp.lt.f32.partialorder %v9220_v0, %v11384_v28  ;;  %v3350_v62 = vsel %vm3308_vm5, %v9223_v45, %v11385_v22  ;;  %v3357_v53 = vsel %vm3309_vm12, %v9220_v0, %v11388_v52  ;;  %vm11400_vm15 = vmmov %vm11394_vm10 }
 0x4b7   : >> { %v3349_v2 = vsel %vm11396_vm1, %v9220_v0, %v11384_v28  ;;  %v3294_v44 = vmul.f32 %v3292_v56, %v3288_v24  ;;  %v3295_v16 = vmax.f32 %v3293_v31, 0.0  ;;  %v3358_v3 = vsel %vm3310_vm14, %v9223_v45, %v11389_v10  ;;  %v4203_v56 = vld [vmem:[%s6276_s15 + $0x288] sm:$0xff]  ;;  %vm11403_vm10 = vmmov %vm11395_vm8 }
 0x4b8   : >> { %v3365_v15 = vsel %vm3311_vm13, %v9220_v0, %v9119_v38  ;;  %v9442_v60 = vsel %vm3302_vm0, %v9009_v14, %v3334_v11  ;;  %v9448_v5 = vsel %vm11391_vm6, %v9015_v9, %v3341_v63  ;;  %v3366_v57 = vsel %vm3312_vm11, %v9223_v45, %v9125_v37  ;;  %vm11405_vm8 = vmmov %vm11396_vm1 }
 0x4b9   : >> { %v3380_v47 = vsub.f32 %v11397_v32, %v4200_v55  ;;  %v3296_v29 = vmax.f32 %v3294_v44, 0.0  ;;  %v9461_v19 = vsel %vm11398_vm7, %v9021_v49, %v3342_v23  ;;  %v9467_v24 = vsel %vm11400_vm15, %v9029_v27, %v3349_v2  ;;  %vm11412_vm1 = vmmov %vm11391_vm6 }
 0x4ba   : >> { %11399 = vst [vmem:[#allocation9_spill] sm:$0xff] %v9461_v19  ;;  %v3381_v11 = vsub.f32 %v11402_v39, %v4201_v12  ;;  %v9475_v31 = vsel %vm11403_vm10, %v11383_v46, %v3350_v62  ;;  %v9481_v63 = vsel %vm11405_vm8, %v11384_v28, %v3357_v53  ;;  %v9487_v55 = vsel %vm3308_vm5, %v11385_v22, %v3358_v3  ;;  %v11410_v12 = vld [vmem:[#allocation6_spill] sm:$0xff]  ;;  %v4208_v3 = vld [vmem:[%s6272_s14 + $0x2d0] sm:$0xff]  ;;  %vm11413_vm6 = vmmov %vm11398_vm7 }
 0x4bb   : >> { %11401 = vst [vmem:[#allocation17_spill] sm:$0xff] %v9467_v24  ;;  %v9493_v23 = vsel %vm3309_vm12, %v11388_v52, %v3365_v15  ;;  %v3319_v2 = vsel %vm3299_vm2, %v3295_v16, %v9113_v13  ;;  %v3327_v62 = vsel %vm3301_vm9, %v3295_v16, %v9143_v58  ;;  %v9507_v53 = vsel %vm3310_vm14, %v11389_v10, %v3366_v57  ;;  %vm11414_vm7 = vmmov %vm11400_vm15 }
 0x4bc   : >> { %11404 = vst [vmem:[#allocation10_spill] sm:$0xff] %v9475_v31  ;;  %v9510_v44 = vsub.f32 %v11410_v12, %v4202_v4  ;;  %v3320_v15 = vsel %vm3300_vm3, %v3296_v29, %v9137_v1  ;;  %v3328_v39 = vsel %vm3302_vm0, %v3296_v29, %v9153_v30  ;;  %v3335_v57 = vsel %vm11412_vm1, %v3295_v16, %v9159_v61  ;;  %v11415_v31 = vld [vmem:[#allocation12_spill] sm:$0xff] }
 0x4bd   : >> { %11406 = vst [vmem:[#allocation15_spill] sm:$0xff] %v9481_v63  ;;  %v4204_v63 = vclamps-f32 %v3380_v47, 1.0  ;;  %v3336_v4 = vsel %vm11413_vm6, %v3296_v29, %v9165_v59  ;;  %v3343_v12 = vsel %vm11414_vm7, %v3295_v16, %v9179_v50  ;;  %v9552_v24 = vsel %vm3299_vm2, %v9113_v13, %v3327_v62  ;;  %vm11419_vm2 = vmmov %vm11403_vm10 }
 0x4be   : >> { %11407 = vst [vmem:[#allocation14_spill] sm:$0xff] %v9487_v55  ;;  %v9555_v19 = vsub.f32 %v11397_v32, %v4208_v3  ;;  %vm11417_vm15 = vcmp.lt.f32.partialorder %v9223_v45, %v8938_v42  ;;  %v9573_v36 = vsel %vm3300_vm3, %v9137_v1, %v3328_v39  ;;  %v3344_v13 = vsel %vm11419_vm2, %v3296_v29, %v9198_v25  ;;  %vm11420_vm3 = vmmov %vm11412_vm1 }
 0x4bf   : >> { %11408 = vst [vmem:[#allocation16_spill] sm:$0xff] %v9493_v23  ;;  %v11411_v23 = vld [vmem:[#allocation5_spill] sm:$0xff]  ;;  %v9589_v42 = vsel %vm3302_vm0, %v9153_v30, %v3336_v4  ;;  %v9595_v33 = vsel %vm11420_vm3, %v9159_v61, %v3343_v12  ;;  %vm11421_vm10 = vmmov %vm11405_vm8  ;;  %v3352_v30 = vsel %vm3308_vm5, %v3296_v29, %v9237_v20  ;;  %v3359_v61 = vsel %vm3309_vm12, %v3295_v16, %v9243_v54 }
 0x4c0   : >> { %11409 = vst [vmem:[#allocation13_spill] sm:$0xff] %v9507_v53  ;;  %v9522_v55 = vsub.f32 %v11411_v23, %v4203_v56  ;;  %v4205_v53 = vclamps-f32 %v3381_v11, 1.0  ;;  %v9540_v56 = vsel %vm3297_vm4, %v3295_v16, %v11415_v31  ;;  %v9546_v23 = vsel %vm3297_vm4, %v11415_v31, %v3319_v2  ;;  %vm11418_vm4 = vmmov %vm11417_vm15 }
 0x4c1   : >> { %11416 = vst [vmem:[#allocation11_spill] sm:$0xff] %v9540_v56  ;;  %v9561_v56 = vsel %vm11417_vm15, %v3296_v29, %v9131_v34  ;;  %v9567_v6 = vsel %vm11418_vm4, %v9131_v34, %v3320_v15  ;;  %v9583_v31 = vsel %vm3301_vm9, %v9143_v58, %v3335_v57  ;;  %v9597_v34 = vsub.f32 %v3380_v47, %v4204_v63  ;;  %vm11422_vm9 = vmmov %vm11413_vm6  ;;  %v11430_v4 = vld [vmem:[#allocation9_spill] sm:$0xff]  ;;  %v11450_v57 = vld [vmem:[#allocation8_spill] sm:$0xff] }
 0x4c2   : >> { %v3351_v43 = vsel %vm11421_vm10, %v3295_v16, %v9231_v26  ;;  %v9603_v1 = vsub.f32 %v3381_v11, %v4205_v53  ;;  %v3401_v58 = vand.u32 2147483647, %v9510_v44  ;;  %v3402_v14 = vand.u32 2147483647, %v9522_v55  ;;  %vm11423_vm0 = vmmov %vm11414_vm7 }
 0x4c3   : >> { %v9611_v9 = vsel %vm11422_vm9, %v9165_v59, %v3344_v13  ;;  %v3393_v47 = vand.u32 2147483647, %v9597_v34  ;;  %v3360_v49 = vsel %vm3310_vm14, %v3296_v29, %v9249_v40  ;;  %v3435_v11 = vmul.f32 %v9510_v44, %v9510_v44  ;;  %vm11424_vm8 = vmmov %vm11419_vm2 }
 0x4c4   : >> { %v3394_v59 = vand.u32 2147483647, %v9603_v1  ;;  %v9627_v39 = vadd.f32 1e-08, %v3401_v58  ;;  %v9635_v63 = vsel %vm11423_vm0, %v9179_v50, %v3351_v43  ;;  %v3367_v2 = vsel %vm3311_vm13, %v3295_v16, %v9255_v17  ;;  %vm11425_vm13 = vmmov %vm11421_vm10  ;;  %v9669_v17 = vld [vmem:[%s6294_s16 + $0x280] sm:$0xff]  ;;  %v11431_v58 = vld [vmem:[#allocation17_spill] sm:$0xff] }
 0x4c5   : >> { %v3395_v62 = vadd.f32 1.0, %v3393_v47  ;;  %v9641_v53 = vadd.f32 1e-08, %v3402_v14  ;;  %v3368_v12 = vsel %vm3312_vm11, %v3296_v29, %v9261_v21  ;;  %v3436_v27 = vmul.f32 %v9522_v55, %v9522_v55  ;;  %v9672_v21 = vld [vmem:[%s6294_s16 + $0x288] sm:$0xff]  ;;  %v11432_v14 = vld [vmem:[#allocation10_spill] sm:$0xff]  ;;  %v11433_v47 = vld [vmem:[#allocation15_spill] sm:$0xff] }
 0x4c6   : >> { %v3396_v3 = vadd.f32 1.0, %v3394_v59  ;;  %4603 = vrcp.f32 %v9627_v39  ;;  %v9654_v38 = vsel %vm11424_vm8, %v9198_v25, %v3352_v30  ;;  %v9660_v50 = vsel %vm11425_vm13, %v9231_v26, %v3359_v61 }
 0x4c7   : >> { %v9666_v37 = vsel %vm3308_vm5, %v9237_v20, %v3360_v49  ;;  %4605 = vrcp.f32 %v3395_v62  ;;  %v3414_v25 = vand.u32 2147483647, %v9627_v39  ;;  %v3416_v46 = vand.u32 2147483648, %v9627_v39  ;;  %v11436_v62 = vld [vmem:[#allocation13_spill] sm:$0xff] }
 0x4c8   : >> { %4607 = vrcp.f32 %v3396_v3  ;;  %v3437_v16 = vadd.f32 1.0, %v3435_v11  ;;  %v9680_v26 = vsel %vm3309_vm12, %v9243_v54, %v3367_v2  ;;  %v9686_v20 = vsel %vm3310_vm14, %v9249_v40, %v3368_v12  ;;  %v11434_v2 = vld [vmem:[#allocation14_spill] sm:$0xff] }
 0x4c9   : >> { %4609 = vrcp.f32 %v9641_v53  ;;  %v3431_v28 = vand.u32 2147483648, %v9641_v53  ;;  %v3429_v22 = vand.u32 2147483647, %v9641_v53  ;;  %v3438_v29 = vadd.f32 1.0, %v3436_v27 }
 0x4ca   : >> { %vm3451_vm11 = vcmp.lt.f32.partialorder %v9669_v17, %v9351_v18  ;;  %vm11072_vm12 = vcmp.lt.f32.partialorder %v9672_v21, %v9358_v51  ;;  %vm3410_vm5 = vweird.f32 %v9627_v39  ;;  %vm3425_vm1 = vweird.f32 %v9641_v53 }
 0x4cb   : >> { %vm3453_vm14 = vcmp.lt.f32.partialorder %v9669_v17, %v9370_v41  ;;  %vm11071_vm6 = vcmp.lt.f32.partialorder %v9672_v21, %v9376_v35  ;;  %vm9701_vm7 = vcmp.eq.f32.partialorder %v3414_v25, 8.507059e+37  ;;  %v3417_v54 = vor.u32 1.1754944e-38, %v3416_v46 }
 0x4cc   : >> { %v4604_v0 = vpop.eup %4603  ;;  %4611 = vlog2.f32 %v3437_v16  ;;  %vm3455_vm15 = vcmp.lt.f32.partialorder %v9669_v17, %v9382_v7  ;;  %v3432_v10 = vor.u32 1.1754944e-38, %v3431_v28  ;;  %vm3456_vm4 = vcmp.lt.f32.partialorder %v9672_v21, %v9388_v8 }
 0x4cd   : >> { %v4606_v40 = vpop.eup %4605  ;;  %v3406_v52 = vmul.f32 %v4604_v0, %v9627_v39  ;;  %vm9712_vm3 = vcmp.eq.f32.partialorder %v3429_v22, 8.507059e+37  ;;  %4613 = vlog2.f32 %v3438_v29  ;;  %vm3459_vm9 = vcmp.lt.f32.partialorder %v9669_v17, %v9448_v5 }
 0x4ce   : >> { %v4608_v15 = vpop.eup %4607  ;;  %vm3411_vm8 = vweird.f32 %v4604_v0  ;;  %v3399_v30 = vmul.f32 %v4606_v40, %v9597_v34  ;;  %v3471_v49 = vsel %vm3453_vm14, %v9669_v17, %v9370_v41  ;;  %v3472_v59 = vsel %vm11071_vm6, %v9672_v21, %v9376_v35  ;;  %v11435_v34 = vld [vmem:[#allocation16_spill] sm:$0xff] }
 0x4cf   : >> { %v4610_v13 = vpop.eup %4609  ;;  %v3407_v43 = vsub.f32 1.0, %v3406_v52  ;;  %vm3464_vm2 = vcmp.lt.f32.partialorder %v9672_v21, %v11434_v2  ;;  %vm3465_vm13 = vcmp.lt.f32.partialorder %v9669_v17, %v11435_v34  ;;  %vm3466_vm10 = vcmp.lt.f32.partialorder %v9672_v21, %v11436_v62  ;;  %vm9749_vm0 = vmor %vm3410_vm5, %vm3411_vm8 }
 0x4d0   : >> { %v3421_v61 = vmul.f32 %v4610_v13, %v9641_v53  ;;  %v3400_v3 = vmul.f32 %v4608_v15, %v9603_v1  ;;  %vm3426_vm6 = vweird.f32 %v4610_v13  ;;  %v9758_v46 = vsel %vm3451_vm11, %v9669_v17, %v9351_v18 }
 0x4d1   : >> { %v3408_v11 = vmul.f32 %v4604_v0, %v3407_v43  ;;  %v9765_v1 = vsel %vm11072_vm12, %v9672_v21, %v9358_v51  ;;  %v9771_v39 = vsel %vm3451_vm11, %v9351_v18, %v3471_v49  ;;  %v9777_v28 = vsel %vm11072_vm12, %v9358_v51, %v3472_v59  ;;  %vm9793_vm5 = vmor %vm3425_vm1, %vm3426_vm6 }
 0x4d2   : >> { %v4612_v12 = vpop.eup %4611  ;;  %v3422_v25 = vsub.f32 1.0, %v3421_v61  ;;  %v3443_v40 = vsub.f32 0.0, %v3399_v30  ;;  %v3479_v52 = vsel %vm3455_vm15, %v9669_v17, %v9382_v7  ;;  %v3480_v15 = vsel %vm3456_vm4, %v9672_v21, %v9388_v8 }
 0x4d3   : >> { %v3409_v16 = vadd.f32 %v4604_v0, %v3408_v11  ;;  %v4614_v22 = vpop.eup %4613  ;;  %v3440_v61 = vmul.f32 0.6931472, %v4612_v12  ;;  %vm11441_vm8 = vcmp.lt.f32.partialorder %v9669_v17, %v9399_v48  ;;  %vm11442_vm12 = vcmp.lt.f32.partialorder %v9672_v21, %v9442_v60 }
 0x4d4   : >> { %v3423_v29 = vmul.f32 %v4610_v13, %v3422_v25  ;;  %v3487_v49 = vsel %vm11441_vm8, %v9669_v17, %v9399_v48  ;;  %v3488_v59 = vsel %vm11442_vm12, %v9672_v21, %v9442_v60  ;;  %v3444_v11 = vsub.f32 0.0, %v3400_v3  ;;  %v4210_v3 = vld [vmem:[%s6276_s15 + $0x2d0] sm:$0xff]  ;;  %vm11446_vm6 = vmmov %vm11441_vm8 }
 0x4d5   : >> { %v3413_v43 = vsel %vm9749_vm0, %v4604_v0, %v3409_v16  ;;  %v3495_v12 = vsel %vm3459_vm9, %v9669_v17, %v9448_v5  ;;  %v3442_v25 = vmul.f32 0.6931472, %v4614_v22  ;;  %v9819_v16 = vsel %vm3453_vm14, %v9370_v41, %v3479_v52 }
 0x4d6   : >> { %v3418_v53 = vsel %vm9701_vm7, %v3417_v54, %v3413_v43  ;;  %v3424_v0 = vadd.f32 %v4610_v13, %v3423_v29  ;;  %vm11443_vm12 = vcmp.lt.f32.partialorder %v9672_v21, %v9376_v35  ;;  %v4209_v54 = vld [vmem:[%s6272_s14 + $0x2d8] sm:$0xff]  ;;  %v9841_v22 = vsel %vm3456_vm4, %v9388_v8, %v3488_v59 }
 0x4d7   : >> { %v3419_v27 = vmul.f32 %v3418_v53, %v9510_v44  ;;  %v9825_v45 = vsel %vm11443_vm12, %v9376_v35, %v3480_v15  ;;  %v9835_v44 = vsel %vm3455_vm15, %v9382_v7, %v3487_v49  ;;  %11444 = vst [vmem:[#allocation12_spill] sm:$0xff] %v9841_v22  ;;  %vm11445_vm1 = vcmp.lt.f32.partialorder %v9672_v21, %v11430_v4  ;;  %v4211_v59 = vld [vmem:[%s6276_s15 + $0x2d8] sm:$0xff] }
 0x4d8   : >> { %v3428_v29 = vsel %vm9793_vm5, %v4610_v13, %v3424_v0  ;;  %v3496_v52 = vsel %vm11445_vm1, %v9672_v21, %v11430_v4  ;;  %v9854_v43 = vsel %vm11446_vm6, %v9399_v48, %v3495_v12  ;;  %vm11448_vm7 = vcmp.lt.f32.partialorder %v9669_v17, %v11431_v58  ;;  %v11451_v53 = vld [vmem:[#allocation6_spill] sm:$0xff]  ;;  %vm11456_vm8 = vmmov %vm11445_vm1 }
 0x4d9   : >> { %v3433_v13 = vsel %vm9712_vm3, %v3432_v10, %v3428_v29  ;;  %v3445_v15 = vmul.f32 %v3443_v40, %v3419_v27  ;;  %11447 = vst [vmem:[#allocation9_spill] sm:$0xff] %v9854_v43  ;;  %v3503_v30 = vsel %vm11448_vm7, %v9669_v17, %v11431_v58  ;;  %vm11449_vm3 = vcmp.lt.f32.partialorder %v9672_v21, %v11432_v14  ;;  %vm11459_vm12 = vmmov %vm11448_vm7 }
 0x4da   : >> { %v3434_v49 = vmul.f32 %v3433_v13, %v9522_v55  ;;  %v3504_v10 = vsel %vm11449_vm3, %v9672_v21, %v11432_v14  ;;  %v3535_v40 = vsub.f32 %v11450_v57, %v4209_v54  ;;  %v9870_v0 = vsub.f32 %v11451_v53, %v4210_v3  ;;  %v4216_v57 = vld [vmem:[%s6272_s14 + $0x320] sm:$0xff]  ;;  %vm11460_vm1 = vmmov %vm11449_vm3 }
 0x4db   : >> { %v3447_v12 = vmul.f32 %v3445_v15, %v3440_v61  ;;  %vm11453_vm0 = vcmp.lt.f32.partialorder %v9672_v21, %v9442_v60  ;;  %vm11455_vm5 = vcmp.lt.f32.partialorder %v9669_v17, %v11433_v47  ;;  %v3512_v54 = vsel %vm3464_vm2, %v9672_v21, %v11434_v2 }
 0x4dc   : >> { %11452 = vst [vmem:[#allocation17_spill] sm:$0xff] %v9870_v0  ;;  %v9876_v27 = vsel %vm11453_vm0, %v9442_v60, %v3496_v52  ;;  %v3511_v55 = vsel %vm11455_vm5, %v9669_v17, %v11433_v47  ;;  %v3446_v3 = vmul.f32 %v3444_v11, %v3434_v49  ;;  %v3519_v61 = vsel %vm3465_vm13, %v9669_v17, %v11435_v34  ;;  %v11457_v49 = vld [vmem:[#allocation5_spill] sm:$0xff]  ;;  %vm11462_vm6 = vmmov %vm11455_vm5 }
 0x4dd   : >> { %11454 = vst [vmem:[#allocation10_spill] sm:$0xff] %v9876_v27  ;;  %v3520_v29 = vsel %vm3466_vm10, %v9672_v21, %v11436_v62  ;;  %v4212_v52 = vclamps-f32 %v9555_v19, 1.0  ;;  %v3449_v13 = vmax.f32 %v3447_v12, 0.0  ;;  %v9903_v11 = vsel %vm3459_vm9, %v9448_v5, %v3503_v30 }
 0x4de   : >> { %v9909_v15 = vsel %vm11456_vm8, %v11430_v4, %v3504_v10  ;;  %v9912_v53 = vsub.f32 %v11457_v49, %v4211_v59  ;;  %v3448_v27 = vmul.f32 %v3446_v3, %v3442_v25  ;;  %v4213_v43 = vclamps-f32 %v3535_v40, 1.0 }
 0x4df   : >> { %v3555_v12 = vand.u32 2147483647, %v9870_v0  ;;  %v3589_v22 = vmul.f32 %v9870_v0, %v9870_v0  ;;  %v9922_v30 = vsel %vm11459_vm12, %v11431_v58, %v3511_v55  ;;  %v9928_v10 = vsel %vm11460_vm1, %v11432_v14, %v3512_v54 }
 0x4e0   : >> { %11458 = vst [vmem:[#allocation15_spill] sm:$0xff] %v9912_v53  ;;  %v9934_v25 = vsel %vm11462_vm6, %v11433_v47, %v3519_v61  ;;  %v9940_v59 = vsel %vm3464_vm2, %v11434_v2, %v3520_v29  ;;  %v3450_v55 = vmax.f32 %v3448_v27, 0.0  ;;  %v3473_v3 = vsel %vm3453_vm14, %v3449_v13, %v9546_v23 }
 0x4e1   : >> { %11461 = vst [vmem:[#allocation14_spill] sm:$0xff] %v9928_v10  ;;  %v9947_v54 = vsub.f32 %v9555_v19, %v4212_v52  ;;  %v9950_v49 = vsub.f32 %v11397_v32, %v4216_v57  ;;  %v3481_v61 = vsel %vm3455_vm15, %v3449_v13, %v9552_v24  ;;  %vm11465_vm7 = vcmp.lt.f32.partialorder %v9669_v17, %v9399_v48 }
 0x4e2   : >> { %11463 = vst [vmem:[#allocation16_spill] sm:$0xff] %v9940_v59  ;;  %v3489_v27 = vsel %vm11465_vm7, %v3449_v13, %v9583_v31  ;;  %v3556_v29 = vand.u32 2147483647, %v9912_v53  ;;  %v3590_v0 = vmul.f32 %v9912_v53, %v9912_v53  ;;  %vm11466_vm3 = vcmp.lt.f32.partialorder %v9672_v21, %v9376_v35 }
 0x4e3   : >> { %11464 = vst [vmem:[#allocation13_spill] sm:$0xff] %v9950_v49  ;;  %v3474_v32 = vsel %vm11466_vm3, %v3450_v55, %v9567_v6  ;;  %v9967_v19 = vsub.f32 %v3535_v40, %v4213_v43  ;;  %v9969_v57 = vadd.f32 1e-08, %v3555_v12  ;;  %v3591_v52 = vadd.f32 1.0, %v3589_v22  ;;  %v11467_v49 = vld [vmem:[#allocation11_spill] sm:$0xff]  ;;  %vm11471_vm8 = vmmov %vm11466_vm3 }
 0x4e4   : >> { %v9975_v59 = vsel %vm3451_vm11, %v3449_v13, %v11467_v49  ;;  %v9981_v53 = vsel %vm3451_vm11, %v11467_v49, %v3473_v3  ;;  %v3482_v43 = vsel %vm3456_vm4, %v3450_v55, %v9573_v36  ;;  %v3490_v22 = vsel %vm11453_vm0, %v3450_v55, %v9589_v42  ;;  %vm11468_vm11 = vmmov %vm11459_vm12 }
 0x4e5   : >> { %v9995_v40 = vsel %vm3453_vm14, %v9546_v23, %v3481_v61  ;;  %v10001_v18 = vsel %vm3455_vm15, %v9552_v24, %v3489_v27  ;;  %v3497_v49 = vsel %vm3459_vm9, %v3449_v13, %v9595_v33  ;;  %v3505_v12 = vsel %vm11468_vm11, %v3449_v13, %v9635_v63  ;;  %vm11478_vm6 = vmmov %vm11468_vm11 }
 0x4e6   : >> { %vm11469_vm14 = vcmp.lt.f32.partialorder %v9672_v21, %v9358_v51  ;;  %v3513_v24 = vsel %vm11455_vm5, %v3449_v13, %v9660_v50  ;;  %v3521_v23 = vsel %vm3465_vm13, %v3449_v13, %v9680_v26  ;;  %v10035_v3 = vsel %vm11471_vm8, %v9567_v6, %v3482_v43  ;;  %vm11474_vm13 = vmmov %vm11465_vm7  ;;  %v11485_v43 = vld [vmem:[#allocation12_spill] sm:$0xff] }
 0x4e7   : >> { %v10015_v41 = vsel %vm11469_vm14, %v3450_v55, %v9561_v56  ;;  %vm11470_vm15 = vmmov %vm11469_vm14  ;;  %v10041_v51 = vsel %vm3456_vm4, %v9573_v36, %v3490_v22  ;;  %vm11473_vm12 = vcmp.lt.f32.partialorder %v9672_v21, %v11430_v4  ;;  %v3547_v34 = vand.u32 2147483647, %v9947_v54  ;;  %v10116_v4 = vld [vmem:[%s6294_s16 + $0x2d8] sm:$0xff] }
 0x4e8   : >> { %v10021_v7 = vsel %vm11470_vm15, %v9561_v56, %v3474_v32  ;;  %11472 = vst [vmem:[#allocation11_spill] sm:$0xff] %v10041_v51  ;;  %v3498_v56 = vsel %vm11473_vm12, %v3450_v55, %v9611_v9  ;;  %v10052_v35 = vsel %vm11474_vm13, %v9583_v31, %v3497_v49  ;;  %v3548_v6 = vand.u32 2147483647, %v9967_v19  ;;  %vm11475_vm4 = vmmov %vm11460_vm1 }
 0x4e9   : >> { %v3558_v26 = vadd.f32 1e-08, %v3556_v29  ;;  %4615 = vrcp.f32 %v9969_v57  ;;  %v3506_v8 = vsel %vm11475_vm4, %v3450_v55, %v9654_v38  ;;  %v3514_v36 = vsel %vm3464_vm2, %v3450_v55, %v9666_v37  ;;  %vm11476_vm1 = vmmov %vm11453_vm0 }
 0x4ea   : >> { %v3522_v48 = vsel %vm3466_vm10, %v3450_v55, %v9686_v20  ;;  %v3549_v31 = vadd.f32 1.0, %v3547_v34  ;;  %v3550_v13 = vadd.f32 1.0, %v3548_v6  ;;  %v3568_v61 = vand.u32 2147483647, %v9969_v57  ;;  %vm11477_vm10 = vmmov %vm11473_vm12  ;;  %v11489_v34 = vld [vmem:[#allocation10_spill] sm:$0xff] }
 0x4eb   : >> { %v3570_v27 = vand.u32 2147483648, %v9969_v57  ;;  %4617 = vrcp.f32 %v3558_v26  ;;  %v10074_v29 = vsel %vm11476_vm1, %v9589_v42, %v3498_v56  ;;  %v10080_v62 = vsel %vm3459_vm9, %v9595_v33, %v3505_v12  ;;  %v10095_v42 = vld [vmem:[%s6294_s16 + $0x2d0] sm:$0xff]  ;;  %vm11479_vm9 = vmmov %vm11475_vm4 }
 0x4ec   : >> { %4619 = vrcp.f32 %v3549_v31  ;;  %v3583_v20 = vand.u32 2147483647, %v3558_v26  ;;  %v10086_v55 = vsel %vm11477_vm10, %v9611_v9, %v3506_v8  ;;  %v10092_v60 = vsel %vm11478_vm6, %v9635_v63, %v3513_v24  ;;  %vm11480_vm7 = vmmov %vm11455_vm5  ;;  %v11488_v56 = vld [vmem:[#allocation9_spill] sm:$0xff] }
 0x4ed   : >> { %4621 = vrcp.f32 %v3550_v13  ;;  %v3585_v5 = vand.u32 2147483648, %v3558_v26  ;;  %v10101_v33 = vsel %vm11479_vm9, %v9654_v38, %v3514_v36  ;;  %v10107_v9 = vsel %vm11480_vm7, %v9660_v50, %v3521_v23 }
 0x4ee   : >> { %v10113_v63 = vsel %vm3464_vm2, %v9666_v37, %v3522_v48  ;;  %v3592_v58 = vadd.f32 1.0, %v3590_v0  ;;  %vm3564_vm3 = vweird.f32 %v9969_v57  ;;  %vm10119_vm0 = vcmp.eq.f32.partialorder %v3568_v61, 8.507059e+37 }
 0x4ef   : >> { %v4616_v32 = vpop.eup %4615  ;;  %v3571_v14 = vor.u32 1.1754944e-38, %v3570_v27  ;;  %vm3579_vm11 = vweird.f32 %v3558_v26  ;;  %vm10124_vm14 = vcmp.eq.f32.partialorder %v3583_v20, 8.507059e+37  ;;  %4623 = vlog2.f32 %v3591_v52 }
 0x4f0   : >> { %v3560_v50 = vmul.f32 %v4616_v32, %v9969_v57  ;;  %vm3605_vm2 = vcmp.lt.f32.partialorder %v10095_v42, %v9758_v46  ;;  %v3586_v21 = vor.u32 1.1754944e-38, %v3585_v5  ;;  %vm3607_vm5 = vcmp.lt.f32.partialorder %v10095_v42, %v9771_v39  ;;  %v11492_v57 = vld [vmem:[#allocation16_spill] sm:$0xff] }
 0x4f1   : >> { %v4618_v37 = vpop.eup %4617  ;;  %vm3608_vm8 = vcmp.lt.f32.partialorder %v10116_v4, %v9777_v28  ;;  %vm3565_vm12 = vweird.f32 %v4616_v32  ;;  %4625 = vlog2.f32 %v3592_v58  ;;  %vm3609_vm13 = vcmp.lt.f32.partialorder %v10095_v42, %v9819_v16 }
 0x4f2   : >> { %v4620_v47 = vpop.eup %4619  ;;  %v3561_v2 = vsub.f32 1.0, %v3560_v50  ;;  %v3575_v0 = vmul.f32 %v4618_v37, %v3558_v26  ;;  %vm3610_vm4 = vcmp.lt.f32.partialorder %v10116_v4, %v9825_v45  ;;  %vm3580_vm6 = vweird.f32 %v4618_v37  ;;  %vm10148_vm9 = vmor %vm3564_vm3, %vm3565_vm12 }
 0x4f3   : >> { %v4622_v52 = vpop.eup %4621  ;;  %v3553_v22 = vmul.f32 %v4620_v47, %v9947_v54  ;;  %vm11089_vm15 = vcmp.lt.f32.partialorder %v10116_v4, %v9909_v15  ;;  %vm11088_vm3 = vcmp.lt.f32.partialorder %v10095_v42, %v9922_v30  ;;  %vm10163_vm12 = vmor %vm3579_vm11, %vm3580_vm6  ;;  %vm11087_vm1 = vcmp.lt.f32.partialorder %v10116_v4, %v9928_v10 }
 0x4f4   : >> { %v3562_v49 = vmul.f32 %v4616_v32, %v3561_v2  ;;  %v3576_v12 = vsub.f32 1.0, %v3575_v0  ;;  %v3554_v24 = vmul.f32 %v4622_v52, %v9967_v19  ;;  %vm3619_vm10 = vcmp.lt.f32.partialorder %v10095_v42, %v9934_v25 }
 0x4f5   : >> { %v4624_v54 = vpop.eup %4623  ;;  %vm3620_vm7 = vcmp.lt.f32.partialorder %v10116_v4, %v11492_v57  ;;  %v10178_v36 = vsel %vm3605_vm2, %v10095_v42, %v9758_v46  ;;  %v3597_v13 = vsub.f32 0.0, %v3553_v22  ;;  %v3625_v61 = vsel %vm3607_vm5, %v10095_v42, %v9771_v39  ;;  %v11496_v22 = vld [vmem:[#allocation15_spill] sm:$0xff] }
 0x4f6   : >> { %v3563_v6 = vadd.f32 %v4616_v32, %v3562_v49  ;;  %v3577_v8 = vmul.f32 %v4618_v37, %v3576_v12  ;;  %v3594_v20 = vmul.f32 0.6931472, %v4624_v54  ;;  %v3598_v5 = vsub.f32 0.0, %v3554_v24 }
 0x4f7   : >> { %v4626_v26 = vpop.eup %4625  ;;  %v3626_v58 = vsel %vm3608_vm8, %v10116_v4, %v9777_v28  ;;  %v3633_v38 = vsel %vm3609_vm13, %v10095_v42, %v9819_v16  ;;  %v10220_v52 = vsel %vm3605_vm2, %v9758_v46, %v3625_v61  ;;  %vm11499_vm6 = vcmp.lt.f32.partialorder %v10116_v4, %v11485_v43 }
 0x4f8   : >> { %v3567_v48 = vsel %vm10148_vm9, %v4616_v32, %v3563_v6  ;;  %v3578_v31 = vadd.f32 %v4618_v37, %v3577_v8  ;;  %v11493_v32 = vld [vmem:[#allocation17_spill] sm:$0xff]  ;;  %v3596_v0 = vmul.f32 0.6931472, %v4626_v26  ;;  %v10238_v24 = vsel %vm3607_vm5, %v9771_v39, %v3633_v38 }
 0x4f9   : >> { %v3572_v27 = vsel %vm10119_vm0, %v3571_v14, %v3567_v48  ;;  %v3634_v14 = vsel %vm3610_vm4, %v10116_v4, %v9825_v45  ;;  %vm11494_vm0 = vcmp.lt.f32.partialorder %v10116_v4, %v9765_v1  ;;  %v3642_v54 = vsel %vm11499_vm6, %v10116_v4, %v11485_v43 }
 0x4fa   : >> { %v3573_v50 = vmul.f32 %v3572_v27, %v11493_v32  ;;  %v3582_v47 = vsel %vm10163_vm12, %v4618_v37, %v3578_v31  ;;  %v10214_v37 = vsel %vm11494_vm0, %v10116_v4, %v9765_v1  ;;  %vm11497_vm11 = vmmov %vm11494_vm0  ;;  %v10244_v23 = vsel %vm3608_vm8, %v9777_v28, %v3634_v14 }
 0x4fb   : >> { %v3587_v2 = vsel %vm10124_vm14, %v3586_v21, %v3582_v47  ;;  %11495 = vst [vmem:[#allocation10_spill] sm:$0xff] %v10214_v37  ;;  %v10227_v17 = vsel %vm11497_vm11, %v9765_v1, %v3626_v58  ;;  %vm11498_vm14 = vcmp.lt.f32.partialorder %v10095_v42, %v9835_v44  ;;  %vm11500_vm9 = vcmp.lt.f32.partialorder %v10095_v42, %v11488_v56 }
 0x4fc   : >> { %v3588_v49 = vmul.f32 %v3587_v2, %v11496_v22  ;;  %v3599_v12 = vmul.f32 %v3597_v13, %v3573_v50  ;;  %v3641_v21 = vsel %vm11498_vm14, %v10095_v42, %v9835_v44  ;;  %v3649_v6 = vsel %vm11500_vm9, %v10095_v42, %v11488_v56  ;;  %vm11503_vm11 = vmmov %vm11498_vm14  ;;  %v4219_v22 = vld [vmem:[%s6276_s15 + $0x328] sm:$0xff] }
 0x4fd   : >> { %vm11501_vm12 = vcmp.lt.f32.partialorder %v10116_v4, %v11489_v34  ;;  %vm11502_vm0 = vcmp.lt.f32.partialorder %v10095_v42, %v9903_v11  ;;  %v10270_v31 = vsel %vm3609_vm13, %v9819_v16, %v3641_v21  ;;  %v3658_v13 = vsel %vm11089_vm15, %v10116_v4, %v9909_v15  ;;  %vm11504_vm14 = vmmov %vm11499_vm6  ;;  %v11507_v21 = vld [vmem:[#allocation8_spill] sm:$0xff] }
 0x4fe   : >> { %v3600_v8 = vmul.f32 %v3598_v5, %v3588_v49  ;;  %v3601_v19 = vmul.f32 %v3599_v12, %v3594_v20  ;;  %v3650_v26 = vsel %vm11501_vm12, %v10116_v4, %v11489_v34  ;;  %v3657_v48 = vsel %vm11502_vm0, %v10095_v42, %v9903_v11  ;;  %v4217_v20 = vld [vmem:[%s6272_s14 + $0x328] sm:$0xff]  ;;  %v4218_v5 = vld [vmem:[%s6276_s15 + $0x320] sm:$0xff]  ;;  %vm11505_vm6 = vmmov %vm11500_vm9 }
 0x4ff   : >> { %v3665_v61 = vsel %vm11088_vm3, %v10095_v42, %v9922_v30  ;;  %v3666_v27 = vsel %vm11087_vm1, %v10116_v4, %v9928_v10  ;;  %v3673_v50 = vsel %vm3619_vm10, %v10095_v42, %v9934_v25  ;;  %v3674_v47 = vsel %vm3620_vm7, %v10116_v4, %v11492_v57  ;;  %vm11506_vm9 = vmmov %vm11501_vm12 }
 0x500   : >> { %v3602_v58 = vmul.f32 %v3600_v8, %v3596_v0  ;;  %v3603_v32 = vmax.f32 %v3601_v19, 0.0  ;;  %v10303_v38 = vsel %vm3610_vm4, %v9825_v45, %v3642_v54  ;;  %v10309_v14 = vsel %vm11503_vm11, %v9835_v44, %v3649_v6  ;;  %v11508_v6 = vld [vmem:[#allocation6_spill] sm:$0xff]  ;;  %vm11509_vm12 = vmmov %vm11502_vm0 }
 0x501   : >> { %v10315_v2 = vsel %vm11504_vm14, %v11485_v43, %v3650_v26  ;;  %v10321_v0 = vsel %vm11505_vm6, %v11488_v56, %v3657_v48  ;;  %v10328_v12 = vsel %vm11506_vm9, %v11489_v34, %v3658_v13  ;;  %v3689_v54 = vsub.f32 %v11507_v21, %v4217_v20  ;;  %vm11514_vm0 = vmmov %vm11503_vm11 }
 0x502   : >> { %v3604_v49 = vmax.f32 %v3602_v58, 0.0  ;;  %v10332_v8 = vsub.f32 %v11508_v6, %v4218_v5  ;;  %v10338_v19 = vsel %vm11509_vm12, %v9903_v11, %v3665_v61  ;;  %v10344_v26 = vsel %vm11089_vm15, %v9909_v15, %v3666_v27  ;;  %v11513_v5 = vld [vmem:[#allocation5_spill] sm:$0xff]  ;;  %vm11515_vm11 = vmmov %vm11504_vm14 }
 0x503   : >> { %11510 = vst [vmem:[#allocation16_spill] sm:$0xff] %v10344_v26  ;;  %v10350_v48 = vsel %vm11088_vm3, %v9922_v30, %v3673_v50  ;;  %v10356_v13 = vsel %vm11087_vm1, %v9928_v10, %v3674_v47  ;;  %v3627_v61 = vsel %vm3607_vm5, %v3603_v32, %v9981_v53  ;;  %v3635_v20 = vsel %vm3609_vm13, %v3603_v32, %v9995_v40  ;;  %v11516_v6 = vld [vmem:[#allocation13_spill] sm:$0xff]  ;;  %vm11518_vm14 = vmmov %vm11505_vm6 }
 0x504   : >> { %11511 = vst [vmem:[#allocation17_spill] sm:$0xff] %v10350_v48  ;;  %v3628_v27 = vsel %vm3608_vm8, %v3604_v49, %v10021_v7  ;;  %v10371_v58 = vsub.f32 %v11513_v5, %v4219_v22  ;;  %v3636_v50 = vsel %vm3610_vm4, %v3604_v49, %v10035_v3  ;;  %v3643_v47 = vsel %vm11514_vm0, %v3603_v32, %v10001_v18 }
 0x505   : >> { %11512 = vst [vmem:[#allocation15_spill] sm:$0xff] %v10356_v13  ;;  %v3644_v21 = vsel %vm11515_vm11, %v3604_v49, %v10041_v51  ;;  %v4220_v13 = vclamps-f32 %v11516_v6, 1.0  ;;  %v10390_v22 = vsel %vm3605_vm2, %v3603_v32, %v9975_v59  ;;  %v3651_v5 = vsel %vm11518_vm14, %v3603_v32, %v10052_v35 }
 0x506   : >> { %11517 = vst [vmem:[#allocation13_spill] sm:$0xff] %v10390_v22  ;;  %v4221_v48 = vclamps-f32 %v3689_v54, 1.0  ;;  %v3709_v26 = vand.u32 2147483647, %v10332_v8  ;;  %vm11519_vm6 = vcmp.lt.f32.partialorder %v10116_v4, %v9765_v1  ;;  %v10407_v51 = vsel %vm3605_vm2, %v9975_v59, %v3627_v61 }
 0x507   : >> { %v10401_v43 = vsel %vm11519_vm6, %v3604_v49, %v10015_v41  ;;  %vm11521_vm9 = vmmov %vm11519_vm6  ;;  %v10419_v56 = vsel %vm3607_vm5, %v9981_v53, %v3635_v20  ;;  %v10425_v46 = vsel %vm3608_vm8, %v10021_v7, %v3636_v50  ;;  %v10431_v1 = vsel %vm3609_vm13, %v9995_v40, %v3643_v47 }
 0x508   : >> { %11520 = vst [vmem:[#allocation18_spill] sm:$0xff] %v10401_v43  ;;  %v10413_v22 = vsel %vm11521_vm9, %v10015_v41, %v3628_v27  ;;  %v10437_v39 = vsel %vm3610_vm4, %v10035_v3, %v3644_v21  ;;  %vm11526_vm2 = vcmp.lt.f32.partialorder %v10116_v4, %v11489_v34  ;;  %vm11527_vm5 = vmmov %vm11514_vm0  ;;  %v10461_v53 = vsel %vm11089_vm15, %v3604_v49, %v10086_v55 }
 0x509   : >> { %11522 = vst [vmem:[#allocation19_spill] sm:$0xff] %v10413_v22  ;;  %v10443_v28 = vsel %vm11526_vm2, %v3604_v49, %v10074_v29  ;;  %v10449_v16 = vsel %vm11527_vm5, %v10001_v18, %v3651_v5  ;;  %vm11529_vm8 = vmmov %vm11509_vm12  ;;  %v3699_v59 = vsub.f32 %v11516_v6, %v4220_v13  ;;  %v3700_v40 = vsub.f32 %v3689_v54, %v4221_v48  ;;  %v10491_v13 = vld [vmem:[%s6294_s16 + $0x328] sm:$0xff] }
 0x50a   : >> { %11523 = vst [vmem:[#allocation20_spill] sm:$0xff] %v10425_v46  ;;  %v10455_v45 = vsel %vm11529_vm8, %v3603_v32, %v10080_v62  ;;  %v3710_v41 = vand.u32 2147483647, %v10371_v58  ;;  %v10465_v44 = vadd.f32 1e-08, %v3709_v26  ;;  %v3743_v18 = vmul.f32 %v10332_v8, %v10332_v8  ;;  %v10488_v26 = vld [vmem:[%s6294_s16 + $0x320] sm:$0xff] }
 0x50b   : >> { %11524 = vst [vmem:[#allocation21_spill] sm:$0xff] %v10431_v1  ;;  %v10473_v7 = vsel %vm11088_vm3, %v3603_v32, %v10092_v60  ;;  %v10479_v3 = vsel %vm11087_vm1, %v3604_v49, %v10101_v33  ;;  %v10485_v54 = vsel %vm3619_vm10, %v3603_v32, %v10107_v9  ;;  %v3701_v48 = vand.u32 2147483647, %v3699_v59 }
 0x50c   : >> { %11525 = vst [vmem:[#allocation22_spill] sm:$0xff] %v10437_v39  ;;  %v3702_v61 = vand.u32 2147483647, %v3700_v40  ;;  %v10493_v27 = vadd.f32 1e-08, %v3710_v41  ;;  %4627 = vrcp.f32 %v10465_v44  ;;  %v3744_v20 = vmul.f32 %v10371_v58, %v10371_v58  ;;  %v11538_v43 = vld [vmem:[#allocation15_spill] sm:$0xff] }
 0x50d   : >> { %11528 = vst [vmem:[#allocation23_spill] sm:$0xff] %v10449_v16  ;;  %v3703_v50 = vadd.f32 1.0, %v3701_v48  ;;  %v3722_v47 = vand.u32 2147483647, %v10465_v44  ;;  %v3724_v25 = vand.u32 2147483648, %v10465_v44  ;;  %v3745_v9 = vadd.f32 1.0, %v3743_v18 }
 0x50e   : >> { %v10504_v32 = vsel %vm3620_vm7, %v3604_v49, %v10113_v63  ;;  %v3704_v21 = vadd.f32 1.0, %v3702_v61  ;;  %4629 = vrcp.f32 %v10493_v27  ;;  %vm3759_vm13 = vcmp.lt.f32.partialorder %v10488_v26, %v10178_v36 }
 0x50f   : >> { %4631 = vrcp.f32 %v3703_v50  ;;  %v3737_v6 = vand.u32 2147483647, %v10493_v27  ;;  %v3739_v5 = vand.u32 2147483648, %v10493_v27  ;;  %vm3760_vm4 = vcmp.lt.f32.partialorder %v10491_v13, %v10214_v37 }
 0x510   : >> { %4633 = vrcp.f32 %v3704_v21  ;;  %vm3718_vm10 = vweird.f32 %v10465_v44  ;;  %vm3733_vm7 = vweird.f32 %v10493_v27  ;;  %v3746_v63 = vadd.f32 1.0, %v3744_v20 }
 0x511   : >> { %vm10515_vm12 = vcmp.eq.f32.partialorder %v3722_v47, 8.507059e+37  ;;  %v3725_v49 = vor.u32 1.1754944e-38, %v3724_v25  ;;  %v10519_v41 = vor.u32 1.1754944e-38, %v3739_v5  ;;  %4635 = vlog2.f32 %v3745_v9  ;;  %v11534_v9 = vld [vmem:[#allocation16_spill] sm:$0xff]  ;;  %v11535_v5 = vld [vmem:[#allocation17_spill] sm:$0xff] }
 0x512   : >> { %vm3761_vm0 = vcmp.lt.f32.partialorder %v10488_v26, %v10220_v52  ;;  %v4628_v18 = vpop.eup %4627  ;;  %4637 = vlog2.f32 %v3746_v63  ;;  %vm3762_vm11 = vcmp.lt.f32.partialorder %v10491_v13, %v10227_v17  ;;  %vm3763_vm14 = vcmp.lt.f32.partialorder %v10488_v26, %v10238_v24 }
 0x513   : >> { %v3714_v48 = vmul.f32 %v4628_v18, %v10465_v44  ;;  %vm3719_vm9 = vweird.f32 %v4628_v18  ;;  %vm10530_vm2 = vcmp.eq.f32.partialorder %v3737_v6, 8.507059e+37  ;;  %vm3769_vm15 = vcmp.lt.f32.partialorder %v10488_v26, %v10321_v0 }
 0x514   : >> { %v4630_v20 = vpop.eup %4629  ;;  %vm3770_vm6 = vcmp.lt.f32.partialorder %v10491_v13, %v10328_v12  ;;  %vm3771_vm8 = vcmp.lt.f32.partialorder %v10488_v26, %v10338_v19  ;;  %v10558_v63 = vsel %vm3759_vm13, %v10488_v26, %v10178_v36   ;;  %v10565_v39 = vsel %vm3760_vm4, %v10491_v13, %v10214_v37   ;;  %vm10577_vm1 = vmor %vm3718_vm10, %vm3719_vm9 }
 0x515   : >> { %v4632_v50 = vpop.eup %4631  ;;  %v3715_v47 = vsub.f32 1.0, %v3714_v48  ;;  %v3729_v25 = vmul.f32 %v4630_v20, %v10493_v27  ;;  %vm3734_vm5 = vweird.f32 %v4630_v20  ;;  %11536 = vst [vmem:[#allocation24_spill] sm:$0xff] %v10558_v63  ;;  %vm3774_vm3 = vcmp.lt.f32.partialorder %v10491_v13, %v11538_v43 }
 0x516   : >> { %v4634_v21 = vpop.eup %4633  ;;  %v3707_v6 = vmul.f32 %v4632_v50, %v3699_v59  ;;  %11537 = vst [vmem:[#allocation25_spill] sm:$0xff] %v10565_v39  ;;  %v3779_v63 = vsel %vm3761_vm0, %v10488_v26, %v10220_v52  ;;  %vm10595_vm10 = vmor %vm3733_vm7, %vm3734_vm5  ;;  %vm11545_vm7 = vcmp.lt.f32.partialorder %v10491_v13, %v10244_v23  ;;  %vm11546_vm9 = vcmp.lt.f32.partialorder %v10488_v26, %v10270_v31 }
 0x517   : >> { %v4636_v46 = vpop.eup %4635  ;;  %v3708_v22 = vmul.f32 %v4634_v21, %v3700_v40  ;;  %v3716_v59 = vmul.f32 %v4628_v18, %v3715_v47  ;;  %v3730_v50 = vsub.f32 1.0, %v3729_v25  ;;  %v3780_v25 = vsel %vm3762_vm11, %v10491_v13, %v10227_v17 }
 0x518   : >> { %v4638_v48 = vpop.eup %4637  ;;  %v3748_v40 = vmul.f32 0.6931472, %v4636_v46  ;;  %v3751_v47 = vsub.f32 0.0, %v3707_v6  ;;  %v10590_v63 = vsel %vm3759_vm13, %v10178_v36, %v3779_v63   ;;  %v10603_v6 = vsel %vm3760_vm4, %v10214_v37, %v3780_v25  }
 0x519   : >> { %11541 = vst [vmem:[#allocation26_spill] sm:$0xff] %v10590_v63  ;;  %v3717_v21 = vadd.f32 %v4628_v18, %v3716_v59  ;;  %v3731_v44 = vmul.f32 %v4630_v20, %v3730_v50  ;;  %v3750_v39 = vmul.f32 0.6931472, %v4638_v48  ;;  %v3752_v1 = vsub.f32 0.0, %v3708_v22 }
 0x51a   : >> { %11544 = vst [vmem:[#allocation27_spill] sm:$0xff] %v10603_v6  ;;  %v3787_v48 = vsel %vm3763_vm14, %v10488_v26, %v10238_v24  ;;  %v3788_v22 = vsel %vm11545_vm7, %v10491_v13, %v10244_v23  ;;  %v3795_v27 = vsel %vm11546_vm9, %v10488_v26, %v10270_v31  ;;  %vm11550_vm5 = vcmp.lt.f32.partialorder %v10488_v26, %v10309_v14 }
 0x51b   : >> { %v3721_v59 = vsel %vm10577_vm1, %v4628_v18, %v3717_v21  ;;  %v3732_v50 = vadd.f32 %v4630_v20, %v3731_v44  ;;  %v10626_v25 = vsel %vm3761_vm0, %v10220_v52, %v3787_v48   ;;  %v10632_v6 = vsel %vm3762_vm11, %v10227_v17, %v3788_v22   ;;  %v11583_v52 = vld [vmem:[#allocation20_spill] sm:$0xff] }
 0x51c   : >> { %v11547_v63 = vmov %v10626_v25  ;;  %v11548_v10 = vmov %v10632_v6  ;;  %v3726_v37 = vsel %vm10515_vm12, %v3725_v49, %v3721_v59  ;;  %vm11549_vm1 = vcmp.lt.f32.partialorder %v10491_v13, %v10303_v38  ;;  %vm11551_vm12 = vmmov %vm11545_vm7 }
 0x51d   : >> { %v3796_v16 = vsel %vm11549_vm1, %v10491_v13, %v10303_v38  ;;  %v10645_v18 = vsel %vm3763_vm14, %v10238_v24, %v3795_v27   ;;  %v3803_v21 = vsel %vm11550_vm5, %v10488_v26, %v10309_v14  ;;  %v3727_v57 = vmul.f32 %v3726_v37, %v10332_v8 }
 0x51e   : >> { %v3736_v49 = vsel %vm10595_vm10, %v4630_v20, %v3732_v50  ;;  %v10659_v44 = vsel %vm11551_vm12, %v10244_v23, %v3796_v16   ;;  %vm11552_vm7 = vcmp.lt.f32.partialorder %v10491_v13, %v10315_v2  ;;  %vm11553_vm10 = vmmov %vm11546_vm9  ;;  %v3811_v46 = vsel %vm3769_vm15, %v10488_v26, %v10321_v0 }
 0x51f   : >> { %v3804_v48 = vsel %vm11552_vm7, %v10491_v13, %v10315_v2  ;;  %v3741_v22 = vsel %vm10530_vm2, %v10519_v41, %v3736_v49  ;;  %v10673_v37 = vsel %vm11553_vm10, %v10270_v31, %v3803_v21   ;;  %vm11554_vm9 = vmmov %vm11549_vm1  ;;  %v3753_v61 = vmul.f32 %v3751_v47, %v3727_v57  ;;  %v11560_v49 = vld [vmem:[#allocation11_spill] sm:$0xff] }
 0x520   : >> { %v10679_v8 = vsel %vm11554_vm9, %v10303_v38, %v3804_v48   ;;  %v3742_v41 = vmul.f32 %v3741_v22, %v10371_v58  ;;  %v3812_v27 = vsel %vm3770_vm6, %v10491_v13, %v10328_v12  ;;  %vm11556_vm2 = vmmov %vm11550_vm5  ;;  %v3819_v58 = vsel %vm3771_vm8, %v10488_v26, %v10338_v19  ;;  %v11561_v48 = vld [vmem:[#allocation12_spill] sm:$0xff] }
 0x521   : >> { %v11555_v20 = vmov %v10679_v8  ;;  %v10696_v59 = vsel %vm11556_vm2, %v10309_v14, %v3811_v46   ;;  %vm11557_vm1 = vmmov %vm11552_vm7  ;;  %vm11558_vm5 = vcmp.lt.f32.partialorder %v10491_v13, %v11534_v9  ;;  %vm11559_vm12 = vcmp.lt.f32.partialorder %v10488_v26, %v11535_v5 }
 0x522   : >> { %v10702_v25 = vsel %vm11557_vm1, %v10315_v2, %v3812_v27   ;;  %v3820_v47 = vsel %vm11558_vm5, %v10491_v13, %v11534_v9  ;;  %v3827_v50 = vsel %vm11559_vm12, %v10488_v26, %v11535_v5  ;;  %v3754_v6 = vmul.f32 %v3752_v1, %v3742_v41  ;;  %v11563_v1 = vld [vmem:[#allocation9_spill] sm:$0xff]  ;;  %vm11566_vm2 = vmmov %vm11558_vm5  ;;  %v11580_v27 = vld [vmem:[#allocation18_spill] sm:$0xff] }
 0x523   : >> { %v3755_v16 = vmul.f32 %v3753_v61, %v3748_v40  ;;  %v10723_v21 = vsel %vm3769_vm15, %v10321_v0, %v3819_v58   ;;  %v10729_v57 = vsel %vm3770_vm6, %v10328_v12, %v3820_v47   ;;  %vm11562_vm7 = vcmp.lt.f32.partialorder %v10116_v4, %v11561_v48  ;;  %v11582_v58 = vld [vmem:[#allocation19_spill] sm:$0xff] }
 0x524   : >> { %v3656_v22 = vsel %vm11562_vm7, %v11560_v49, %v10443_v28  ;;  %vm11564_vm10 = vcmp.lt.f32.partialorder %v10095_v42, %v11563_v1  ;;  %v3828_v8 = vsel %vm3774_vm3, %v10491_v13, %v11538_v43  ;;  %v3831_v61 = vsel %vm3771_vm8, %v10338_v19, %v3827_v50  }
 0x525   : >> { %v3663_v40 = vsel %vm11564_vm10, %v10052_v35, %v10455_v45  ;;  %vm11565_vm9 = vcmp.lt.f32.partialorder %v10116_v4, %v11489_v34  ;;  %v3756_v46 = vmul.f32 %v3754_v6, %v3750_v39  ;;  %v3757_v41 = vmax.f32 %v3755_v16, 0.0  ;;  %v11570_v39 = vld [vmem:[#allocation14_spill] sm:$0xff] }
 0x526   : >> { %v3664_v28 = vsel %vm11565_vm9, %v10074_v29, %v10461_v53  ;;  %v3832_v35 = vsel %vm11566_vm2, %v11534_v9, %v3828_v8   ;;  %vm11567_vm1 = vcmp.lt.f32.partialorder %v10095_v42, %v9903_v11  ;;  %vm11568_vm5 = vcmp.lt.f32.partialorder %v10116_v4, %v9909_v15  ;;  %v11585_v6 = vld [vmem:[#allocation22_spill] sm:$0xff] }
 0x527   : >> { %v3671_v45 = vsel %vm11567_vm1, %v10080_v62, %v10473_v7  ;;  %v3672_v34 = vsel %vm11568_vm5, %v10086_v55, %v10479_v3  ;;  %vm11569_vm12 = vcmp.lt.f32.partialorder %v10095_v42, %v9922_v30  ;;  %vm11571_vm7 = vcmp.lt.f32.partialorder %v10116_v4, %v11570_v39  ;;  %v11572_v62 = vld [vmem:[#allocation13_spill] sm:$0xff] }
 0x528   : >> { %v3679_v29 = vsel %vm11569_vm12, %v10092_v60, %v10485_v54  ;;  %v3680_v53 = vsel %vm11571_vm7, %v10101_v33, %v10504_v32  ;;  %v3758_v11 = vmax.f32 %v3756_v46, 0.0  ;;  %v10783_v55 = vsel %vm3759_vm13, %v3757_v41, %v11572_v62   ;;  %v11576_v4 = vld [vmem:[#allocation21_spill] sm:$0xff]  ;;  %v11578_v54 = vld [vmem:[#allocation23_spill] sm:$0xff] }
 0x529   : >> { %v11573_v15 = vmov %v10783_v55  ;;  %v3781_v7 = vsel %vm3761_vm0, %v3757_v41, %v10407_v51  ;;  %v3789_v30 = vsel %vm3763_vm14, %v3757_v41, %v10419_v56  ;;  %vm11577_vm10 = vcmp.lt.f32.partialorder %v10488_v26, %v10270_v31 }
 0x52a   : >> { %v10797_v60 = vsel %vm3759_vm13, %v11572_v62, %v3781_v7   ;;  %v10803_v55 = vsel %vm3761_vm0, %v10407_v51, %v3789_v30   ;;  %v3797_v3 = vsel %vm11577_vm10, %v3757_v41, %v11576_v4  ;;  %vm11579_vm9 = vcmp.lt.f32.partialorder %v10488_v26, %v10309_v14  ;;  %v11624_v62 = vld [vmem:[#allocation27_spill] sm:$0xff]  ;;  %v11627_v30 = vld [vmem:[#allocation24_spill] sm:$0xff] }
 0x52b   : >> { %v11574_v42 = vmov %v10797_v60  ;;  %v11575_v33 = vmov %v10803_v55  ;;  %v3805_v32 = vsel %vm11579_vm9, %v3757_v41, %v11578_v54  ;;  %v3778_v50 = vsel %vm3760_vm4, %v3758_v11, %v11580_v27  }
 0x52c   : >> { %v3782_v51 = vsel %vm3762_vm11, %v3758_v11, %v11582_v58  ;;  %vm11584_vm13 = vcmp.lt.f32.partialorder %v10491_v13, %v10244_v23  ;;  %vm11586_vm0 = vcmp.lt.f32.partialorder %v10491_v13, %v10303_v38  ;;  %v3801_v39 = vsel %vm3763_vm14, %v10419_v56, %v3797_v3   ;;  %vm11591_vm14 = vmmov %vm11579_vm9 }
 0x52d   : >> { %v3790_v47 = vsel %vm11584_vm13, %v3758_v11, %v11583_v52  ;;  %v3798_v16 = vsel %vm11586_vm0, %v3758_v11, %v11585_v6  ;;  %v3786_v49 = vsel %vm3760_vm4, %v11580_v27, %v3782_v51   ;;  %vm11587_vm2 = vmmov %vm11584_vm13  ;;  %vm11588_vm1 = vcmp.lt.f32.partialorder %v10491_v13, %v10315_v2 }
 0x52e   : >> { %v3794_v48 = vsel %vm3762_vm11, %v11582_v58, %v3790_v47   ;;  %v3802_v7 = vsel %vm11587_vm2, %v11583_v52, %v3798_v16   ;;  %v3806_v1 = vsel %vm11588_vm1, %v3758_v11, %v3656_v22  ;;  %vm11589_vm4 = vmmov %vm11577_vm10  ;;  %v3813_v17 = vsel %vm3769_vm15, %v3757_v41, %v3663_v40 }
 0x52f   : >> { %v3809_v36 = vsel %vm11589_vm4, %v11576_v4, %v3805_v32   ;;  %v3814_v56 = vsel %vm3770_vm6, %v3758_v11, %v3664_v28  ;;  %vm11590_vm11 = vmmov %vm11586_vm0  ;;  %v3817_v3 = vsel %vm11591_vm14, %v11578_v54, %v3813_v17   ;;  %v3821_v24 = vsel %vm3771_vm8, %v3757_v41, %v3671_v45 }
 0x530   : >> { %v3810_v23 = vsel %vm11590_vm11, %v11585_v6, %v3806_v1   ;;  %vm11592_vm5 = vmmov %vm11588_vm1  ;;  %vm11593_vm12 = vcmp.lt.f32.partialorder %v10491_v13, %v11534_v9  ;;  %v3825_v38 = vsel %vm3769_vm15, %v3663_v40, %v3821_v24   ;;  %vm11594_vm7 = vcmp.lt.f32.partialorder %v10488_v26, %v11535_v5 }
 0x531   : >> { %v3818_v31 = vsel %vm11592_vm5, %v3656_v22, %v3814_v56   ;;  %v3822_v8 = vsel %vm11593_vm12, %v3758_v11, %v3672_v34  ;;  %v3829_v14 = vsel %vm11594_vm7, %v3757_v41, %v3679_v29  ;;  %v3830_v2 = vsel %vm3774_vm3, %v3758_v11, %v3680_v53  ;;  %vm11595_vm10 = vmmov %vm11593_vm12 }
 0x532   : >> { %v3826_v54 = vsel %vm3770_vm6, %v3664_v28, %v3822_v8   ;;  %v3833_v32 = vsel %vm3771_vm8, %v3671_v45, %v3829_v14   ;;  %v3834_v40 = vsel %vm11595_vm10, %v3672_v34, %v3830_v2   ;;  %v11600_v47 = vmov %v3825_v38 }
 0x533   : >> { %v11597_v41 = vmov %v3834_v40  ;;  %v11598_v45 = vmov %v3833_v32  ;;  %v11599_v46 = vmov %v3826_v54  ;;  %v11601_v51 = vmov %v3818_v31 }
 0x534   : >> { %v11602_v1 = vmov %v3817_v3  ;;  %v11603_v4 = vmov %v3810_v23  ;;  %v11604_v0 = vmov %v3809_v36  ;;  %v11605_v52 = vmov %v3802_v7 }
 0x535   : >> { %v11606_v6 = vmov %v3801_v39  ;;  %v11607_v8 = vmov %v3794_v48  ;;  %v11608_v12 = vmov %v11575_v33  ;;  %v11609_v13 = vmov %v3786_v49  ;;  %2107 = sbr.rel (!%p10896_p4) target bundleno = 927 (0x39f), region = 138 }
 0x536   : >> { %v11610_v14 = vmov %v11574_v42  ;;  %v11611_v17 = vmov %v3778_v50  ;;  %v11612_v55 = vmov %v11573_v15  ;;  %v11613_v19 = vmov %v3832_v35 }
 0x537   : >> { %v11614_v22 = vmov %v3831_v61  ;;  %v11615_v56 = vmov %v10729_v57  ;;  %v11616_v24 = vmov %v10723_v21  ;;  %v11617_v26 = vmov %v10696_v59 }
 0x538   : >> { %v11618_v28 = vmov %v11555_v20  ;;  %v11619_v60 = vmov %v10673_v37  ;;  %v11620_v57 = vmov %v10659_v44  ;;  %v11621_v58 = vmov %v10645_v18 }
 0x539   : >> { %v11622_v27 = vmov %v11548_v10  ;;  %v11623_v61 = vmov %v11547_v63  ;;  %v11625_v63 = vld [vmem:[#allocation26_spill] sm:$0xff]  ;;  %v11626_v10 = vld [vmem:[#allocation25_spill] sm:$0xff]  ;;  %v3835_v43 = vadd.f32 (%p10896_p4), %v11574_v42, %v11573_v15  ;;  %v3836_v9 = vadd.f32 (%p10896_p4), %v3786_v49, %v3778_v50 }
 0x53a   : > { %vm11629_vm15 = vcmask 130048   ;;  %vm3862_vm6 = vcmask 0  }
 0x53b   : > { %v3837_v5 = vadd.f32 %v3835_v43, %v11575_v33  ;;  %v3838_v18 = vadd.f32 %v3836_v9, %v3794_v48  ;;  %vm11630_vm3 = vmmov %vm11629_vm15 }
 0x53d   : > { %v3839_v44 = vadd.f32 %v3837_v5, %v3801_v39  ;;  %v3840_v37 = vadd.f32 %v3838_v18, %v3802_v7 }
 0x53f   : > { %v3841_v20 = vadd.f32 %v3839_v44, %v3809_v36  ;;  %v3842_v59 = vadd.f32 %v3840_v37, %v3810_v23 }
 0x541   : > { %v3843_v21 = vadd.f32 %v3841_v20, %v3817_v3  ;;  %v3844_v35 = vadd.f32 %v3842_v59, %v3818_v31 }
 0x543   : > { %v3845_v34 = vadd.f32 %v3843_v21, %v3825_v38  ;;  %v3846_v53 = vadd.f32 %v3844_v35, %v3826_v54 }
 0x545   : > { %v3847_v29 = vadd.f32 %v3845_v34, %v3833_v32  ;;  %v3848_v10 = vadd.f32 %v3846_v53, %v3834_v40 }
 0x547   : > { %v3849_v11 = vsel %vm11629_vm15, %v3847_v29, 0.0  ;;  %v3852_v0 = vsel %vm11630_vm3, %v3848_v10, 0.0 }
 0x548   : > { %3850 = vadd.xlane.f32.xlu0 %v3849_v11 }
 0x550   : > { %3853 = vadd.xlane.f32.xlu0 %v3852_v0 }
 0x5bb   : > { %v3851_v12 = vpop.xlane.xlu0 %3850 }
 0x5c3   : > { %v3854_v19 = vpop.xlane.xlu0 %3853 }
 0x5c4   : > { %v3855_v26 = vadd.f32 %v3854_v19, %v3851_v12 }
 0x5c6   : > { %v3856_v13 = vrot.slane %v3855_v26, 4 }
 0x5c8   : > { %v3857_v63 = vadd.f32 %v3856_v13, %v3855_v26 }
 0x5ca   : > { %v3858_v25 = vrot.slane %v3857_v63, 2 }
 0x5cc   : > { %v3859_v57 = vadd.f32 %v3858_v25, %v3857_v63 }
 0x5ce   : > { %v3860_v22 = vrot.slane %v3859_v57, 1 }
 0x5d0   : > { %v3861_v61 = vadd.f32 %v3860_v22, %v3859_v57 }
 0x5d2   : > { %3863 = vst.msk [vmem:[%s206_s17] sm:$0x1] %vm3862_vm6, %v3861_v61 }
 0x5d3 PF: > { %s13_s12 = sadd.s32 1, %s4777_s12  }
 0x5d4   : > { %p10_p5 = scmp.ge.s32.totalorder %s13_s12, 6  }
 0x5d6   :  { %12 = sbr.rel (!%p10_p5) target bundleno = 1 (0x1), region = 149 }

</bundles_post_ra>
